<compile_context>
chip_gen: v7x
topology: tpu7x:2x2x1
jax: 0.10.0
libtpu: 0.0.40
codegen_flags: <defaults>
</compile_context>

<pallas_src>
import functools

import jax
import jax.numpy as jnp
from jax.experimental import pallas as pl
from jax.experimental.pallas import tpu as pltpu

BN_EPS = 1e-5
_MIB = 1024 * 1024


def _round_up(x, m):
    return ((x + m - 1) // m) * m


def _vmem_budget_bytes():
    """~75% of this generation's physical VMEM (128 MiB v5e/v6e, 64 MiB/TC v7x)."""
    cap = 64 * _MIB
    try:
        info = pltpu.get_tpu_info()
        cap = int(getattr(info, "vmem_capacity_bytes", cap)) or cap
    except Exception:
        pass
    return max(40 * _MIB, min((cap * 3) // 4, 96 * _MIB))


def _fused_vmem_bytes(n_pad, d_pad):
    """Conservative VMEM footprint estimate of the fused (A-resident) kernel."""
    a = 2 * n_pad * n_pad * 2            # A_norm bf16 (default double-buffered)
    h0 = 2 * n_pad * d_pad * 2           # initial activations bf16
    out = 2 * n_pad * d_pad * 4          # output f32
    scratch = n_pad * d_pad * 2          # resident h scratch bf16
    weights = 2 * (d_pad * d_pad * 2 + 3 * d_pad * 4)
    temps = n_pad * d_pad * (2 + 4 + 4)  # xw bf16, agg f32, y f32
    return int(1.25 * (a + h0 + out + scratch + weights + temps))


def _choose_tiles(n_true):
    """Row tile TM / contraction tile TK for the tiled (fallback) A @ xw path."""
    n128 = _round_up(max(int(n_true), 1), 128)
    tm = min(512, n128)
    n_pad = _round_up(n128, tm)
    # Keep the parallel row axis even so v7x's two TensorCores split it evenly.
    while (n_pad // tm) % 2 == 1 and (n_pad // tm) > 1 and tm > 256:
        tm //= 2
        n_pad = _round_up(n128, tm)
    tk = max(t for t in (2048, 1024, 512, 256, 128) if n_pad % t == 0)
    return n_pad, tm, tk


def _resident_spec(block_shape, index_map):
    """Constant-index operand: single pipeline buffer when supported (review item)."""
    try:
        return pl.BlockSpec(block_shape, index_map, pipeline_mode=pl.Buffered(1))
    except Exception:  # pragma: no cover - older JAX without pipeline_mode
        return pl.BlockSpec(block_shape, index_map)


# ---------------------------------------------------------------------------
# Fused path: one pallas_call for all layers, A_norm VMEM-resident across layers.
# ---------------------------------------------------------------------------
def _fused_layers_kernel(a_ref, h0_ref, wt_ref, b_ref, gamma_ref, beta_ref,
                         out_ref, h_ref, *, n_true, num_layer):
    layer = pl.program_id(0)
    inv_n = 1.0 / float(n_true)

    @pl.when(layer == 0)
    def _init():
        h_ref[...] = h0_ref[...]

    # Linear: xw = h @ W^T + b  (bf16 MXU operands, f32 accumulation).
    xw = jnp.dot(h_ref[...], wt_ref[0], preferred_element_type=jnp.float32) + b_ref[0]
    xw = xw.astype(jnp.bfloat16)

    # GCN message + add-aggregate: agg = A_norm @ xw.
    # Padded rows/cols of A_norm are zero, so padded xw rows never pollute real rows
    # and padded agg rows are exactly zero (keeps the BN sums exact).
    agg = jnp.dot(a_ref[...], xw, preferred_element_type=jnp.float32)

    # BatchNorm1d (training mode, biased variance over the true node count).
    # Two-pass variance with padded rows masked out (avoids E[x^2]-mean^2 cancellation).
    mean = jnp.sum(agg, axis=0, keepdims=True) * inv_n
    row_ids = jax.lax.broadcasted_iota(jnp.int32, agg.shape, 0)
    centered = jnp.where(row_ids < n_true, agg - mean, 0.0)
    var = jnp.sum(centered * centered, axis=0, keepdims=True) * inv_n
    scale = jax.lax.rsqrt(var + BN_EPS) * gamma_ref[0]
    shift = beta_ref[0] - mean * scale
    y = agg * scale + shift

    @pl.when(layer < num_layer - 1)
    def _not_last():
        # ReLU (drop_ratio=0 -> dropout is identity); bf16 feed for the next MXU pass.
        h_ref[...] = jnp.maximum(y, 0.0).astype(h_ref.dtype)

    @pl.when(layer == num_layer - 1)
    def _last():
        out_ref[...] = y            # JK='last': final layer is BN only (no ReLU), f32.


def _forward_fused(a_norm, h0, wt_all, b_all, gamma_all, beta_all, *, n_true, vmem_limit):
    num_layer, d_pad = int(wt_all.shape[0]), int(wt_all.shape[1])
    n_pad = int(a_norm.shape[0])
    kernel = functools.partial(_fused_layers_kernel, n_true=n_true, num_layer=num_layer)
    flops = num_layer * (2 * n_pad * d_pad * d_pad + 2 * n_pad * n_pad * d_pad)
    bytes_accessed = (n_pad * n_pad * 2 + n_pad * d_pad * 2 + n_pad * d_pad * 4
                      + num_layer * (d_pad * d_pad * 2 + 3 * d_pad * 4))
    return pl.pallas_call(
        kernel,
        out_shape=jax.ShapeDtypeStruct((n_pad, d_pad), jnp.float32),
        grid_spec=pltpu.PrefetchScalarGridSpec(
            num_scalar_prefetch=0,
            grid=(num_layer,),
            in_specs=[
                pl.BlockSpec((n_pad, n_pad), lambda l: (0, 0)),        # A_norm, resident
                pl.BlockSpec((n_pad, d_pad), lambda l: (0, 0)),        # initial h
                pl.BlockSpec((1, d_pad, d_pad), lambda l: (l, 0, 0)),  # per-layer W^T
                pl.BlockSpec((1, 1, d_pad), lambda l: (l, 0, 0)),      # bias
                pl.BlockSpec((1, 1, d_pad), lambda l: (l, 0, 0)),      # gamma
                pl.BlockSpec((1, 1, d_pad), lambda l: (l, 0, 0)),      # beta
            ],
            out_specs=pl.BlockSpec((n_pad, d_pad), lambda l: (0, 0)),
            scratch_shapes=[pltpu.VMEM((n_pad, d_pad), jnp.bfloat16)],  # resident h
        ),
        compiler_params=pltpu.CompilerParams(
            dimension_semantics=("arbitrary",),
            vmem_limit_bytes=vmem_limit),
        cost_estimate=pl.CostEstimate(flops=flops, transcendentals=0,
                                      bytes_accessed=bytes_accessed),
    )(a_norm, h0, wt_all, b_all, gamma_all, beta_all)


# ---------------------------------------------------------------------------
# Tiled fallback path (graphs whose A_norm does not fit in VMEM).
# ---------------------------------------------------------------------------
def _embed_linear_kernel(h_ref, wt_ref, b_ref, xw_ref):
    xw = jnp.dot(h_ref[...], wt_ref[...], preferred_element_type=jnp.float32) + b_ref[...]
    xw_ref[...] = xw.astype(xw_ref.dtype)


def embed_linear_pallas(h_bf16, wt_bf16, b, *, tm, vmem_limit):
    n_pad, d_pad = h_bf16.shape
    return pl.pallas_call(
        _embed_linear_kernel,
        out_shape=jax.ShapeDtypeStruct((n_pad, d_pad), jnp.bfloat16),
        grid_spec=pltpu.PrefetchScalarGridSpec(
            num_scalar_prefetch=0,
            grid=(n_pad // tm,),
            in_specs=[
                pl.BlockSpec((tm, d_pad), lambda i: (i, 0)),
                _resident_spec((d_pad, d_pad), lambda i: (0, 0)),
                _resident_spec((1, d_pad), lambda i: (0, 0)),
            ],
            out_specs=pl.BlockSpec((tm, d_pad), lambda i: (i, 0)),
        ),
        compiler_params=pltpu.CompilerParams(
            dimension_semantics=("parallel",), vmem_limit_bytes=vmem_limit),
    )(h_bf16, wt_bf16, b)


def _agg_stats_kernel(a_ref, xw_ref, agg_ref, psum_ref, psq_ref):
    k = pl.program_id(1)
    tk = a_ref.shape[1]

    @pl.when(k == 0)
    def _init():
        agg_ref[...] = jnp.zeros_like(agg_ref)

    start = pl.multiple_of(k * tk, tk)
    agg_ref[...] += jnp.dot(a_ref[...], xw_ref[pl.ds(start, tk), :],
                            preferred_element_type=jnp.float32)

    @pl.when(k == pl.num_programs(1) - 1)
    def _finalize():
        acc = agg_ref[...]
        s = jnp.sum(acc, axis=0, keepdims=True)            # [1, D]
        sq = jnp.sum(acc * acc, axis=0, keepdims=True)     # [1, D]
        psum_ref[...] = jnp.broadcast_to(s[None], psum_ref.shape)
        psq_ref[...] = jnp.broadcast_to(sq[None], psq_ref.shape)


def aggregate_pallas(a_bf16, xw_bf16, *, tm, tk, vmem_limit):
    n_pad = a_bf16.shape[0]
    d_pad = xw_bf16.shape[1]
    ni, nk = n_pad // tm, n_pad // tk
    flops = 2 * n_pad * n_pad * d_pad
    bytes_accessed = (n_pad * n_pad * 2 + n_pad * d_pad * 2
                      + n_pad * d_pad * 4 + 2 * ni * 8 * d_pad * 4)
    return pl.pallas_call(
        _agg_stats_kernel,
        out_shape=(
            jax.ShapeDtypeStruct((n_pad, d_pad), jnp.float32),
            jax.ShapeDtypeStruct((ni, 8, d_pad), jnp.float32),
            jax.ShapeDtypeStruct((ni, 8, d_pad), jnp.float32),
        ),
        grid_spec=pltpu.PrefetchScalarGridSpec(
            num_scalar_prefetch=0,
            grid=(ni, nk),
            in_specs=[
                pl.BlockSpec((tm, tk), lambda i, k: (i, k)),             # A tiles
                _resident_spec((n_pad, d_pad), lambda i, k: (0, 0)),     # xw, single buffer
            ],
            out_specs=(
                pl.BlockSpec((tm, d_pad), lambda i, k: (i, 0)),          # accumulate in-place
                pl.BlockSpec((1, 8, d_pad), lambda i, k: (i, 0, 0)),
                pl.BlockSpec((1, 8, d_pad), lambda i, k: (i, 0, 0)),
            ),
        ),
        compiler_params=pltpu.CompilerParams(
            dimension_semantics=("parallel", "arbitrary"),
            vmem_limit_bytes=vmem_limit),
        cost_estimate=pl.CostEstimate(flops=flops, transcendentals=0,
                                      bytes_accessed=bytes_accessed),
    )(a_bf16, xw_bf16)


def _bn_scale_shift(psum, psq, gamma, beta, n_true):
    """Tiny [1, D] BN scale/shift computed once per layer (hoisted out of the row grid)."""
    s = jnp.sum(psum[:, 0, :], axis=0, keepdims=True)
    sq = jnp.sum(psq[:, 0, :], axis=0, keepdims=True)
    mean = s / n_true
    var = sq / n_true - mean * mean   # TODO(synk): Welford if cancellation ever bites here
    scale = jax.lax.rsqrt(var + BN_EPS) * gamma
    shift = beta - mean * scale
    return scale, shift


def _bn_relu_linear_kernel(agg_ref, scale_ref, shift_ref, wt_ref, b_ref, xw_ref):
    y = jnp.maximum(agg_ref[...] * scale_ref[...] + shift_ref[...], 0.0)
    xw = jnp.dot(y.astype(jnp.bfloat16), wt_ref[...],
                 preferred_element_type=jnp.float32) + b_ref[...]
    xw_ref[...] = xw.astype(xw_ref.dtype)


def bn_relu_linear_pallas(agg, scale, shift, wt_bf16, b, *, tm, vmem_limit):
    n_pad, d_pad = agg.shape
    return pl.pallas_call(
        _bn_relu_linear_kernel,
        out_shape=jax.ShapeDtypeStruct((n_pad, d_pad), jnp.bfloat16),
        grid_spec=pltpu.PrefetchScalarGridSpec(
            num_scalar_prefetch=0,
            grid=(n_pad // tm,),
            in_specs=[
                pl.BlockSpec((tm, d_pad), lambda i: (i, 0)),
                _resident_spec((1, d_pad), lambda i: (0, 0)),
                _resident_spec((1, d_pad), lambda i: (0, 0)),
                _resident_spec((d_pad, d_pad), lambda i: (0, 0)),
                _resident_spec((1, d_pad), lambda i: (0, 0)),
            ],
            out_specs=pl.BlockSpec((tm, d_pad), lambda i: (i, 0)),
        ),
        compiler_params=pltpu.CompilerParams(
            dimension_semantics=("parallel",), vmem_limit_bytes=vmem_limit),
    )(agg, scale, shift, wt_bf16, b)


def _bn_kernel(agg_ref, scale_ref, shift_ref, o_ref):
    o_ref[...] = (agg_ref[...] * scale_ref[...] + shift_ref[...]).astype(o_ref.dtype)


def bn_pallas(agg, scale, shift, *, tm, vmem_limit):
    n_pad, d_pad = agg.shape
    return pl.pallas_call(
        _bn_kernel,
        out_shape=jax.ShapeDtypeStruct((n_pad, d_pad), jnp.float32),
        grid_spec=pltpu.PrefetchScalarGridSpec(
            num_scalar_prefetch=0,
            grid=(n_pad // tm,),
            in_specs=[
                pl.BlockSpec((tm, d_pad), lambda i: (i, 0)),
                _resident_spec((1, d_pad), lambda i: (0, 0)),
                _resident_spec((1, d_pad), lambda i: (0, 0)),
            ],
            out_specs=pl.BlockSpec((tm, d_pad), lambda i: (i, 0)),
        ),
        compiler_params=pltpu.CompilerParams(
            dimension_semantics=("parallel",), vmem_limit_bytes=vmem_limit),
    )(agg, scale, shift)


def _forward_tiled(a_norm, h0, wts, bs, gammas, betas, *, n_true, tm, tk, vmem_limit):
    num_layer = len(wts)
    xw = embed_linear_pallas(h0, wts[0], bs[0], tm=tm, vmem_limit=vmem_limit)
    h_out = None
    for layer in range(num_layer):
        agg, psum, psq = aggregate_pallas(a_norm, xw, tm=tm, tk=tk, vmem_limit=vmem_limit)
        scale, shift = _bn_scale_shift(psum, psq, gammas[layer], betas[layer], n_true)
        if layer < num_layer - 1:
            # BN + ReLU of layer L fused with the linear of layer L+1 (bf16 activations).
            xw = bn_relu_linear_pallas(agg, scale, shift, wts[layer + 1], bs[layer + 1],
                                       tm=tm, vmem_limit=vmem_limit)
        else:
            h_out = bn_pallas(agg, scale, shift, tm=tm, vmem_limit=vmem_limit)
    return h_out
    # TODO(synk): stream xw tiles (instead of keeping xw fully resident) for graphs where
    #             n_pad * d_pad no longer fits VMEM.


# ---------------------------------------------------------------------------
# Plain-JAX glue
# ---------------------------------------------------------------------------
def build_norm_adj(edge_index, num_nodes, n_pad):
    """Dense GCN-normalized adjacency with self loops, zero-padded, bf16.

    Matches GCNConv.norm + add-aggregation at the target node:
      deg over edge_index[0], norm_e = d^-1/2[src] * d^-1/2[dst], A[dst, src] += norm_e.
    """
    src, dst = edge_index[0], edge_index[1]
    loop = jnp.arange(num_nodes, dtype=edge_index.dtype)
    src = jnp.concatenate([src, loop])
    dst = jnp.concatenate([dst, loop])
    ew = jnp.ones(src.shape[0], dtype=jnp.float32)
    deg = jnp.zeros((num_nodes,), jnp.float32).at[src].add(ew)
    deg_inv_sqrt = jnp.where(deg > 0, deg ** -0.5, 0.0)
    norm = deg_inv_sqrt[src] * ew * deg_inv_sqrt[dst]
    a = jnp.zeros((n_pad, n_pad), jnp.float32).at[dst, src].add(norm)
    return a.astype(jnp.bfloat16)


def init_params(key, num_layer, emb_dim, num_node_type):
    keys = jax.random.split(key, 1 + 2 * num_layer)
    fan_in, fan_out = num_node_type + 1, emb_dim
    limit = (6.0 / (fan_in + fan_out)) ** 0.5
    emb = jax.random.uniform(keys[0], (num_node_type + 1, emb_dim),
                             jnp.float32, -limit, limit)
    layers = []
    for l in range(num_layer):
        lim = 1.0 / (emb_dim ** 0.5)
        w = jax.random.uniform(keys[1 + 2 * l], (emb_dim, emb_dim),
                               jnp.float32, -lim, lim)
        b = jax.random.uniform(keys[2 + 2 * l], (1, emb_dim),
                               jnp.float32, -lim, lim)
        gamma = jnp.ones((1, emb_dim), jnp.float32)
        beta = jnp.zeros((1, emb_dim), jnp.float32)
        layers.append((w, b, gamma, beta))
    return emb, layers


def gnn_forward(params, x, edge_index):
    """x: [N, 1] int32 node types; edge_index: [2, E] int32. Returns [N, emb_dim] f32."""
    emb, layers = params
    num_layer = len(layers)
    if num_layer < 2:
        raise ValueError("Number of GNN layers must be greater than 1.")
    n_true = int(x.shape[0])
    d_true = int(emb.shape[1])
    d_pad = _round_up(d_true, 128)
    n128 = _round_up(n_true, 128)

    budget = _vmem_budget_bytes()
    use_fused = _fused_vmem_bytes(n128, d_pad) <= budget
    if use_fused:
        n_pad = n128
    else:
        n_pad, tm, tk = _choose_tiles(n_true)

    # Parameter transpose / padding / bf16 cast, hoisted out of all kernels.
    wts, bs, gammas, betas = [], [], [], []
    for (w, b, gamma, beta) in layers:
        wts.append(jnp.pad(w.T, ((0, d_pad - d_true), (0, d_pad - d_true)))
                   .astype(jnp.bfloat16))
        bs.append(jnp.pad(b, ((0, 0), (0, d_pad - d_true))))
        gammas.append(jnp.pad(gamma, ((0, 0), (0, d_pad - d_true))))
        betas.append(jnp.pad(beta, ((0, 0), (0, d_pad - d_true))))

    # Embedding lookup (plain-JAX gather), zero-padded, bf16 activations.
    h0 = jnp.take(emb, x[:, 0], axis=0)
    h0 = jnp.pad(h0, ((0, n_pad - n_true), (0, d_pad - d_true))).astype(jnp.bfloat16)

    # Dense normalized adjacency (identical for every layer), bf16.
    a_norm = build_norm_adj(edge_index, n_true, n_pad)

    if use_fused:
        h = _forward_fused(a_norm, h0, jnp.stack(wts), jnp.stack(bs),
                           jnp.stack(gammas), jnp.stack(betas),
                           n_true=n_true, vmem_limit=budget)
    else:
        h = _forward_tiled(a_norm, h0, wts, bs, gammas, betas,
                           n_true=n_true, tm=tm, tk=tk, vmem_limit=budget)

    # JK == 'last'; drop_ratio == 0 -> dropout identity; strip padding.
    return h[:n_true, :d_true]


def gnn_forward_ref(params, x, edge_index):
    """Pure-JAX/XLA reference with the same dtype policy (bf16 MXU operands, f32 BN)."""
    emb, layers = params
    num_layer = len(layers)
    n = x.shape[0]
    a = build_norm_adj(edge_index, n, n)
    h = jnp.take(emb, x[:, 0], axis=0).astype(jnp.bfloat16)
    for layer, (w, b, gamma, beta) in enumerate(layers):
        xw = jnp.dot(h, w.T.astype(jnp.bfloat16), preferred_element_type=jnp.float32) + b
        agg = jnp.dot(a, xw.astype(jnp.bfloat16), preferred_element_type=jnp.float32)
        mean = jnp.mean(agg, axis=0, keepdims=True)
        var = jnp.mean((agg - mean) ** 2, axis=0, keepdims=True)
        y = (agg - mean) * jax.lax.rsqrt(var + BN_EPS) * gamma + beta
        h = jnp.maximum(y, 0.0).astype(jnp.bfloat16) if layer < num_layer - 1 else y
    return h


# ---------------------------------------------------------------------------
# Demo
# ---------------------------------------------------------------------------
if __name__ == "__main__":
    num_layer = 3
    emb_dim = 32
    num_node_type = 8
    num_nodes = 1000
    num_edges = 4000

    key = jax.random.PRNGKey(0)
    k_param, k_x, k_e = jax.random.split(key, 3)

    params = init_params(k_param, num_layer, emb_dim, num_node_type)
    x = jax.random.randint(k_x, (num_nodes, 1), 0, num_node_type + 1, dtype=jnp.int32)
    edge_index = jax.random.randint(k_e, (2, num_edges), 0, num_nodes, dtype=jnp.int32)

    out = jax.jit(gnn_forward)(params, x, edge_index)
    out = jax.block_until_ready(out)

    ref = gnn_forward_ref(params, x, edge_index)
    assert out.shape == (num_nodes, emb_dim)
    assert bool(jnp.all(jnp.isfinite(out)))
    assert bool(jnp.allclose(out, ref, atol=3e-2, rtol=3e-2))
    print("KERNEL_OK")
</pallas_src>

<mosaic_0001>
module attributes {stable_mosaic.version = 11 : i64} {
  func.func @_fused_layers_kernel(%arg0: i32, %arg1: memref<1024x1024xbf16, #tpu.memory_space<vmem>>, %arg2: memref<1024x128xbf16, #tpu.memory_space<vmem>>, %arg3: memref<1x128x128xbf16, #tpu.memory_space<vmem>>, %arg4: memref<1x1x128xf32, #tpu.memory_space<vmem>>, %arg5: memref<1x1x128xf32, #tpu.memory_space<vmem>>, %arg6: memref<1x1x128xf32, #tpu.memory_space<vmem>>, %arg7: memref<1024x128xf32, #tpu.memory_space<vmem>>, %arg8: memref<1024x128xbf16, #tpu.memory_space<vmem>>) attributes {dimension_semantics = [#tpu.dimension_semantics<arbitrary>], iteration_bounds = array<i64: 3>, scalar_prefetch = 0 : i64, scratch_operands = 1 : i64, tpu.core_type = #tpu.core_type<tc>, window_params = [{pipeline_mode = #tpu.pipeline_mode<synchronous>, transform_indices = @transform_0, window_bounds = array<i64: 1024, 1024>}, {pipeline_mode = #tpu.pipeline_mode<synchronous>, transform_indices = @transform_1, window_bounds = array<i64: 1024, 128>}, {transform_indices = @transform_2, window_bounds = array<i64: 1, 128, 128>}, {transform_indices = @transform_3, window_bounds = array<i64: 1, 1, 128>}, {transform_indices = @transform_4, window_bounds = array<i64: 1, 1, 128>}, {transform_indices = @transform_5, window_bounds = array<i64: 1, 1, 128>}, {pipeline_mode = #tpu.pipeline_mode<synchronous>, transform_indices = @transform_6, window_bounds = array<i64: 1024, 128>}]} {
    %c0_i32 = arith.constant 0 : i32
    %0 = arith.cmpi eq, %arg0, %c0_i32 : i32
    %1 = arith.extui %0 : i1 to i32
    %c0_i32_0 = arith.constant 0 : i32
    %2 = arith.cmpi ne, %1, %c0_i32_0 : i32
    scf.if %2 {
      %c0_26 = arith.constant 0 : index
      %c0_27 = arith.constant 0 : index
      %50 = vector.load %arg2[%c0_26, %c0_27] : memref<1024x128xbf16, #tpu.memory_space<vmem>>, vector<1024x128xbf16>
      %c0_28 = arith.constant 0 : index
      %c0_29 = arith.constant 0 : index
      %51 = vector.load %arg8[%c0_28, %c0_29] : memref<1024x128xbf16, #tpu.memory_space<vmem>>, vector<1024x128xbf16>
      tpu.vector_store %arg8[%c0_28, %c0_29], %50 {strides = array<i32>} : memref<1024x128xbf16, #tpu.memory_space<vmem>>, vector<1024x128xbf16>,
    } else {
    }
    %c0 = arith.constant 0 : index
    %c0_1 = arith.constant 0 : index
    %3 = vector.load %arg8[%c0, %c0_1] : memref<1024x128xbf16, #tpu.memory_space<vmem>>, vector<1024x128xbf16>
    %c0_2 = arith.constant 0 : index
    %c0_3 = arith.constant 0 : index
    %c0_4 = arith.constant 0 : index
    %4 = vector.load %arg3[%c0_2, %c0_3, %c0_4] : memref<1x128x128xbf16, #tpu.memory_space<vmem>>, vector<1x128x128xbf16>
    %5 = vector.shape_cast %4 : vector<1x128x128xbf16> to vector<128x128xbf16>
    %cst = arith.constant dense<0.000000e+00> : vector<1024x128xf32>
    %6 = tpu.matmul %3, %5, %cst {dimension_numbers = #tpu.dot_dimension_numbers<[1], [0], [0], [1], [0, 0, 1, 1], [], []>} : vector<1024x128xbf16>, vector<128x128xbf16>, vector<1024x128xf32> -> vector<1024x128xf32>
    %c0_5 = arith.constant 0 : index
    %c0_6 = arith.constant 0 : index
    %c0_7 = arith.constant 0 : index
    %7 = vector.load %arg4[%c0_5, %c0_6, %c0_7] : memref<1x1x128xf32, #tpu.memory_space<vmem>>, vector<1x1x128xf32>
    %8 = vector.shape_cast %7 : vector<1x1x128xf32> to vector<1x128xf32>
    %9 = vector.broadcast %8 : vector<1x128xf32> to vector<1024x128xf32>
    %10 = arith.addf %6, %9 : vector<1024x128xf32>
    %11 = arith.truncf %10 : vector<1024x128xf32> to vector<1024x128xbf16>
    %c0_8 = arith.constant 0 : index
    %c0_9 = arith.constant 0 : index
    %12 = vector.load %arg1[%c0_8, %c0_9] : memref<1024x1024xbf16, #tpu.memory_space<vmem>>, vector<1024x1024xbf16>
    %cst_10 = arith.constant dense<0.000000e+00> : vector<1024x128xf32>
    %13 = tpu.matmul %12, %11, %cst_10 {dimension_numbers = #tpu.dot_dimension_numbers<[1], [0], [0], [1], [0, 0, 1, 1], [], []>} : vector<1024x1024xbf16>, vector<1024x128xbf16>, vector<1024x128xf32> -> vector<1024x128xf32>
    %cst_11 = arith.constant dense<0.000000e+00> : vector<128xf32>
    %14 = vector.multi_reduction <add>, %13, %cst_11 [0] : vector<1024x128xf32> to vector<128xf32>
    %15 = vector.shape_cast %14 : vector<128xf32> to vector<1x128xf32>
    %cst_12 = arith.constant 1.000000e-03 : f32
    %16 = vector.broadcast %cst_12 : f32 to vector<1x128xf32>
    %17 = arith.mulf %15, %16 : vector<1x128xf32>
    %18 = tpu.iota {dimensions = array<i32: 0>} : vector<1024x128xi32>
    %c1000_i32 = arith.constant 1000 : i32
    %19 = vector.broadcast %c1000_i32 : i32 to vector<1024x128xi32>
    %20 = arith.cmpi slt, %18, %19 : vector<1024x128xi32>
    %21 = vector.broadcast %17 : vector<1x128xf32> to vector<1024x128xf32>
    %22 = arith.subf %13, %21 : vector<1024x128xf32>
    %cst_13 = arith.constant 0.000000e+00 : f32
    %23 = vector.broadcast %cst_13 : f32 to vector<1024x128xf32>
    %24 = arith.select %20, %22, %23 : vector<1024x128xi1>, vector<1024x128xf32>
    %25 = arith.mulf %24, %24 : vector<1024x128xf32>
    %cst_14 = arith.constant dense<0.000000e+00> : vector<128xf32>
    %26 = vector.multi_reduction <add>, %25, %cst_14 [0] : vector<1024x128xf32> to vector<128xf32>
    %27 = vector.shape_cast %26 : vector<128xf32> to vector<1x128xf32>
    %cst_15 = arith.constant 1.000000e-03 : f32
    %28 = vector.broadcast %cst_15 : f32 to vector<1x128xf32>
    %29 = arith.mulf %27, %28 : vector<1x128xf32>
    %cst_16 = arith.constant 9.99999974E-6 : f32
    %30 = vector.broadcast %cst_16 : f32 to vector<1x128xf32>
    %31 = arith.addf %29, %30 : vector<1x128xf32>
    %32 = math.rsqrt %31 : vector<1x128xf32>
    %c0_17 = arith.constant 0 : index
    %c0_18 = arith.constant 0 : index
    %c0_19 = arith.constant 0 : index
    %33 = vector.load %arg5[%c0_17, %c0_18, %c0_19] : memref<1x1x128xf32, #tpu.memory_space<vmem>>, vector<1x1x128xf32>
    %34 = vector.shape_cast %33 : vector<1x1x128xf32> to vector<1x128xf32>
    %35 = arith.mulf %32, %34 : vector<1x128xf32>
    %c0_20 = arith.constant 0 : index
    %c0_21 = arith.constant 0 : index
    %c0_22 = arith.constant 0 : index
    %36 = vector.load %arg6[%c0_20, %c0_21, %c0_22] : memref<1x1x128xf32, #tpu.memory_space<vmem>>, vector<1x1x128xf32>
    %37 = vector.shape_cast %36 : vector<1x1x128xf32> to vector<1x128xf32>
    %38 = arith.mulf %17, %35 : vector<1x128xf32>
    %39 = arith.subf %37, %38 : vector<1x128xf32>
    %40 = vector.broadcast %35 : vector<1x128xf32> to vector<1024x128xf32>
    %41 = arith.mulf %13, %40 : vector<1024x128xf32>
    %42 = vector.broadcast %39 : vector<1x128xf32> to vector<1024x128xf32>
    %43 = arith.addf %41, %42 : vector<1024x128xf32>
    %c2_i32 = arith.constant 2 : i32
    %44 = arith.cmpi slt, %arg0, %c2_i32 : i32
    %45 = arith.extui %44 : i1 to i32
    %c0_i32_23 = arith.constant 0 : i32
    %46 = arith.cmpi ne, %45, %c0_i32_23 : i32
    scf.if %46 {
      %cst_26 = arith.constant 0.000000e+00 : f32
      %50 = vector.broadcast %cst_26 : f32 to vector<1024x128xf32>
      %51 = arith.maximumf %43, %50 : vector<1024x128xf32>
      %52 = arith.truncf %51 : vector<1024x128xf32> to vector<1024x128xbf16>
      %c0_27 = arith.constant 0 : index
      %c0_28 = arith.constant 0 : index
      %53 = vector.load %arg8[%c0_27, %c0_28] : memref<1024x128xbf16, #tpu.memory_space<vmem>>, vector<1024x128xbf16>
      tpu.vector_store %arg8[%c0_27, %c0_28], %52 {strides = array<i32>} : memref<1024x128xbf16, #tpu.memory_space<vmem>>, vector<1024x128xbf16>,
    } else {
    }
    %c2_i32_24 = arith.constant 2 : i32
    %47 = arith.cmpi eq, %arg0, %c2_i32_24 : i32
    %48 = arith.extui %47 : i1 to i32
    %c0_i32_25 = arith.constant 0 : i32
    %49 = arith.cmpi ne, %48, %c0_i32_25 : i32
    scf.if %49 {
      %c0_26 = arith.constant 0 : index
      %c0_27 = arith.constant 0 : index
      %50 = vector.load %arg7[%c0_26, %c0_27] : memref<1024x128xf32, #tpu.memory_space<vmem>>, vector<1024x128xf32>
      tpu.vector_store %arg7[%c0_26, %c0_27], %43 {strides = array<i32>} : memref<1024x128xf32, #tpu.memory_space<vmem>>, vector<1024x128xf32>,
    } else {
    }
    return
  }
  func.func @transform_0(%arg0: i32) -> (i32, i32) {
    %c0_i32 = arith.constant 0 : i32
    %c0_i32_0 = arith.constant 0 : i32
    %c0_i32_1 = arith.constant 0 : i32
    return %c0_i32, %c0_i32_0 : i32, i32
  }
  func.func @transform_1(%arg0: i32) -> (i32, i32) {
    %c0_i32 = arith.constant 0 : i32
    %c0_i32_0 = arith.constant 0 : i32
    %c0_i32_1 = arith.constant 0 : i32
    return %c0_i32, %c0_i32_0 : i32, i32
  }
  func.func @transform_2(%arg0: i32) -> (i32, i32, i32) {
    %c0_i32 = arith.constant 0 : i32
    %c0_i32_0 = arith.constant 0 : i32
    %c0_i32_1 = arith.constant 0 : i32
    return %arg0, %c0_i32, %c0_i32_0 : i32, i32, i32
  }
  func.func @transform_3(%arg0: i32) -> (i32, i32, i32) {
    %c0_i32 = arith.constant 0 : i32
    %c0_i32_0 = arith.constant 0 : i32
    %c0_i32_1 = arith.constant 0 : i32
    return %arg0, %c0_i32, %c0_i32_0 : i32, i32, i32
  }
  func.func @transform_4(%arg0: i32) -> (i32, i32, i32) {
    %c0_i32 = arith.constant 0 : i32
    %c0_i32_0 = arith.constant 0 : i32
    %c0_i32_1 = arith.constant 0 : i32
    return %arg0, %c0_i32, %c0_i32_0 : i32, i32, i32
  }
  func.func @transform_5(%arg0: i32) -> (i32, i32, i32) {
    %c0_i32 = arith.constant 0 : i32
    %c0_i32_0 = arith.constant 0 : i32
    %c0_i32_1 = arith.constant 0 : i32
    return %arg0, %c0_i32, %c0_i32_0 : i32, i32, i32
  }
  func.func @transform_6(%arg0: i32) -> (i32, i32) {
    %c0_i32 = arith.constant 0 : i32
    %c0_i32_0 = arith.constant 0 : i32
    %c0_i32_1 = arith.constant 0 : i32
    return %c0_i32, %c0_i32_0 : i32, i32
  }
}

</mosaic_0001>

<bundles_post_ra>
// kernel: mul.1
= control target key start
LH: loop header
LB: loop body
LE: loop exit
PB: predicated region body
PF: predicated region fallthrough
CT: control target
= control target key end

     0   :  { %s122_s0 = inlined_call_operand.vmem [shape: f32[5000], index: 0, kind: input, shape index: {}]   ;;  %s123_s1 = inlined_call_operand.vmem [shape: f32[5000], index: 1, kind: input, shape index: {}]   ;;  %s124_s2 = inlined_call_operand.vmem [shape: f32[5000], index: 2, kind: output, shape index: {}]  }
   0x1   :  { %v3_v0 = vld [vmem:[%s122_s0] sm:$0xff]  ;;  %v50_v2 = vld [vmem:[%s122_s0 + $0x8] sm:$0xff]  ;;  %v53_v5 = vld [vmem:[%s122_s0 + $0x10] sm:$0xff] }
   0x2   :  { %v4_v1 = vld [vmem:[%s123_s1] sm:$0xff]  ;;  %v51_v4 = vld [vmem:[%s123_s1 + $0x8] sm:$0xff]  ;;  %v54_v6 = vld [vmem:[%s123_s1 + $0x10] sm:$0xff] }
   0x3   :  { %v7_v3 = vmul.f32 %v4_v1, %v3_v0  ;;  %v16_v7 = vmul.f32 %v51_v4, %v50_v2  ;;  %v26_v8 = vmul.f32 %v54_v6, %v53_v5  ;;  %v56_v9 = vld [vmem:[%s122_s0 + $0x18] sm:$0xff]  ;;  %v59_v11 = vld [vmem:[%s122_s0 + $0x20] sm:$0xff] }
   0x4   :  { %v57_v10 = vld [vmem:[%s123_s1 + $0x18] sm:$0xff]  ;;  %v60_v13 = vld [vmem:[%s123_s1 + $0x20] sm:$0xff] }
   0x5   :  { %9 = vst [vmem:[%s124_s2] sm:$0xff] %v7_v3  ;;  %v36_v12 = vmul.f32 %v57_v10, %v56_v9  ;;  %52 = vst [vmem:[%s124_s2 + $0x8] sm:$0xff] %v16_v7  ;;  %v46_v14 = vmul.f32 %v60_v13, %v59_v11 }
   0x6   :  { %55 = vst [vmem:[%s124_s2 + $0x10] sm:$0xff] %v26_v8 }
   0x7   :  { %58 = vst [vmem:[%s124_s2 + $0x18] sm:$0xff] %v36_v12  ;;  %61 = vst [vmem:[%s124_s2 + $0x20] sm:$0xff] %v46_v14 }

// kernel: gnn_forward.1
= control target key start
LH: loop header
LB: loop body
LE: loop exit
PB: predicated region body
PF: predicated region fallthrough
CT: control target
= control target key end

     0   :  { %s10098_s21 = smov 0   ;;  %s14867_s0 = inlined_call_operand.vmem [shape: bf16[1024,1024], index: 0, kind: input, shape index: {}]   ;;  %s14868_s1 = inlined_call_operand.vmem [shape: bf16[1024,128], index: 1, kind: input, shape index: {}]   ;;  %s14869_s2 = inlined_call_operand.vmem [shape: bf16[3,128,128], index: 2, kind: input, shape index: {}]   ;;  %s14870_s3 = inlined_call_operand.vmem [shape: f32[3,1,128], index: 3, kind: input, shape index: {}]   ;;  %s14871_s4 = inlined_call_operand.vmem [shape: f32[3,1,128], index: 4, kind: input, shape index: {}]   ;;  %s14872_s5 = inlined_call_operand.vmem [shape: f32[3,1,128], index: 5, kind: input, shape index: {}]   ;;  %s14873_s6 = inlined_call_operand.vmem [shape: f32[1024,128], index: 6, kind: output, shape index: {}]  }
   0x1 LB: > { %s10104_s22 = sadd.s32 4294967295, %s10060_s21   ;;  %p8488_p0 = scmp.ge.s32.totalorder %s10060_s21, 1  ;;  %s10060_s21 = sphi %s10098_s21, %s16_s21  }
   0x2   : > { %p231_p1 = scmp.lt.s32.totalorder %s10060_s21, 4 }
   0x4   : > { %p232_p2 = pnand %p8488_p0, %p231_p1 }
   0x6   : > { %235 = sbr.rel (%p232_p2) target bundleno = 2302 (0x8fe), region = 44 }
   0xd   : > { %p265_p3 = scmp.lt.s32.totalorder %s10104_s22, 2  ;;  %p8491_p4 = scmp.ne.s32.totalorder %s10104_s22, 0 }
   0xe   : > { %v9979_v0 = vld [vmem:[%s14868_s1] sm:$0xff] (!%p8491_p4)   ;;  %v9980_v1 = vld [vmem:[%s14868_s1 + $0x8] sm:$0xff] (!%p8491_p4)   ;;  %v9981_v2 = vld [vmem:[%s14868_s1 + $0x10] sm:$0xff] (!%p8491_p4)  }
   0xf   : > { %s10110_s23 = scalar_select %p265_p3, %s10104_s22, 2 }
  0x10   : > { %283 = sbr.rel (%p8491_p4) target bundleno = 48 (0x30), region = 48  ;;  %796 = vst [vmem:[#allocation2] sm:$0xff] (!%p8491_p4), %v9979_v0  ;;  %797 = vst [vmem:[#allocation2 + $0x8] sm:$0xff] (!%p8491_p4), %v9980_v1  ;;  %v9982_v3 = vld [vmem:[%s14868_s1 + $0x18] sm:$0xff] (!%p8491_p4)   ;;  %v9983_v4 = vld [vmem:[%s14868_s1 + $0x20] sm:$0xff] (!%p8491_p4)  }
  0x11   : > { %s9081_s24 = sshll.u32 %s10110_s23, 6  ;;  %s10117_s27 = scalar_lea.vmem %s14870_s3, %s10110_s23  ;;  %798 = vst [vmem:[#allocation2 + $0x10] sm:$0xff] (!%p8491_p4), %v9981_v2  ;;  %799 = vst [vmem:[#allocation2 + $0x18] sm:$0xff] (!%p8491_p4), %v9982_v3  ;;  %v9984_v5 = vld [vmem:[%s14868_s1 + $0x28] sm:$0xff] (!%p8491_p4)   ;;  %v9985_v6 = vld [vmem:[%s14868_s1 + $0x30] sm:$0xff] (!%p8491_p4)  }
  0x12   : > { %s10122_s30 = scalar_lea.vmem %s14869_s2, %s9081_s24  ;;  %s275_s9 = scalar_lea.vmem %s14871_s4, %s10110_s23  ;;  %800 = vst [vmem:[#allocation2 + $0x20] sm:$0xff] (!%p8491_p4), %v9983_v4  ;;  %801 = vst [vmem:[#allocation2 + $0x28] sm:$0xff] (!%p8491_p4), %v9984_v5  ;;  %v9986_v7 = vld [vmem:[%s14868_s1 + $0x38] sm:$0xff] (!%p8491_p4)   ;;  %v9987_v8 = vld [vmem:[%s14868_s1 + $0x40] sm:$0xff] (!%p8491_p4)  }
  0x13   : > { %s278_s12 = scalar_lea.vmem %s14872_s5, %s10110_s23  ;;  %802 = vst [vmem:[#allocation2 + $0x30] sm:$0xff] (!%p8491_p4), %v9985_v6  ;;  %803 = vst [vmem:[#allocation2 + $0x38] sm:$0xff] (!%p8491_p4), %v9986_v7  ;;  %v9988_v9 = vld [vmem:[%s14868_s1 + $0x48] sm:$0xff] (!%p8491_p4)   ;;  %v9989_v10 = vld [vmem:[%s14868_s1 + $0x50] sm:$0xff] (!%p8491_p4)  }
  0x14   : > { %804 = vst [vmem:[#allocation2 + $0x40] sm:$0xff] (!%p8491_p4), %v9987_v8  ;;  %805 = vst [vmem:[#allocation2 + $0x48] sm:$0xff] (!%p8491_p4), %v9988_v9  ;;  %v9990_v11 = vld [vmem:[%s14868_s1 + $0x58] sm:$0xff] (!%p8491_p4)   ;;  %v9991_v12 = vld [vmem:[%s14868_s1 + $0x60] sm:$0xff] (!%p8491_p4)  }
  0x15   : > { %806 = vst [vmem:[#allocation2 + $0x50] sm:$0xff] (!%p8491_p4), %v9989_v10  ;;  %807 = vst [vmem:[#allocation2 + $0x58] sm:$0xff] (!%p8491_p4), %v9990_v11  ;;  %v9992_v13 = vld [vmem:[%s14868_s1 + $0x68] sm:$0xff] (!%p8491_p4)   ;;  %v9993_v14 = vld [vmem:[%s14868_s1 + $0x70] sm:$0xff] (!%p8491_p4)  }
  0x16   : > { %808 = vst [vmem:[#allocation2 + $0x60] sm:$0xff] (!%p8491_p4), %v9991_v12  ;;  %809 = vst [vmem:[#allocation2 + $0x68] sm:$0xff] (!%p8491_p4), %v9992_v13  ;;  %v9994_v15 = vld [vmem:[%s14868_s1 + $0x78] sm:$0xff] (!%p8491_p4)   ;;  %v9995_v16 = vld [vmem:[%s14868_s1 + $0x80] sm:$0xff] (!%p8491_p4)  }
  0x17   : > { %810 = vst [vmem:[#allocation2 + $0x70] sm:$0xff] %v9993_v14  ;;  %811 = vst [vmem:[#allocation2 + $0x78] sm:$0xff] %v9994_v15  ;;  %v9996_v17 = vld [vmem:[%s14868_s1 + $0x88] sm:$0xff]   ;;  %v9997_v18 = vld [vmem:[%s14868_s1 + $0x90] sm:$0xff]  }
  0x18   : > { %812 = vst [vmem:[#allocation2 + $0x80] sm:$0xff] %v9995_v16  ;;  %813 = vst [vmem:[#allocation2 + $0x88] sm:$0xff] %v9996_v17  ;;  %v9998_v19 = vld [vmem:[%s14868_s1 + $0x98] sm:$0xff]   ;;  %v9999_v20 = vld [vmem:[%s14868_s1 + $0xa0] sm:$0xff]  }
  0x19   : > { %814 = vst [vmem:[#allocation2 + $0x90] sm:$0xff] %v9997_v18  ;;  %815 = vst [vmem:[#allocation2 + $0x98] sm:$0xff] %v9998_v19  ;;  %v10000_v21 = vld [vmem:[%s14868_s1 + $0xa8] sm:$0xff]   ;;  %v10001_v22 = vld [vmem:[%s14868_s1 + $0xb0] sm:$0xff]  }
  0x1a   : > { %816 = vst [vmem:[#allocation2 + $0xa0] sm:$0xff] %v9999_v20  ;;  %817 = vst [vmem:[#allocation2 + $0xa8] sm:$0xff] %v10000_v21  ;;  %v10002_v23 = vld [vmem:[%s14868_s1 + $0xb8] sm:$0xff]   ;;  %v10003_v24 = vld [vmem:[%s14868_s1 + $0xc0] sm:$0xff]  }
  0x1b   : > { %818 = vst [vmem:[#allocation2 + $0xb0] sm:$0xff] %v10001_v22  ;;  %819 = vst [vmem:[#allocation2 + $0xb8] sm:$0xff] %v10002_v23  ;;  %v10004_v25 = vld [vmem:[%s14868_s1 + $0xc8] sm:$0xff]   ;;  %v10005_v26 = vld [vmem:[%s14868_s1 + $0xd0] sm:$0xff]  }
  0x1c   : > { %820 = vst [vmem:[#allocation2 + $0xc0] sm:$0xff] %v10003_v24  ;;  %821 = vst [vmem:[#allocation2 + $0xc8] sm:$0xff] %v10004_v25  ;;  %v10006_v27 = vld [vmem:[%s14868_s1 + $0xd8] sm:$0xff]   ;;  %v10007_v28 = vld [vmem:[%s14868_s1 + $0xe0] sm:$0xff]  }
  0x1d   : > { %822 = vst [vmem:[#allocation2 + $0xd0] sm:$0xff] %v10005_v26  ;;  %823 = vst [vmem:[#allocation2 + $0xd8] sm:$0xff] %v10006_v27  ;;  %v10008_v29 = vld [vmem:[%s14868_s1 + $0xe8] sm:$0xff]   ;;  %v10009_v30 = vld [vmem:[%s14868_s1 + $0xf0] sm:$0xff]  }
  0x1e   : > { %824 = vst [vmem:[#allocation2 + $0xe0] sm:$0xff] %v10007_v28  ;;  %825 = vst [vmem:[#allocation2 + $0xe8] sm:$0xff] %v10008_v29  ;;  %v10010_v31 = vld [vmem:[%s14868_s1 + $0xf8] sm:$0xff]   ;;  %v10011_v32 = vld [vmem:[%s14868_s1 + $0x100] sm:$0xff]  }
  0x1f   : > { %826 = vst [vmem:[#allocation2 + $0xf0] sm:$0xff] %v10009_v30  ;;  %827 = vst [vmem:[#allocation2 + $0xf8] sm:$0xff] %v10010_v31  ;;  %v10012_v33 = vld [vmem:[%s14868_s1 + $0x108] sm:$0xff]   ;;  %v10013_v34 = vld [vmem:[%s14868_s1 + $0x110] sm:$0xff]  }
  0x20   : > { %828 = vst [vmem:[#allocation2 + $0x100] sm:$0xff] %v10011_v32  ;;  %829 = vst [vmem:[#allocation2 + $0x108] sm:$0xff] %v10012_v33  ;;  %v10014_v35 = vld [vmem:[%s14868_s1 + $0x118] sm:$0xff]   ;;  %v10015_v36 = vld [vmem:[%s14868_s1 + $0x120] sm:$0xff]  }
  0x21   : > { %830 = vst [vmem:[#allocation2 + $0x110] sm:$0xff] %v10013_v34  ;;  %831 = vst [vmem:[#allocation2 + $0x118] sm:$0xff] %v10014_v35  ;;  %v10016_v37 = vld [vmem:[%s14868_s1 + $0x128] sm:$0xff]   ;;  %v10017_v38 = vld [vmem:[%s14868_s1 + $0x130] sm:$0xff]  }
  0x22   : > { %832 = vst [vmem:[#allocation2 + $0x120] sm:$0xff] %v10015_v36  ;;  %833 = vst [vmem:[#allocation2 + $0x128] sm:$0xff] %v10016_v37  ;;  %v10018_v39 = vld [vmem:[%s14868_s1 + $0x138] sm:$0xff]   ;;  %v10019_v40 = vld [vmem:[%s14868_s1 + $0x140] sm:$0xff]  }
  0x23   : > { %834 = vst [vmem:[#allocation2 + $0x130] sm:$0xff] %v10017_v38  ;;  %835 = vst [vmem:[#allocation2 + $0x138] sm:$0xff] %v10018_v39  ;;  %v10020_v41 = vld [vmem:[%s14868_s1 + $0x148] sm:$0xff]   ;;  %v10021_v42 = vld [vmem:[%s14868_s1 + $0x150] sm:$0xff]  }
  0x24   : > { %836 = vst [vmem:[#allocation2 + $0x140] sm:$0xff] %v10019_v40  ;;  %837 = vst [vmem:[#allocation2 + $0x148] sm:$0xff] %v10020_v41  ;;  %v10022_v43 = vld [vmem:[%s14868_s1 + $0x158] sm:$0xff]   ;;  %v10023_v44 = vld [vmem:[%s14868_s1 + $0x160] sm:$0xff]  }
  0x25   : > { %838 = vst [vmem:[#allocation2 + $0x150] sm:$0xff] %v10021_v42  ;;  %839 = vst [vmem:[#allocation2 + $0x158] sm:$0xff] %v10022_v43  ;;  %v10024_v45 = vld [vmem:[%s14868_s1 + $0x168] sm:$0xff]   ;;  %v10025_v46 = vld [vmem:[%s14868_s1 + $0x170] sm:$0xff]  }
  0x26   : > { %840 = vst [vmem:[#allocation2 + $0x160] sm:$0xff] %v10023_v44  ;;  %841 = vst [vmem:[#allocation2 + $0x168] sm:$0xff] %v10024_v45  ;;  %v10026_v47 = vld [vmem:[%s14868_s1 + $0x178] sm:$0xff]   ;;  %v10027_v48 = vld [vmem:[%s14868_s1 + $0x180] sm:$0xff]  }
  0x27   : > { %842 = vst [vmem:[#allocation2 + $0x170] sm:$0xff] %v10025_v46  ;;  %843 = vst [vmem:[#allocation2 + $0x178] sm:$0xff] %v10026_v47  ;;  %v10028_v49 = vld [vmem:[%s14868_s1 + $0x188] sm:$0xff]   ;;  %v10029_v50 = vld [vmem:[%s14868_s1 + $0x190] sm:$0xff]  }
  0x28   : > { %844 = vst [vmem:[#allocation2 + $0x180] sm:$0xff] %v10027_v48  ;;  %845 = vst [vmem:[#allocation2 + $0x188] sm:$0xff] %v10028_v49  ;;  %v10030_v51 = vld [vmem:[%s14868_s1 + $0x198] sm:$0xff]   ;;  %v10031_v52 = vld [vmem:[%s14868_s1 + $0x1a0] sm:$0xff]  }
  0x29   : > { %846 = vst [vmem:[#allocation2 + $0x190] sm:$0xff] %v10029_v50  ;;  %847 = vst [vmem:[#allocation2 + $0x198] sm:$0xff] %v10030_v51  ;;  %v10032_v53 = vld [vmem:[%s14868_s1 + $0x1a8] sm:$0xff]   ;;  %v10033_v54 = vld [vmem:[%s14868_s1 + $0x1b0] sm:$0xff]  }
  0x2a   : > { %848 = vst [vmem:[#allocation2 + $0x1a0] sm:$0xff] %v10031_v52  ;;  %849 = vst [vmem:[#allocation2 + $0x1a8] sm:$0xff] %v10032_v53  ;;  %v10034_v55 = vld [vmem:[%s14868_s1 + $0x1b8] sm:$0xff]   ;;  %v10035_v56 = vld [vmem:[%s14868_s1 + $0x1c0] sm:$0xff]  }
  0x2b   : > { %850 = vst [vmem:[#allocation2 + $0x1b0] sm:$0xff] %v10033_v54  ;;  %851 = vst [vmem:[#allocation2 + $0x1b8] sm:$0xff] %v10034_v55  ;;  %v10036_v57 = vld [vmem:[%s14868_s1 + $0x1c8] sm:$0xff]   ;;  %v10037_v58 = vld [vmem:[%s14868_s1 + $0x1d0] sm:$0xff]  }
  0x2c   : > { %852 = vst [vmem:[#allocation2 + $0x1c0] sm:$0xff] %v10035_v56  ;;  %853 = vst [vmem:[#allocation2 + $0x1c8] sm:$0xff] %v10036_v57  ;;  %v10038_v59 = vld [vmem:[%s14868_s1 + $0x1d8] sm:$0xff]   ;;  %v10039_v60 = vld [vmem:[%s14868_s1 + $0x1e0] sm:$0xff]  }
  0x2d   : > { %854 = vst [vmem:[#allocation2 + $0x1d0] sm:$0xff] %v10037_v58  ;;  %855 = vst [vmem:[#allocation2 + $0x1d8] sm:$0xff] %v10038_v59  ;;  %v10040_v61 = vld [vmem:[%s14868_s1 + $0x1e8] sm:$0xff]   ;;  %v10041_v62 = vld [vmem:[%s14868_s1 + $0x1f0] sm:$0xff]  }
  0x2e   : > { %856 = vst [vmem:[#allocation2 + $0x1e0] sm:$0xff] %v10039_v60  ;;  %857 = vst [vmem:[#allocation2 + $0x1e8] sm:$0xff] %v10040_v61  ;;  %v10042_v63 = vld [vmem:[%s14868_s1 + $0x1f8] sm:$0xff]  }
  0x2f   : > { %858 = vst [vmem:[#allocation2 + $0x1f0] sm:$0xff] %v10041_v62  ;;  %859 = vst [vmem:[#allocation2 + $0x1f8] sm:$0xff] %v10042_v63 }
  0x30 PF: > { %v10043_v0 = vld [vmem:[%s10122_s30] sm:$0xff]   ;;  %v10044_v1 = vld [vmem:[%s10122_s30 + $0x8] sm:$0xff]   ;;  %v10045_v2 = vld [vmem:[%s10122_s30 + $0x10] sm:$0xff]   ;;  %v10062_v33 = vmov 0   ;;  %p9077_p5 = scmp.ge.s32.totalorder %s10104_s22, 2 }
  0x31   : > { %9154 = vmatprep.subr.bf16.mxu0 %v10043_v0  ;;  %v10046_v3 = vld [vmem:[%s10122_s30 + $0x18] sm:$0xff]   ;;  %v860_v4 = vld [vmem:[#allocation2] sm:$0xff]  ;;  %v10048_v6 = vld [vmem:[%s10122_s30 + $0x28] sm:$0xff]   ;;  %9298 = vmatprep.subr.bf16.mxu1 %v10062_v33 }
  0x32   : > { %9155 = vmatpush3.bf16.msra.mxu0 %v10043_v0  ;;  %9170 = vmatprep.mubr.bf16.mxu0 %v860_v4  ;;  %v10047_v5 = vld [vmem:[%s10122_s30 + $0x20] sm:$0xff]   ;;  %v10049_v7 = vld [vmem:[%s10122_s30 + $0x30] sm:$0xff]   ;;  %v10050_v8 = vld [vmem:[%s10122_s30 + $0x38] sm:$0xff]  }
  0x33   : > { %9156 = vmatprep.subr.bf16.mxu0 %v10044_v1  ;;  %v861_v9 = vld [vmem:[#allocation2 + $0x8] sm:$0xff]  ;;  %v862_v10 = vld [vmem:[#allocation2 + $0x10] sm:$0xff]  ;;  %v863_v11 = vld [vmem:[#allocation2 + $0x18] sm:$0xff] }
  0x34   : > { %v864_v12 = vld [vmem:[#allocation2 + $0x20] sm:$0xff]  ;;  %v865_v13 = vld [vmem:[#allocation2 + $0x28] sm:$0xff]  ;;  %v866_v14 = vld [vmem:[#allocation2 + $0x30] sm:$0xff] }
  0x35   : > { %v867_v15 = vld [vmem:[#allocation2 + $0x38] sm:$0xff]  ;;  %v868_v16 = vld [vmem:[#allocation2 + $0x40] sm:$0xff]  ;;  %v869_v17 = vld [vmem:[#allocation2 + $0x48] sm:$0xff] }
  0x36   : > { %9157 = vmatpush3.bf16.msra.mxu0 %v10044_v1  ;;  %v870_v18 = vld [vmem:[#allocation2 + $0x50] sm:$0xff]  ;;  %v871_v19 = vld [vmem:[#allocation2 + $0x58] sm:$0xff]  ;;  %v872_v20 = vld [vmem:[#allocation2 + $0x60] sm:$0xff] }
  0x37   : > { %9158 = vmatprep.subr.bf16.mxu0 %v10045_v2  ;;  %v873_v21 = vld [vmem:[#allocation2 + $0x68] sm:$0xff]  ;;  %v874_v22 = vld [vmem:[#allocation2 + $0x70] sm:$0xff]  ;;  %v875_v23 = vld [vmem:[#allocation2 + $0x78] sm:$0xff] }
  0x38   : > { %v876_v24 = vld [vmem:[#allocation2 + $0x80] sm:$0xff]  ;;  %v877_v25 = vld [vmem:[#allocation2 + $0x88] sm:$0xff]  ;;  %v878_v26 = vld [vmem:[#allocation2 + $0x90] sm:$0xff] }
  0x39   : > { %v879_v27 = vld [vmem:[#allocation2 + $0x98] sm:$0xff]  ;;  %v880_v28 = vld [vmem:[#allocation2 + $0xa0] sm:$0xff]  ;;  %v881_v29 = vld [vmem:[#allocation2 + $0xa8] sm:$0xff] }
  0x3a   : > { %9159 = vmatpush3.bf16.msra.mxu0 %v10045_v2  ;;  %v882_v30 = vld [vmem:[#allocation2 + $0xb0] sm:$0xff]  ;;  %v883_v31 = vld [vmem:[#allocation2 + $0xb8] sm:$0xff]  ;;  %v884_v32 = vld [vmem:[#allocation2 + $0xc0] sm:$0xff] }
  0x3b   : > { %9160 = vmatprep.subr.bf16.mxu0 %v10046_v3  ;;  %v885_v34 = vld [vmem:[#allocation2 + $0xc8] sm:$0xff]  ;;  %v886_v35 = vld [vmem:[#allocation2 + $0xd0] sm:$0xff]  ;;  %v887_v36 = vld [vmem:[#allocation2 + $0xd8] sm:$0xff] }
  0x3c   : > { %v888_v37 = vld [vmem:[#allocation2 + $0xe0] sm:$0xff]  ;;  %v889_v38 = vld [vmem:[#allocation2 + $0xe8] sm:$0xff]  ;;  %v890_v39 = vld [vmem:[#allocation2 + $0xf0] sm:$0xff] }
  0x3d   : > { %v891_v40 = vld [vmem:[#allocation2 + $0xf8] sm:$0xff]  ;;  %v892_v41 = vld [vmem:[#allocation2 + $0x100] sm:$0xff]  ;;  %v893_v42 = vld [vmem:[#allocation2 + $0x108] sm:$0xff] }
  0x3e   : > { %9161 = vmatpush3.bf16.msra.mxu0 %v10046_v3  ;;  %v894_v43 = vld [vmem:[#allocation2 + $0x110] sm:$0xff]  ;;  %v895_v44 = vld [vmem:[#allocation2 + $0x118] sm:$0xff]  ;;  %v896_v45 = vld [vmem:[#allocation2 + $0x120] sm:$0xff] }
  0x3f   : > { %9162 = vmatprep.subr.bf16.mxu0 %v10047_v5  ;;  %v897_v46 = vld [vmem:[#allocation2 + $0x128] sm:$0xff]  ;;  %v898_v47 = vld [vmem:[#allocation2 + $0x130] sm:$0xff]  ;;  %v899_v48 = vld [vmem:[#allocation2 + $0x138] sm:$0xff] }
  0x40   : > { %v900_v49 = vld [vmem:[#allocation2 + $0x140] sm:$0xff]  ;;  %v901_v50 = vld [vmem:[#allocation2 + $0x148] sm:$0xff]  ;;  %v902_v51 = vld [vmem:[#allocation2 + $0x150] sm:$0xff] }
  0x41   : > { %v903_v52 = vld [vmem:[#allocation2 + $0x158] sm:$0xff]  ;;  %v904_v53 = vld [vmem:[#allocation2 + $0x160] sm:$0xff]  ;;  %v905_v54 = vld [vmem:[#allocation2 + $0x168] sm:$0xff] }
  0x42   : > { %9163 = vmatpush3.bf16.msra.mxu0 %v10047_v5  ;;  %v906_v55 = vld [vmem:[#allocation2 + $0x170] sm:$0xff]  ;;  %v907_v56 = vld [vmem:[#allocation2 + $0x178] sm:$0xff]  ;;  %v908_v57 = vld [vmem:[#allocation2 + $0x180] sm:$0xff] }
  0x43   : > { %9164 = vmatprep.subr.bf16.mxu0 %v10048_v6  ;;  %v909_v58 = vld [vmem:[#allocation2 + $0x188] sm:$0xff]  ;;  %v910_v59 = vld [vmem:[#allocation2 + $0x190] sm:$0xff]  ;;  %v911_v60 = vld [vmem:[#allocation2 + $0x198] sm:$0xff] }
  0x44   : > { %v912_v61 = vld [vmem:[#allocation2 + $0x1a0] sm:$0xff]  ;;  %v913_v62 = vld [vmem:[#allocation2 + $0x1a8] sm:$0xff]  ;;  %v914_v63 = vld [vmem:[#allocation2 + $0x1b0] sm:$0xff] }
  0x45   : > { %v10336_v1 = vld [vmem:[%s10117_s27] ss:$0 sm:$0xff]  ;;  %v915_v4 = vld [vmem:[#allocation2 + $0x1b8] sm:$0xff] }
  0x46   : > { %9165 = vmatpush3.bf16.msra.mxu0 %v10048_v6 }
  0x47   : > { %9166 = vmatprep.subr.bf16.mxu0 %v10049_v7 }
  0x4a   : > { %9167 = vmatpush3.bf16.msra.mxu0 %v10049_v7 }
  0x4b   : > { %9168 = vmatprep.subr.bf16.mxu0 %v10050_v8 }
  0x4e   : > { %9169 = vmatpush3.bf16.msra.mxu0 %v10050_v8  ;;  %v916_v8 = vld [vmem:[#allocation2 + $0x1c0] sm:$0xff] }
  0x4f   : > { %4676 = vmatprep.subr.bf16.mxu0 %v10062_v33 }
  0x51   : > { %9171 = vmatmul.mubr.bf16.vlgmr.msra.gmra.mrb[0].mxu0 %v861_v9  ;;  %v10343_v9 = vld [vmem:[%s14867_s0 + $0xc88] sm:$0xff] }
  0x52   : > { %9174 = vmatprep.mubr.bf16.mxu0 %v862_v10 }
  0x59   : > { %9175 = vmatmul.mubr.bf16.gmra.mrb[4].mxu0 %v863_v11 }
  0x5a   : > { %9178 = vmatprep.mubr.bf16.mxu0 %v864_v12  ;;  %v10350_v12 = vld [vmem:[%s14867_s0 + $0xca8] sm:$0xff] }
  0x61   : > { %9179 = vmatmul.mubr.bf16.gmra.mrb[8].mxu0 %v865_v13 }
  0x62   : > { %9182 = vmatprep.mubr.bf16.mxu0 %v866_v14  ;;  %v8967_v14 = vcombine.low %v10343_v9, %v10350_v12 }
  0x69   : > { %9183 = vmatmul.mubr.bf16.gmra.mrb[12].mxu0 %v867_v15  ;;  %v8968_v15 = vcombine.high %v10343_v9, %v10350_v12 }
  0x6a   : > { %9186 = vmatprep.mubr.bf16.mxu0 %v868_v16 }
  0x6b   : > { %5653 = vmatprep.mubr.bf16.mxu1 %v8968_v15 }
  0x71   : > { %9187 = vmatmul.mubr.bf16.gmra.mrb[16].mxu0 %v869_v17 }
  0x72   : > { %9190 = vmatprep.mubr.bf16.mxu0 %v870_v18 }
  0x79   : > { %9191 = vmatmul.mubr.bf16.gmra.mrb[20].mxu0 %v871_v19 }
  0x7a   : > { %9194 = vmatprep.mubr.bf16.mxu0 %v872_v20  ;;  %v917_v20 = vld [vmem:[#allocation2 + $0x1c8] sm:$0xff] }
  0x81   : > { %9195 = vmatmul.mubr.bf16.gmra.mrb[24].mxu0 %v873_v21 }
  0x82   : > { %9198 = vmatprep.mubr.bf16.mxu0 %v874_v22 }
  0x89   : > { %9199 = vmatmul.mubr.bf16.gmra.mrb[28].mxu0 %v875_v23 }
  0x8a   : > { %9202 = vmatprep.mubr.bf16.mxu0 %v876_v24  ;;  %v918_v24 = vld [vmem:[#allocation2 + $0x1d0] sm:$0xff] }
  0x91   : > { %9203 = vmatmul.mubr.bf16.gmra.mrb[32].mxu0 %v877_v25 }
  0x92   : > { %9206 = vmatprep.mubr.bf16.mxu0 %v878_v26 }
  0x99   : > { %9207 = vmatmul.mubr.bf16.gmra.mrb[36].mxu0 %v879_v27 }
  0x9a   : > { %9210 = vmatprep.mubr.bf16.mxu0 %v880_v28 }
  0xa1   : > { %9211 = vmatmul.mubr.bf16.gmra.mrb[40].mxu0 %v881_v29 }
  0xa2   : > { %9214 = vmatprep.mubr.bf16.mxu0 %v882_v30 }
  0xa9   : > { %9215 = vmatmul.mubr.bf16.gmra.mrb[44].mxu0 %v883_v31 }
  0xaa   : > { %9218 = vmatprep.mubr.bf16.mxu0 %v884_v32  ;;  %v919_v32 = vld [vmem:[#allocation2 + $0x1d8] sm:$0xff] }
  0xb1   : > { %9219 = vmatmul.mubr.bf16.gmra.mrb[48].mxu0 %v885_v34 }
  0xb2   : > { %9222 = vmatprep.mubr.bf16.mxu0 %v886_v35 }
  0xb9   : > { %9223 = vmatmul.mubr.bf16.gmra.mrb[52].mxu0 %v887_v36 }
  0xba   : > { %9226 = vmatprep.mubr.bf16.mxu0 %v888_v37  ;;  %v920_v37 = vld [vmem:[#allocation2 + $0x1e0] sm:$0xff] }
  0xc1   : > { %9227 = vmatmul.mubr.bf16.gmra.mrb[56].mxu0 %v889_v38 }
  0xc2   : > { %9230 = vmatprep.mubr.bf16.mxu0 %v890_v39 }
  0xc9   : > { %9231 = vmatmul.mubr.bf16.gmra.mrb[60].mxu0 %v891_v40 }
  0xca   : > { %9234 = vmatprep.mubr.bf16.mxu0 %v892_v41 }
  0xd1   : > { %9235 = vmatmul.mubr.bf16.gmra.mrb[64].mxu0 %v893_v42 }
  0xd2   : > { %9238 = vmatprep.mubr.bf16.mxu0 %v894_v43 }
  0xd9   : > { %9239 = vmatmul.mubr.bf16.gmra.mrb[68].mxu0 %v895_v44 }
  0xda   : > { %9242 = vmatprep.mubr.bf16.mxu0 %v896_v45  ;;  %v921_v45 = vld [vmem:[#allocation2 + $0x1e8] sm:$0xff] }
  0xe1   : > { %9243 = vmatmul.mubr.bf16.gmra.mrb[72].mxu0 %v897_v46 }
  0xe2   : > { %9246 = vmatprep.mubr.bf16.mxu0 %v898_v47 }
  0xe9   : > { %9247 = vmatmul.mubr.bf16.gmra.mrb[76].mxu0 %v899_v48 }
  0xea   : > { %9250 = vmatprep.mubr.bf16.mxu0 %v900_v49  ;;  %v922_v49 = vld [vmem:[#allocation2 + $0x1f0] sm:$0xff] }
  0xf1   : > { %9251 = vmatmul.mubr.bf16.gmra.mrb[80].mxu0 %v901_v50 }
  0xf2   : > { %9254 = vmatprep.mubr.bf16.mxu0 %v902_v51 }
  0xf9   : > { %9255 = vmatmul.mubr.bf16.gmra.mrb[84].mxu0 %v903_v52 }
  0xfa   : > { %9258 = vmatprep.mubr.bf16.mxu0 %v904_v53 }
 0x101   : > { %9259 = vmatmul.mubr.bf16.gmra.mrb[88].mxu0 %v905_v54  ;;  %v10377_v54 = vld [vmem:[%s14867_s0] sm:$0xff] }
 0x102   : > { %9262 = vmatprep.mubr.bf16.mxu0 %v906_v55  ;;  %v10382_v55 = vld [vmem:[%s14867_s0 + $0x20] sm:$0xff] }
 0x109   : > { %9263 = vmatmul.mubr.bf16.gmra.mrb[92].mxu0 %v907_v56 }
 0x10a   : > { %9266 = vmatprep.mubr.bf16.mxu0 %v908_v57 }
 0x111   : > { %9267 = vmatmul.mubr.bf16.gmra.mrb[96].mxu0 %v909_v58 }
 0x112   : > { %9270 = vmatprep.mubr.bf16.mxu0 %v910_v59  ;;  %v923_v59 = vld [vmem:[#allocation2 + $0x1f8] sm:$0xff] }
 0x119   : > { %9271 = vmatmul.mubr.bf16.gmra.mrb[100].mxu0 %v911_v60  ;;  %v8566_v60 = vcombine.high %v10377_v54, %v10382_v55 }
 0x11a   : > { %9274 = vmatprep.mubr.bf16.mxu0 %v912_v61 }
 0x121   : > { %9275 = vmatmul.mubr.bf16.gmra.mrb[104].mxu0 %v913_v62 }
 0x122   : > { %9278 = vmatprep.mubr.bf16.mxu0 %v914_v63 }
 0x124   : > { %v9172_v0 = vpop.f32.mrb[0].mxu0 }
 0x125   : > { %v1029_v2 = vpop.f32.mrb[1].mxu0  ;;  %v1038_v5 = vadd.f32 %v9172_v0, %v10336_v1 }
 0x126   : > { %v9173_v3 = vpop.f32.mrb[2].mxu0  ;;  %v1030_v10 = vadd.f32 %v10336_v1, %v1029_v2 }
 0x127   : > { %v1041_v6 = vadd.f32 %v9173_v3, %v10336_v1  ;;  %v1032_v7 = vpop.f32.mrb[3].mxu0 }
 0x128   : > { %v1033_v11 = vadd.f32 %v10336_v1, %v1032_v7 }
 0x129   : > { %v1541_v13 = vpack.c.bf16 %v1041_v6, %v1038_v5  ;;  %9279 = vmatmul.mubr.bf16.gmra.mrb[108].mxu0 %v915_v4 }
 0x12a   : > { %v1540_v16 = vpack.c.bf16 %v1033_v11, %v1030_v10  ;;  %9282 = vmatprep.mubr.bf16.mxu0 %v916_v8 }
 0x12c   : > { %v9176_v17 = vpop.f32.mrb[4].mxu0  ;;  %4677 = vmatpush1.bf16.msra.mxu0 %v1540_v16 }
 0x12d   : > { %v1045_v18 = vpop.f32.mrb[5].mxu0  ;;  %4678 = vmatprep.subr.bf16.mxu0 %v10062_v33  ;;  %v1054_v21 = vadd.f32 %v9176_v17, %v10336_v1 }
 0x12e   : > { %v9177_v19 = vpop.f32.mrb[6].mxu0  ;;  %v1046_v25 = vadd.f32 %v10336_v1, %v1045_v18 }
 0x12f   : > { %v1057_v22 = vadd.f32 %v9177_v19, %v10336_v1  ;;  %v1048_v23 = vpop.f32.mrb[7].mxu0 }
 0x130   : > { %v1049_v26 = vadd.f32 %v10336_v1, %v1048_v23  ;;  %4679 = vmatpush1.bf16.msra.mxu0 %v1541_v13 }
 0x131   : > { %4680 = vmatprep.subr.bf16.mxu0 %v10062_v33  ;;  %v1543_v27 = vpack.c.bf16 %v1057_v22, %v1054_v21  ;;  %9283 = vmatmul.mubr.bf16.gmra.mrb[112].mxu0 %v917_v20 }
 0x132   : > { %v1542_v28 = vpack.c.bf16 %v1049_v26, %v1046_v25  ;;  %9286 = vmatprep.mubr.bf16.mxu0 %v918_v24 }
 0x134   : > { %v9180_v29 = vpop.f32.mrb[8].mxu0  ;;  %4681 = vmatpush1.bf16.msra.mxu0 %v1542_v28 }
 0x135   : > { %v1061_v30 = vpop.f32.mrb[9].mxu0  ;;  %4682 = vmatprep.subr.bf16.mxu0 %v10062_v33  ;;  %v1070_v34 = vadd.f32 %v9180_v29, %v10336_v1 }
 0x136   : > { %v9181_v31 = vpop.f32.mrb[10].mxu0  ;;  %v1062_v38 = vadd.f32 %v10336_v1, %v1061_v30 }
 0x137   : > { %v1073_v35 = vadd.f32 %v9181_v31, %v10336_v1  ;;  %v1064_v36 = vpop.f32.mrb[11].mxu0 }
 0x138   : > { %v1065_v39 = vadd.f32 %v10336_v1, %v1064_v36  ;;  %4683 = vmatpush1.bf16.msra.mxu0 %v1543_v27 }
 0x139   : > { %4684 = vmatprep.subr.bf16.mxu0 %v10062_v33  ;;  %v1545_v40 = vpack.c.bf16 %v1073_v35, %v1070_v34  ;;  %9287 = vmatmul.mubr.bf16.gmra.mrb[116].mxu0 %v919_v32 }
 0x13a   : > { %v1544_v41 = vpack.c.bf16 %v1065_v39, %v1062_v38  ;;  %9290 = vmatprep.mubr.bf16.mxu0 %v920_v37 }
 0x13c   : > { %v9184_v42 = vpop.f32.mrb[12].mxu0  ;;  %4685 = vmatpush1.bf16.msra.mxu0 %v1544_v41 }
 0x13d   : > { %v1077_v43 = vpop.f32.mrb[13].mxu0  ;;  %4686 = vmatprep.subr.bf16.mxu0 %v10062_v33  ;;  %v1086_v46 = vadd.f32 %v9184_v42, %v10336_v1 }
 0x13e   : > { %v9185_v44 = vpop.f32.mrb[14].mxu0  ;;  %v1078_v50 = vadd.f32 %v10336_v1, %v1077_v43 }
 0x13f   : > { %v1089_v47 = vadd.f32 %v9185_v44, %v10336_v1  ;;  %v1080_v48 = vpop.f32.mrb[15].mxu0 }
 0x140   : > { %v1081_v51 = vadd.f32 %v10336_v1, %v1080_v48  ;;  %4687 = vmatpush1.bf16.msra.mxu0 %v1545_v40 }
 0x141   : > { %4688 = vmatprep.subr.bf16.mxu0 %v10062_v33  ;;  %v1547_v52 = vpack.c.bf16 %v1089_v47, %v1086_v46  ;;  %9291 = vmatmul.mubr.bf16.gmra.mrb[120].mxu0 %v921_v45  ;;  %v8565_v45 = vcombine.low %v10377_v54, %v10382_v55  ;;  %v1612_v46 = vld [vmem:[%s14867_s0 + $0x40] sm:$0xff] }
 0x142   : > { %v1546_v53 = vpack.c.bf16 %v1081_v51, %v1078_v50  ;;  %9294 = vmatprep.mubr.bf16.mxu0 %v922_v49  ;;  %v1616_v47 = vld [vmem:[%s14867_s0 + $0x60] sm:$0xff] }
 0x144   : > { %v9188_v56 = vpop.f32.mrb[16].mxu0  ;;  %4689 = vmatpush1.bf16.msra.mxu0 %v1546_v53 }
 0x145   : > { %v1093_v57 = vpop.f32.mrb[17].mxu0  ;;  %4690 = vmatprep.subr.bf16.mxu0 %v10062_v33  ;;  %v1102_v61 = vadd.f32 %v9188_v56, %v10336_v1 }
 0x146   : > { %v9189_v58 = vpop.f32.mrb[18].mxu0  ;;  %v1094_v0 = vadd.f32 %v10336_v1, %v1093_v57 }
 0x147   : > { %v1105_v62 = vadd.f32 %v9189_v58, %v10336_v1  ;;  %v1096_v63 = vpop.f32.mrb[19].mxu0 }
 0x148   : > { %v1097_v2 = vadd.f32 %v10336_v1, %v1096_v63  ;;  %4691 = vmatpush1.bf16.msra.mxu0 %v1547_v52  ;;  %v8574_v52 = vcombine.high %v1612_v46, %v1616_v47 }
 0x149   : > { %4692 = vmatprep.subr.bf16.mxu0 %v10062_v33  ;;  %v1549_v3 = vpack.c.bf16 %v1105_v62, %v1102_v61  ;;  %9295 = vmatmul.mubr.bf16.gmra.mrb[124].mxu0 %v923_v59  ;;  %v8573_v59 = vcombine.low %v1612_v46, %v1616_v47  ;;  %v1624_v61 = vld [vmem:[%s14867_s0 + $0xa0] sm:$0xff] }
 0x14a   : > { %v1548_v4 = vpack.c.bf16 %v1097_v2, %v1094_v0  ;;  %4708 = vmatprep.mubr.bf16.mxu0 %v8566_v60  ;;  %v1620_v60 = vld [vmem:[%s14867_s0 + $0x80] sm:$0xff] }
 0x14c   : > { %v9192_v5 = vpop.f32.mrb[20].mxu0  ;;  %4693 = vmatpush1.bf16.msra.mxu0 %v1548_v4 }
 0x14d   : > { %v1109_v6 = vpop.f32.mrb[21].mxu0  ;;  %4694 = vmatprep.subr.bf16.mxu0 %v10062_v33  ;;  %v1118_v8 = vadd.f32 %v9192_v5, %v10336_v1 }
 0x14e   : > { %v9193_v7 = vpop.f32.mrb[22].mxu0  ;;  %v1110_v13 = vadd.f32 %v10336_v1, %v1109_v6 }
 0x14f   : > { %v1121_v10 = vadd.f32 %v9193_v7, %v10336_v1  ;;  %v1112_v11 = vpop.f32.mrb[23].mxu0 }
 0x150   : > { %v1113_v15 = vadd.f32 %v10336_v1, %v1112_v11  ;;  %4695 = vmatpush1.bf16.msra.mxu0 %v1549_v3  ;;  %v8582_v3 = vcombine.high %v1620_v60, %v1624_v61  ;;  %v8581_v11 = vcombine.low %v1620_v60, %v1624_v61 }
 0x151   : > { %4696 = vmatprep.subr.bf16.mxu0 %v10062_v33  ;;  %v1551_v16 = vpack.c.bf16 %v1121_v10, %v1118_v8 }
 0x152   : > { %v1550_v17 = vpack.c.bf16 %v1113_v15, %v1110_v13  ;;  %v1628_v13 = vld [vmem:[%s14867_s0 + $0xc0] sm:$0xff] }
 0x153   : > { %v1632_v15 = vld [vmem:[%s14867_s0 + $0xe0] sm:$0xff] }
 0x154   : > { %v9196_v18 = vpop.f32.mrb[24].mxu0  ;;  %4697 = vmatpush1.bf16.msra.mxu0 %v1550_v17 }
 0x155   : > { %v1125_v19 = vpop.f32.mrb[25].mxu0  ;;  %4698 = vmatprep.subr.bf16.mxu0 %v10062_v33  ;;  %v1134_v21 = vadd.f32 %v9196_v18, %v10336_v1 }
 0x156   : > { %v9197_v20 = vpop.f32.mrb[26].mxu0  ;;  %v1126_v24 = vadd.f32 %v10336_v1, %v1125_v19 }
 0x157   : > { %v1137_v22 = vadd.f32 %v9197_v20, %v10336_v1  ;;  %v1128_v23 = vpop.f32.mrb[27].mxu0  ;;  %v8590_v20 = vcombine.high %v1628_v13, %v1632_v15 }
 0x158   : > { %v1129_v25 = vadd.f32 %v10336_v1, %v1128_v23  ;;  %4699 = vmatpush1.bf16.msra.mxu0 %v1551_v16 }
 0x159   : > { %4700 = vmatprep.subr.bf16.mxu0 %v10062_v33  ;;  %v1553_v26 = vpack.c.bf16 %v1137_v22, %v1134_v21 }
 0x15a   : > { %v1552_v27 = vpack.c.bf16 %v1129_v25, %v1126_v24 }
 0x15c   : > { %v9200_v28 = vpop.f32.mrb[28].mxu0  ;;  %4701 = vmatpush1.bf16.msra.mxu0 %v1552_v27  ;;  %v8589_v27 = vcombine.low %v1628_v13, %v1632_v15 }
 0x15d   : > { %v1141_v29 = vpop.f32.mrb[29].mxu0  ;;  %4702 = vmatprep.subr.bf16.mxu0 %v10062_v33  ;;  %v1150_v31 = vadd.f32 %v9200_v28, %v10336_v1  ;;  %v1636_v28 = vld [vmem:[%s14867_s0 + $0x100] sm:$0xff] }
 0x15e   : > { %v9201_v30 = vpop.f32.mrb[30].mxu0  ;;  %v1142_v35 = vadd.f32 %v10336_v1, %v1141_v29  ;;  %v1640_v29 = vld [vmem:[%s14867_s0 + $0x120] sm:$0xff] }
 0x15f   : > { %v1153_v32 = vadd.f32 %v9201_v30, %v10336_v1  ;;  %v1144_v34 = vpop.f32.mrb[31].mxu0 }
 0x160   : > { %v1145_v36 = vadd.f32 %v10336_v1, %v1144_v34  ;;  %4703 = vmatpush1.bf16.msra.mxu0 %v1553_v26 }
 0x161   : > { %4704 = vmatprep.subr.bf16.mxu0 %v10062_v33  ;;  %v1555_v37 = vpack.c.bf16 %v1153_v32, %v1150_v31 }
 0x162   : > { %v1554_v38 = vpack.c.bf16 %v1145_v36, %v1142_v35  ;;  %v8598_v35 = vcombine.high %v1636_v28, %v1640_v29 }
 0x164   : > { %v9204_v39 = vpop.f32.mrb[32].mxu0  ;;  %4705 = vmatpush1.bf16.msra.mxu0 %v1554_v38 }
 0x165   : > { %v1157_v40 = vpop.f32.mrb[33].mxu0  ;;  %4706 = vmatprep.subr.bf16.mxu0 %v10062_v33  ;;  %v1166_v42 = vadd.f32 %v9204_v39, %v10336_v1 }
 0x166   : > { %v9205_v41 = vpop.f32.mrb[34].mxu0  ;;  %v1158_v48 = vadd.f32 %v10336_v1, %v1157_v40 }
 0x167   : > { %v1169_v43 = vadd.f32 %v9205_v41, %v10336_v1  ;;  %v1160_v44 = vpop.f32.mrb[35].mxu0 }
 0x168   : > { %v1161_v49 = vadd.f32 %v10336_v1, %v1160_v44  ;;  %4707 = vmatpush1.bf16.msra.mxu0 %v1555_v37  ;;  %v1648_v44 = vld [vmem:[%s14867_s0 + $0x160] sm:$0xff] }
 0x169   : > { %5221 = vmatprep.subr.bf16.mxu0 %v10062_v33  ;;  %v1557_v50 = vpack.c.bf16 %v1169_v43, %v1166_v42  ;;  %v8597_v42 = vcombine.low %v1636_v28, %v1640_v29  ;;  %v1644_v43 = vld [vmem:[%s14867_s0 + $0x140] sm:$0xff] }
 0x16a   : > { %v1556_v51 = vpack.c.bf16 %v1161_v49, %v1158_v48  ;;  %v8606_v49 = vcombine.high %v1644_v43, %v1648_v44 }
 0x16b   : > { %4709 = vmatmul.mubr.bf16.vlgmr.msra.gmra.mrb[128].mxu0 %v8565_v45 }
 0x16c   : > { %v9208_v53 = vpop.f32.mrb[36].mxu0  ;;  %5222 = vmatpush1.bf16.msra.mxu0 %v1556_v51  ;;  %9314 = vmatpush1.bf16.msra.mxu1 %v1556_v51 }
 0x16d   : > { %v1173_v54 = vpop.f32.mrb[37].mxu0  ;;  %5223 = vmatprep.subr.bf16.mxu0 %v10062_v33  ;;  %9299 = vmatprep.subr.bf16.mxu1 %v10062_v33  ;;  %v1182_v56 = vadd.f32 %v9208_v53, %v10336_v1 }
 0x16e   : > { %v9209_v55 = vpop.f32.mrb[38].mxu0  ;;  %4716 = vmatprep.mubr.bf16.mxu0 %v8574_v52  ;;  %v1174_v62 = vadd.f32 %v10336_v1, %v1173_v54 }
 0x16f   : > { %v1185_v57 = vadd.f32 %v9209_v55, %v10336_v1  ;;  %v1176_v58 = vpop.f32.mrb[39].mxu0 }
 0x170   : > { %v1177_v63 = vadd.f32 %v10336_v1, %v1176_v58  ;;  %5224 = vmatpush1.bf16.msra.mxu0 %v1557_v50  ;;  %9315 = vmatpush1.bf16.msra.mxu1 %v1557_v50  ;;  %v1656_v58 = vld [vmem:[%s14867_s0 + $0x1a0] sm:$0xff] }
 0x171   : > { %5225 = vmatprep.subr.bf16.mxu0 %v10062_v33  ;;  %9300 = vmatprep.subr.bf16.mxu1 %v10062_v33  ;;  %v1559_v0 = vpack.c.bf16 %v1185_v57, %v1182_v56  ;;  %v8605_v56 = vcombine.low %v1644_v43, %v1648_v44  ;;  %v1652_v57 = vld [vmem:[%s14867_s0 + $0x180] sm:$0xff] }
 0x172   : > { %v1558_v2 = vpack.c.bf16 %v1177_v63, %v1174_v62  ;;  %v8614_v63 = vcombine.high %v1652_v57, %v1656_v58 }
 0x173   : > { %4717 = vmatmul.mubr.bf16.gmra.mrb[132].mxu0 %v8573_v59 }
 0x174   : > { %v9212_v4 = vpop.f32.mrb[40].mxu0  ;;  %5226 = vmatpush1.bf16.msra.mxu0 %v1558_v2  ;;  %9316 = vmatpush1.bf16.msra.mxu1 %v1558_v2 }
 0x175   : > { %v1189_v5 = vpop.f32.mrb[41].mxu0  ;;  %5227 = vmatprep.subr.bf16.mxu0 %v10062_v33  ;;  %9301 = vmatprep.subr.bf16.mxu1 %v10062_v33  ;;  %v1198_v7 = vadd.f32 %v9212_v4, %v10336_v1 }
 0x176   : > { %v9213_v6 = vpop.f32.mrb[42].mxu0  ;;  %4724 = vmatprep.mubr.bf16.mxu0 %v8582_v3  ;;  %v1190_v16 = vadd.f32 %v10336_v1, %v1189_v5 }
 0x177   : > { %v1201_v8 = vadd.f32 %v9213_v6, %v10336_v1  ;;  %v1192_v10 = vpop.f32.mrb[43].mxu0 }
 0x178   : > { %v1193_v17 = vadd.f32 %v10336_v1, %v1192_v10  ;;  %5228 = vmatpush1.bf16.msra.mxu0 %v1559_v0  ;;  %9317 = vmatpush1.bf16.msra.mxu1 %v1559_v0  ;;  %v1664_v10 = vld [vmem:[%s14867_s0 + $0x1e0] sm:$0xff] }
 0x179   : > { %5229 = vmatprep.subr.bf16.mxu0 %v10062_v33  ;;  %9302 = vmatprep.subr.bf16.mxu1 %v10062_v33  ;;  %v1561_v18 = vpack.c.bf16 %v1201_v8, %v1198_v7  ;;  %v8613_v7 = vcombine.low %v1652_v57, %v1656_v58  ;;  %v1660_v8 = vld [vmem:[%s14867_s0 + $0x1c0] sm:$0xff] }
 0x17a   : > { %v1560_v19 = vpack.c.bf16 %v1193_v17, %v1190_v16  ;;  %v8622_v17 = vcombine.high %v1660_v8, %v1664_v10 }
 0x17b   : > { %4725 = vmatmul.mubr.bf16.gmra.mrb[136].mxu0 %v8581_v11 }
 0x17c   : > { %v9216_v21 = vpop.f32.mrb[44].mxu0  ;;  %5230 = vmatpush1.bf16.msra.mxu0 %v1560_v19  ;;  %9318 = vmatpush1.bf16.msra.mxu1 %v1560_v19 }
 0x17d   : > { %v1205_v22 = vpop.f32.mrb[45].mxu0  ;;  %5231 = vmatprep.subr.bf16.mxu0 %v10062_v33  ;;  %9303 = vmatprep.subr.bf16.mxu1 %v10062_v33  ;;  %v1214_v24 = vadd.f32 %v9216_v21, %v10336_v1 }
 0x17e   : > { %v9217_v23 = vpop.f32.mrb[46].mxu0  ;;  %4732 = vmatprep.mubr.bf16.mxu0 %v8590_v20  ;;  %v1206_v30 = vadd.f32 %v10336_v1, %v1205_v22 }
 0x17f   : > { %v1217_v25 = vadd.f32 %v9217_v23, %v10336_v1  ;;  %v1208_v26 = vpop.f32.mrb[47].mxu0 }
 0x180   : > { %v1209_v31 = vadd.f32 %v10336_v1, %v1208_v26  ;;  %5232 = vmatpush1.bf16.msra.mxu0 %v1561_v18  ;;  %9319 = vmatpush1.bf16.msra.mxu1 %v1561_v18  ;;  %v1672_v26 = vld [vmem:[%s14867_s0 + $0x220] sm:$0xff] }
 0x181   : > { %5233 = vmatprep.subr.bf16.mxu0 %v10062_v33  ;;  %9304 = vmatprep.subr.bf16.mxu1 %v10062_v33  ;;  %v1563_v32 = vpack.c.bf16 %v1217_v25, %v1214_v24  ;;  %v8621_v24 = vcombine.low %v1660_v8, %v1664_v10  ;;  %v1668_v25 = vld [vmem:[%s14867_s0 + $0x200] sm:$0xff]  ;;  %v2029_v10 = vld [vmem:[%s14867_s0 + $0xd48] sm:$0xff] }
 0x182   : > { %v1562_v34 = vpack.c.bf16 %v1209_v31, %v1206_v30  ;;  %v8630_v31 = vcombine.high %v1668_v25, %v1672_v26  ;;  %v8629_v44 = vcombine.low %v1668_v25, %v1672_v26 }
 0x183   : > { %4733 = vmatmul.mubr.bf16.gmra.mrb[140].mxu0 %v8589_v27 }
 0x184   : > { %v9220_v36 = vpop.f32.mrb[48].mxu0  ;;  %5234 = vmatpush1.bf16.msra.mxu0 %v1562_v34  ;;  %9320 = vmatpush1.bf16.msra.mxu1 %v1562_v34 }
 0x185   : > { %v1221_v37 = vpop.f32.mrb[49].mxu0  ;;  %5235 = vmatprep.subr.bf16.mxu0 %v10062_v33  ;;  %9305 = vmatprep.subr.bf16.mxu1 %v10062_v33  ;;  %v1230_v39 = vadd.f32 %v9220_v36, %v10336_v1  ;;  %v1676_v36 = vld [vmem:[%s14867_s0 + $0x240] sm:$0xff] }
 0x186   : > { %v9221_v38 = vpop.f32.mrb[50].mxu0  ;;  %4740 = vmatprep.mubr.bf16.mxu0 %v8598_v35  ;;  %v1222_v45 = vadd.f32 %v10336_v1, %v1221_v37  ;;  %v1680_v37 = vld [vmem:[%s14867_s0 + $0x260] sm:$0xff] }
 0x187   : > { %v1233_v40 = vadd.f32 %v9221_v38, %v10336_v1  ;;  %v1224_v41 = vpop.f32.mrb[51].mxu0  ;;  %v8637_v58 = vcombine.low %v1676_v36, %v1680_v37 }
 0x188   : > { %v1225_v46 = vadd.f32 %v10336_v1, %v1224_v41  ;;  %5236 = vmatpush1.bf16.msra.mxu0 %v1563_v32  ;;  %9321 = vmatpush1.bf16.msra.mxu1 %v1563_v32  ;;  %v2017_v41 = vld [vmem:[%s14867_s0 + $0xce8] sm:$0xff] }
 0x189   : > { %5237 = vmatprep.subr.bf16.mxu0 %v10062_v33  ;;  %9306 = vmatprep.subr.bf16.mxu1 %v10062_v33  ;;  %v1565_v47 = vpack.c.bf16 %v1233_v40, %v1230_v39  ;;  %v2013_v40 = vld [vmem:[%s14867_s0 + $0xcc8] sm:$0xff] }
 0x18a   : > { %v1564_v48 = vpack.c.bf16 %v1225_v46, %v1222_v45  ;;  %v8638_v46 = vcombine.high %v1676_v36, %v1680_v37 }
 0x18b   : > { %4741 = vmatmul.mubr.bf16.gmra.mrb[144].mxu0 %v8597_v42 }
 0x18c   : > { %v9224_v50 = vpop.f32.mrb[52].mxu0  ;;  %5238 = vmatpush1.bf16.msra.mxu0 %v1564_v48  ;;  %9322 = vmatpush1.bf16.msra.mxu1 %v1564_v48  ;;  %v8976_v48 = vcombine.high %v2013_v40, %v2017_v41 }
 0x18d   : > { %v1237_v51 = vpop.f32.mrb[53].mxu0  ;;  %5239 = vmatprep.subr.bf16.mxu0 %v10062_v33  ;;  %9307 = vmatprep.subr.bf16.mxu1 %v10062_v33  ;;  %v1246_v53 = vadd.f32 %v9224_v50, %v10336_v1 }
 0x18e   : > { %v9225_v52 = vpop.f32.mrb[54].mxu0  ;;  %4748 = vmatprep.mubr.bf16.mxu0 %v8606_v49  ;;  %v1238_v59 = vadd.f32 %v10336_v1, %v1237_v51 }
 0x18f   : > { %v1249_v54 = vadd.f32 %v9225_v52, %v10336_v1  ;;  %v1240_v55 = vpop.f32.mrb[55].mxu0 }
 0x190   : > { %v1241_v60 = vadd.f32 %v10336_v1, %v1240_v55  ;;  %5240 = vmatpush1.bf16.msra.mxu0 %v1565_v47  ;;  %9323 = vmatpush1.bf16.msra.mxu1 %v1565_v47  ;;  %v2025_v55 = vld [vmem:[%s14867_s0 + $0xd28] sm:$0xff] }
 0x191   : > { %5241 = vmatprep.subr.bf16.mxu0 %v10062_v33  ;;  %9308 = vmatprep.subr.bf16.mxu1 %v10062_v33  ;;  %v1567_v61 = vpack.c.bf16 %v1249_v54, %v1246_v53  ;;  %v1684_v53 = vld [vmem:[%s14867_s0 + $0x280] sm:$0xff] }
 0x192   : > { %v1566_v62 = vpack.c.bf16 %v1241_v60, %v1238_v59  ;;  %v1688_v54 = vld [vmem:[%s14867_s0 + $0x2a0] sm:$0xff]  ;;  %v8975_v59 = vcombine.low %v2013_v40, %v2017_v41 }
 0x193   : > { %4749 = vmatmul.mubr.bf16.gmra.mrb[148].mxu0 %v8605_v56 }
 0x194   : > { %v9228_v0 = vpop.f32.mrb[56].mxu0  ;;  %5242 = vmatpush1.bf16.msra.mxu0 %v1566_v62  ;;  %9324 = vmatpush1.bf16.msra.mxu1 %v1566_v62 }
 0x195   : > { %v1253_v2 = vpop.f32.mrb[57].mxu0  ;;  %5243 = vmatprep.subr.bf16.mxu0 %v10062_v33  ;;  %9309 = vmatprep.subr.bf16.mxu1 %v10062_v33  ;;  %v1262_v4 = vadd.f32 %v9228_v0, %v10336_v1 }
 0x196   : > { %v9229_v3 = vpop.f32.mrb[58].mxu0  ;;  %4756 = vmatprep.mubr.bf16.mxu0 %v8614_v63  ;;  %v1254_v11 = vadd.f32 %v10336_v1, %v1253_v2 }
 0x197   : > { %v1265_v5 = vadd.f32 %v9229_v3, %v10336_v1  ;;  %v1256_v6 = vpop.f32.mrb[59].mxu0 }
 0x198   : > { %v1257_v13 = vadd.f32 %v10336_v1, %v1256_v6  ;;  %5244 = vmatpush1.bf16.msra.mxu0 %v1567_v61  ;;  %9325 = vmatpush1.bf16.msra.mxu1 %v1567_v61  ;;  %v8646_v61 = vcombine.high %v1684_v53, %v1688_v54  ;;  %v1696_v6 = vld [vmem:[%s14867_s0 + $0x2e0] sm:$0xff] }
 0x199   : > { %5245 = vmatprep.subr.bf16.mxu0 %v10062_v33  ;;  %9310 = vmatprep.subr.bf16.mxu1 %v10062_v33  ;;  %v1569_v15 = vpack.c.bf16 %v1265_v5, %v1262_v4  ;;  %v1692_v5 = vld [vmem:[%s14867_s0 + $0x2c0] sm:$0xff] }
 0x19a   : > { %v1568_v16 = vpack.c.bf16 %v1257_v13, %v1254_v11  ;;  %v2033_v11 = vld [vmem:[%s14867_s0 + $0xd68] sm:$0xff] }
 0x19b   : > { %4757 = vmatmul.mubr.bf16.gmra.mrb[152].mxu0 %v8613_v7 }
 0x19c   : > { %v9232_v18 = vpop.f32.mrb[60].mxu0  ;;  %5246 = vmatpush1.bf16.msra.mxu0 %v1568_v16  ;;  %9326 = vmatpush1.bf16.msra.mxu1 %v1568_v16 }
 0x19d   : > { %v1269_v19 = vpop.f32.mrb[61].mxu0  ;;  %5247 = vmatprep.subr.bf16.mxu0 %v10062_v33  ;;  %9311 = vmatprep.subr.bf16.mxu1 %v10062_v33  ;;  %v1278_v21 = vadd.f32 %v9232_v18, %v10336_v1 }
 0x19e   : > { %v9233_v20 = vpop.f32.mrb[62].mxu0  ;;  %4764 = vmatprep.mubr.bf16.mxu0 %v8622_v17  ;;  %v1270_v27 = vadd.f32 %v10336_v1, %v1269_v19  ;;  %v8654_v19 = vcombine.high %v1692_v5, %v1696_v6 }
 0x19f   : > { %v1281_v22 = vadd.f32 %v9233_v20, %v10336_v1  ;;  %v1272_v23 = vpop.f32.mrb[63].mxu0 }
 0x1a0   : > { %v1273_v28 = vadd.f32 %v10336_v1, %v1272_v23  ;;  %5248 = vmatpush1.bf16.msra.mxu0 %v1569_v15  ;;  %9327 = vmatpush1.bf16.msra.mxu1 %v1569_v15  ;;  %v8645_v15 = vcombine.low %v1684_v53, %v1688_v54 }
 0x1a1   : > { %5249 = vmatprep.subr.bf16.mxu0 %v10062_v33  ;;  %9312 = vmatprep.subr.bf16.mxu1 %v10062_v33  ;;  %v1571_v29 = vpack.c.bf16 %v1281_v22, %v1278_v21  ;;  %v8992_v21 = vcombine.high %v2029_v10, %v2033_v11 }
 0x1a2   : > { %v1570_v30 = vpack.c.bf16 %v1273_v28, %v1270_v27  ;;  %v1704_v27 = vld [vmem:[%s14867_s0 + $0x320] sm:$0xff]  ;;  %v2037_v28 = vld [vmem:[%s14867_s0 + $0xd88] sm:$0xff] }
 0x1a3   : > { %4765 = vmatmul.mubr.bf16.gmra.mrb[156].mxu0 %v8621_v24  ;;  %v1700_v24 = vld [vmem:[%s14867_s0 + $0x300] sm:$0xff] }
 0x1a4   : > { %v9236_v32 = vpop.f32.mrb[64].mxu0  ;;  %5250 = vmatpush1.bf16.msra.mxu0 %v1570_v30  ;;  %9328 = vmatpush1.bf16.msra.mxu1 %v1570_v30 }
 0x1a5   : > { %v1294_v34 = vadd.f32 %v9236_v32, %v10336_v1  ;;  %v1285_v35 = vpop.f32.mrb[65].mxu0  ;;  %5251 = vmatprep.subr.bf16.mxu0 %v10062_v33  ;;  %9313 = vmatprep.subr.bf16.mxu1 %v10062_v33  ;;  %v8653_v32 = vcombine.low %v1692_v5, %v1696_v6 }
 0x1a6   : > { %v1286_v38 = vadd.f32 %v10336_v1, %v1285_v35  ;;  %v9237_v39 = vpop.f32.mrb[66].mxu0  ;;  %4772 = vmatprep.mubr.bf16.mxu0 %v8630_v31 }
 0x1a7   : > { %v1297_v42 = vadd.f32 %v9237_v39, %v10336_v1  ;;  %v1288_v43 = vpop.f32.mrb[67].mxu0 }
 0x1a8   : > { %v1289_v45 = vadd.f32 %v10336_v1, %v1288_v43  ;;  %5252 = vmatpush1.bf16.msra.mxu0 %v1571_v29  ;;  %9329 = vmatpush1.bf16.msra.mxu1 %v1571_v29  ;;  %v2041_v29 = vld [vmem:[%s14867_s0 + $0xda8] sm:$0xff] }
 0x1a9   : > { %5766 = vmatprep.subr.bf16.mxu1 %v10062_v33  ;;  %v1573_v47 = vpack.c.bf16 %v1297_v42, %v1294_v34  ;;  %v8991_v34 = vcombine.low %v2029_v10, %v2033_v11  ;;  %v9000_v39 = vcombine.high %v2037_v28, %v2041_v29  ;;  %v1708_v42 = vld [vmem:[%s14867_s0 + $0x340] sm:$0xff] }
 0x1aa   : > { %v1572_v49 = vpack.c.bf16 %v1289_v45, %v1286_v38  ;;  %v8662_v38 = vcombine.high %v1700_v24, %v1704_v27  ;;  %v2045_v45 = vld [vmem:[%s14867_s0 + $0xdc8] sm:$0xff] }
 0x1ab   : > { %4773 = vmatmul.mubr.bf16.gmra.mrb[160].mxu0 %v8629_v44  ;;  %5654 = vmatmul.mubr.bf16.vlgmr.msra.gmra.mrb[0].mxu1 %v8967_v14  ;;  %v2021_v14 = vld [vmem:[%s14867_s0 + $0xd08] sm:$0xff]  ;;  %v1712_v44 = vld [vmem:[%s14867_s0 + $0x360] sm:$0xff] }
 0x1ac   : > { %v9240_v50 = vpop.f32.mrb[68].mxu0  ;;  %5767 = vmatpush1.bf16.msra.mxu1 %v1572_v49  ;;  %4780 = vmatprep.mubr.bf16.mxu0 %v8638_v46  ;;  %v8984_v63 = vcombine.high %v2021_v14, %v2025_v55  ;;  %v8983_v16 = vcombine.low %v2021_v14, %v2025_v55  ;;  %v2049_v46 = vld [vmem:[%s14867_s0 + $0xde8] sm:$0xff] }
 0x1ad   : > { %v1310_v51 = vadd.f32 %v9240_v50, %v10336_v1  ;;  %v1301_v52 = vpop.f32.mrb[69].mxu0  ;;  %5768 = vmatprep.subr.bf16.mxu1 %v10062_v33  ;;  %5661 = vmatprep.mubr.bf16.mxu1 %v8976_v48 }
 0x1ae   : > { %v1302_v9 = vadd.f32 %v10336_v1, %v1301_v52  ;;  %v9241_v12 = vpop.f32.mrb[70].mxu0  ;;  %v8999_v52 = vcombine.low %v2037_v28, %v2041_v29 }
 0x1af   : > { %v1313_v56 = vadd.f32 %v9241_v12, %v10336_v1  ;;  %v1304_v57 = vpop.f32.mrb[71].mxu0  ;;  %v9008_v12 = vcombine.high %v2045_v45, %v2049_v46 }
 0x1b0   : > { %v1305_v60 = vadd.f32 %v10336_v1, %v1304_v57  ;;  %5769 = vmatpush1.bf16.msra.mxu1 %v1573_v47  ;;  %v1716_v57 = vld [vmem:[%s14867_s0 + $0x380] sm:$0xff] }
 0x1b1   : > { %5770 = vmatprep.subr.bf16.mxu1 %v10062_v33  ;;  %v1575_v62 = vpack.c.bf16 %v1313_v56, %v1310_v51  ;;  %v8661_v51 = vcombine.low %v1700_v24, %v1704_v27 }
 0x1b2   : > { %v1574_v0 = vpack.c.bf16 %v1305_v60, %v1302_v9  ;;  %v8670_v9 = vcombine.high %v1708_v42, %v1712_v44  ;;  %v2053_v60 = vld [vmem:[%s14867_s0 + $0xe08] sm:$0xff] }
 0x1b3   : > { %4781 = vmatmul.mubr.bf16.gmra.mrb[164].mxu0 %v8637_v58  ;;  %5662 = vmatmul.mubr.bf16.gmra.mrb[4].mxu1 %v8975_v59  ;;  %v1720_v59 = vld [vmem:[%s14867_s0 + $0x3a0] sm:$0xff] }
 0x1b4   : > { %5771 = vmatpush1.bf16.msra.mxu1 %v1574_v0  ;;  %v9244_v2 = vpop.f32.mrb[72].mxu0  ;;  %4788 = vmatprep.mubr.bf16.mxu0 %v8646_v61  ;;  %v2057_v61 = vld [vmem:[%s14867_s0 + $0xe28] sm:$0xff]  ;;  %v8677_v24 = vcombine.low %v1716_v57, %v1720_v59 }
 0x1b5   : > { %5772 = vmatprep.subr.bf16.mxu1 %v10062_v33  ;;  %v1326_v3 = vadd.f32 %v9244_v2, %v10336_v1  ;;  %v1317_v4 = vpop.f32.mrb[73].mxu0  ;;  %5669 = vmatprep.mubr.bf16.mxu1 %v8984_v63 }
 0x1b6   : > { %v1318_v7 = vadd.f32 %v10336_v1, %v1317_v4  ;;  %v9245_v8 = vpop.f32.mrb[74].mxu0  ;;  %v9007_v4 = vcombine.low %v2045_v45, %v2049_v46 }
 0x1b7   : > { %v1329_v13 = vadd.f32 %v9245_v8, %v10336_v1  ;;  %v1320_v17 = vpop.f32.mrb[75].mxu0  ;;  %v9016_v8 = vcombine.high %v2053_v60, %v2057_v61 }
 0x1b8   : > { %5773 = vmatpush1.bf16.msra.mxu1 %v1575_v62  ;;  %v1321_v18 = vadd.f32 %v10336_v1, %v1320_v17  ;;  %v1728_v17 = vld [vmem:[%s14867_s0 + $0x3e0] sm:$0xff] }
 0x1b9   : > { %v1577_v20 = vpack.c.bf16 %v1329_v13, %v1326_v3  ;;  %5774 = vmatprep.subr.bf16.mxu1 %v10062_v33  ;;  %v8669_v3 = vcombine.low %v1708_v42, %v1712_v44 }
 0x1ba   : > { %v1576_v22 = vpack.c.bf16 %v1321_v18, %v1318_v7  ;;  %v8678_v7 = vcombine.high %v1716_v57, %v1720_v59  ;;  %v2061_v18 = vld [vmem:[%s14867_s0 + $0xe48] sm:$0xff] }
 0x1bb   : > { %4789 = vmatmul.mubr.bf16.gmra.mrb[168].mxu0 %v8645_v15  ;;  %5670 = vmatmul.mubr.bf16.gmra.mrb[8].mxu1 %v8983_v16  ;;  %v1724_v15 = vld [vmem:[%s14867_s0 + $0x3c0] sm:$0xff] }
 0x1bc   : > { %5775 = vmatpush1.bf16.msra.mxu1 %v1576_v22  ;;  %4796 = vmatprep.mubr.bf16.mxu0 %v8654_v19  ;;  %v9248_v23 = vpop.f32.mrb[76].mxu0  ;;  %v2065_v19 = vld [vmem:[%s14867_s0 + $0xe68] sm:$0xff]  ;;  %v8686_v28 = vcombine.high %v1724_v15, %v1728_v17 }
 0x1bd   : > { %5677 = vmatprep.mubr.bf16.mxu1 %v8992_v21  ;;  %5776 = vmatprep.subr.bf16.mxu1 %v10062_v33  ;;  %v1342_v25 = vadd.f32 %v9248_v23, %v10336_v1  ;;  %v1333_v26 = vpop.f32.mrb[77].mxu0  ;;  %v9024_v29 = vcombine.high %v2061_v18, %v2065_v19  ;;  %v9023_v44 = vcombine.low %v2061_v18, %v2065_v19 }
 0x1be   : > { %v1334_v30 = vadd.f32 %v10336_v1, %v1333_v26  ;;  %v9249_v31 = vpop.f32.mrb[78].mxu0 }
 0x1bf   : > { %v1345_v35 = vadd.f32 %v9249_v31, %v10336_v1  ;;  %v1336_v36 = vpop.f32.mrb[79].mxu0 }
 0x1c0   : > { %5777 = vmatpush1.bf16.msra.mxu1 %v1577_v20  ;;  %v1337_v37 = vadd.f32 %v10336_v1, %v1336_v36  ;;  %v1736_v36 = vld [vmem:[%s14867_s0 + $0x420] sm:$0xff] }
 0x1c1   : > { %v1579_v40 = vpack.c.bf16 %v1345_v35, %v1342_v25  ;;  %5778 = vmatprep.subr.bf16.mxu1 %v10062_v33  ;;  %v9015_v25 = vcombine.low %v2053_v60, %v2057_v61 }
 0x1c2   : > { %v1578_v41 = vpack.c.bf16 %v1337_v37, %v1334_v30  ;;  %v2073_v37 = vld [vmem:[%s14867_s0 + $0xea8] sm:$0xff] }
 0x1c3   : > { %4797 = vmatmul.mubr.bf16.gmra.mrb[172].mxu0 %v8653_v32  ;;  %5678 = vmatmul.mubr.bf16.gmra.mrb[12].mxu1 %v8991_v34  ;;  %v1732_v34 = vld [vmem:[%s14867_s0 + $0x400] sm:$0xff] }
 0x1c4   : > { %4804 = vmatprep.mubr.bf16.mxu0 %v8662_v38  ;;  %5685 = vmatprep.mubr.bf16.mxu1 %v9000_v39  ;;  %v9252_v43 = vpop.f32.mrb[80].mxu0  ;;  %v10665_v38 = vld [vmem:[%s10117_s27] ss:$0 sm:$0xff] }
 0x1c5   : > { %5779 = vmatpush1.bf16.msra.mxu1 %v1578_v41  ;;  %v1358_v47 = vadd.f32 %v9252_v43, %v10336_v1  ;;  %v1349_v48 = vpop.f32.mrb[81].mxu0  ;;  %v8685_v43 = vcombine.low %v1724_v15, %v1728_v17 }
 0x1c6   : > { %5780 = vmatprep.subr.bf16.mxu1 %v10062_v33  ;;  %v1350_v49 = vadd.f32 %v10336_v1, %v1349_v48  ;;  %v9253_v50 = vpop.f32.mrb[82].mxu0 }
 0x1c7   : > { %v1361_v53 = vadd.f32 %v9253_v50, %v10336_v1  ;;  %v1352_v54 = vpop.f32.mrb[83].mxu0 }
 0x1c8   : > { %v1353_v14 = vadd.f32 %v10336_v1, %v1352_v54  ;;  %v1744_v54 = vld [vmem:[%s14867_s0 + $0x460] sm:$0xff] }
 0x1c9   : > { %5781 = vmatpush1.bf16.msra.mxu1 %v1579_v40  ;;  %v1581_v55 = vpack.c.bf16 %v1361_v53, %v1358_v47  ;;  %v8694_v47 = vcombine.high %v1732_v34, %v1736_v36 }
 0x1ca   : > { %v1580_v56 = vpack.c.bf16 %v1353_v14, %v1350_v49  ;;  %5782 = vmatprep.subr.bf16.mxu1 %v10062_v33 }
 0x1cb   : > { %4805 = vmatmul.mubr.bf16.gmra.mrb[176].mxu0 %v8661_v51  ;;  %5686 = vmatmul.mubr.bf16.gmra.mrb[16].mxu1 %v8999_v52  ;;  %v1740_v52 = vld [vmem:[%s14867_s0 + $0x440] sm:$0xff] }
 0x1cc   : > { %4812 = vmatprep.mubr.bf16.mxu0 %v8670_v9  ;;  %5693 = vmatprep.mubr.bf16.mxu1 %v9008_v12  ;;  %v9256_v58 = vpop.f32.mrb[84].mxu0  ;;  %v2077_v9 = vld [vmem:[%s14867_s0 + $0xec8] sm:$0xff] }
 0x1cd   : > { %5783 = vmatpush1.bf16.msra.mxu1 %v1580_v56  ;;  %v1374_v62 = vadd.f32 %v9256_v58, %v10336_v1  ;;  %v1365_v63 = vpop.f32.mrb[85].mxu0  ;;  %v2081_v12 = vld [vmem:[%s14867_s0 + $0xee8] sm:$0xff]  ;;  %v8693_v58 = vcombine.low %v1732_v34, %v1736_v36  ;;  %v1764_v34 = vld [vmem:[%s14867_s0 + $0x500] sm:$0xff] }
 0x1ce   : > { %5784 = vmatprep.subr.bf16.mxu1 %v10062_v33  ;;  %v1366_v0 = vadd.f32 %v10336_v1, %v1365_v63  ;;  %v9257_v2 = vpop.f32.mrb[86].mxu0  ;;  %v9040_v63 = vcombine.high %v2077_v9, %v2081_v12  ;;  %v9039_v17 = vcombine.low %v2077_v9, %v2081_v12  ;;  %v2101_v36 = vld [vmem:[%s14867_s0 + $0xf88] sm:$0xff]  ;;  %v1606_v9 = vld [vmem:[%s14867_s0 + $0x10] sm:$0xff] }
 0x1cf   : > { %v1377_v5 = vadd.f32 %v9257_v2, %v10336_v1  ;;  %v1368_v6 = vpop.f32.mrb[87].mxu0  ;;  %v1610_v12 = vld [vmem:[%s14867_s0 + $0x30] sm:$0xff] }
 0x1d0   : > { %v1369_v10 = vadd.f32 %v10336_v1, %v1368_v6  ;;  %v1752_v6 = vld [vmem:[%s14867_s0 + $0x4a0] sm:$0xff] }
 0x1d1   : > { %5785 = vmatpush1.bf16.msra.mxu1 %v1581_v55  ;;  %v1583_v11 = vpack.c.bf16 %v1377_v5, %v1374_v62  ;;  %v8702_v62 = vcombine.high %v1740_v52, %v1744_v54 }
 0x1d2   : > { %v1582_v13 = vpack.c.bf16 %v1369_v10, %v1366_v0  ;;  %5786 = vmatprep.subr.bf16.mxu1 %v10062_v33 }
 0x1d3   : > { %4813 = vmatmul.mubr.bf16.gmra.mrb[180].mxu0 %v8669_v3  ;;  %5694 = vmatmul.mubr.bf16.gmra.mrb[20].mxu1 %v9007_v4  ;;  %v1748_v4 = vld [vmem:[%s14867_s0 + $0x480] sm:$0xff] }
 0x1d4   : > { %4820 = vmatprep.mubr.bf16.mxu0 %v8678_v7  ;;  %5701 = vmatprep.mubr.bf16.mxu1 %v9016_v8  ;;  %v9260_v16 = vpop.f32.mrb[88].mxu0  ;;  %v2085_v7 = vld [vmem:[%s14867_s0 + $0xf08] sm:$0xff] }
 0x1d5   : > { %5787 = vmatpush1.bf16.msra.mxu1 %v1582_v13  ;;  %v1390_v20 = vadd.f32 %v9260_v16, %v10336_v1  ;;  %v1381_v21 = vpop.f32.mrb[89].mxu0  ;;  %v2089_v8 = vld [vmem:[%s14867_s0 + $0xf28] sm:$0xff]  ;;  %v8701_v16 = vcombine.low %v1740_v52, %v1744_v54  ;;  %v1784_v54 = vld [vmem:[%s14867_s0 + $0x5a0] sm:$0xff] }
 0x1d6   : > { %5788 = vmatprep.subr.bf16.mxu1 %v10062_v33  ;;  %v1382_v22 = vadd.f32 %v10336_v1, %v1381_v21  ;;  %v9261_v23 = vpop.f32.mrb[90].mxu0  ;;  %v9048_v21 = vcombine.high %v2085_v7, %v2089_v8 }
 0x1d7   : > { %v1393_v26 = vadd.f32 %v9261_v23, %v10336_v1  ;;  %v1384_v27 = vpop.f32.mrb[91].mxu0 }
 0x1d8   : > { %v1385_v30 = vadd.f32 %v10336_v1, %v1384_v27  ;;  %v2069_v1 = vld [vmem:[%s14867_s0 + $0xe88] sm:$0xff] }
 0x1d9   : > { %5789 = vmatpush1.bf16.msra.mxu1 %v1583_v11  ;;  %v1585_v31 = vpack.c.bf16 %v1393_v26, %v1390_v20  ;;  %v9032_v48 = vcombine.high %v2069_v1, %v2073_v37  ;;  %v9031_v59 = vcombine.low %v2069_v1, %v2073_v37  ;;  %v8710_v20 = vcombine.high %v1748_v4, %v1752_v6  ;;  %v1760_v26 = vld [vmem:[%s14867_s0 + $0x4e0] sm:$0xff]  ;;  %v2093_v27 = vld [vmem:[%s14867_s0 + $0xf48] sm:$0xff] }
 0x1da   : > { %v1584_v32 = vpack.c.bf16 %v1385_v30, %v1382_v22  ;;  %5790 = vmatprep.subr.bf16.mxu1 %v10062_v33  ;;  %v9047_v30 = vcombine.low %v2085_v7, %v2089_v8  ;;  %v2105_v1 = vld [vmem:[%s14867_s0 + $0xfa8] sm:$0xff]  ;;  %v1788_v8 = vld [vmem:[%s14867_s0 + $0x5c0] sm:$0xff] }
 0x1db   : > { %4821 = vmatmul.mubr.bf16.gmra.mrb[184].mxu0 %v8677_v24  ;;  %5702 = vmatmul.mubr.bf16.gmra.mrb[24].mxu1 %v9015_v25  ;;  %v1756_v25 = vld [vmem:[%s14867_s0 + $0x4c0] sm:$0xff] }
 0x1dc   : > { %4828 = vmatprep.mubr.bf16.mxu0 %v8686_v28  ;;  %5709 = vmatprep.mubr.bf16.mxu1 %v9024_v29  ;;  %v9264_v35 = vpop.f32.mrb[92].mxu0  ;;  %v2097_v28 = vld [vmem:[%s14867_s0 + $0xf68] sm:$0xff]  ;;  %v8709_v29 = vcombine.low %v1748_v4, %v1752_v6  ;;  %v8717_v37 = vcombine.low %v1756_v25, %v1760_v26 }
 0x1dd   : > { %5791 = vmatpush1.bf16.msra.mxu1 %v1584_v32  ;;  %v1406_v39 = vadd.f32 %v10665_v38, %v9264_v35  ;;  %v1397_v40 = vpop.f32.mrb[93].mxu0  ;;  %v9056_v32 = vcombine.high %v2093_v27, %v2097_v28  ;;  %v1768_v35 = vld [vmem:[%s14867_s0 + $0x520] sm:$0xff] }
 0x1de   : > { %5792 = vmatprep.subr.bf16.mxu1 %v10062_v33  ;;  %v1398_v41 = vadd.f32 %v10665_v38, %v1397_v40  ;;  %v9265_v42 = vpop.f32.mrb[94].mxu0  ;;  %v8726_v40 = vcombine.high %v1764_v34, %v1768_v35 }
 0x1df   : > { %v1409_v45 = vadd.f32 %v10665_v38, %v9265_v42  ;;  %v1400_v46 = vpop.f32.mrb[95].mxu0  ;;  %v1772_v42 = vld [vmem:[%s14867_s0 + $0x540] sm:$0xff] }
 0x1e0   : > { %v1401_v49 = vadd.f32 %v10665_v38, %v1400_v46  ;;  %v8725_v46 = vcombine.low %v1764_v34, %v1768_v35 }
 0x1e1   : > { %5793 = vmatpush1.bf16.msra.mxu1 %v1585_v31  ;;  %v1587_v50 = vpack.c.bf16 %v1409_v45, %v1406_v39  ;;  %v8718_v31 = vcombine.high %v1756_v25, %v1760_v26  ;;  %v9055_v39 = vcombine.low %v2093_v27, %v2097_v28  ;;  %v2113_v45 = vld [vmem:[%s14867_s0 + $0xfe8] sm:$0xff]  ;;  %v1796_v25 = vld [vmem:[%s14867_s0 + $0x600] sm:$0xff]  ;;  %v1622_v27 = vld [vmem:[%s14867_s0 + $0x90] sm:$0xff] }
 0x1e2   : > { %v1586_v51 = vpack.c.bf16 %v1401_v49, %v1398_v41  ;;  %5794 = vmatprep.subr.bf16.mxu1 %v10062_v33  ;;  %v9064_v41 = vcombine.high %v2101_v36, %v2105_v1  ;;  %v1800_v26 = vld [vmem:[%s14867_s0 + $0x620] sm:$0xff] }
 0x1e3   : > { %4829 = vmatmul.mubr.bf16.gmra.mrb[188].mxu0 %v8685_v43  ;;  %5710 = vmatmul.mubr.bf16.gmra.mrb[28].mxu1 %v9023_v44  ;;  %v1776_v43 = vld [vmem:[%s14867_s0 + $0x560] sm:$0xff]  ;;  %v2109_v44 = vld [vmem:[%s14867_s0 + $0xfc8] sm:$0xff]  ;;  %v8758_v28 = vcombine.high %v1796_v25, %v1800_v26 }
 0x1e4   : > { %4836 = vmatprep.mubr.bf16.mxu0 %v8694_v47  ;;  %5717 = vmatprep.mubr.bf16.mxu1 %v9032_v48  ;;  %v9268_v53 = vpop.f32.mrb[96].mxu0  ;;  %v9063_v47 = vcombine.low %v2101_v36, %v2105_v1  ;;  %v8734_v48 = vcombine.high %v1772_v42, %v1776_v43  ;;  %v9072_v49 = vcombine.high %v2109_v44, %v2113_v45 }
 0x1e5   : > { %5795 = vmatpush1.bf16.msra.mxu1 %v1586_v51  ;;  %v10686_v14 = vadd.f32 %v10665_v38, %v9268_v53  ;;  %v1413_v55 = vpop.f32.mrb[97].mxu0  ;;  %v1780_v51 = vld [vmem:[%s14867_s0 + $0x580] sm:$0xff] }
 0x1e6   : > { %5796 = vmatprep.subr.bf16.mxu1 %v10062_v33  ;;  %v10690_v56 = vadd.f32 %v10665_v38, %v1413_v55  ;;  %v9269_v57 = vpop.f32.mrb[98].mxu0  ;;  %v8742_v4 = vcombine.high %v1780_v51, %v1784_v54 }
 0x1e7   : > { %v10693_v60 = vadd.f32 %v10665_v38, %v9269_v57  ;;  %v1416_v61 = vpop.f32.mrb[99].mxu0 }
 0x1e8   : > { %v10696_v0 = vadd.f32 %v10665_v38, %v1416_v61  ;;  %v8733_v61 = vcombine.low %v1772_v42, %v1776_v43 }
 0x1e9   : > { %5797 = vmatpush1.bf16.msra.mxu1 %v1587_v50  ;;  %v1589_v2 = vpack.c.bf16 %v10693_v60, %v10686_v14  ;;  %v1630_v14 = vld [vmem:[%s14867_s0 + $0xd0] sm:$0xff] }
 0x1ea   : > { %v1588_v3 = vpack.c.bf16 %v10696_v0, %v10690_v56  ;;  %6311 = vmatprep.subr.bf16.mxu1 %v10062_v33  ;;  %v1626_v56 = vld [vmem:[%s14867_s0 + $0xb0] sm:$0xff] }
 0x1eb   : > { %4837 = vmatmul.mubr.bf16.gmra.mrb[192].mxu0 %v8693_v58  ;;  %5718 = vmatmul.mubr.bf16.gmra.mrb[32].mxu1 %v9031_v59  ;;  %v1634_v60 = vld [vmem:[%s14867_s0 + $0xf0] sm:$0xff] }
 0x1ec   : > { %4844 = vmatprep.mubr.bf16.mxu0 %v8702_v62  ;;  %5725 = vmatprep.mubr.bf16.mxu1 %v9040_v63  ;;  %v9272_v5 = vpop.f32.mrb[100].mxu0  ;;  %v9071_v62 = vcombine.low %v2109_v44, %v2113_v45  ;;  %v8594_v35 = vcombine.high %v1630_v14, %v1634_v60 }
 0x1ed   : > { %v10716_v10 = vadd.f32 %v10665_v38, %v9272_v5  ;;  %v1429_v11 = vpop.f32.mrb[101].mxu0  ;;  %v8570_v5 = vcombine.high %v1606_v9, %v1610_v12 }
 0x1ee   : > { %v10719_v13 = vadd.f32 %v10665_v38, %v1429_v11  ;;  %v9273_v15 = vpop.f32.mrb[102].mxu0  ;;  %v1792_v11 = vld [vmem:[%s14867_s0 + $0x5e0] sm:$0xff] }
 0x1ef   : > { %v10722_v18 = vadd.f32 %v10665_v38, %v9273_v15  ;;  %v1432_v19 = vpop.f32.mrb[103].mxu0  ;;  %v1614_v15 = vld [vmem:[%s14867_s0 + $0x50] sm:$0xff]  ;;  %v8749_v0 = vcombine.low %v1788_v8, %v1792_v11 }
 0x1f0   : > { %v10725_v22 = vadd.f32 %v10665_v38, %v1432_v19  ;;  %v8741_v19 = vcombine.low %v1780_v51, %v1784_v54  ;;  %v1836_v54 = vld [vmem:[%s14867_s0 + $0x740] sm:$0xff] }
 0x1f1   : > { %v1591_v23 = vpack.c.bf16 %v10722_v18, %v10716_v10  ;;  %v1642_v10 = vld [vmem:[%s14867_s0 + $0x130] sm:$0xff] }
 0x1f2   : > { %v1590_v24 = vpack.c.bf16 %v10725_v22, %v10719_v13  ;;  %v1812_v13 = vld [vmem:[%s14867_s0 + $0x680] sm:$0xff] }
 0x1f3   : > { %4845 = vmatmul.mubr.bf16.gmra.mrb[196].mxu0 %v8701_v16  ;;  %5726 = vmatmul.mubr.bf16.gmra.mrb[36].mxu1 %v9039_v17  ;;  %v1618_v16 = vld [vmem:[%s14867_s0 + $0x70] sm:$0xff]  ;;  %v8569_v17 = vcombine.low %v1606_v9, %v1610_v12  ;;  %v1816_v22 = vld [vmem:[%s14867_s0 + $0x6a0] sm:$0xff] }
 0x1f4   : > { %4852 = vmatprep.mubr.bf16.mxu0 %v8710_v20  ;;  %5733 = vmatprep.mubr.bf16.mxu1 %v9048_v21  ;;  %v9276_v50 = vpop.f32.mrb[104].mxu0  ;;  %v8750_v20 = vcombine.high %v1788_v8, %v1792_v11  ;;  %v8578_v21 = vcombine.high %v1614_v15, %v1618_v16  ;;  %v8774_v36 = vcombine.high %v1812_v13, %v1816_v22  ;;  %v1840_v9 = vld [vmem:[%s14867_s0 + $0x760] sm:$0xff]  ;;  %v1662_v12 = vld [vmem:[%s14867_s0 + $0x1d0] sm:$0xff] }
 0x1f5   : > { %v10771_v52 = vadd.f32 %v10665_v38, %v9276_v50  ;;  %v1445_v53 = vpop.f32.mrb[105].mxu0  ;;  %v8773_v42 = vcombine.low %v1812_v13, %v1816_v22  ;;  %v1674_v8 = vld [vmem:[%s14867_s0 + $0x230] sm:$0xff] }
 0x1f6   : > { %v10783_v55 = vadd.f32 %v10665_v38, %v1445_v53  ;;  %v9277_v57 = vpop.f32.mrb[106].mxu0 }
 0x1f7   : > { %v10786_v58 = vadd.f32 %v10665_v38, %v9277_v57  ;;  %v1448_v59 = vpop.f32.mrb[107].mxu0 }
 0x1f8   : > { %v1449_v63 = vadd.f32 %v10665_v38, %v1448_v59  ;;  %v8798_v59 = vcombine.high %v1836_v54, %v1840_v9 }
 0x1f9   : > { %v1593_v6 = vpack.c.bf16 %v10786_v58, %v10771_v52 }
 0x1fa   : > { %v1592_v7 = vpack.c.bf16 %v1449_v63, %v10783_v55  ;;  %v1666_v55 = vld [vmem:[%s14867_s0 + $0x1f0] sm:$0xff]  ;;  %v1844_v63 = vld [vmem:[%s14867_s0 + $0x780] sm:$0xff] }
 0x1fb   : > { %4853 = vmatmul.mubr.bf16.gmra.mrb[200].mxu0 %v8709_v29  ;;  %5734 = vmatmul.mubr.bf16.gmra.mrb[40].mxu1 %v9047_v30  ;;  %v8586_v29 = vcombine.high %v1622_v27, %v1626_v56  ;;  %v1804_v30 = vld [vmem:[%s14867_s0 + $0x640] sm:$0xff] }
 0x1fc   : > { %4860 = vmatprep.mubr.bf16.mxu0 %v8718_v31  ;;  %5741 = vmatprep.mubr.bf16.mxu1 %v9056_v32  ;;  %v1808_v31 = vld [vmem:[%s14867_s0 + $0x660] sm:$0xff]  ;;  %v8585_v32 = vcombine.low %v1622_v27, %v1626_v56 }
 0x1fd   : > { %v8766_v34 = vcombine.high %v1804_v30, %v1808_v31  ;;  %v8765_v18 = vcombine.low %v1804_v30, %v1808_v31 }
 0x203   : > { %4861 = vmatmul.mubr.bf16.gmra.mrb[204].mxu0 %v8717_v37  ;;  %5742 = vmatmul.mubr.bf16.gmra.mrb[44].mxu1 %v9055_v39  ;;  %v1820_v37 = vld [vmem:[%s14867_s0 + $0x6c0] sm:$0xff] }
 0x204   : > { %4868 = vmatprep.mubr.bf16.mxu0 %v8726_v40  ;;  %5749 = vmatprep.mubr.bf16.mxu1 %v9064_v41  ;;  %v1824_v39 = vld [vmem:[%s14867_s0 + $0x6e0] sm:$0xff]  ;;  %v1646_v40 = vld [vmem:[%s14867_s0 + $0x150] sm:$0xff] }
 0x205   : > { %v1650_v41 = vld [vmem:[%s14867_s0 + $0x170] sm:$0xff]  ;;  %v8782_v44 = vcombine.high %v1820_v37, %v1824_v39  ;;  %v8781_v50 = vcombine.low %v1820_v37, %v1824_v39 }
 0x206   : > { %v8610_v45 = vcombine.high %v1646_v40, %v1650_v41  ;;  %v8609_v51 = vcombine.low %v1646_v40, %v1650_v41 }
 0x20b   : > { %4869 = vmatmul.mubr.bf16.gmra.mrb[208].mxu0 %v8725_v46  ;;  %5750 = vmatmul.mubr.bf16.gmra.mrb[48].mxu1 %v9063_v47  ;;  %v1828_v46 = vld [vmem:[%s14867_s0 + $0x700] sm:$0xff] }
 0x20c   : > { %4876 = vmatprep.mubr.bf16.mxu0 %v8734_v48  ;;  %5757 = vmatprep.mubr.bf16.mxu1 %v9072_v49  ;;  %v1832_v47 = vld [vmem:[%s14867_s0 + $0x720] sm:$0xff]  ;;  %v1654_v48 = vld [vmem:[%s14867_s0 + $0x190] sm:$0xff] }
 0x20d   : > { %v1658_v49 = vld [vmem:[%s14867_s0 + $0x1b0] sm:$0xff]  ;;  %v8790_v52 = vcombine.high %v1828_v46, %v1832_v47  ;;  %v8789_v57 = vcombine.low %v1828_v46, %v1832_v47 }
 0x20e   : > { %v8618_v53 = vcombine.high %v1654_v48, %v1658_v49  ;;  %v8617_v58 = vcombine.low %v1654_v48, %v1658_v49 }
 0x213   : > { %4877 = vmatmul.mubr.bf16.gmra.mrb[212].mxu0 %v8733_v61  ;;  %5758 = vmatmul.mubr.bf16.gmra.mrb[52].mxu1 %v9071_v62  ;;  %v8626_v61 = vcombine.high %v1662_v12, %v1666_v55  ;;  %v9280_v62 = vpop.f32.mrb[108].mxu0 }
 0x214   : > { %4884 = vmatprep.mubr.bf16.mxu0 %v8742_v4  ;;  %5798 = vmatprep.mubr.bf16.mxu1 %v8570_v5  ;;  %v1470_v4 = vadd.f32 %v10665_v38, %v9280_v62  ;;  %v1461_v5 = vpop.f32.mrb[109].mxu0  ;;  %v1896_v62 = vld [vmem:[%s14867_s0 + $0x920] sm:$0xff] }
 0x215   : > { %v1462_v11 = vadd.f32 %v10665_v38, %v1461_v5 }
 0x21b   : > { %4885 = vmatmul.mubr.bf16.gmra.mrb[216].mxu0 %v8741_v19  ;;  %5799 = vmatmul.mubr.bf16.vlgmr.msra.gmra.mrb[56].mxu1 %v8569_v17  ;;  %v8797_v19 = vcombine.low %v1836_v54, %v1840_v9 }
 0x21c   : > { %6312 = vmatpush1.bf16.msra.mxu1 %v1588_v3  ;;  %4892 = vmatprep.mubr.bf16.mxu0 %v8750_v20  ;;  %v8577_v3 = vcombine.low %v1614_v15, %v1618_v16  ;;  %v9281_v15 = vpop.f32.mrb[110].mxu0  ;;  %v8625_v20 = vcombine.low %v1662_v12, %v1666_v55 }
 0x21d   : > { %6313 = vmatprep.subr.bf16.mxu1 %v10062_v33  ;;  %5806 = vmatprep.mubr.bf16.mxu1 %v8578_v21  ;;  %v1473_v16 = vadd.f32 %v10665_v38, %v9281_v15  ;;  %v1464_v17 = vpop.f32.mrb[111].mxu0 }
 0x21e   : > { %v1465_v21 = vadd.f32 %v10665_v38, %v1464_v17 }
 0x21f   : > { %v1595_v27 = vpack.c.bf16 %v1473_v16, %v1470_v4  ;;  %v1722_v4 = vld [vmem:[%s14867_s0 + $0x3b0] sm:$0xff] }
 0x220   : > { %6314 = vmatpush1.bf16.msra.mxu1 %v1589_v2  ;;  %v8757_v2 = vcombine.low %v1796_v25, %v1800_v26  ;;  %v1594_v56 = vpack.c.bf16 %v1465_v21, %v1462_v11 }
 0x221   : > { %6315 = vmatprep.subr.bf16.mxu1 %v10062_v33 }
 0x223   : > { %4893 = vmatmul.mubr.bf16.gmra.mrb[220].mxu0 %v8749_v0  ;;  %5807 = vmatmul.mubr.bf16.gmra.mrb[60].mxu1 %v8577_v3  ;;  %v1852_v0 = vld [vmem:[%s14867_s0 + $0x7c0] sm:$0xff] }
 0x224   : > { %4900 = vmatprep.mubr.bf16.mxu0 %v8758_v28  ;;  %5814 = vmatprep.mubr.bf16.mxu1 %v8586_v29  ;;  %v1856_v3 = vld [vmem:[%s14867_s0 + $0x7e0] sm:$0xff]  ;;  %v1678_v28 = vld [vmem:[%s14867_s0 + $0x250] sm:$0xff] }
 0x225   : > { %6316 = vmatpush1.bf16.msra.mxu1 %v1590_v24  ;;  %v1638_v24 = vld [vmem:[%s14867_s0 + $0x110] sm:$0xff]  ;;  %v8813_v13 = vcombine.low %v1852_v0, %v1856_v3 }
 0x226   : > { %6317 = vmatprep.subr.bf16.mxu1 %v10062_v33  ;;  %v8602_v1 = vcombine.high %v1638_v24, %v1642_v10  ;;  %v8601_v43 = vcombine.low %v1638_v24, %v1642_v10  ;;  %v1682_v29 = vld [vmem:[%s14867_s0 + $0x270] sm:$0xff] }
 0x227   : > { %v8641_v22 = vcombine.low %v1678_v28, %v1682_v29 }
 0x229   : > { %6318 = vmatpush1.bf16.msra.mxu1 %v1591_v23  ;;  %v8593_v23 = vcombine.low %v1630_v14, %v1634_v60  ;;  %v8814_v14 = vcombine.high %v1852_v0, %v1856_v3  ;;  %v8642_v60 = vcombine.high %v1678_v28, %v1682_v29  ;;  %v1904_v0 = vld [vmem:[%s14867_s0 + $0x960] sm:$0xff]  ;;  %v1726_v3 = vld [vmem:[%s14867_s0 + $0x3d0] sm:$0xff] }
 0x22a   : > { %6319 = vmatprep.subr.bf16.mxu1 %v10062_v33  ;;  %v1730_v28 = vld [vmem:[%s14867_s0 + $0x3f0] sm:$0xff] }
 0x22b   : > { %4901 = vmatmul.mubr.bf16.gmra.mrb[224].mxu0 %v8757_v2  ;;  %5815 = vmatmul.mubr.bf16.gmra.mrb[64].mxu1 %v8585_v32  ;;  %v1860_v2 = vld [vmem:[%s14867_s0 + $0x800] sm:$0xff] }
 0x22c   : > { %4908 = vmatprep.mubr.bf16.mxu0 %v8766_v34  ;;  %5822 = vmatprep.mubr.bf16.mxu1 %v8594_v35  ;;  %v1864_v32 = vld [vmem:[%s14867_s0 + $0x820] sm:$0xff]  ;;  %v1686_v34 = vld [vmem:[%s14867_s0 + $0x290] sm:$0xff] }
 0x22d   : > { %6320 = vmatpush1.bf16.msra.mxu1 %v1592_v7  ;;  %v1670_v7 = vld [vmem:[%s14867_s0 + $0x210] sm:$0xff]  ;;  %v8822_v24 = vcombine.high %v1860_v2, %v1864_v32  ;;  %v8821_v37 = vcombine.low %v1860_v2, %v1864_v32 }
 0x22e   : > { %6321 = vmatprep.subr.bf16.mxu1 %v10062_v33  ;;  %v8634_v26 = vcombine.high %v1670_v7, %v1674_v8  ;;  %v8633_v31 = vcombine.low %v1670_v7, %v1674_v8  ;;  %v1690_v35 = vld [vmem:[%s14867_s0 + $0x2b0] sm:$0xff] }
 0x22f   : > { %v8650_v10 = vcombine.high %v1686_v34, %v1690_v35  ;;  %v8649_v39 = vcombine.low %v1686_v34, %v1690_v35  ;;  %v8690_v35 = vcombine.high %v1726_v3, %v1730_v28 }
 0x231   : > { %6322 = vmatpush1.bf16.msra.mxu1 %v1593_v6  ;;  %v1848_v6 = vld [vmem:[%s14867_s0 + $0x7a0] sm:$0xff] }
 0x232   : > { %6323 = vmatprep.subr.bf16.mxu1 %v10062_v33  ;;  %v8806_v25 = vcombine.high %v1844_v63, %v1848_v6  ;;  %v8805_v30 = vcombine.low %v1844_v63, %v1848_v6  ;;  %v1718_v63 = vld [vmem:[%s14867_s0 + $0x390] sm:$0xff] }
 0x233   : > { %4909 = vmatmul.mubr.bf16.gmra.mrb[228].mxu0 %v8765_v18  ;;  %5823 = vmatmul.mubr.bf16.gmra.mrb[68].mxu1 %v8593_v23  ;;  %v1868_v18 = vld [vmem:[%s14867_s0 + $0x840] sm:$0xff]  ;;  %v8681_v2 = vcombine.low %v1718_v63, %v1722_v4 }
 0x234   : > { %4916 = vmatprep.mubr.bf16.mxu0 %v8774_v36  ;;  %5830 = vmatprep.mubr.bf16.mxu1 %v8602_v1  ;;  %v1872_v23 = vld [vmem:[%s14867_s0 + $0x860] sm:$0xff]  ;;  %v1694_v36 = vld [vmem:[%s14867_s0 + $0x2d0] sm:$0xff] }
 0x235   : > { %6324 = vmatpush1.bf16.msra.mxu1 %v1594_v56  ;;  %v1698_v1 = vld [vmem:[%s14867_s0 + $0x2f0] sm:$0xff]  ;;  %v8830_v40 = vcombine.high %v1868_v18, %v1872_v23  ;;  %v8829_v46 = vcombine.low %v1868_v18, %v1872_v23 }
 0x236   : > { %6325 = vmatprep.subr.bf16.mxu1 %v10062_v33  ;;  %v8658_v41 = vcombine.high %v1694_v36, %v1698_v1  ;;  %v8657_v47 = vcombine.low %v1694_v36, %v1698_v1  ;;  %v1912_v36 = vld [vmem:[%s14867_s0 + $0x9a0] sm:$0xff]  ;;  %v1734_v1 = vld [vmem:[%s14867_s0 + $0x410] sm:$0xff] }
 0x239   : > { %6326 = vmatpush1.bf16.msra.mxu1 %v1595_v27 }
 0x23a   : > { %6327 = vmatprep.subr.bf16.mxu1 %v10062_v33 }
 0x23b   : > { %4917 = vmatmul.mubr.bf16.gmra.mrb[232].mxu0 %v8773_v42  ;;  %5831 = vmatmul.mubr.bf16.gmra.mrb[72].mxu1 %v8601_v43  ;;  %v1876_v42 = vld [vmem:[%s14867_s0 + $0x880] sm:$0xff] }
 0x23c   : > { %4924 = vmatprep.mubr.bf16.mxu0 %v8782_v44  ;;  %5838 = vmatprep.mubr.bf16.mxu1 %v8610_v45  ;;  %v1880_v43 = vld [vmem:[%s14867_s0 + $0x8a0] sm:$0xff]  ;;  %v1702_v44 = vld [vmem:[%s14867_s0 + $0x310] sm:$0xff] }
 0x23d   : > { %v1706_v45 = vld [vmem:[%s14867_s0 + $0x330] sm:$0xff]  ;;  %v8838_v48 = vcombine.high %v1876_v42, %v1880_v43  ;;  %v8837_v54 = vcombine.low %v1876_v42, %v1880_v43 }
 0x23e   : > { %v8666_v49 = vcombine.high %v1702_v44, %v1706_v45  ;;  %v8665_v9 = vcombine.low %v1702_v44, %v1706_v45  ;;  %v8689_v44 = vcombine.low %v1726_v3, %v1730_v28  ;;  %v1940_v28 = vld [vmem:[%s14867_s0 + $0xa80] sm:$0xff] }
 0x243   : > { %4925 = vmatmul.mubr.bf16.gmra.mrb[236].mxu0 %v8781_v50  ;;  %5839 = vmatmul.mubr.bf16.gmra.mrb[76].mxu1 %v8609_v51  ;;  %v1884_v50 = vld [vmem:[%s14867_s0 + $0x8c0] sm:$0xff] }
 0x244   : > { %4932 = vmatprep.mubr.bf16.mxu0 %v8790_v52  ;;  %5846 = vmatprep.mubr.bf16.mxu1 %v8618_v53  ;;  %v1888_v51 = vld [vmem:[%s14867_s0 + $0x8e0] sm:$0xff]  ;;  %v1710_v52 = vld [vmem:[%s14867_s0 + $0x350] sm:$0xff] }
 0x245   : > { %v1714_v53 = vld [vmem:[%s14867_s0 + $0x370] sm:$0xff]  ;;  %v8846_v12 = vcombine.high %v1884_v50, %v1888_v51  ;;  %v8845_v11 = vcombine.low %v1884_v50, %v1888_v51  ;;  %v1916_v51 = vld [vmem:[%s14867_s0 + $0x9c0] sm:$0xff] }
 0x246   : > { %v8674_v55 = vcombine.high %v1710_v52, %v1714_v53  ;;  %v8673_v15 = vcombine.low %v1710_v52, %v1714_v53 }
 0x24b   : > { %4933 = vmatmul.mubr.bf16.gmra.mrb[240].mxu0 %v8789_v57  ;;  %5847 = vmatmul.mubr.bf16.gmra.mrb[80].mxu1 %v8617_v58  ;;  %v9284_v57 = vpop.f32.mrb[112].mxu0  ;;  %v1892_v58 = vld [vmem:[%s14867_s0 + $0x900] sm:$0xff] }
 0x24c   : > { %4940 = vmatprep.mubr.bf16.mxu0 %v8798_v59  ;;  %5854 = vmatprep.mubr.bf16.mxu1 %v8626_v61  ;;  %v1486_v59 = vadd.f32 %v10665_v38, %v9284_v57  ;;  %v1477_v61 = vpop.f32.mrb[113].mxu0  ;;  %v8854_v17 = vcombine.high %v1892_v58, %v1896_v62 }
 0x24d   : > { %v1478_v5 = vadd.f32 %v10665_v38, %v1477_v61  ;;  %v9285_v6 = vpop.f32.mrb[114].mxu0 }
 0x24e   : > { %v1489_v7 = vadd.f32 %v10665_v38, %v9285_v6  ;;  %v1480_v8 = vpop.f32.mrb[115].mxu0 }
 0x24f   : > { %v1481_v16 = vadd.f32 %v10665_v38, %v1480_v8  ;;  %v1924_v8 = vld [vmem:[%s14867_s0 + $0xa00] sm:$0xff] }
 0x251   : > { %v1596_v21 = vpack.c.bf16 %v1481_v16, %v1478_v5 }
 0x253   : > { %4941 = vmatmul.mubr.bf16.gmra.mrb[244].mxu0 %v8797_v19  ;;  %5855 = vmatmul.mubr.bf16.gmra.mrb[84].mxu1 %v8625_v20  ;;  %v8682_v19 = vcombine.high %v1718_v63, %v1722_v4  ;;  %v1597_v20 = vpack.c.bf16 %v1489_v7, %v1486_v59 }
 0x254   : > { %4948 = vmatprep.mubr.bf16.mxu0 %v8806_v25  ;;  %5862 = vmatprep.mubr.bf16.mxu1 %v8634_v26  ;;  %v9288_v25 = vpop.f32.mrb[116].mxu0  ;;  %v1900_v26 = vld [vmem:[%s14867_s0 + $0x940] sm:$0xff] }
 0x255   : > { %v1502_v27 = vadd.f32 %v10665_v38, %v9288_v25  ;;  %v1493_v56 = vpop.f32.mrb[117].mxu0  ;;  %6328 = vmatpush1.bf16.msra.mxu1 %v1596_v21  ;;  %v8862_v34 = vcombine.high %v1900_v26, %v1904_v0  ;;  %v8861_v43 = vcombine.low %v1900_v26, %v1904_v0  ;;  %v1932_v21 = vld [vmem:[%s14867_s0 + $0xa40] sm:$0xff]  ;;  %v1762_v26 = vld [vmem:[%s14867_s0 + $0x4f0] sm:$0xff] }
 0x256   : > { %v1494_v29 = vadd.f32 %v10665_v38, %v1493_v56  ;;  %6329 = vmatprep.subr.bf16.mxu1 %v10062_v33  ;;  %v1936_v25 = vld [vmem:[%s14867_s0 + $0xa60] sm:$0xff] }
 0x257   : > { %v8894_v0 = vcombine.high %v1932_v21, %v1936_v25 }
 0x259   : > { %6330 = vmatpush1.bf16.msra.mxu1 %v1597_v20 }
 0x25a   : > { %6331 = vmatprep.subr.bf16.mxu1 %v10062_v33 }
 0x25b   : > { %4949 = vmatmul.mubr.bf16.gmra.mrb[248].mxu0 %v8805_v30  ;;  %5863 = vmatmul.mubr.bf16.gmra.mrb[88].mxu1 %v8633_v31  ;;  %v9289_v30 = vpop.f32.mrb[118].mxu0 }
 0x25c   : > { %4956 = vmatprep.mubr.bf16.mxu0 %v8814_v14  ;;  %5870 = vmatprep.mubr.bf16.mxu1 %v8642_v60  ;;  %v1505_v31 = vadd.f32 %v10665_v38, %v9289_v30  ;;  %v1496_v14 = vpop.f32.mrb[119].mxu0  ;;  %v8853_v60 = vcombine.low %v1892_v58, %v1896_v62  ;;  %v1766_v30 = vld [vmem:[%s14867_s0 + $0x510] sm:$0xff] }
 0x25d   : > { %v1497_v32 = vadd.f32 %v10665_v38, %v1496_v14  ;;  %v8893_v14 = vcombine.low %v1932_v21, %v1936_v25  ;;  %v1996_v21 = vld [vmem:[%s14867_s0 + $0xc40] sm:$0xff] }
 0x25e   : > { %v2000_v25 = vld [vmem:[%s14867_s0 + $0xc60] sm:$0xff] }
 0x263   : > { %4957 = vmatmul.mubr.bf16.gmra.mrb[252].mxu0 %v8813_v13  ;;  %5871 = vmatmul.mubr.bf16.gmra.mrb[92].mxu1 %v8641_v22  ;;  %v1599_v13 = vpack.c.bf16 %v1505_v31, %v1502_v27  ;;  %v1598_v22 = vpack.c.bf16 %v1497_v32, %v1494_v29  ;;  %v1944_v29 = vld [vmem:[%s14867_s0 + $0xaa0] sm:$0xff]  ;;  %v1770_v31 = vld [vmem:[%s14867_s0 + $0x530] sm:$0xff] }
 0x264   : > { %4964 = vmatprep.mubr.bf16.mxu0 %v8822_v24  ;;  %5878 = vmatprep.mubr.bf16.mxu1 %v8650_v10  ;;  %v9292_v24 = vpop.f32.mrb[120].mxu0  ;;  %v1908_v10 = vld [vmem:[%s14867_s0 + $0x980] sm:$0xff]  ;;  %v8730_v32 = vcombine.high %v1766_v30, %v1770_v31 }
 0x265   : > { %v1518_v18 = vadd.f32 %v10665_v38, %v9292_v24  ;;  %v1509_v23 = vpop.f32.mrb[121].mxu0  ;;  %6332 = vmatpush1.bf16.msra.mxu1 %v1598_v22  ;;  %v8869_v61 = vcombine.low %v1908_v10, %v1912_v36  ;;  %v1778_v22 = vld [vmem:[%s14867_s0 + $0x570] sm:$0xff]  ;;  %v8901_v24 = vcombine.low %v1940_v28, %v1944_v29 }
 0x266   : > { %6333 = vmatprep.subr.bf16.mxu1 %v10062_v33 }
 0x269   : > { %6334 = vmatpush1.bf16.msra.mxu1 %v1599_v13  ;;  %v1774_v13 = vld [vmem:[%s14867_s0 + $0x550] sm:$0xff] }
 0x26a   : > { %6335 = vmatprep.subr.bf16.mxu1 %v10062_v33 }
 0x26b   : > { %4965 = vmatmul.mubr.bf16.gmra.mrb[0].mxu0 %v8821_v37  ;;  %5879 = vmatmul.mubr.bf16.gmra.mrb[96].mxu1 %v8649_v39  ;;  %v1738_v37 = vld [vmem:[%s14867_s0 + $0x430] sm:$0xff]  ;;  %v1510_v39 = vadd.f32 %v10665_v38, %v1509_v23  ;;  %v8738_v23 = vcombine.high %v1774_v13, %v1778_v22 }
 0x26c   : > { %4972 = vmatprep.mubr.bf16.mxu0 %v8830_v40  ;;  %5886 = vmatprep.mubr.bf16.mxu1 %v8658_v41  ;;  %v9293_v40 = vpop.f32.mrb[122].mxu0  ;;  %v8697_v62 = vcombine.low %v1734_v1, %v1738_v37 }
 0x26d   : > { %v1521_v41 = vadd.f32 %v10665_v38, %v9293_v40  ;;  %v1512_v42 = vpop.f32.mrb[123].mxu0 }
 0x26e   : > { %v1513_v45 = vadd.f32 %v10665_v38, %v1512_v42  ;;  %v9296_v50 = vpop.f32.mrb[124].mxu0 }
 0x26f   : > { %v1534_v52 = vadd.f32 %v10665_v38, %v9296_v50  ;;  %v1525_v53 = vpop.f32.mrb[125].mxu0 }
 0x270   : > { %v9297_v57 = vpop.f32.mrb[126].mxu0 }
 0x271   : > { %v1537_v58 = vadd.f32 %v10665_v38, %v9297_v57  ;;  %v1528_v59 = vpop.f32.mrb[127].mxu0 }
 0x272   : > { %v1529_v63 = vadd.f32 %v10665_v38, %v1528_v59  ;;  %v1980_v59 = vld [vmem:[%s14867_s0 + $0xbc0] sm:$0xff] }
 0x273   : > { %4973 = vmatmul.mubr.bf16.gmra.mrb[4].mxu0 %v8829_v46  ;;  %5887 = vmatmul.mubr.bf16.gmra.mrb[100].mxu1 %v8657_v47  ;;  %v8870_v46 = vcombine.high %v1908_v10, %v1912_v36  ;;  %v8698_v47 = vcombine.high %v1734_v1, %v1738_v37  ;;  %v1603_v6 = vpack.c.bf16 %v1537_v58, %v1534_v52  ;;  %v1956_v36 = vld [vmem:[%s14867_s0 + $0xb00] sm:$0xff]  ;;  %v1782_v37 = vld [vmem:[%s14867_s0 + $0x590] sm:$0xff] }
 0x274   : > { %4980 = vmatprep.mubr.bf16.mxu0 %v8838_v48  ;;  %5894 = vmatprep.mubr.bf16.mxu1 %v8666_v49  ;;  %v1601_v48 = vpack.c.bf16 %v1521_v41, %v1518_v18  ;;  %v1600_v49 = vpack.c.bf16 %v1513_v45, %v1510_v39  ;;  %v8729_v10 = vcombine.low %v1766_v30, %v1770_v31  ;;  %v1960_v1 = vld [vmem:[%s14867_s0 + $0xb20] sm:$0xff]  ;;  %v1786_v39 = vld [vmem:[%s14867_s0 + $0x5b0] sm:$0xff] }
 0x275   : > { %v8737_v41 = vcombine.low %v1774_v13, %v1778_v22  ;;  %v8918_v42 = vcombine.high %v1956_v36, %v1960_v1  ;;  %v1968_v45 = vld [vmem:[%s14867_s0 + $0xb60] sm:$0xff]  ;;  %v1830_v30 = vld [vmem:[%s14867_s0 + $0x710] sm:$0xff] }
 0x276   : > { %6336 = vmatpush1.bf16.msra.mxu1 %v1600_v49  ;;  %v8745_v49 = vcombine.low %v1782_v37, %v1786_v39  ;;  %v1972_v52 = vld [vmem:[%s14867_s0 + $0xb80] sm:$0xff]  ;;  %v1834_v31 = vld [vmem:[%s14867_s0 + $0x730] sm:$0xff] }
 0x277   : > { %6337 = vmatprep.subr.bf16.mxu1 %v10062_v33  ;;  %v1838_v13 = vld [vmem:[%s14867_s0 + $0x750] sm:$0xff] }
 0x278   : > { %v1842_v22 = vld [vmem:[%s14867_s0 + $0x770] sm:$0xff] }
 0x27a   : > { %6338 = vmatpush1.bf16.msra.mxu1 %v1601_v48  ;;  %v8917_v48 = vcombine.low %v1956_v36, %v1960_v1  ;;  %v2020_v36 = vld [vmem:[%s14867_s0 + $0xd00] sm:$0xff] }
 0x27b   : > { %4981 = vmatmul.mubr.bf16.gmra.mrb[8].mxu0 %v8837_v54  ;;  %5895 = vmatmul.mubr.bf16.gmra.mrb[104].mxu1 %v8665_v9  ;;  %v1920_v54 = vld [vmem:[%s14867_s0 + $0x9e0] sm:$0xff]  ;;  %v1742_v9 = vld [vmem:[%s14867_s0 + $0x450] sm:$0xff] }
 0x27c   : > { %4988 = vmatprep.mubr.bf16.mxu0 %v8846_v12  ;;  %5902 = vmatprep.mubr.bf16.mxu1 %v8674_v55  ;;  %v1746_v12 = vld [vmem:[%s14867_s0 + $0x470] sm:$0xff]  ;;  %v1526_v55 = vadd.f32 %v10665_v38, %v1525_v53  ;;  %v8878_v4 = vcombine.high %v1916_v51, %v1920_v54  ;;  %v8877_v16 = vcombine.low %v1916_v51, %v1920_v54  ;;  %v1976_v53 = vld [vmem:[%s14867_s0 + $0xba0] sm:$0xff] }
 0x27d   : > { %v8706_v5 = vcombine.high %v1742_v9, %v1746_v12  ;;  %6339 = vmatprep.subr.bf16.mxu1 %v10062_v33  ;;  %v1750_v38 = vld [vmem:[%s14867_s0 + $0x490] sm:$0xff]  ;;  %v8934_v57 = vcombine.high %v1972_v52, %v1976_v53  ;;  %v2024_v1 = vld [vmem:[%s14867_s0 + $0xd20] sm:$0xff] }
 0x27e   : > { %v1602_v7 = vpack.c.bf16 %v1529_v63, %v1526_v55  ;;  %v1798_v54 = vld [vmem:[%s14867_s0 + $0x610] sm:$0xff] }
 0x27f   : > { %v1810_v63 = vld [vmem:[%s14867_s0 + $0x670] sm:$0xff] }
 0x280   : > { %6340 = vmatpush1.bf16.msra.mxu1 %v1602_v7 }
 0x281   : > { %6341 = vmatprep.subr.bf16.mxu1 %v10062_v33  ;;  %v1758_v33 = vld [vmem:[%s14867_s0 + $0x4d0] sm:$0xff] }
 0x282   : > { %v8722_v3 = vcombine.high %v1758_v33, %v1762_v26 }
 0x283   : > { %4989 = vmatmul.mubr.bf16.gmra.mrb[12].mxu0 %v8845_v11  ;;  %5903 = vmatmul.mubr.bf16.gmra.mrb[108].mxu1 %v8673_v15  ;;  %v1928_v11 = vld [vmem:[%s14867_s0 + $0xa20] sm:$0xff]  ;;  %v1754_v15 = vld [vmem:[%s14867_s0 + $0x4b0] sm:$0xff] }
 0x284   : > { %4996 = vmatprep.mubr.bf16.mxu0 %v8854_v17  ;;  %5910 = vmatprep.mubr.bf16.mxu1 %v8682_v19  ;;  %v8705_v17 = vcombine.low %v1742_v9, %v1746_v12  ;;  %v8886_v19 = vcombine.high %v1924_v8, %v1928_v11  ;;  %v8714_v20 = vcombine.high %v1750_v38, %v1754_v15  ;;  %v1802_v9 = vld [vmem:[%s14867_s0 + $0x630] sm:$0xff] }
 0x285   : > { %6342 = vmatpush1.bf16.msra.mxu1 %v1603_v6  ;;  %v8885_v27 = vcombine.low %v1924_v8, %v1928_v11  ;;  %v8713_v56 = vcombine.low %v1750_v38, %v1754_v15  ;;  %v8762_v58 = vcombine.high %v1798_v54, %v1802_v9  ;;  %v1988_v8 = vld [vmem:[%s14867_s0 + $0xc00] sm:$0xff]  ;;  %v1814_v38 = vld [vmem:[%s14867_s0 + $0x690] sm:$0xff] }
 0x286   : > { %v1992_v11 = vld [vmem:[%s14867_s0 + $0xc20] sm:$0xff]  ;;  %v1818_v15 = vld [vmem:[%s14867_s0 + $0x6b0] sm:$0xff] }
 0x28b   : > { %4997 = vmatmul.mubr.bf16.gmra.mrb[16].mxu0 %v8853_v60  ;;  %5911 = vmatmul.mubr.bf16.gmra.mrb[112].mxu1 %v8681_v2  ;;  %v8721_v60 = vcombine.low %v1758_v33, %v1762_v26  ;;  %v8902_v2 = vcombine.high %v1940_v28, %v1944_v29  ;;  %v1822_v33 = vld [vmem:[%s14867_s0 + $0x6d0] sm:$0xff]  ;;  %v2004_v28 = vld [vmem:[%s14867_s0 + $0xc80] sm:$0xff] }
 0x28c   : > { %5004 = vmatprep.mubr.bf16.mxu0 %v8862_v34  ;;  %5918 = vmatprep.mubr.bf16.mxu1 %v8690_v35  ;;  %v1948_v34 = vld [vmem:[%s14867_s0 + $0xac0] sm:$0xff]  ;;  %v1826_v26 = vld [vmem:[%s14867_s0 + $0x6f0] sm:$0xff] }
 0x28d   : > { %v1952_v35 = vld [vmem:[%s14867_s0 + $0xae0] sm:$0xff] }
 0x28e   : > { %v8910_v18 = vcombine.high %v1948_v34, %v1952_v35  ;;  %v8909_v40 = vcombine.low %v1948_v34, %v1952_v35  ;;  %v2008_v29 = vld [vmem:[%s14867_s0 + $0xca0] sm:$0xff] }
 0x28f   : > { %v2012_v34 = vld [vmem:[%s14867_s0 + $0xcc0] sm:$0xff] }
 0x290   : > { %v2016_v35 = vld [vmem:[%s14867_s0 + $0xce0] sm:$0xff] }
 0x293   : > { %5005 = vmatmul.mubr.bf16.gmra.mrb[20].mxu0 %v8861_v43  ;;  %5919 = vmatmul.mubr.bf16.gmra.mrb[116].mxu1 %v8689_v44  ;;  %v8746_v43 = vcombine.high %v1782_v37, %v1786_v39  ;;  %v1964_v44 = vld [vmem:[%s14867_s0 + $0xb40] sm:$0xff]  ;;  %v1846_v37 = vld [vmem:[%s14867_s0 + $0x790] sm:$0xff] }
 0x294   : > { %5012 = vmatprep.mubr.bf16.mxu0 %v8870_v46  ;;  %5926 = vmatprep.mubr.bf16.mxu1 %v8698_v47  ;;  %v1790_v46 = vld [vmem:[%s14867_s0 + $0x5d0] sm:$0xff]  ;;  %v8926_v50 = vcombine.high %v1964_v44, %v1968_v45  ;;  %v8925_v12 = vcombine.low %v1964_v44, %v1968_v45  ;;  %v2028_v44 = vld [vmem:[%s14867_s0 + $0xd40] sm:$0xff] }
 0x295   : > { %v1794_v47 = vld [vmem:[%s14867_s0 + $0x5f0] sm:$0xff]  ;;  %v2032_v45 = vld [vmem:[%s14867_s0 + $0xd60] sm:$0xff] }
 0x296   : > { %v8754_v51 = vcombine.high %v1790_v46, %v1794_v47  ;;  %v8753_v55 = vcombine.low %v1790_v46, %v1794_v47  ;;  %v1850_v39 = vld [vmem:[%s14867_s0 + $0x7b0] sm:$0xff] }
 0x297   : > { %v1854_v46 = vld [vmem:[%s14867_s0 + $0x7d0] sm:$0xff] }
 0x298   : > { %v1858_v47 = vld [vmem:[%s14867_s0 + $0x7f0] sm:$0xff] }
 0x29b   : > { %5013 = vmatmul.mubr.bf16.gmra.mrb[24].mxu0 %v8869_v61  ;;  %5927 = vmatmul.mubr.bf16.gmra.mrb[120].mxu1 %v8697_v62  ;;  %v1984_v61 = vld [vmem:[%s14867_s0 + $0xbe0] sm:$0xff]  ;;  %v1806_v62 = vld [vmem:[%s14867_s0 + $0x650] sm:$0xff] }
 0x29c   : > { %5020 = vmatprep.mubr.bf16.mxu0 %v8878_v4  ;;  %5934 = vmatprep.mubr.bf16.mxu1 %v8706_v5  ;;  %v8933_v4 = vcombine.low %v1972_v52, %v1976_v53  ;;  %v8761_v5 = vcombine.low %v1798_v54, %v1802_v9  ;;  %v8942_v6 = vcombine.high %v1980_v59, %v1984_v61  ;;  %v2036_v52 = vld [vmem:[%s14867_s0 + $0xd80] sm:$0xff]  ;;  %v1862_v54 = vld [vmem:[%s14867_s0 + $0x810] sm:$0xff] }
 0x29d   : > { %v8770_v7 = vcombine.high %v1806_v62, %v1810_v63  ;;  %v2040_v53 = vld [vmem:[%s14867_s0 + $0xda0] sm:$0xff]  ;;  %v1866_v9 = vld [vmem:[%s14867_s0 + $0x830] sm:$0xff] }
 0x2a3   : > { %5021 = vmatmul.mubr.bf16.gmra.mrb[28].mxu0 %v8877_v16  ;;  %5935 = vmatmul.mubr.bf16.gmra.mrb[124].mxu1 %v8705_v17  ;;  %v8941_v16 = vcombine.low %v1980_v59, %v1984_v61  ;;  %v8769_v17 = vcombine.low %v1806_v62, %v1810_v63  ;;  %v2044_v59 = vld [vmem:[%s14867_s0 + $0xdc0] sm:$0xff]  ;;  %v1870_v62 = vld [vmem:[%s14867_s0 + $0x850] sm:$0xff] }
 0x2a4   : > { %5028 = vmatprep.mubr.bf16.mxu0 %v8886_v19  ;;  %5942 = vmatprep.mubr.bf16.mxu1 %v8714_v20  ;;  %v8950_v19 = vcombine.high %v1988_v8, %v1992_v11  ;;  %v8778_v20 = vcombine.high %v1814_v38, %v1818_v15  ;;  %v2048_v61 = vld [vmem:[%s14867_s0 + $0xde0] sm:$0xff]  ;;  %v1874_v63 = vld [vmem:[%s14867_s0 + $0x870] sm:$0xff] }
 0x2ab   : > { %5029 = vmatmul.mubr.bf16.gmra.mrb[32].mxu0 %v8885_v27  ;;  %5943 = vmatmul.mubr.bf16.gmra.mrb[128].mxu1 %v8713_v56  ;;  %v8949_v27 = vcombine.low %v1988_v8, %v1992_v11  ;;  %v8777_v56 = vcombine.low %v1814_v38, %v1818_v15  ;;  %v2052_v8 = vld [vmem:[%s14867_s0 + $0xe00] sm:$0xff]  ;;  %v1878_v38 = vld [vmem:[%s14867_s0 + $0x890] sm:$0xff] }
 0x2ac   : > { %5036 = vmatprep.mubr.bf16.mxu0 %v8894_v0  ;;  %5950 = vmatprep.mubr.bf16.mxu1 %v8722_v3  ;;  %v8958_v0 = vcombine.high %v1996_v21, %v2000_v25  ;;  %v8786_v3 = vcombine.high %v1822_v33, %v1826_v26  ;;  %v2056_v11 = vld [vmem:[%s14867_s0 + $0xe20] sm:$0xff]  ;;  %v1882_v15 = vld [vmem:[%s14867_s0 + $0x8b0] sm:$0xff] }
 0x2b3   : > { %5037 = vmatmul.mubr.bf16.gmra.mrb[36].mxu0 %v8893_v14  ;;  %5951 = vmatmul.mubr.bf16.gmra.mrb[132].mxu1 %v8721_v60  ;;  %v8957_v14 = vcombine.low %v1996_v21, %v2000_v25  ;;  %v8785_v60 = vcombine.low %v1822_v33, %v1826_v26  ;;  %v2060_v21 = vld [vmem:[%s14867_s0 + $0xe40] sm:$0xff]  ;;  %v1886_v33 = vld [vmem:[%s14867_s0 + $0x8d0] sm:$0xff] }
 0x2b4   : > { %5044 = vmatprep.mubr.bf16.mxu0 %v8902_v2  ;;  %5958 = vmatprep.mubr.bf16.mxu1 %v8730_v32  ;;  %v8966_v2 = vcombine.high %v2004_v28, %v2008_v29  ;;  %v8794_v32 = vcombine.high %v1830_v30, %v1834_v31  ;;  %v2064_v25 = vld [vmem:[%s14867_s0 + $0xe60] sm:$0xff]  ;;  %v1890_v26 = vld [vmem:[%s14867_s0 + $0x8f0] sm:$0xff] }
 0x2bb   : > { %5045 = vmatmul.mubr.bf16.gmra.mrb[40].mxu0 %v8901_v24  ;;  %5959 = vmatmul.mubr.bf16.gmra.mrb[136].mxu1 %v8729_v10  ;;  %v8965_v24 = vcombine.low %v2004_v28, %v2008_v29  ;;  %v8793_v10 = vcombine.low %v1830_v30, %v1834_v31  ;;  %v2068_v28 = vld [vmem:[%s14867_s0 + $0xe80] sm:$0xff]  ;;  %v1894_v30 = vld [vmem:[%s14867_s0 + $0x910] sm:$0xff] }
 0x2bc   : > { %5052 = vmatprep.mubr.bf16.mxu0 %v8910_v18  ;;  %5966 = vmatprep.mubr.bf16.mxu1 %v8738_v23  ;;  %v8974_v18 = vcombine.high %v2012_v34, %v2016_v35  ;;  %v8802_v23 = vcombine.high %v1838_v13, %v1842_v22  ;;  %v2072_v29 = vld [vmem:[%s14867_s0 + $0xea0] sm:$0xff]  ;;  %v1898_v31 = vld [vmem:[%s14867_s0 + $0x930] sm:$0xff] }
 0x2c3   : > { %5053 = vmatmul.mubr.bf16.gmra.mrb[44].mxu0 %v8909_v40  ;;  %5967 = vmatmul.mubr.bf16.gmra.mrb[140].mxu1 %v8737_v41  ;;  %v8973_v40 = vcombine.low %v2012_v34, %v2016_v35  ;;  %v8801_v41 = vcombine.low %v1838_v13, %v1842_v22  ;;  %v2076_v34 = vld [vmem:[%s14867_s0 + $0xec0] sm:$0xff]  ;;  %v1902_v13 = vld [vmem:[%s14867_s0 + $0x950] sm:$0xff] }
 0x2c4   : > { %5060 = vmatprep.mubr.bf16.mxu0 %v8918_v42  ;;  %5974 = vmatprep.mubr.bf16.mxu1 %v8746_v43  ;;  %v8982_v42 = vcombine.high %v2020_v36, %v2024_v1  ;;  %v8810_v43 = vcombine.high %v1846_v37, %v1850_v39  ;;  %v2080_v35 = vld [vmem:[%s14867_s0 + $0xee0] sm:$0xff]  ;;  %v1906_v22 = vld [vmem:[%s14867_s0 + $0x970] sm:$0xff] }
 0x2cb   : > { %5061 = vmatmul.mubr.bf16.gmra.mrb[48].mxu0 %v8917_v48  ;;  %5975 = vmatmul.mubr.bf16.gmra.mrb[144].mxu1 %v8745_v49  ;;  %v8981_v48 = vcombine.low %v2020_v36, %v2024_v1  ;;  %v8809_v49 = vcombine.low %v1846_v37, %v1850_v39  ;;  %v2084_v36 = vld [vmem:[%s14867_s0 + $0xf00] sm:$0xff]  ;;  %v1910_v37 = vld [vmem:[%s14867_s0 + $0x990] sm:$0xff] }
 0x2cc   : > { %5068 = vmatprep.mubr.bf16.mxu0 %v8926_v50  ;;  %5982 = vmatprep.mubr.bf16.mxu1 %v8754_v51  ;;  %v8990_v50 = vcombine.high %v2028_v44, %v2032_v45  ;;  %v8818_v51 = vcombine.high %v1854_v46, %v1858_v47  ;;  %v2088_v1 = vld [vmem:[%s14867_s0 + $0xf20] sm:$0xff]  ;;  %v1914_v39 = vld [vmem:[%s14867_s0 + $0x9b0] sm:$0xff] }
 0x2d3   : > { %5069 = vmatmul.mubr.bf16.gmra.mrb[52].mxu0 %v8925_v12  ;;  %5983 = vmatmul.mubr.bf16.gmra.mrb[148].mxu1 %v8753_v55  ;;  %v8989_v12 = vcombine.low %v2028_v44, %v2032_v45  ;;  %v8817_v55 = vcombine.low %v1854_v46, %v1858_v47  ;;  %v2092_v44 = vld [vmem:[%s14867_s0 + $0xf40] sm:$0xff]  ;;  %v1918_v46 = vld [vmem:[%s14867_s0 + $0x9d0] sm:$0xff] }
 0x2d4   : > { %5076 = vmatprep.mubr.bf16.mxu0 %v8934_v57  ;;  %5990 = vmatprep.mubr.bf16.mxu1 %v8762_v58  ;;  %v8998_v57 = vcombine.high %v2036_v52, %v2040_v53  ;;  %v8826_v58 = vcombine.high %v1862_v54, %v1866_v9  ;;  %v2096_v45 = vld [vmem:[%s14867_s0 + $0xf60] sm:$0xff]  ;;  %v1922_v47 = vld [vmem:[%s14867_s0 + $0x9f0] sm:$0xff] }
 0x2db   : > { %5077 = vmatmul.mubr.bf16.gmra.mrb[56].mxu0 %v8933_v4  ;;  %5991 = vmatmul.mubr.bf16.gmra.mrb[152].mxu1 %v8761_v5  ;;  %v8997_v4 = vcombine.low %v2036_v52, %v2040_v53  ;;  %v8825_v5 = vcombine.low %v1862_v54, %v1866_v9  ;;  %v2100_v52 = vld [vmem:[%s14867_s0 + $0xf80] sm:$0xff]  ;;  %v1926_v54 = vld [vmem:[%s14867_s0 + $0xa10] sm:$0xff] }
 0x2dc   : > { %5084 = vmatprep.mubr.bf16.mxu0 %v8942_v6  ;;  %5998 = vmatprep.mubr.bf16.mxu1 %v8770_v7  ;;  %v9006_v6 = vcombine.high %v2044_v59, %v2048_v61  ;;  %v8834_v7 = vcombine.high %v1870_v62, %v1874_v63  ;;  %v2104_v53 = vld [vmem:[%s14867_s0 + $0xfa0] sm:$0xff]  ;;  %v1930_v9 = vld [vmem:[%s14867_s0 + $0xa30] sm:$0xff] }
 0x2e3   : > { %5085 = vmatmul.mubr.bf16.gmra.mrb[60].mxu0 %v8941_v16  ;;  %5999 = vmatmul.mubr.bf16.gmra.mrb[156].mxu1 %v8769_v17  ;;  %v9005_v16 = vcombine.low %v2044_v59, %v2048_v61  ;;  %v8833_v17 = vcombine.low %v1870_v62, %v1874_v63  ;;  %v2108_v59 = vld [vmem:[%s14867_s0 + $0xfc0] sm:$0xff]  ;;  %v1934_v62 = vld [vmem:[%s14867_s0 + $0xa50] sm:$0xff] }
 0x2e4   : > { %5092 = vmatprep.mubr.bf16.mxu0 %v8950_v19  ;;  %6006 = vmatprep.mubr.bf16.mxu1 %v8778_v20  ;;  %v9014_v19 = vcombine.high %v2052_v8, %v2056_v11  ;;  %v8842_v20 = vcombine.high %v1878_v38, %v1882_v15  ;;  %v2112_v61 = vld [vmem:[%s14867_s0 + $0xfe0] sm:$0xff]  ;;  %v1938_v63 = vld [vmem:[%s14867_s0 + $0xa70] sm:$0xff] }
 0x2eb   : > { %5093 = vmatmul.mubr.bf16.gmra.mrb[64].mxu0 %v8949_v27  ;;  %6007 = vmatmul.mubr.bf16.gmra.mrb[160].mxu1 %v8777_v56  ;;  %v9013_v27 = vcombine.low %v2052_v8, %v2056_v11  ;;  %v8841_v56 = vcombine.low %v1878_v38, %v1882_v15  ;;  %v1605_v8 = vld [vmem:[%s14867_s0 + $0x8] sm:$0xff]  ;;  %v1942_v38 = vld [vmem:[%s14867_s0 + $0xa90] sm:$0xff] }
 0x2ec   : > { %5100 = vmatprep.mubr.bf16.mxu0 %v8958_v0  ;;  %6014 = vmatprep.mubr.bf16.mxu1 %v8786_v3  ;;  %v9022_v0 = vcombine.high %v2060_v21, %v2064_v25  ;;  %v8850_v3 = vcombine.high %v1886_v33, %v1890_v26  ;;  %v1609_v11 = vld [vmem:[%s14867_s0 + $0x28] sm:$0xff]  ;;  %v1946_v15 = vld [vmem:[%s14867_s0 + $0xab0] sm:$0xff] }
 0x2f3   : > { %5101 = vmatmul.mubr.bf16.gmra.mrb[68].mxu0 %v8957_v14  ;;  %6015 = vmatmul.mubr.bf16.gmra.mrb[164].mxu1 %v8785_v60  ;;  %v9021_v14 = vcombine.low %v2060_v21, %v2064_v25  ;;  %v8849_v60 = vcombine.low %v1886_v33, %v1890_v26  ;;  %v1613_v21 = vld [vmem:[%s14867_s0 + $0x48] sm:$0xff]  ;;  %v1950_v33 = vld [vmem:[%s14867_s0 + $0xad0] sm:$0xff] }
 0x2f4   : > { %5108 = vmatprep.mubr.bf16.mxu0 %v8966_v2  ;;  %6022 = vmatprep.mubr.bf16.mxu1 %v8794_v32  ;;  %v9030_v2 = vcombine.high %v2068_v28, %v2072_v29  ;;  %v8858_v32 = vcombine.high %v1894_v30, %v1898_v31  ;;  %v1617_v25 = vld [vmem:[%s14867_s0 + $0x68] sm:$0xff]  ;;  %v1954_v26 = vld [vmem:[%s14867_s0 + $0xaf0] sm:$0xff] }
 0x2fb   : > { %5109 = vmatmul.mubr.bf16.gmra.mrb[72].mxu0 %v8965_v24  ;;  %6023 = vmatmul.mubr.bf16.gmra.mrb[168].mxu1 %v8793_v10  ;;  %v9029_v24 = vcombine.low %v2068_v28, %v2072_v29  ;;  %v8857_v10 = vcombine.low %v1894_v30, %v1898_v31  ;;  %v1621_v28 = vld [vmem:[%s14867_s0 + $0x88] sm:$0xff]  ;;  %v1958_v30 = vld [vmem:[%s14867_s0 + $0xb10] sm:$0xff] }
 0x2fc   : > { %5116 = vmatprep.mubr.bf16.mxu0 %v8974_v18  ;;  %6030 = vmatprep.mubr.bf16.mxu1 %v8802_v23  ;;  %v9038_v18 = vcombine.high %v2076_v34, %v2080_v35  ;;  %v8866_v23 = vcombine.high %v1902_v13, %v1906_v22  ;;  %v1625_v29 = vld [vmem:[%s14867_s0 + $0xa8] sm:$0xff]  ;;  %v1962_v31 = vld [vmem:[%s14867_s0 + $0xb30] sm:$0xff] }
 0x303   : > { %5117 = vmatmul.mubr.bf16.gmra.mrb[76].mxu0 %v8973_v40  ;;  %6031 = vmatmul.mubr.bf16.gmra.mrb[172].mxu1 %v8801_v41  ;;  %v9037_v40 = vcombine.low %v2076_v34, %v2080_v35  ;;  %v8865_v41 = vcombine.low %v1902_v13, %v1906_v22  ;;  %v1629_v34 = vld [vmem:[%s14867_s0 + $0xc8] sm:$0xff]  ;;  %v1966_v13 = vld [vmem:[%s14867_s0 + $0xb50] sm:$0xff] }
 0x304   : > { %5124 = vmatprep.mubr.bf16.mxu0 %v8982_v42  ;;  %6038 = vmatprep.mubr.bf16.mxu1 %v8810_v43  ;;  %v9046_v42 = vcombine.high %v2084_v36, %v2088_v1  ;;  %v8874_v43 = vcombine.high %v1910_v37, %v1914_v39  ;;  %v1633_v35 = vld [vmem:[%s14867_s0 + $0xe8] sm:$0xff]  ;;  %v1970_v22 = vld [vmem:[%s14867_s0 + $0xb70] sm:$0xff] }
 0x30b   : > { %5125 = vmatmul.mubr.bf16.gmra.mrb[80].mxu0 %v8981_v48  ;;  %6039 = vmatmul.mubr.bf16.gmra.mrb[176].mxu1 %v8809_v49  ;;  %v9045_v48 = vcombine.low %v2084_v36, %v2088_v1  ;;  %v8873_v49 = vcombine.low %v1910_v37, %v1914_v39  ;;  %v1637_v36 = vld [vmem:[%s14867_s0 + $0x108] sm:$0xff]  ;;  %v1974_v37 = vld [vmem:[%s14867_s0 + $0xb90] sm:$0xff] }
 0x30c   : > { %5132 = vmatprep.mubr.bf16.mxu0 %v8990_v50  ;;  %6046 = vmatprep.mubr.bf16.mxu1 %v8818_v51  ;;  %v9054_v50 = vcombine.high %v2092_v44, %v2096_v45  ;;  %v8882_v51 = vcombine.high %v1918_v46, %v1922_v47  ;;  %v1641_v1 = vld [vmem:[%s14867_s0 + $0x128] sm:$0xff]  ;;  %v1978_v39 = vld [vmem:[%s14867_s0 + $0xbb0] sm:$0xff] }
 0x313   : > { %5133 = vmatmul.mubr.bf16.gmra.mrb[84].mxu0 %v8989_v12  ;;  %6047 = vmatmul.mubr.bf16.gmra.mrb[180].mxu1 %v8817_v55  ;;  %v9053_v12 = vcombine.low %v2092_v44, %v2096_v45  ;;  %v8881_v55 = vcombine.low %v1918_v46, %v1922_v47  ;;  %v1645_v44 = vld [vmem:[%s14867_s0 + $0x148] sm:$0xff]  ;;  %v1982_v46 = vld [vmem:[%s14867_s0 + $0xbd0] sm:$0xff] }
 0x314   : > { %5140 = vmatprep.mubr.bf16.mxu0 %v8998_v57  ;;  %6054 = vmatprep.mubr.bf16.mxu1 %v8826_v58  ;;  %v9062_v57 = vcombine.high %v2100_v52, %v2104_v53  ;;  %v8890_v58 = vcombine.high %v1926_v54, %v1930_v9  ;;  %v1649_v45 = vld [vmem:[%s14867_s0 + $0x168] sm:$0xff]  ;;  %v1986_v47 = vld [vmem:[%s14867_s0 + $0xbf0] sm:$0xff] }
 0x31b   : > { %5141 = vmatmul.mubr.bf16.gmra.mrb[88].mxu0 %v8997_v4  ;;  %6055 = vmatmul.mubr.bf16.gmra.mrb[184].mxu1 %v8825_v5  ;;  %v9061_v4 = vcombine.low %v2100_v52, %v2104_v53  ;;  %v8889_v5 = vcombine.low %v1926_v54, %v1930_v9  ;;  %v1653_v52 = vld [vmem:[%s14867_s0 + $0x188] sm:$0xff]  ;;  %v1990_v54 = vld [vmem:[%s14867_s0 + $0xc10] sm:$0xff] }
 0x31c   : > { %5148 = vmatprep.mubr.bf16.mxu0 %v9006_v6  ;;  %6062 = vmatprep.mubr.bf16.mxu1 %v8834_v7  ;;  %v9070_v6 = vcombine.high %v2108_v59, %v2112_v61  ;;  %v8898_v7 = vcombine.high %v1934_v62, %v1938_v63  ;;  %v1657_v53 = vld [vmem:[%s14867_s0 + $0x1a8] sm:$0xff]  ;;  %v1994_v9 = vld [vmem:[%s14867_s0 + $0xc30] sm:$0xff] }
 0x323   : > { %5149 = vmatmul.mubr.bf16.gmra.mrb[92].mxu0 %v9005_v16  ;;  %6063 = vmatmul.mubr.bf16.gmra.mrb[188].mxu1 %v8833_v17  ;;  %v9069_v16 = vcombine.low %v2108_v59, %v2112_v61  ;;  %v8897_v17 = vcombine.low %v1934_v62, %v1938_v63  ;;  %v1661_v59 = vld [vmem:[%s14867_s0 + $0x1c8] sm:$0xff]  ;;  %v1998_v62 = vld [vmem:[%s14867_s0 + $0xc50] sm:$0xff] }
 0x324   : > { %5156 = vmatprep.mubr.bf16.mxu0 %v9014_v19  ;;  %6070 = vmatprep.mubr.bf16.mxu1 %v8842_v20  ;;  %v8568_v19 = vcombine.high %v1605_v8, %v1609_v11  ;;  %v8906_v20 = vcombine.high %v1942_v38, %v1946_v15  ;;  %v1665_v61 = vld [vmem:[%s14867_s0 + $0x1e8] sm:$0xff]  ;;  %v2002_v63 = vld [vmem:[%s14867_s0 + $0xc70] sm:$0xff] }
 0x32b   : > { %5157 = vmatmul.mubr.bf16.gmra.mrb[96].mxu0 %v9013_v27  ;;  %6071 = vmatmul.mubr.bf16.gmra.mrb[192].mxu1 %v8841_v56  ;;  %v8567_v27 = vcombine.low %v1605_v8, %v1609_v11  ;;  %v8905_v56 = vcombine.low %v1942_v38, %v1946_v15  ;;  %v1669_v8 = vld [vmem:[%s14867_s0 + $0x208] sm:$0xff]  ;;  %v2006_v38 = vld [vmem:[%s14867_s0 + $0xc90] sm:$0xff] }
 0x32c   : > { %5164 = vmatprep.mubr.bf16.mxu0 %v9022_v0  ;;  %6078 = vmatprep.mubr.bf16.mxu1 %v8850_v3  ;;  %v8576_v0 = vcombine.high %v1613_v21, %v1617_v25  ;;  %v8914_v3 = vcombine.high %v1950_v33, %v1954_v26  ;;  %v1673_v11 = vld [vmem:[%s14867_s0 + $0x228] sm:$0xff]  ;;  %v2010_v15 = vld [vmem:[%s14867_s0 + $0xcb0] sm:$0xff] }
 0x333   : > { %5165 = vmatmul.mubr.bf16.gmra.mrb[100].mxu0 %v9021_v14  ;;  %6079 = vmatmul.mubr.bf16.gmra.mrb[196].mxu1 %v8849_v60  ;;  %v8575_v14 = vcombine.low %v1613_v21, %v1617_v25  ;;  %v8913_v60 = vcombine.low %v1950_v33, %v1954_v26  ;;  %v1677_v21 = vld [vmem:[%s14867_s0 + $0x248] sm:$0xff]  ;;  %v2014_v33 = vld [vmem:[%s14867_s0 + $0xcd0] sm:$0xff] }
 0x334   : > { %5172 = vmatprep.mubr.bf16.mxu0 %v9030_v2  ;;  %6086 = vmatprep.mubr.bf16.mxu1 %v8858_v32  ;;  %v8584_v2 = vcombine.high %v1621_v28, %v1625_v29  ;;  %v8922_v32 = vcombine.high %v1958_v30, %v1962_v31  ;;  %v1681_v25 = vld [vmem:[%s14867_s0 + $0x268] sm:$0xff]  ;;  %v2018_v26 = vld [vmem:[%s14867_s0 + $0xcf0] sm:$0xff] }
 0x33b   : > { %5173 = vmatmul.mubr.bf16.gmra.mrb[104].mxu0 %v9029_v24  ;;  %6087 = vmatmul.mubr.bf16.gmra.mrb[200].mxu1 %v8857_v10  ;;  %v8583_v24 = vcombine.low %v1621_v28, %v1625_v29  ;;  %v8921_v10 = vcombine.low %v1958_v30, %v1962_v31  ;;  %v1685_v28 = vld [vmem:[%s14867_s0 + $0x288] sm:$0xff]  ;;  %v2022_v30 = vld [vmem:[%s14867_s0 + $0xd10] sm:$0xff] }
 0x33c   : > { %5180 = vmatprep.mubr.bf16.mxu0 %v9038_v18  ;;  %6094 = vmatprep.mubr.bf16.mxu1 %v8866_v23  ;;  %v8592_v18 = vcombine.high %v1629_v34, %v1633_v35  ;;  %v8930_v23 = vcombine.high %v1966_v13, %v1970_v22  ;;  %v1689_v29 = vld [vmem:[%s14867_s0 + $0x2a8] sm:$0xff]  ;;  %v2026_v31 = vld [vmem:[%s14867_s0 + $0xd30] sm:$0xff] }
 0x343   : > { %5181 = vmatmul.mubr.bf16.gmra.mrb[108].mxu0 %v9037_v40  ;;  %6095 = vmatmul.mubr.bf16.gmra.mrb[204].mxu1 %v8865_v41  ;;  %v8591_v40 = vcombine.low %v1629_v34, %v1633_v35  ;;  %v8929_v41 = vcombine.low %v1966_v13, %v1970_v22  ;;  %v1693_v34 = vld [vmem:[%s14867_s0 + $0x2c8] sm:$0xff]  ;;  %v2030_v13 = vld [vmem:[%s14867_s0 + $0xd50] sm:$0xff] }
 0x344   : > { %5188 = vmatprep.mubr.bf16.mxu0 %v9046_v42  ;;  %6102 = vmatprep.mubr.bf16.mxu1 %v8874_v43  ;;  %v8600_v42 = vcombine.high %v1637_v36, %v1641_v1  ;;  %v8938_v43 = vcombine.high %v1974_v37, %v1978_v39  ;;  %v1697_v35 = vld [vmem:[%s14867_s0 + $0x2e8] sm:$0xff]  ;;  %v2034_v22 = vld [vmem:[%s14867_s0 + $0xd70] sm:$0xff] }
 0x34b   : > { %5189 = vmatmul.mubr.bf16.gmra.mrb[112].mxu0 %v9045_v48  ;;  %6103 = vmatmul.mubr.bf16.gmra.mrb[208].mxu1 %v8873_v49  ;;  %v8599_v48 = vcombine.low %v1637_v36, %v1641_v1  ;;  %v8937_v49 = vcombine.low %v1974_v37, %v1978_v39  ;;  %v1701_v36 = vld [vmem:[%s14867_s0 + $0x308] sm:$0xff]  ;;  %v2038_v37 = vld [vmem:[%s14867_s0 + $0xd90] sm:$0xff] }
 0x34c   : > { %5196 = vmatprep.mubr.bf16.mxu0 %v9054_v50  ;;  %6110 = vmatprep.mubr.bf16.mxu1 %v8882_v51  ;;  %v8608_v50 = vcombine.high %v1645_v44, %v1649_v45  ;;  %v8946_v51 = vcombine.high %v1982_v46, %v1986_v47  ;;  %v1705_v1 = vld [vmem:[%s14867_s0 + $0x328] sm:$0xff]  ;;  %v2042_v39 = vld [vmem:[%s14867_s0 + $0xdb0] sm:$0xff] }
 0x353   : > { %5197 = vmatmul.mubr.bf16.gmra.mrb[116].mxu0 %v9053_v12  ;;  %6111 = vmatmul.mubr.bf16.gmra.mrb[212].mxu1 %v8881_v55  ;;  %v8607_v12 = vcombine.low %v1645_v44, %v1649_v45  ;;  %v8945_v55 = vcombine.low %v1982_v46, %v1986_v47  ;;  %v1709_v44 = vld [vmem:[%s14867_s0 + $0x348] sm:$0xff]  ;;  %v2046_v46 = vld [vmem:[%s14867_s0 + $0xdd0] sm:$0xff] }
 0x354   : > { %5204 = vmatprep.mubr.bf16.mxu0 %v9062_v57  ;;  %6118 = vmatprep.mubr.bf16.mxu1 %v8890_v58  ;;  %v8616_v57 = vcombine.high %v1653_v52, %v1657_v53  ;;  %v8954_v58 = vcombine.high %v1990_v54, %v1994_v9  ;;  %v1713_v45 = vld [vmem:[%s14867_s0 + $0x368] sm:$0xff]  ;;  %v2050_v47 = vld [vmem:[%s14867_s0 + $0xdf0] sm:$0xff] }
 0x35b   : > { %5205 = vmatmul.mubr.bf16.gmra.mrb[120].mxu0 %v9061_v4  ;;  %6119 = vmatmul.mubr.bf16.gmra.mrb[216].mxu1 %v8889_v5  ;;  %v8615_v4 = vcombine.low %v1653_v52, %v1657_v53  ;;  %v8953_v5 = vcombine.low %v1990_v54, %v1994_v9  ;;  %v1717_v52 = vld [vmem:[%s14867_s0 + $0x388] sm:$0xff]  ;;  %v2054_v54 = vld [vmem:[%s14867_s0 + $0xe10] sm:$0xff] }
 0x35c   : > { %5212 = vmatprep.mubr.bf16.mxu0 %v9070_v6  ;;  %6126 = vmatprep.mubr.bf16.mxu1 %v8898_v7  ;;  %v8624_v6 = vcombine.high %v1661_v59, %v1665_v61  ;;  %v8962_v7 = vcombine.high %v1998_v62, %v2002_v63  ;;  %v1721_v53 = vld [vmem:[%s14867_s0 + $0x3a8] sm:$0xff]  ;;  %v2058_v9 = vld [vmem:[%s14867_s0 + $0xe30] sm:$0xff] }
 0x363   : > { %5213 = vmatmul.mubr.bf16.gmra.mrb[124].mxu0 %v9069_v16  ;;  %6127 = vmatmul.mubr.bf16.gmra.mrb[220].mxu1 %v8897_v17  ;;  %v8623_v16 = vcombine.low %v1661_v59, %v1665_v61  ;;  %v8961_v17 = vcombine.low %v1998_v62, %v2002_v63  ;;  %v8680_v59 = vcombine.high %v1717_v52, %v1721_v53 }
 0x364   : > { %5253 = vmatprep.mubr.bf16.mxu0 %v8568_v19  ;;  %6134 = vmatprep.mubr.bf16.mxu1 %v8906_v20  ;;  %v8632_v19 = vcombine.high %v1669_v8, %v1673_v11  ;;  %v8970_v20 = vcombine.high %v2006_v38, %v2010_v15  ;;  %v9018_v61 = vcombine.high %v2054_v54, %v2058_v9 }
 0x36b   : > { %5254 = vmatmul.mubr.bf16.vlgmr.msra.gmra.mrb[128].mxu0 %v8567_v27  ;;  %6135 = vmatmul.mubr.bf16.gmra.mrb[224].mxu1 %v8905_v56  ;;  %v8631_v27 = vcombine.low %v1669_v8, %v1673_v11  ;;  %v8969_v56 = vcombine.low %v2006_v38, %v2010_v15  ;;  %v8679_v11 = vcombine.low %v1717_v52, %v1721_v53 }
 0x36c   : > { %5261 = vmatprep.mubr.bf16.mxu0 %v8576_v0  ;;  %6142 = vmatprep.mubr.bf16.mxu1 %v8914_v3  ;;  %v8640_v0 = vcombine.high %v1677_v21, %v1681_v25  ;;  %v8978_v3 = vcombine.high %v2014_v33, %v2018_v26  ;;  %v9017_v38 = vcombine.low %v2054_v54, %v2058_v9 }
 0x373   : > { %5262 = vmatmul.mubr.bf16.gmra.mrb[132].mxu0 %v8575_v14  ;;  %6143 = vmatmul.mubr.bf16.gmra.mrb[228].mxu1 %v8913_v60  ;;  %v8639_v14 = vcombine.low %v1677_v21, %v1681_v25  ;;  %v8977_v60 = vcombine.low %v2014_v33, %v2018_v26  ;;  %v1733_v21 = vld [vmem:[%s14867_s0 + $0x408] sm:$0xff]  ;;  %v2070_v33 = vld [vmem:[%s14867_s0 + $0xe90] sm:$0xff] }
 0x374   : > { %5269 = vmatprep.mubr.bf16.mxu0 %v8584_v2  ;;  %6150 = vmatprep.mubr.bf16.mxu1 %v8922_v32  ;;  %v8648_v2 = vcombine.high %v1685_v28, %v1689_v29  ;;  %v8986_v32 = vcombine.high %v2022_v30, %v2026_v31  ;;  %v1737_v25 = vld [vmem:[%s14867_s0 + $0x428] sm:$0xff]  ;;  %v2074_v26 = vld [vmem:[%s14867_s0 + $0xeb0] sm:$0xff] }
 0x37b   : > { %5270 = vmatmul.mubr.bf16.gmra.mrb[136].mxu0 %v8583_v24  ;;  %6151 = vmatmul.mubr.bf16.gmra.mrb[232].mxu1 %v8921_v10  ;;  %v8647_v24 = vcombine.low %v1685_v28, %v1689_v29  ;;  %v8985_v10 = vcombine.low %v2022_v30, %v2026_v31  ;;  %v8696_v28 = vcombine.high %v1733_v21, %v1737_v25 }
 0x37c   : > { %5277 = vmatprep.mubr.bf16.mxu0 %v8592_v18  ;;  %6158 = vmatprep.mubr.bf16.mxu1 %v8930_v23  ;;  %v8656_v18 = vcombine.high %v1693_v34, %v1697_v35  ;;  %v8994_v23 = vcombine.high %v2030_v13, %v2034_v22  ;;  %v9034_v29 = vcombine.high %v2070_v33, %v2074_v26 }
 0x383   : > { %5278 = vmatmul.mubr.bf16.gmra.mrb[140].mxu0 %v8591_v40  ;;  %6159 = vmatmul.mubr.bf16.gmra.mrb[236].mxu1 %v8929_v41  ;;  %v8655_v40 = vcombine.low %v1693_v34, %v1697_v35  ;;  %v8993_v41 = vcombine.low %v2030_v13, %v2034_v22  ;;  %v8695_v35 = vcombine.low %v1733_v21, %v1737_v25  ;;  %v1773_v21 = vld [vmem:[%s14867_s0 + $0x548] sm:$0xff] }
 0x384   : > { %5285 = vmatprep.mubr.bf16.mxu0 %v8600_v42  ;;  %6166 = vmatprep.mubr.bf16.mxu1 %v8938_v43  ;;  %v8664_v42 = vcombine.high %v1701_v36, %v1705_v1  ;;  %v9002_v43 = vcombine.high %v2038_v37, %v2042_v39  ;;  %v9033_v13 = vcombine.low %v2070_v33, %v2074_v26  ;;  %v1777_v25 = vld [vmem:[%s14867_s0 + $0x568] sm:$0xff]  ;;  %v2110_v33 = vld [vmem:[%s14867_s0 + $0xfd0] sm:$0xff] }
 0x385   : > { %v2114_v26 = vld [vmem:[%s14867_s0 + $0xff0] sm:$0xff] }
 0x38b   : > { %5286 = vmatmul.mubr.bf16.gmra.mrb[144].mxu0 %v8599_v48  ;;  %6167 = vmatmul.mubr.bf16.gmra.mrb[240].mxu1 %v8937_v49  ;;  %v8663_v48 = vcombine.low %v1701_v36, %v1705_v1  ;;  %v9001_v49 = vcombine.low %v2038_v37, %v2042_v39  ;;  %v1749_v36 = vld [vmem:[%s14867_s0 + $0x488] sm:$0xff]  ;;  %v2086_v37 = vld [vmem:[%s14867_s0 + $0xf10] sm:$0xff] }
 0x38c   : > { %5293 = vmatprep.mubr.bf16.mxu0 %v8608_v50  ;;  %6174 = vmatprep.mubr.bf16.mxu1 %v8946_v51  ;;  %v8672_v50 = vcombine.high %v1709_v44, %v1713_v45  ;;  %v9010_v51 = vcombine.high %v2046_v46, %v2050_v47  ;;  %v1753_v1 = vld [vmem:[%s14867_s0 + $0x4a8] sm:$0xff]  ;;  %v2090_v39 = vld [vmem:[%s14867_s0 + $0xf30] sm:$0xff] }
 0x38d   : > { %v8711_v53 = vcombine.low %v1749_v36, %v1753_v1  ;;  %v9049_v54 = vcombine.low %v2086_v37, %v2090_v39 }
 0x393   : > { %5294 = vmatmul.mubr.bf16.gmra.mrb[148].mxu0 %v8607_v12  ;;  %6175 = vmatmul.mubr.bf16.gmra.mrb[244].mxu1 %v8945_v55  ;;  %v8671_v55 = vcombine.low %v1709_v44, %v1713_v45  ;;  %v8712_v44 = vcombine.high %v1749_v36, %v1753_v1  ;;  %v9050_v45 = vcombine.high %v2086_v37, %v2090_v39 }
 0x394   : > { %5301 = vmatprep.mubr.bf16.mxu0 %v8616_v57  ;;  %6182 = vmatprep.mubr.bf16.mxu1 %v8954_v58  ;;  %v9009_v57 = vcombine.low %v2046_v46, %v2050_v47 }
 0x39b   : > { %5302 = vmatmul.mubr.bf16.gmra.mrb[152].mxu0 %v8615_v4  ;;  %6183 = vmatmul.mubr.bf16.gmra.mrb[248].mxu1 %v8953_v5  ;;  %v1725_v4 = vld [vmem:[%s14867_s0 + $0x3c8] sm:$0xff] }
 0x39c   : > { %5309 = vmatprep.mubr.bf16.mxu0 %v8624_v6  ;;  %6190 = vmatprep.mubr.bf16.mxu1 %v8962_v7  ;;  %v1729_v5 = vld [vmem:[%s14867_s0 + $0x3e8] sm:$0xff]  ;;  %v2062_v6 = vld [vmem:[%s14867_s0 + $0xe50] sm:$0xff] }
 0x39d   : > { %v2066_v7 = vld [vmem:[%s14867_s0 + $0xe70] sm:$0xff] }
 0x3a3   : > { %5310 = vmatmul.mubr.bf16.gmra.mrb[156].mxu0 %v8623_v16  ;;  %6191 = vmatmul.mubr.bf16.gmra.mrb[252].mxu1 %v8961_v17  ;;  %v8688_v16 = vcombine.high %v1725_v4, %v1729_v5  ;;  %v9026_v17 = vcombine.high %v2062_v6, %v2066_v7 }
 0x3a4   : > { %5317 = vmatprep.mubr.bf16.mxu0 %v8632_v19  ;;  %6198 = vmatprep.mubr.bf16.mxu1 %v8970_v20 }
 0x3ab   : > { %5318 = vmatmul.mubr.bf16.gmra.mrb[160].mxu0 %v8631_v27  ;;  %6199 = vmatmul.mubr.bf16.gmra.mrb[0].mxu1 %v8969_v56  ;;  %v8687_v56 = vcombine.low %v1725_v4, %v1729_v5  ;;  %v2102_v4 = vld [vmem:[%s14867_s0 + $0xf90] sm:$0xff] }
 0x3ac   : > { %5325 = vmatprep.mubr.bf16.mxu0 %v8640_v0  ;;  %6206 = vmatprep.mubr.bf16.mxu1 %v8978_v3  ;;  %v9025_v0 = vcombine.low %v2062_v6, %v2066_v7  ;;  %v2106_v5 = vld [vmem:[%s14867_s0 + $0xfb0] sm:$0xff] }
 0x3b3   : > { %5326 = vmatmul.mubr.bf16.gmra.mrb[164].mxu0 %v8639_v14  ;;  %6207 = vmatmul.mubr.bf16.gmra.mrb[4].mxu1 %v8977_v60  ;;  %v1741_v14 = vld [vmem:[%s14867_s0 + $0x448] sm:$0xff] }
 0x3b4   : > { %5333 = vmatprep.mubr.bf16.mxu0 %v8648_v2  ;;  %6214 = vmatprep.mubr.bf16.mxu1 %v8986_v32  ;;  %v1745_v60 = vld [vmem:[%s14867_s0 + $0x468] sm:$0xff]  ;;  %v2078_v2 = vld [vmem:[%s14867_s0 + $0xed0] sm:$0xff] }
 0x3b5   : > { %v2082_v32 = vld [vmem:[%s14867_s0 + $0xef0] sm:$0xff] }
 0x3bb   : > { %5334 = vmatmul.mubr.bf16.gmra.mrb[168].mxu0 %v8647_v24  ;;  %6215 = vmatmul.mubr.bf16.gmra.mrb[8].mxu1 %v8985_v10  ;;  %v8704_v24 = vcombine.high %v1741_v14, %v1745_v60  ;;  %v9042_v10 = vcombine.high %v2078_v2, %v2082_v32 }
 0x3bc   : > { %5341 = vmatprep.mubr.bf16.mxu0 %v8656_v18  ;;  %6222 = vmatprep.mubr.bf16.mxu1 %v8994_v23 }
 0x3c3   : > { %5342 = vmatmul.mubr.bf16.gmra.mrb[172].mxu0 %v8655_v40  ;;  %6223 = vmatmul.mubr.bf16.gmra.mrb[12].mxu1 %v8993_v41  ;;  %v8703_v41 = vcombine.low %v1741_v14, %v1745_v60 }
 0x3c4   : > { %5349 = vmatprep.mubr.bf16.mxu0 %v8664_v42  ;;  %6230 = vmatprep.mubr.bf16.mxu1 %v9002_v43  ;;  %v9041_v42 = vcombine.low %v2078_v2, %v2082_v32  ;;  %v1781_v2 = vld [vmem:[%s14867_s0 + $0x588] sm:$0xff] }
 0x3c5   : > { %v1785_v32 = vld [vmem:[%s14867_s0 + $0x5a8] sm:$0xff] }
 0x3c6   : > { %v8744_v36 = vcombine.high %v1781_v2, %v1785_v32 }
 0x3cb   : > { %5350 = vmatmul.mubr.bf16.gmra.mrb[176].mxu0 %v8663_v48  ;;  %6231 = vmatmul.mubr.bf16.gmra.mrb[16].mxu1 %v9001_v49  ;;  %v1757_v48 = vld [vmem:[%s14867_s0 + $0x4c8] sm:$0xff] }
 0x3cc   : > { %5357 = vmatprep.mubr.bf16.mxu0 %v8672_v50  ;;  %6238 = vmatprep.mubr.bf16.mxu1 %v9010_v51  ;;  %v1761_v49 = vld [vmem:[%s14867_s0 + $0x4e8] sm:$0xff]  ;;  %v2094_v50 = vld [vmem:[%s14867_s0 + $0xf50] sm:$0xff] }
 0x3cd   : > { %v2098_v51 = vld [vmem:[%s14867_s0 + $0xf70] sm:$0xff]  ;;  %v8719_v7 = vcombine.low %v1757_v48, %v1761_v49 }
 0x3ce   : > { %v11511_v12 = vpop.f32.mrb[72].mxu0 }
 0x3cf   : > { %15082 = vst [vmem:[#allocation3_spill] sm:$0xff] %v11511_v12  ;;  %v5112_v58 = vpop.f32.mrb[73].mxu0 }
 0x3d0   : > { %v11513_v62 = vpop.f32.mrb[74].mxu0 }
 0x3d1   : > { %15083 = vst [vmem:[#allocation4_spill] sm:$0xff] %v11513_v62  ;;  %v5115_v63 = vpop.f32.mrb[75].mxu0 }
 0x3d2   : > { %v1769_v63 = vld [vmem:[%s14867_s0 + $0x528] sm:$0xff] }
 0x3d3   : > { %5358 = vmatmul.mubr.bf16.gmra.mrb[180].mxu0 %v8671_v55  ;;  %6239 = vmatmul.mubr.bf16.gmra.mrb[20].mxu1 %v9009_v57  ;;  %v8720_v55 = vcombine.high %v1757_v48, %v1761_v49  ;;  %v9058_v57 = vcombine.high %v2094_v50, %v2098_v51  ;;  %v8743_v48 = vcombine.low %v1781_v2, %v1785_v32  ;;  %v1813_v2 = vld [vmem:[%s14867_s0 + $0x688] sm:$0xff] }
 0x3d4   : > { %5365 = vmatprep.mubr.bf16.mxu0 %v8680_v59  ;;  %6246 = vmatprep.mubr.bf16.mxu1 %v9018_v61  ;;  %v1765_v61 = vld [vmem:[%s14867_s0 + $0x508] sm:$0xff] }
 0x3d5   : > { %v1817_v32 = vld [vmem:[%s14867_s0 + $0x6a8] sm:$0xff] }
 0x3d6   : > { %v11527_v8 = vpop.f32.mrb[76].mxu0 }
 0x3d7   : > { %15084 = vst [vmem:[#allocation5_spill] sm:$0xff] %v11527_v8  ;;  %v5120_v15 = vpop.f32.mrb[77].mxu0 }
 0x3d8   : > { %v11529_v19 = vpop.f32.mrb[78].mxu0  ;;  %v8728_v15 = vcombine.high %v1765_v61, %v1769_v63 }
 0x3d9   : > { %15085 = vst [vmem:[#allocation6_spill] sm:$0xff] %v11529_v19  ;;  %v5123_v20 = vpop.f32.mrb[79].mxu0 }
 0x3db   : > { %5366 = vmatmul.mubr.bf16.gmra.mrb[184].mxu0 %v8679_v11  ;;  %6247 = vmatmul.mubr.bf16.gmra.mrb[24].mxu1 %v9017_v38  ;;  %v9057_v11 = vcombine.low %v2094_v50, %v2098_v51 }
 0x3dc   : > { %5373 = vmatprep.mubr.bf16.mxu0 %v8688_v16  ;;  %6254 = vmatprep.mubr.bf16.mxu1 %v9026_v17  ;;  %v9066_v16 = vcombine.high %v2102_v4, %v2106_v5 }
 0x3de   : > { %v11543_v27 = vpop.f32.mrb[80].mxu0 }
 0x3df   : > { %15086 = vst [vmem:[#allocation7_spill] sm:$0xff] %v11543_v27  ;;  %v5128_v3 = vpop.f32.mrb[81].mxu0  ;;  %v1835_v27 = vld [vmem:[%s14867_s0 + $0x738] sm:$0xff] }
 0x3e0   : > { %v11545_v30 = vpop.f32.mrb[82].mxu0  ;;  %v9065_v3 = vcombine.low %v2102_v4, %v2106_v5 }
 0x3e1   : > { %15087 = vst [vmem:[#allocation8_spill] sm:$0xff] %v11545_v30  ;;  %v5131_v31 = vpop.f32.mrb[83].mxu0  ;;  %v1831_v30 = vld [vmem:[%s14867_s0 + $0x718] sm:$0xff] }
 0x3e2   : > { %v9074_v31 = vcombine.high %v2110_v33, %v2114_v26 }
 0x3e3   : > { %5374 = vmatmul.mubr.bf16.gmra.mrb[188].mxu0 %v8687_v56  ;;  %6255 = vmatmul.mubr.bf16.gmra.mrb[28].mxu1 %v9025_v0  ;;  %v8727_v0 = vcombine.low %v1765_v61, %v1769_v63 }
 0x3e4   : > { %5381 = vmatprep.mubr.bf16.mxu0 %v8696_v28  ;;  %6262 = vmatprep.mubr.bf16.mxu1 %v9034_v29  ;;  %v8736_v29 = vcombine.high %v1773_v21, %v1777_v25 }
 0x3e6   : > { %v11559_v34 = vpop.f32.mrb[84].mxu0 }
 0x3e7   : > { %15088 = vst [vmem:[#allocation9_spill] sm:$0xff] %v11559_v34  ;;  %v5136_v22 = vpop.f32.mrb[85].mxu0  ;;  %v2001_v34 = vld [vmem:[%s14867_s0 + $0xc68] sm:$0xff] }
 0x3e8   : > { %v11561_v18 = vpop.f32.mrb[86].mxu0 }
 0x3e9   : > { %15089 = vst [vmem:[#allocation10_spill] sm:$0xff] %v11561_v18  ;;  %v5139_v23 = vpop.f32.mrb[87].mxu0  ;;  %v1997_v18 = vld [vmem:[%s14867_s0 + $0xc48] sm:$0xff] }
 0x3eb   : > { %5382 = vmatmul.mubr.bf16.gmra.mrb[192].mxu0 %v8695_v35  ;;  %6263 = vmatmul.mubr.bf16.gmra.mrb[32].mxu1 %v9033_v13  ;;  %v1607_v35 = vld [vmem:[%s14867_s0 + $0x18] sm:$0xff] }
 0x3ec   : > { %5389 = vmatprep.mubr.bf16.mxu0 %v8704_v24  ;;  %6270 = vmatprep.mubr.bf16.mxu1 %v9042_v10  ;;  %v1611_v13 = vld [vmem:[%s14867_s0 + $0x38] sm:$0xff]  ;;  %v8735_v24 = vcombine.low %v1773_v21, %v1777_v25  ;;  %v9073_v10 = vcombine.low %v2110_v33, %v2114_v26 }
 0x3ed   : > { %v8572_v1 = vcombine.high %v1607_v35, %v1611_v13  ;;  %v1631_v21 = vld [vmem:[%s14867_s0 + $0xd8] sm:$0xff] }
 0x3ee   : > { %v11575_v40 = vpop.f32.mrb[88].mxu0  ;;  %v1635_v25 = vld [vmem:[%s14867_s0 + $0xf8] sm:$0xff] }
 0x3ef   : > { %15090 = vst [vmem:[#allocation11_spill] sm:$0xff] %v11575_v40  ;;  %v5144_v43 = vpop.f32.mrb[89].mxu0  ;;  %v1993_v40 = vld [vmem:[%s14867_s0 + $0xc28] sm:$0xff] }
 0x3f0   : > { %v11577_v46 = vpop.f32.mrb[90].mxu0  ;;  %v1615_v43 = vld [vmem:[%s14867_s0 + $0x58] sm:$0xff] }
 0x3f1   : > { %15091 = vst [vmem:[#allocation12_spill] sm:$0xff] %v11577_v46  ;;  %v5147_v47 = vpop.f32.mrb[91].mxu0  ;;  %v1989_v46 = vld [vmem:[%s14867_s0 + $0xc08] sm:$0xff] }
 0x3f2   : > { %v8571_v47 = vcombine.low %v1607_v35, %v1611_v13  ;;  %v1639_v35 = vld [vmem:[%s14867_s0 + $0x118] sm:$0xff] }
 0x3f3   : > { %5390 = vmatmul.mubr.bf16.gmra.mrb[196].mxu0 %v8703_v41  ;;  %6271 = vmatmul.mubr.bf16.gmra.mrb[36].mxu1 %v9041_v42  ;;  %v1789_v41 = vld [vmem:[%s14867_s0 + $0x5c8] sm:$0xff]  ;;  %v1643_v13 = vld [vmem:[%s14867_s0 + $0x138] sm:$0xff] }
 0x3f4   : > { %5397 = vmatprep.mubr.bf16.mxu0 %v8712_v44  ;;  %6278 = vmatprep.mubr.bf16.mxu1 %v9050_v45  ;;  %v1793_v42 = vld [vmem:[%s14867_s0 + $0x5e8] sm:$0xff]  ;;  %v1619_v44 = vld [vmem:[%s14867_s0 + $0x78] sm:$0xff] }
 0x3f5   : > { %v8752_v50 = vcombine.high %v1789_v41, %v1793_v42  ;;  %v8580_v51 = vcombine.high %v1615_v43, %v1619_v44  ;;  %v8751_v63 = vcombine.low %v1789_v41, %v1793_v42  ;;  %v8579_v4 = vcombine.low %v1615_v43, %v1619_v44  ;;  %v1821_v43 = vld [vmem:[%s14867_s0 + $0x6c8] sm:$0xff] }
 0x3f6   : > { %v11591_v52 = vpop.f32.mrb[92].mxu0  ;;  %v8604_v41 = vcombine.high %v1639_v35, %v1643_v13  ;;  %v1825_v44 = vld [vmem:[%s14867_s0 + $0x6e8] sm:$0xff] }
 0x3f7   : > { %15092 = vst [vmem:[#allocation13_spill] sm:$0xff] %v11591_v52  ;;  %v5152_v9 = vpop.f32.mrb[93].mxu0  ;;  %v1985_v52 = vld [vmem:[%s14867_s0 + $0xbe8] sm:$0xff] }
 0x3f8   : > { %v11593_v58 = vpop.f32.mrb[94].mxu0  ;;  %v1797_v9 = vld [vmem:[%s14867_s0 + $0x608] sm:$0xff] }
 0x3f9   : > { %15093 = vst [vmem:[#allocation14_spill] sm:$0xff] %v11593_v58  ;;  %v5155_v59 = vpop.f32.mrb[95].mxu0  ;;  %v1981_v58 = vld [vmem:[%s14867_s0 + $0xbc8] sm:$0xff] }
 0x3fa   : > { %v1627_v59 = vld [vmem:[%s14867_s0 + $0xb8] sm:$0xff] }
 0x3fb   : > { %5398 = vmatmul.mubr.bf16.gmra.mrb[200].mxu0 %v8711_v53  ;;  %6279 = vmatmul.mubr.bf16.gmra.mrb[40].mxu1 %v9049_v54 }
 0x3fc   : > { %5405 = vmatprep.mubr.bf16.mxu0 %v8720_v55  ;;  %6286 = vmatprep.mubr.bf16.mxu1 %v9058_v57  ;;  %v1801_v55 = vld [vmem:[%s14867_s0 + $0x628] sm:$0xff]  ;;  %v1623_v57 = vld [vmem:[%s14867_s0 + $0x98] sm:$0xff] }
 0x3fd   : > { %v8759_v26 = vcombine.low %v1797_v9, %v1801_v55 }
 0x3fe   : > { %v11607_v6 = vpop.f32.mrb[96].mxu0 }
 0x3ff   : > { %15094 = vst [vmem:[#allocation15_spill] sm:$0xff] %v11607_v6  ;;  %v5160_v38 = vpop.f32.mrb[97].mxu0  ;;  %v1977_v6 = vld [vmem:[%s14867_s0 + $0xba8] sm:$0xff] }
 0x400   : > { %v11609_v17 = vpop.f32.mrb[98].mxu0 }
 0x401   : > { %15095 = vst [vmem:[#allocation16_spill] sm:$0xff] %v11609_v17  ;;  %v5163_v20 = vpop.f32.mrb[99].mxu0  ;;  %v1973_v17 = vld [vmem:[%s14867_s0 + $0xb88] sm:$0xff] }
 0x402   : > { %v1809_v20 = vld [vmem:[%s14867_s0 + $0x668] sm:$0xff] }
 0x403   : > { %5406 = vmatmul.mubr.bf16.gmra.mrb[204].mxu0 %v8719_v7  ;;  %6287 = vmatmul.mubr.bf16.gmra.mrb[44].mxu1 %v9057_v11  ;;  %v8760_v7 = vcombine.high %v1797_v9, %v1801_v55  ;;  %v8588_v11 = vcombine.high %v1623_v57, %v1627_v59  ;;  %v8784_v55 = vcombine.high %v1821_v43, %v1825_v44 }
 0x404   : > { %5413 = vmatprep.mubr.bf16.mxu0 %v8728_v15  ;;  %6294 = vmatprep.mubr.bf16.mxu1 %v9066_v16  ;;  %v1805_v16 = vld [vmem:[%s14867_s0 + $0x648] sm:$0xff] }
 0x406   : > { %v11623_v56 = vpop.f32.mrb[100].mxu0 }
 0x407   : > { %15096 = vst [vmem:[#allocation17_spill] sm:$0xff] %v11623_v56  ;;  %v5168_v28 = vpop.f32.mrb[101].mxu0  ;;  %v1969_v56 = vld [vmem:[%s14867_s0 + $0xb68] sm:$0xff] }
 0x408   : > { %v11625_v14 = vpop.f32.mrb[102].mxu0  ;;  %v8768_v28 = vcombine.high %v1805_v16, %v1809_v20 }
 0x409   : > { %15097 = vst [vmem:[#allocation18_spill] sm:$0xff] %v11625_v14  ;;  %v5171_v60 = vpop.f32.mrb[103].mxu0  ;;  %v1965_v14 = vld [vmem:[%s14867_s0 + $0xb48] sm:$0xff] }
 0x40b   : > { %5414 = vmatmul.mubr.bf16.gmra.mrb[208].mxu0 %v8727_v0  ;;  %6295 = vmatmul.mubr.bf16.gmra.mrb[48].mxu1 %v9065_v3  ;;  %v8587_v0 = vcombine.low %v1623_v57, %v1627_v59 }
 0x40c   : > { %5421 = vmatprep.mubr.bf16.mxu0 %v8736_v29  ;;  %6302 = vmatprep.mubr.bf16.mxu1 %v9074_v31  ;;  %v8596_v29 = vcombine.high %v1631_v21, %v1635_v25 }
 0x40e   : > { %v11639_v22 = vpop.f32.mrb[104].mxu0 }
 0x40f   : > { %15098 = vst [vmem:[#allocation19_spill] sm:$0xff] %v11639_v22  ;;  %v5176_v23 = vpop.f32.mrb[105].mxu0  ;;  %v1961_v22 = vld [vmem:[%s14867_s0 + $0xb28] sm:$0xff] }
 0x410   : > { %v11641_v37 = vpop.f32.mrb[106].mxu0  ;;  %v8595_v23 = vcombine.low %v1631_v21, %v1635_v25 }
 0x411   : > { %15099 = vst [vmem:[#allocation20_spill] sm:$0xff] %v11641_v37  ;;  %v5179_v39 = vpop.f32.mrb[107].mxu0  ;;  %v1957_v37 = vld [vmem:[%s14867_s0 + $0xb08] sm:$0xff] }
 0x412   : > { %v8776_v39 = vcombine.high %v1813_v2, %v1817_v32 }
 0x413   : > { %5422 = vmatmul.mubr.bf16.gmra.mrb[212].mxu0 %v8735_v24  ;;  %6303 = vmatmul.mubr.bf16.gmra.mrb[52].mxu1 %v9073_v10  ;;  %v8767_v10 = vcombine.low %v1805_v16, %v1809_v20  ;;  %v8783_v16 = vcombine.low %v1821_v43, %v1825_v44  ;;  %v1671_v43 = vld [vmem:[%s14867_s0 + $0x218] sm:$0xff] }
 0x414   : > { %5429 = vmatprep.mubr.bf16.mxu0 %v8744_v36  ;;  %6343 = vmatprep.mubr.bf16.mxu1 %v8572_v1  ;;  %v1675_v44 = vld [vmem:[%s14867_s0 + $0x238] sm:$0xff] }
 0x416   : > { %v11655_v45 = vpop.f32.mrb[108].mxu0 }
 0x417   : > { %15100 = vst [vmem:[#allocation21_spill] sm:$0xff] %v11655_v45  ;;  %v5184_v49 = vpop.f32.mrb[109].mxu0  ;;  %v1953_v45 = vld [vmem:[%s14867_s0 + $0xae8] sm:$0xff] }
 0x418   : > { %v11657_v53 = vpop.f32.mrb[110].mxu0 }
 0x419   : > { %15101 = vst [vmem:[#allocation22_spill] sm:$0xff] %v11657_v53  ;;  %v5187_v54 = vpop.f32.mrb[111].mxu0  ;;  %v1949_v53 = vld [vmem:[%s14867_s0 + $0xac8] sm:$0xff] }
 0x41a   : > { %v8603_v54 = vcombine.low %v1639_v35, %v1643_v13 }
 0x41b   : > { %5430 = vmatmul.mubr.bf16.gmra.mrb[216].mxu0 %v8743_v48  ;;  %6344 = vmatmul.mubr.bf16.vlgmr.msra.gmra.mrb[56].mxu1 %v8571_v47  ;;  %v1647_v47 = vld [vmem:[%s14867_s0 + $0x158] sm:$0xff] }
 0x41c   : > { %5437 = vmatprep.mubr.bf16.mxu0 %v8752_v50  ;;  %6351 = vmatprep.mubr.bf16.mxu1 %v8580_v51  ;;  %v1651_v48 = vld [vmem:[%s14867_s0 + $0x178] sm:$0xff]  ;;  %v8775_v51 = vcombine.low %v1813_v2, %v1817_v32 }
 0x41d   : > { %v8612_v57 = vcombine.high %v1647_v47, %v1651_v48  ;;  %v8611_v20 = vcombine.low %v1647_v47, %v1651_v48 }
 0x41e   : > { %v11671_v61 = vpop.f32.mrb[112].mxu0 }
 0x41f   : > { %15102 = vst [vmem:[#allocation23_spill] sm:$0xff] %v11671_v61  ;;  %v5192_v5 = vpop.f32.mrb[113].mxu0  ;;  %v1945_v61 = vld [vmem:[%s14867_s0 + $0xaa8] sm:$0xff] }
 0x420   : > { %v11673_v38 = vpop.f32.mrb[114].mxu0  ;;  %v1655_v5 = vld [vmem:[%s14867_s0 + $0x198] sm:$0xff] }
 0x421   : > { %15103 = vst [vmem:[#allocation24_spill] sm:$0xff] %v11673_v38  ;;  %v5195_v15 = vpop.f32.mrb[115].mxu0  ;;  %v1941_v38 = vld [vmem:[%s14867_s0 + $0xa88] sm:$0xff] }
 0x423   : > { %5438 = vmatmul.mubr.bf16.gmra.mrb[220].mxu0 %v8751_v63  ;;  %6352 = vmatmul.mubr.bf16.gmra.mrb[60].mxu1 %v8579_v4  ;;  %v1829_v63 = vld [vmem:[%s14867_s0 + $0x708] sm:$0xff] }
 0x424   : > { %5445 = vmatprep.mubr.bf16.mxu0 %v8760_v7  ;;  %6359 = vmatprep.mubr.bf16.mxu1 %v8588_v11  ;;  %v1833_v4 = vld [vmem:[%s14867_s0 + $0x728] sm:$0xff]  ;;  %v1659_v7 = vld [vmem:[%s14867_s0 + $0x1b8] sm:$0xff] }
 0x425   : > { %v8792_v25 = vcombine.high %v1829_v63, %v1833_v4  ;;  %v8791_v35 = vcombine.low %v1829_v63, %v1833_v4  ;;  %v8619_v13 = vcombine.low %v1655_v5, %v1659_v7  ;;  %v1853_v63 = vld [vmem:[%s14867_s0 + $0x7c8] sm:$0xff] }
 0x426   : > { %v11687_v33 = vpop.f32.mrb[116].mxu0  ;;  %v1857_v4 = vld [vmem:[%s14867_s0 + $0x7e8] sm:$0xff] }
 0x427   : > { %15104 = vst [vmem:[#allocation25_spill] sm:$0xff] %v11687_v33  ;;  %v5200_v3 = vpop.f32.mrb[117].mxu0  ;;  %v1937_v33 = vld [vmem:[%s14867_s0 + $0xa68] sm:$0xff] }
 0x428   : > { %v11689_v31 = vpop.f32.mrb[118].mxu0  ;;  %v1837_v3 = vld [vmem:[%s14867_s0 + $0x748] sm:$0xff] }
 0x429   : > { %15105 = vst [vmem:[#allocation26_spill] sm:$0xff] %v11689_v31  ;;  %v5203_v60 = vpop.f32.mrb[119].mxu0  ;;  %v1933_v31 = vld [vmem:[%s14867_s0 + $0xa48] sm:$0xff] }
 0x42a   : > { %v1667_v60 = vld [vmem:[%s14867_s0 + $0x1f8] sm:$0xff] }
 0x42b   : > { %5446 = vmatmul.mubr.bf16.gmra.mrb[224].mxu0 %v8759_v26  ;;  %6360 = vmatmul.mubr.bf16.gmra.mrb[64].mxu1 %v8587_v0  ;;  %v8620_v26 = vcombine.high %v1655_v5, %v1659_v7  ;;  %v1679_v5 = vld [vmem:[%s14867_s0 + $0x258] sm:$0xff] }
 0x42c   : > { %5453 = vmatprep.mubr.bf16.mxu0 %v8768_v28  ;;  %6367 = vmatprep.mubr.bf16.mxu1 %v8596_v29  ;;  %v1841_v28 = vld [vmem:[%s14867_s0 + $0x768] sm:$0xff]  ;;  %v1663_v29 = vld [vmem:[%s14867_s0 + $0x1d8] sm:$0xff] }
 0x42d   : > { %v1683_v7 = vld [vmem:[%s14867_s0 + $0x278] sm:$0xff] }
 0x42e   : > { %v11703_v24 = vpop.f32.mrb[120].mxu0 }
 0x42f   : > { %15106 = vst [vmem:[#allocation27_spill] sm:$0xff] %v11703_v24  ;;  %v5208_v36 = vpop.f32.mrb[121].mxu0  ;;  %v1929_v24 = vld [vmem:[%s14867_s0 + $0xa28] sm:$0xff] }
 0x430   : > { %v11705_v1 = vpop.f32.mrb[122].mxu0  ;;  %v8628_v36 = vcombine.high %v1663_v29, %v1667_v60 }
 0x431   : > { %15107 = vst [vmem:[#allocation28_spill] sm:$0xff] %v11705_v1  ;;  %v5211_v42 = vpop.f32.mrb[123].mxu0  ;;  %v1925_v1 = vld [vmem:[%s14867_s0 + $0xa08] sm:$0xff] }
 0x432   : > { %v1849_v42 = vld [vmem:[%s14867_s0 + $0x7a8] sm:$0xff] }
 0x433   : > { %5454 = vmatmul.mubr.bf16.gmra.mrb[228].mxu0 %v8767_v10  ;;  %6368 = vmatmul.mubr.bf16.gmra.mrb[68].mxu1 %v8595_v23  ;;  %v8800_v23 = vcombine.high %v1837_v3, %v1841_v28 }
 0x434   : > { %5461 = vmatprep.mubr.bf16.mxu0 %v8776_v39  ;;  %6375 = vmatprep.mubr.bf16.mxu1 %v8604_v41  ;;  %v1845_v41 = vld [vmem:[%s14867_s0 + $0x788] sm:$0xff] }
 0x436   : > { %v11719_v49 = vpop.f32.mrb[124].mxu0 }
 0x437   : > { %15108 = vst [vmem:[#allocation29_spill] sm:$0xff] %v11719_v49  ;;  %v5216_v50 = vpop.f32.mrb[125].mxu0  ;;  %v1921_v49 = vld [vmem:[%s14867_s0 + $0x9e8] sm:$0xff] }
 0x438   : > { %v11721_v9 = vpop.f32.mrb[126].mxu0  ;;  %v8799_v50 = vcombine.low %v1837_v3, %v1841_v28  ;;  %v8644_v3 = vcombine.high %v1679_v5, %v1683_v7 }
 0x439   : > { %15109 = vst [vmem:[#allocation30_spill] sm:$0xff] %v11721_v9  ;;  %v5219_v59 = vpop.f32.mrb[127].mxu0  ;;  %v1917_v9 = vld [vmem:[%s14867_s0 + $0x9c8] sm:$0xff] }
 0x43b   : > { %5462 = vmatmul.mubr.bf16.gmra.mrb[232].mxu0 %v8775_v51  ;;  %6376 = vmatmul.mubr.bf16.gmra.mrb[72].mxu1 %v8603_v54  ;;  %v8627_v51 = vcombine.low %v1663_v29, %v1667_v60  ;;  %v1861_v29 = vld [vmem:[%s14867_s0 + $0x808] sm:$0xff] }
 0x43c   : > { %5469 = vmatprep.mubr.bf16.mxu0 %v8784_v55  ;;  %6383 = vmatprep.mubr.bf16.mxu1 %v8612_v57  ;;  %v8808_v55 = vcombine.high %v1845_v41, %v1849_v42  ;;  %v8636_v57 = vcombine.high %v1671_v43, %v1675_v44  ;;  %v1865_v60 = vld [vmem:[%s14867_s0 + $0x828] sm:$0xff] }
 0x43e   : > { %v11735_v11 = vpop.f32.mrb[128].mxu0 }
 0x43f   : > { %v5257_v15 = vpop.f32.mrb[129].mxu0 }
 0x440   : > { %v11737_v21 = vpop.f32.mrb[130].mxu0 }
 0x441   : > { %v5260_v0 = vpop.f32.mrb[131].mxu0 }
 0x442   : > { %v8816_v0 = vcombine.high %v1853_v63, %v1857_v4 }
 0x443   : > { %5470 = vmatmul.mubr.bf16.gmra.mrb[236].mxu0 %v8783_v16  ;;  %6384 = vmatmul.mubr.bf16.gmra.mrb[76].mxu1 %v8611_v20  ;;  %v8807_v20 = vcombine.low %v1845_v41, %v1849_v42  ;;  %v8824_v42 = vcombine.high %v1861_v29, %v1865_v60 }
 0x444   : > { %5477 = vmatprep.mubr.bf16.mxu0 %v8792_v25  ;;  %6391 = vmatprep.mubr.bf16.mxu1 %v8620_v26  ;;  %v8635_v25 = vcombine.low %v1671_v43, %v1675_v44 }
 0x446   : > { %v11751_v2 = vpop.f32.mrb[132].mxu0 }
 0x447   : > { %v5265_v32 = vpop.f32.mrb[133].mxu0 }
 0x448   : > { %v11753_v10 = vpop.f32.mrb[134].mxu0  ;;  %v1687_v32 = vld [vmem:[%s14867_s0 + $0x298] sm:$0xff] }
 0x449   : > { %v5268_v39 = vpop.f32.mrb[135].mxu0 }
 0x44a   : > { %v8643_v39 = vcombine.low %v1679_v5, %v1683_v7 }
 0x44b   : > { %5478 = vmatmul.mubr.bf16.gmra.mrb[240].mxu0 %v8791_v35  ;;  %6392 = vmatmul.mubr.bf16.gmra.mrb[80].mxu1 %v8619_v13  ;;  %v1691_v35 = vld [vmem:[%s14867_s0 + $0x2b8] sm:$0xff] }
 0x44c   : > { %5485 = vmatprep.mubr.bf16.mxu0 %v8800_v23  ;;  %6399 = vmatprep.mubr.bf16.mxu1 %v8628_v36  ;;  %v8815_v36 = vcombine.low %v1853_v63, %v1857_v4  ;;  %v8652_v43 = vcombine.high %v1687_v32, %v1691_v35  ;;  %v8823_v63 = vcombine.low %v1861_v29, %v1865_v60 }
 0x44d   : > { %v8651_v4 = vcombine.low %v1687_v32, %v1691_v35 }
 0x44e   : > { %v11767_v47 = vpop.f32.mrb[136].mxu0 }
 0x44f   : > { %v5273_v48 = vpop.f32.mrb[137].mxu0 }
 0x450   : > { %v11769_v54 = vpop.f32.mrb[138].mxu0  ;;  %v1869_v48 = vld [vmem:[%s14867_s0 + $0x848] sm:$0xff] }
 0x451   : > { %v5276_v59 = vpop.f32.mrb[139].mxu0 }
 0x453   : > { %5486 = vmatmul.mubr.bf16.gmra.mrb[244].mxu0 %v8799_v50  ;;  %6400 = vmatmul.mubr.bf16.gmra.mrb[84].mxu1 %v8627_v51  ;;  %v1873_v50 = vld [vmem:[%s14867_s0 + $0x868] sm:$0xff]  ;;  %v1695_v51 = vld [vmem:[%s14867_s0 + $0x2d8] sm:$0xff] }
 0x454   : > { %5493 = vmatprep.mubr.bf16.mxu0 %v8808_v55  ;;  %6407 = vmatprep.mubr.bf16.mxu1 %v8636_v57  ;;  %v1699_v55 = vld [vmem:[%s14867_s0 + $0x2f8] sm:$0xff]  ;;  %v8832_v7 = vcombine.high %v1869_v48, %v1873_v50  ;;  %v8831_v32 = vcombine.low %v1869_v48, %v1873_v50 }
 0x455   : > { %v8659_v35 = vcombine.low %v1695_v51, %v1699_v55  ;;  %v1711_v48 = vld [vmem:[%s14867_s0 + $0x358] sm:$0xff] }
 0x456   : > { %v11783_v15 = vpop.f32.mrb[140].mxu0  ;;  %v1715_v50 = vld [vmem:[%s14867_s0 + $0x378] sm:$0xff] }
 0x457   : > { %v5281_v16 = vpop.f32.mrb[141].mxu0 }
 0x458   : > { %v11785_v26 = vpop.f32.mrb[142].mxu0  ;;  %v8660_v16 = vcombine.high %v1695_v51, %v1699_v55 }
 0x459   : > { %v5284_v28 = vpop.f32.mrb[143].mxu0 }
 0x45a   : > { %v1707_v28 = vld [vmem:[%s14867_s0 + $0x338] sm:$0xff] }
 0x45b   : > { %5494 = vmatmul.mubr.bf16.gmra.mrb[248].mxu0 %v8807_v20  ;;  %6408 = vmatmul.mubr.bf16.gmra.mrb[88].mxu1 %v8635_v25  ;;  %v1877_v25 = vld [vmem:[%s14867_s0 + $0x888] sm:$0xff] }
 0x45c   : > { %5501 = vmatprep.mubr.bf16.mxu0 %v8816_v0  ;;  %6415 = vmatprep.mubr.bf16.mxu1 %v8644_v3  ;;  %v1881_v0 = vld [vmem:[%s14867_s0 + $0x8a8] sm:$0xff]  ;;  %v1703_v3 = vld [vmem:[%s14867_s0 + $0x318] sm:$0xff] }
 0x45e   : > { %v11799_v13 = vpop.f32.mrb[144].mxu0 }
 0x45f   : > { %v5289_v23 = vpop.f32.mrb[145].mxu0 }
 0x460   : > { %v11801_v41 = vpop.f32.mrb[146].mxu0 }
 0x461   : > { %v5292_v44 = vpop.f32.mrb[147].mxu0 }
 0x462   : > { %v1889_v44 = vld [vmem:[%s14867_s0 + $0x8e8] sm:$0xff] }
 0x463   : > { %5502 = vmatmul.mubr.bf16.gmra.mrb[252].mxu0 %v8815_v36  ;;  %6416 = vmatmul.mubr.bf16.gmra.mrb[92].mxu1 %v8643_v39  ;;  %v8840_v36 = vcombine.high %v1877_v25, %v1881_v0  ;;  %v8668_v39 = vcombine.high %v1703_v3, %v1707_v28 }
 0x464   : > { %5509 = vmatprep.mubr.bf16.mxu0 %v8824_v42  ;;  %6423 = vmatprep.mubr.bf16.mxu1 %v8652_v43  ;;  %v1885_v43 = vld [vmem:[%s14867_s0 + $0x8c8] sm:$0xff] }
 0x466   : > { %v11815_v57 = vpop.f32.mrb[148].mxu0 }
 0x467   : > { %v5297_v59 = vpop.f32.mrb[149].mxu0 }
 0x468   : > { %v11817_v5 = vpop.f32.mrb[150].mxu0  ;;  %v8839_v59 = vcombine.low %v1877_v25, %v1881_v0  ;;  %v1719_v25 = vld [vmem:[%s14867_s0 + $0x398] sm:$0xff] }
 0x469   : > { %v5300_v20 = vpop.f32.mrb[151].mxu0  ;;  %v1723_v0 = vld [vmem:[%s14867_s0 + $0x3b8] sm:$0xff] }
 0x46b   : > { %5510 = vmatmul.mubr.bf16.gmra.mrb[0].mxu0 %v8823_v63  ;;  %6424 = vmatmul.mubr.bf16.gmra.mrb[96].mxu1 %v8651_v4  ;;  %v8667_v63 = vcombine.low %v1703_v3, %v1707_v28 }
 0x46c   : > { %5517 = vmatprep.mubr.bf16.mxu0 %v8832_v7  ;;  %6431 = vmatprep.mubr.bf16.mxu1 %v8660_v16  ;;  %v8848_v7 = vcombine.high %v1885_v43, %v1889_v44  ;;  %v8676_v16 = vcombine.high %v1711_v48, %v1715_v50 }
 0x46e   : > { %v11831_v29 = vpop.f32.mrb[152].mxu0 }
 0x46f   : > { %v5305_v60 = vpop.f32.mrb[153].mxu0 }
 0x470   : > { %v11833_v23 = vpop.f32.mrb[154].mxu0  ;;  %v1893_v60 = vld [vmem:[%s14867_s0 + $0x908] sm:$0xff] }
 0x471   : > { %v5308_v42 = vpop.f32.mrb[155].mxu0 }
 0x473   : > { %5518 = vmatmul.mubr.bf16.gmra.mrb[4].mxu0 %v8831_v32  ;;  %6432 = vmatmul.mubr.bf16.gmra.mrb[100].mxu1 %v8659_v35  ;;  %v1897_v32 = vld [vmem:[%s14867_s0 + $0x928] sm:$0xff]  ;;  %v8847_v35 = vcombine.low %v1885_v43, %v1889_v44  ;;  %v1727_v43 = vld [vmem:[%s14867_s0 + $0x3d8] sm:$0xff] }
 0x474   : > { %5525 = vmatprep.mubr.bf16.mxu0 %v8840_v36  ;;  %6439 = vmatprep.mubr.bf16.mxu1 %v8668_v39  ;;  %v8675_v36 = vcombine.low %v1711_v48, %v1715_v50  ;;  %v8856_v42 = vcombine.high %v1893_v60, %v1897_v32  ;;  %v1731_v44 = vld [vmem:[%s14867_s0 + $0x3f8] sm:$0xff] }
 0x476   : > { %v11847_v51 = vpop.f32.mrb[156].mxu0 }
 0x477   : > { %v5313_v55 = vpop.f32.mrb[157].mxu0 }
 0x478   : > { %v11849_v4 = vpop.f32.mrb[158].mxu0  ;;  %v8684_v55 = vcombine.high %v1719_v25, %v1723_v0 }
 0x479   : > { %v5316_v20 = vpop.f32.mrb[159].mxu0 }
 0x47a   : > { %v8683_v20 = vcombine.low %v1719_v25, %v1723_v0 }
 0x47b   : > { %5526 = vmatmul.mubr.bf16.gmra.mrb[8].mxu0 %v8839_v59  ;;  %6440 = vmatmul.mubr.bf16.gmra.mrb[104].mxu1 %v8667_v63  ;;  %v1901_v63 = vld [vmem:[%s14867_s0 + $0x948] sm:$0xff] }
 0x47c   : > { %5533 = vmatprep.mubr.bf16.mxu0 %v8848_v7  ;;  %6447 = vmatprep.mubr.bf16.mxu1 %v8676_v16  ;;  %v1905_v7 = vld [vmem:[%s14867_s0 + $0x968] sm:$0xff]  ;;  %v8855_v16 = vcombine.low %v1893_v60, %v1897_v32  ;;  %v1735_v60 = vld [vmem:[%s14867_s0 + $0x418] sm:$0xff] }
 0x47d   : > { %v1739_v32 = vld [vmem:[%s14867_s0 + $0x438] sm:$0xff] }
 0x47e   : > { %v11863_v3 = vpop.f32.mrb[160].mxu0 }
 0x47f   : > { %v5321_v28 = vpop.f32.mrb[161].mxu0 }
 0x480   : > { %v11865_v39 = vpop.f32.mrb[162].mxu0 }
 0x481   : > { %v5324_v59 = vpop.f32.mrb[163].mxu0 }
 0x482   : > { %v1913_v59 = vld [vmem:[%s14867_s0 + $0x9a8] sm:$0xff] }
 0x483   : > { %5534 = vmatmul.mubr.bf16.gmra.mrb[12].mxu0 %v8847_v35  ;;  %6448 = vmatmul.mubr.bf16.gmra.mrb[108].mxu1 %v8675_v36  ;;  %v8864_v35 = vcombine.high %v1901_v63, %v1905_v7  ;;  %v8692_v36 = vcombine.high %v1727_v43, %v1731_v44 }
 0x484   : > { %5541 = vmatprep.mubr.bf16.mxu0 %v8856_v42  ;;  %6455 = vmatprep.mubr.bf16.mxu1 %v8684_v55  ;;  %v1909_v55 = vld [vmem:[%s14867_s0 + $0x988] sm:$0xff] }
 0x486   : > { %v11879_v48 = vpop.f32.mrb[164].mxu0 }
 0x487   : > { %v5329_v50 = vpop.f32.mrb[165].mxu0 }
 0x488   : > { %v11881_v28 = vpop.f32.mrb[166].mxu0  ;;  %v8863_v50 = vcombine.low %v1901_v63, %v1905_v7  ;;  %v1743_v63 = vld [vmem:[%s14867_s0 + $0x458] sm:$0xff] }
 0x489   : > { %v5332_v42 = vpop.f32.mrb[167].mxu0  ;;  %v1747_v7 = vld [vmem:[%s14867_s0 + $0x478] sm:$0xff] }
 0x48b   : > { %5542 = vmatmul.mubr.bf16.gmra.mrb[16].mxu0 %v8855_v16  ;;  %6456 = vmatmul.mubr.bf16.gmra.mrb[112].mxu1 %v8683_v20  ;;  %v8691_v16 = vcombine.low %v1727_v43, %v1731_v44 }
 0x48c   : > { %5549 = vmatprep.mubr.bf16.mxu0 %v8864_v35  ;;  %6463 = vmatprep.mubr.bf16.mxu1 %v8692_v36  ;;  %v8872_v35 = vcombine.high %v1909_v55, %v1913_v59  ;;  %v8700_v36 = vcombine.high %v1735_v60, %v1739_v32 }
 0x48e   : > { %v11895_v25 = vpop.f32.mrb[168].mxu0 }
 0x48f   : > { %v5337_v0 = vpop.f32.mrb[169].mxu0 }
 0x490   : > { %v11897_v20 = vpop.f32.mrb[170].mxu0  ;;  %v8871_v0 = vcombine.low %v1909_v55, %v1913_v59  ;;  %v1751_v55 = vld [vmem:[%s14867_s0 + $0x498] sm:$0xff] }
 0x491   : > { %v5340_v42 = vpop.f32.mrb[171].mxu0  ;;  %v1755_v59 = vld [vmem:[%s14867_s0 + $0x4b8] sm:$0xff] }
 0x493   : > { %5550 = vmatmul.mubr.bf16.gmra.mrb[20].mxu0 %v8863_v50  ;;  %6464 = vmatmul.mubr.bf16.gmra.mrb[116].mxu1 %v8691_v16  ;;  %v8699_v50 = vcombine.low %v1735_v60, %v1739_v32 }
 0x494   : > { %5557 = vmatprep.mubr.bf16.mxu0 %v8872_v35  ;;  %6471 = vmatprep.mubr.bf16.mxu1 %v8700_v36  ;;  %v8880_v35 = vcombine.high %v1917_v9, %v1921_v49  ;;  %v8708_v36 = vcombine.high %v1743_v63, %v1747_v7 }
 0x496   : > { %v11911_v43 = vpop.f32.mrb[172].mxu0 }
 0x497   : > { %v5345_v44 = vpop.f32.mrb[173].mxu0 }
 0x498   : > { %v11913_v16 = vpop.f32.mrb[174].mxu0  ;;  %v8879_v44 = vcombine.low %v1917_v9, %v1921_v49  ;;  %v1759_v49 = vld [vmem:[%s14867_s0 + $0x4d8] sm:$0xff] }
 0x499   : > { %v5348_v42 = vpop.f32.mrb[175].mxu0  ;;  %v1763_v9 = vld [vmem:[%s14867_s0 + $0x4f8] sm:$0xff] }
 0x49b   : > { %5558 = vmatmul.mubr.bf16.gmra.mrb[24].mxu0 %v8871_v0  ;;  %6472 = vmatmul.mubr.bf16.gmra.mrb[120].mxu1 %v8699_v50  ;;  %v8707_v0 = vcombine.low %v1743_v63, %v1747_v7 }
 0x49c   : > { %5565 = vmatprep.mubr.bf16.mxu0 %v8880_v35  ;;  %6479 = vmatprep.mubr.bf16.mxu1 %v8708_v36  ;;  %v8888_v35 = vcombine.high %v1925_v1, %v1929_v24  ;;  %v8716_v36 = vcombine.high %v1751_v55, %v1755_v59 }
 0x49e   : > { %v11927_v60 = vpop.f32.mrb[176].mxu0 }
 0x49f   : > { %v5353_v32 = vpop.f32.mrb[177].mxu0 }
 0x4a0   : > { %v11929_v50 = vpop.f32.mrb[178].mxu0  ;;  %v8887_v32 = vcombine.low %v1925_v1, %v1929_v24  ;;  %v1767_v24 = vld [vmem:[%s14867_s0 + $0x518] sm:$0xff] }
 0x4a1   : > { %v5356_v42 = vpop.f32.mrb[179].mxu0  ;;  %v1771_v1 = vld [vmem:[%s14867_s0 + $0x538] sm:$0xff] }
 0x4a3   : > { %5566 = vmatmul.mubr.bf16.gmra.mrb[28].mxu0 %v8879_v44  ;;  %6480 = vmatmul.mubr.bf16.gmra.mrb[124].mxu1 %v8707_v0  ;;  %v8715_v44 = vcombine.low %v1751_v55, %v1755_v59 }
 0x4a4   : > { %5573 = vmatprep.mubr.bf16.mxu0 %v8888_v35  ;;  %6487 = vmatprep.mubr.bf16.mxu1 %v8716_v36  ;;  %v8896_v35 = vcombine.high %v1933_v31, %v1937_v33  ;;  %v8724_v36 = vcombine.high %v1759_v49, %v1763_v9 }
 0x4a6   : > { %v11943_v63 = vpop.f32.mrb[180].mxu0 }
 0x4a7   : > { %v5361_v7 = vpop.f32.mrb[181].mxu0 }
 0x4a8   : > { %v11945_v0 = vpop.f32.mrb[182].mxu0  ;;  %v8895_v7 = vcombine.low %v1933_v31, %v1937_v33  ;;  %v1775_v33 = vld [vmem:[%s14867_s0 + $0x558] sm:$0xff] }
 0x4a9   : > { %v5364_v42 = vpop.f32.mrb[183].mxu0  ;;  %v1779_v31 = vld [vmem:[%s14867_s0 + $0x578] sm:$0xff] }
 0x4ab   : > { %5574 = vmatmul.mubr.bf16.gmra.mrb[32].mxu0 %v8887_v32  ;;  %6488 = vmatmul.mubr.bf16.gmra.mrb[128].mxu1 %v8715_v44  ;;  %v8723_v32 = vcombine.low %v1759_v49, %v1763_v9 }
 0x4ac   : > { %5581 = vmatprep.mubr.bf16.mxu0 %v8896_v35  ;;  %6495 = vmatprep.mubr.bf16.mxu1 %v8724_v36  ;;  %v8904_v35 = vcombine.high %v1941_v38, %v1945_v61  ;;  %v8732_v36 = vcombine.high %v1767_v24, %v1771_v1 }
 0x4ae   : > { %v11959_v55 = vpop.f32.mrb[184].mxu0 }
 0x4af   : > { %v5369_v59 = vpop.f32.mrb[185].mxu0 }
 0x4b0   : > { %v11961_v44 = vpop.f32.mrb[186].mxu0  ;;  %v8903_v59 = vcombine.low %v1941_v38, %v1945_v61  ;;  %v1783_v61 = vld [vmem:[%s14867_s0 + $0x598] sm:$0xff] }
 0x4b1   : > { %v5372_v42 = vpop.f32.mrb[187].mxu0  ;;  %v1787_v38 = vld [vmem:[%s14867_s0 + $0x5b8] sm:$0xff] }
 0x4b3   : > { %5582 = vmatmul.mubr.bf16.gmra.mrb[36].mxu0 %v8895_v7  ;;  %6496 = vmatmul.mubr.bf16.gmra.mrb[132].mxu1 %v8723_v32  ;;  %v8731_v7 = vcombine.low %v1767_v24, %v1771_v1 }
 0x4b4   : > { %5589 = vmatprep.mubr.bf16.mxu0 %v8904_v35  ;;  %6503 = vmatprep.mubr.bf16.mxu1 %v8732_v36  ;;  %v8912_v35 = vcombine.high %v1949_v53, %v1953_v45  ;;  %v8740_v36 = vcombine.high %v1775_v33, %v1779_v31 }
 0x4b6   : > { %v11975_v49 = vpop.f32.mrb[188].mxu0 }
 0x4b7   : > { %v5377_v9 = vpop.f32.mrb[189].mxu0 }
 0x4b8   : > { %v11977_v32 = vpop.f32.mrb[190].mxu0  ;;  %v8911_v9 = vcombine.low %v1949_v53, %v1953_v45  ;;  %v1791_v45 = vld [vmem:[%s14867_s0 + $0x5d8] sm:$0xff] }
 0x4b9   : > { %v5380_v42 = vpop.f32.mrb[191].mxu0  ;;  %v1795_v53 = vld [vmem:[%s14867_s0 + $0x5f8] sm:$0xff] }
 0x4bb   : > { %5590 = vmatmul.mubr.bf16.gmra.mrb[40].mxu0 %v8903_v59  ;;  %6504 = vmatmul.mubr.bf16.gmra.mrb[136].mxu1 %v8731_v7  ;;  %v8739_v59 = vcombine.low %v1775_v33, %v1779_v31 }
 0x4bc   : > { %5597 = vmatprep.mubr.bf16.mxu0 %v8912_v35  ;;  %6511 = vmatprep.mubr.bf16.mxu1 %v8740_v36  ;;  %v8920_v35 = vcombine.high %v1957_v37, %v1961_v22  ;;  %v8748_v36 = vcombine.high %v1783_v61, %v1787_v38 }
 0x4be   : > { %v11991_v24 = vpop.f32.mrb[192].mxu0 }
 0x4bf   : > { %v5385_v1 = vpop.f32.mrb[193].mxu0 }
 0x4c0   : > { %v11993_v7 = vpop.f32.mrb[194].mxu0  ;;  %v8919_v1 = vcombine.low %v1957_v37, %v1961_v22  ;;  %v1799_v22 = vld [vmem:[%s14867_s0 + $0x618] sm:$0xff] }
 0x4c1   : > { %v5388_v42 = vpop.f32.mrb[195].mxu0  ;;  %v1803_v37 = vld [vmem:[%s14867_s0 + $0x638] sm:$0xff] }
 0x4c3   : > { %5598 = vmatmul.mubr.bf16.gmra.mrb[44].mxu0 %v8911_v9  ;;  %6512 = vmatmul.mubr.bf16.gmra.mrb[140].mxu1 %v8739_v59  ;;  %v8747_v9 = vcombine.low %v1783_v61, %v1787_v38 }
 0x4c4   : > { %5605 = vmatprep.mubr.bf16.mxu0 %v8920_v35  ;;  %6519 = vmatprep.mubr.bf16.mxu1 %v8748_v36  ;;  %v8928_v35 = vcombine.high %v1965_v14, %v1969_v56  ;;  %v8756_v36 = vcombine.high %v1791_v45, %v1795_v53 }
 0x4c6   : > { %v12007_v33 = vpop.f32.mrb[196].mxu0 }
 0x4c7   : > { %v5393_v31 = vpop.f32.mrb[197].mxu0 }
 0x4c8   : > { %v12009_v59 = vpop.f32.mrb[198].mxu0  ;;  %v8927_v31 = vcombine.low %v1965_v14, %v1969_v56  ;;  %v1807_v56 = vld [vmem:[%s14867_s0 + $0x658] sm:$0xff] }
 0x4c9   : > { %v5396_v42 = vpop.f32.mrb[199].mxu0  ;;  %v1811_v14 = vld [vmem:[%s14867_s0 + $0x678] sm:$0xff] }
 0x4cb   : > { %5606 = vmatmul.mubr.bf16.gmra.mrb[48].mxu0 %v8919_v1  ;;  %6520 = vmatmul.mubr.bf16.gmra.mrb[144].mxu1 %v8747_v9  ;;  %v8755_v1 = vcombine.low %v1791_v45, %v1795_v53 }
 0x4cc   : > { %5613 = vmatprep.mubr.bf16.mxu0 %v8928_v35  ;;  %6527 = vmatprep.mubr.bf16.mxu1 %v8756_v36  ;;  %v8936_v35 = vcombine.high %v1973_v17, %v1977_v6  ;;  %v8764_v36 = vcombine.high %v1799_v22, %v1803_v37 }
 0x4ce   : > { %v12023_v61 = vpop.f32.mrb[200].mxu0 }
 0x4cf   : > { %v5401_v38 = vpop.f32.mrb[201].mxu0 }
 0x4d0   : > { %v12025_v9 = vpop.f32.mrb[202].mxu0  ;;  %v8935_v38 = vcombine.low %v1973_v17, %v1977_v6  ;;  %v1815_v6 = vld [vmem:[%s14867_s0 + $0x698] sm:$0xff] }
 0x4d1   : > { %v5404_v42 = vpop.f32.mrb[203].mxu0  ;;  %v1819_v17 = vld [vmem:[%s14867_s0 + $0x6b8] sm:$0xff] }
 0x4d3   : > { %5614 = vmatmul.mubr.bf16.gmra.mrb[52].mxu0 %v8927_v31  ;;  %6528 = vmatmul.mubr.bf16.gmra.mrb[148].mxu1 %v8755_v1  ;;  %v8763_v31 = vcombine.low %v1799_v22, %v1803_v37 }
 0x4d4   : > { %5621 = vmatprep.mubr.bf16.mxu0 %v8936_v35  ;;  %6535 = vmatprep.mubr.bf16.mxu1 %v8764_v36  ;;  %v8944_v35 = vcombine.high %v1981_v58, %v1985_v52  ;;  %v8772_v36 = vcombine.high %v1807_v56, %v1811_v14 }
 0x4d6   : > { %v12039_v45 = vpop.f32.mrb[204].mxu0 }
 0x4d7   : > { %v5409_v53 = vpop.f32.mrb[205].mxu0 }
 0x4d8   : > { %v12041_v1 = vpop.f32.mrb[206].mxu0  ;;  %v8943_v53 = vcombine.low %v1981_v58, %v1985_v52  ;;  %v1823_v52 = vld [vmem:[%s14867_s0 + $0x6d8] sm:$0xff] }
 0x4d9   : > { %v5412_v42 = vpop.f32.mrb[207].mxu0  ;;  %v1827_v58 = vld [vmem:[%s14867_s0 + $0x6f8] sm:$0xff] }
 0x4db   : > { %5622 = vmatmul.mubr.bf16.gmra.mrb[56].mxu0 %v8935_v38  ;;  %6536 = vmatmul.mubr.bf16.gmra.mrb[152].mxu1 %v8763_v31  ;;  %v8771_v38 = vcombine.low %v1807_v56, %v1811_v14 }
 0x4dc   : > { %5629 = vmatprep.mubr.bf16.mxu0 %v8944_v35  ;;  %6543 = vmatprep.mubr.bf16.mxu1 %v8772_v36  ;;  %v8952_v35 = vcombine.high %v1989_v46, %v1993_v40  ;;  %v8780_v36 = vcombine.high %v1815_v6, %v1819_v17 }
 0x4de   : > { %v12055_v22 = vpop.f32.mrb[208].mxu0 }
 0x4df   : > { %v5417_v37 = vpop.f32.mrb[209].mxu0 }
 0x4e0   : > { %v12057_v31 = vpop.f32.mrb[210].mxu0  ;;  %v8951_v37 = vcombine.low %v1989_v46, %v1993_v40 }
 0x4e1   : > { %v5420_v42 = vpop.f32.mrb[211].mxu0 }
 0x4e3   : > { %5630 = vmatmul.mubr.bf16.gmra.mrb[60].mxu0 %v8943_v53  ;;  %6544 = vmatmul.mubr.bf16.gmra.mrb[156].mxu1 %v8771_v38  ;;  %v8779_v53 = vcombine.low %v1815_v6, %v1819_v17 }
 0x4e4   : > { %5637 = vmatprep.mubr.bf16.mxu0 %v8952_v35  ;;  %6551 = vmatprep.mubr.bf16.mxu1 %v8780_v36  ;;  %v8960_v35 = vcombine.high %v1997_v18, %v2001_v34  ;;  %v8788_v36 = vcombine.high %v1823_v52, %v1827_v58 }
 0x4e6   : > { %v12071_v56 = vpop.f32.mrb[212].mxu0 }
 0x4e7   : > { %v5425_v14 = vpop.f32.mrb[213].mxu0 }
 0x4e8   : > { %v12073_v38 = vpop.f32.mrb[214].mxu0 }
 0x4e9   : > { %v5428_v42 = vpop.f32.mrb[215].mxu0 }
 0x4ea   : > { %v8796_v42 = vcombine.high %v1831_v30, %v1835_v27 }
 0x4eb   : > { %5638 = vmatmul.mubr.bf16.gmra.mrb[64].mxu0 %v8951_v37  ;;  %6552 = vmatmul.mubr.bf16.gmra.mrb[160].mxu1 %v8779_v53  ;;  %v8959_v37 = vcombine.low %v1997_v18, %v2001_v34  ;;  %v8787_v53 = vcombine.low %v1823_v52, %v1827_v58  ;;  %v1843_v34 = vld [vmem:[%s14867_s0 + $0x778] sm:$0xff] }
 0x4ec   : > { %5645 = vmatprep.mubr.bf16.mxu0 %v8960_v35  ;;  %6559 = vmatprep.mubr.bf16.mxu1 %v8788_v36 }
 0x4ee   : > { %v12081_v14 = vpop.f32.mrb[216].mxu0  ;;  %v6345_v40 = vpop.f32.mrb[56].mxu1 }
 0x4ef   : > { %v12084_v46 = vadd.f32 %v6345_v40, %v11735_v11  ;;  %v5433_v6 = vpop.f32.mrb[217].mxu0  ;;  %v6347_v17 = vpop.f32.mrb[57].mxu1  ;;  %v1839_v11 = vld [vmem:[%s14867_s0 + $0x758] sm:$0xff] }
 0x4f0   : > { %v12086_v35 = vpop.f32.mrb[218].mxu0  ;;  %v6348_v36 = vpop.f32.mrb[58].mxu1  ;;  %v8804_v17 = vcombine.high %v1839_v11, %v1843_v34 }
 0x4f1   : > { %15110 = vst [vmem:[#allocation31_spill] sm:$0xff] %v12084_v46  ;;  %v12089_v19 = vadd.f32 %v6348_v36, %v11737_v21  ;;  %v5436_v8 = vpop.f32.mrb[219].mxu0  ;;  %v6350_v62 = vpop.f32.mrb[59].mxu1 }
 0x4f2   : > { %v8795_v62 = vcombine.low %v1831_v30, %v1835_v27 }
 0x4f3   : > { %15111 = vst [vmem:[#allocation32_spill] sm:$0xff] %v12089_v19  ;;  %5646 = vmatmul.mubr.bf16.gmra.mrb[68].mxu0 %v8959_v37  ;;  %6560 = vmatmul.mubr.bf16.gmra.mrb[164].mxu1 %v8787_v53 }
 0x4f4   : > { %6567 = vmatprep.mubr.bf16.mxu1 %v8796_v42  ;;  %v1847_v42 = vld [vmem:[%s14867_s0 + $0x798] sm:$0xff] }
 0x4f6   : > { %v12097_v18 = vpop.f32.mrb[220].mxu0  ;;  %v6353_v52 = vpop.f32.mrb[60].mxu1 }
 0x4f7   : > { %v12100_v58 = vadd.f32 %v6353_v52, %v11751_v2  ;;  %v5441_v21 = vpop.f32.mrb[221].mxu0  ;;  %v6355_v8 = vpop.f32.mrb[61].mxu1  ;;  %v1851_v2 = vld [vmem:[%s14867_s0 + $0x7b8] sm:$0xff] }
 0x4f8   : > { %v12102_v40 = vpop.f32.mrb[222].mxu0  ;;  %v6356_v6 = vpop.f32.mrb[62].mxu1  ;;  %v8803_v8 = vcombine.low %v1839_v11, %v1843_v34 }
 0x4f9   : > { %15112 = vst [vmem:[#allocation33_spill] sm:$0xff] %v12100_v58  ;;  %v12105_v37 = vadd.f32 %v6356_v6, %v11753_v10  ;;  %v5444_v53 = vpop.f32.mrb[223].mxu0  ;;  %v6358_v36 = vpop.f32.mrb[63].mxu1 }
 0x4fb   : > { %15113 = vst [vmem:[#allocation34_spill] sm:$0xff] %v12105_v37  ;;  %6568 = vmatmul.mubr.bf16.gmra.mrb[168].mxu1 %v8795_v62 }
 0x4fc   : > { %6575 = vmatprep.mubr.bf16.mxu1 %v8804_v17  ;;  %v8812_v17 = vcombine.high %v1847_v42, %v1851_v2 }
 0x4fe   : > { %v12113_v27 = vpop.f32.mrb[224].mxu0  ;;  %v6361_v30 = vpop.f32.mrb[64].mxu1 }
 0x4ff   : > { %15114 = vst [vmem:[#allocation35_spill] sm:$0xff] %v12113_v27  ;;  %v12116_v52 = vadd.f32 %v6361_v30, %v11767_v47  ;;  %v5449_v10 = vpop.f32.mrb[225].mxu0  ;;  %v6363_v21 = vpop.f32.mrb[65].mxu1  ;;  %v1855_v27 = vld [vmem:[%s14867_s0 + $0x7d8] sm:$0xff] }
 0x500   : > { %v12118_v6 = vpop.f32.mrb[226].mxu0  ;;  %v6364_v62 = vpop.f32.mrb[66].mxu1  ;;  %v1859_v47 = vld [vmem:[%s14867_s0 + $0x7f8] sm:$0xff]  ;;  %v8811_v21 = vcombine.low %v1847_v42, %v1851_v2 }
 0x501   : > { %15115 = vst [vmem:[#allocation36_spill] sm:$0xff] %v12116_v52  ;;  %15116 = vst [vmem:[#allocation37_spill] sm:$0xff] %v12118_v6  ;;  %v12121_v53 = vadd.f32 %v6364_v62, %v11769_v54  ;;  %v5452_v36 = vpop.f32.mrb[227].mxu0  ;;  %v6366_v12 = vpop.f32.mrb[67].mxu1  ;;  %v8820_v62 = vcombine.high %v1855_v27, %v1859_v47 }
 0x503   : > { %15117 = vst [vmem:[#allocation38_spill] sm:$0xff] %v12121_v53  ;;  %6576 = vmatmul.mubr.bf16.gmra.mrb[172].mxu1 %v8803_v8 }
 0x504   : > { %6583 = vmatprep.mubr.bf16.mxu1 %v8812_v17 }
 0x506   : > { %v12129_v11 = vpop.f32.mrb[228].mxu0  ;;  %v6369_v34 = vpop.f32.mrb[68].mxu1 }
 0x507   : > { %15118 = vst [vmem:[#allocation39_spill] sm:$0xff] %v12129_v11  ;;  %v12132_v30 = vadd.f32 %v6369_v34, %v11783_v15  ;;  %v5457_v54 = vpop.f32.mrb[229].mxu0  ;;  %v6371_v10 = vpop.f32.mrb[69].mxu1  ;;  %v1863_v11 = vld [vmem:[%s14867_s0 + $0x818] sm:$0xff] }
 0x508   : > { %v12134_v12 = vpop.f32.mrb[230].mxu0  ;;  %v6372_v8 = vpop.f32.mrb[70].mxu1  ;;  %v1867_v15 = vld [vmem:[%s14867_s0 + $0x838] sm:$0xff]  ;;  %v8819_v10 = vcombine.low %v1855_v27, %v1859_v47 }
 0x509   : > { %15119 = vst [vmem:[#allocation40_spill] sm:$0xff] %v12132_v30  ;;  %15120 = vst [vmem:[#allocation41_spill] sm:$0xff] %v12134_v12  ;;  %v12137_v17 = vadd.f32 %v6372_v8, %v11785_v26  ;;  %v5460_v36 = vpop.f32.mrb[231].mxu0  ;;  %v6374_v6 = vpop.f32.mrb[71].mxu1  ;;  %v8828_v8 = vcombine.high %v1863_v11, %v1867_v15 }
 0x50b   : > { %15121 = vst [vmem:[#allocation42_spill] sm:$0xff] %v12137_v17  ;;  %6584 = vmatmul.mubr.bf16.gmra.mrb[176].mxu1 %v8811_v21 }
 0x50c   : > { %6591 = vmatprep.mubr.bf16.mxu1 %v8820_v62 }
 0x50e   : > { %v12145_v42 = vpop.f32.mrb[232].mxu0  ;;  %v6377_v2 = vpop.f32.mrb[72].mxu1 }
 0x50f   : > { %15122 = vst [vmem:[#allocation43_spill] sm:$0xff] %v12145_v42  ;;  %v12148_v34 = vadd.f32 %v6377_v2, %v11799_v13  ;;  %v5465_v26 = vpop.f32.mrb[233].mxu0  ;;  %v6379_v54 = vpop.f32.mrb[73].mxu1  ;;  %v1871_v42 = vld [vmem:[%s14867_s0 + $0x858] sm:$0xff] }
 0x510   : > { %v12150_v6 = vpop.f32.mrb[234].mxu0  ;;  %v6380_v21 = vpop.f32.mrb[74].mxu1  ;;  %v1875_v13 = vld [vmem:[%s14867_s0 + $0x878] sm:$0xff]  ;;  %v8827_v54 = vcombine.low %v1863_v11, %v1867_v15 }
 0x511   : > { %15123 = vst [vmem:[#allocation44_spill] sm:$0xff] %v12148_v34  ;;  %15124 = vst [vmem:[#allocation45_spill] sm:$0xff] %v12150_v6  ;;  %v12153_v62 = vadd.f32 %v6380_v21, %v11801_v41  ;;  %v5468_v36 = vpop.f32.mrb[235].mxu0  ;;  %v6382_v12 = vpop.f32.mrb[75].mxu1  ;;  %v8836_v21 = vcombine.high %v1871_v42, %v1875_v13 }
 0x513   : > { %15125 = vst [vmem:[#allocation46_spill] sm:$0xff] %v12153_v62  ;;  %6592 = vmatmul.mubr.bf16.gmra.mrb[180].mxu1 %v8819_v10 }
 0x514   : > { %6599 = vmatprep.mubr.bf16.mxu1 %v8828_v8 }
 0x516   : > { %v12161_v27 = vpop.f32.mrb[236].mxu0  ;;  %v6385_v47 = vpop.f32.mrb[76].mxu1 }
 0x517   : > { %15126 = vst [vmem:[#allocation47_spill] sm:$0xff] %v12161_v27  ;;  %v12164_v2 = vadd.f32 %v6385_v47, %v11815_v57  ;;  %v5473_v41 = vpop.f32.mrb[237].mxu0  ;;  %v6387_v26 = vpop.f32.mrb[77].mxu1  ;;  %v1879_v27 = vld [vmem:[%s14867_s0 + $0x898] sm:$0xff] }
 0x518   : > { %v12166_v12 = vpop.f32.mrb[238].mxu0  ;;  %v6388_v10 = vpop.f32.mrb[78].mxu1  ;;  %v1883_v57 = vld [vmem:[%s14867_s0 + $0x8b8] sm:$0xff]  ;;  %v8835_v26 = vcombine.low %v1871_v42, %v1875_v13 }
 0x519   : > { %15127 = vst [vmem:[#allocation48_spill] sm:$0xff] %v12164_v2  ;;  %15128 = vst [vmem:[#allocation49_spill] sm:$0xff] %v12166_v12  ;;  %v12169_v8 = vadd.f32 %v6388_v10, %v11817_v5  ;;  %v5476_v36 = vpop.f32.mrb[239].mxu0  ;;  %v6390_v6 = vpop.f32.mrb[79].mxu1  ;;  %v8844_v10 = vcombine.high %v1879_v27, %v1883_v57 }
 0x51b   : > { %15129 = vst [vmem:[#allocation50_spill] sm:$0xff] %v12169_v8  ;;  %6600 = vmatmul.mubr.bf16.gmra.mrb[184].mxu1 %v8827_v54 }
 0x51c   : > { %6607 = vmatprep.mubr.bf16.mxu1 %v8836_v21 }
 0x51e   : > { %v12177_v11 = vpop.f32.mrb[240].mxu0  ;;  %v6393_v15 = vpop.f32.mrb[80].mxu1 }
 0x51f   : > { %15130 = vst [vmem:[#allocation51_spill] sm:$0xff] %v12177_v11  ;;  %v12180_v47 = vadd.f32 %v6393_v15, %v11831_v29  ;;  %v5481_v5 = vpop.f32.mrb[241].mxu0  ;;  %v6395_v41 = vpop.f32.mrb[81].mxu1  ;;  %v1887_v11 = vld [vmem:[%s14867_s0 + $0x8d8] sm:$0xff] }
 0x520   : > { %v12182_v6 = vpop.f32.mrb[242].mxu0  ;;  %v6396_v54 = vpop.f32.mrb[82].mxu1  ;;  %v1891_v29 = vld [vmem:[%s14867_s0 + $0x8f8] sm:$0xff]  ;;  %v8843_v41 = vcombine.low %v1879_v27, %v1883_v57 }
 0x521   : > { %15131 = vst [vmem:[#allocation52_spill] sm:$0xff] %v12180_v47  ;;  %15132 = vst [vmem:[#allocation53_spill] sm:$0xff] %v12182_v6  ;;  %v12185_v21 = vadd.f32 %v6396_v54, %v11833_v23  ;;  %v5484_v36 = vpop.f32.mrb[243].mxu0  ;;  %v6398_v12 = vpop.f32.mrb[83].mxu1  ;;  %v8852_v54 = vcombine.high %v1887_v11, %v1891_v29 }
 0x523   : > { %15133 = vst [vmem:[#allocation54_spill] sm:$0xff] %v12185_v21  ;;  %6608 = vmatmul.mubr.bf16.gmra.mrb[188].mxu1 %v8835_v26 }
 0x524   : > { %6615 = vmatprep.mubr.bf16.mxu1 %v8844_v10 }
 0x526   : > { %v12193_v42 = vpop.f32.mrb[244].mxu0  ;;  %v6401_v13 = vpop.f32.mrb[84].mxu1 }
 0x527   : > { %15134 = vst [vmem:[#allocation55_spill] sm:$0xff] %v12193_v42  ;;  %v12196_v15 = vadd.f32 %v6401_v13, %v11847_v51  ;;  %v5489_v23 = vpop.f32.mrb[245].mxu0  ;;  %v6403_v5 = vpop.f32.mrb[85].mxu1  ;;  %v1895_v42 = vld [vmem:[%s14867_s0 + $0x918] sm:$0xff] }
 0x528   : > { %v12198_v12 = vpop.f32.mrb[246].mxu0  ;;  %v6404_v26 = vpop.f32.mrb[86].mxu1  ;;  %v1899_v51 = vld [vmem:[%s14867_s0 + $0x938] sm:$0xff]  ;;  %v8851_v5 = vcombine.low %v1887_v11, %v1891_v29 }
 0x529   : > { %15135 = vst [vmem:[#allocation56_spill] sm:$0xff] %v12196_v15  ;;  %15136 = vst [vmem:[#allocation57_spill] sm:$0xff] %v12198_v12  ;;  %v12201_v10 = vadd.f32 %v6404_v26, %v11849_v4  ;;  %v5492_v36 = vpop.f32.mrb[247].mxu0  ;;  %v6406_v6 = vpop.f32.mrb[87].mxu1  ;;  %v8860_v26 = vcombine.high %v1895_v42, %v1899_v51 }
 0x52b   : > { %15137 = vst [vmem:[#allocation58_spill] sm:$0xff] %v12201_v10  ;;  %6616 = vmatmul.mubr.bf16.gmra.mrb[192].mxu1 %v8843_v41 }
 0x52c   : > { %6623 = vmatprep.mubr.bf16.mxu1 %v8852_v54 }
 0x52e   : > { %v12209_v27 = vpop.f32.mrb[248].mxu0  ;;  %v6409_v57 = vpop.f32.mrb[88].mxu1 }
 0x52f   : > { %15138 = vst [vmem:[#allocation59_spill] sm:$0xff] %v12209_v27  ;;  %v12212_v13 = vadd.f32 %v6409_v57, %v11863_v3  ;;  %v5497_v4 = vpop.f32.mrb[249].mxu0  ;;  %v6411_v23 = vpop.f32.mrb[89].mxu1  ;;  %v1903_v27 = vld [vmem:[%s14867_s0 + $0x958] sm:$0xff] }
 0x530   : > { %v12214_v6 = vpop.f32.mrb[250].mxu0  ;;  %v6412_v41 = vpop.f32.mrb[90].mxu1  ;;  %v1907_v3 = vld [vmem:[%s14867_s0 + $0x978] sm:$0xff]  ;;  %v8859_v23 = vcombine.low %v1895_v42, %v1899_v51 }
 0x531   : > { %15139 = vst [vmem:[#allocation60_spill] sm:$0xff] %v12212_v13  ;;  %15140 = vst [vmem:[#allocation61_spill] sm:$0xff] %v12214_v6  ;;  %v12217_v54 = vadd.f32 %v6412_v41, %v11865_v39  ;;  %v5500_v36 = vpop.f32.mrb[251].mxu0  ;;  %v6414_v12 = vpop.f32.mrb[91].mxu1  ;;  %v8868_v41 = vcombine.high %v1903_v27, %v1907_v3 }
 0x533   : > { %15141 = vst [vmem:[#allocation62_spill] sm:$0xff] %v12217_v54  ;;  %6624 = vmatmul.mubr.bf16.gmra.mrb[196].mxu1 %v8851_v5 }
 0x534   : > { %6631 = vmatprep.mubr.bf16.mxu1 %v8860_v26 }
 0x536   : > { %v12225_v11 = vpop.f32.mrb[252].mxu0  ;;  %v6417_v29 = vpop.f32.mrb[92].mxu1 }
 0x537   : > { %15142 = vst [vmem:[#allocation63_spill] sm:$0xff] %v12225_v11  ;;  %v12228_v57 = vadd.f32 %v6417_v29, %v11879_v48  ;;  %v5505_v39 = vpop.f32.mrb[253].mxu0  ;;  %v6419_v4 = vpop.f32.mrb[93].mxu1  ;;  %v1911_v11 = vld [vmem:[%s14867_s0 + $0x998] sm:$0xff] }
 0x538   : > { %v12230_v12 = vpop.f32.mrb[254].mxu0  ;;  %v6420_v5 = vpop.f32.mrb[94].mxu1  ;;  %v1915_v48 = vld [vmem:[%s14867_s0 + $0x9b8] sm:$0xff]  ;;  %v8867_v4 = vcombine.low %v1903_v27, %v1907_v3 }
 0x539   : > { %15143 = vst [vmem:[#allocation64_spill] sm:$0xff] %v12228_v57  ;;  %15144 = vst [vmem:[#allocation65_spill] sm:$0xff] %v12230_v12  ;;  %v12233_v26 = vadd.f32 %v6420_v5, %v11881_v28  ;;  %v5508_v36 = vpop.f32.mrb[255].mxu0  ;;  %v6422_v6 = vpop.f32.mrb[95].mxu1  ;;  %v8876_v5 = vcombine.high %v1911_v11, %v1915_v48 }
 0x53b   : > { %15145 = vst [vmem:[#allocation66_spill] sm:$0xff] %v12233_v26  ;;  %6632 = vmatmul.mubr.bf16.gmra.mrb[200].mxu1 %v8859_v23 }
 0x53c   : > { %6639 = vmatprep.mubr.bf16.mxu1 %v8868_v41 }
 0x53e   : > { %v12241_v42 = vpop.f32.mrb[0].mxu0  ;;  %v6425_v51 = vpop.f32.mrb[96].mxu1 }
 0x53f   : > { %15146 = vst [vmem:[#allocation67_spill] sm:$0xff] %v12241_v42  ;;  %v12244_v29 = vadd.f32 %v6425_v51, %v11895_v25  ;;  %v5513_v28 = vpop.f32.mrb[1].mxu0  ;;  %v6427_v39 = vpop.f32.mrb[97].mxu1  ;;  %v1919_v42 = vld [vmem:[%s14867_s0 + $0x9d8] sm:$0xff] }
 0x540   : > { %v12246_v6 = vpop.f32.mrb[2].mxu0  ;;  %v6428_v23 = vpop.f32.mrb[98].mxu1  ;;  %v1923_v25 = vld [vmem:[%s14867_s0 + $0x9f8] sm:$0xff]  ;;  %v8875_v39 = vcombine.low %v1911_v11, %v1915_v48 }
 0x541   : > { %15147 = vst [vmem:[#allocation68_spill] sm:$0xff] %v12244_v29  ;;  %15148 = vst [vmem:[#allocation69_spill] sm:$0xff] %v12246_v6  ;;  %v12249_v41 = vadd.f32 %v6428_v23, %v11897_v20  ;;  %v5516_v36 = vpop.f32.mrb[3].mxu0  ;;  %v6430_v12 = vpop.f32.mrb[99].mxu1  ;;  %v8884_v23 = vcombine.high %v1919_v42, %v1923_v25 }
 0x543   : > { %15149 = vst [vmem:[#allocation70_spill] sm:$0xff] %v12249_v41  ;;  %6640 = vmatmul.mubr.bf16.gmra.mrb[204].mxu1 %v8867_v4 }
 0x544   : > { %6647 = vmatprep.mubr.bf16.mxu1 %v8876_v5 }
 0x546   : > { %v12257_v27 = vpop.f32.mrb[4].mxu0  ;;  %v6433_v3 = vpop.f32.mrb[100].mxu1 }
 0x547   : > { %15150 = vst [vmem:[#allocation71_spill] sm:$0xff] %v12257_v27  ;;  %v12260_v51 = vadd.f32 %v6433_v3, %v11911_v43  ;;  %v5521_v20 = vpop.f32.mrb[5].mxu0  ;;  %v6435_v28 = vpop.f32.mrb[101].mxu1  ;;  %v1927_v27 = vld [vmem:[%s14867_s0 + $0xa18] sm:$0xff] }
 0x548   : > { %v12262_v12 = vpop.f32.mrb[6].mxu0  ;;  %v6436_v4 = vpop.f32.mrb[102].mxu1  ;;  %v1931_v43 = vld [vmem:[%s14867_s0 + $0xa38] sm:$0xff]  ;;  %v8883_v28 = vcombine.low %v1919_v42, %v1923_v25 }
 0x549   : > { %15151 = vst [vmem:[#allocation72_spill] sm:$0xff] %v12260_v51  ;;  %15152 = vst [vmem:[#allocation73_spill] sm:$0xff] %v12262_v12  ;;  %v12265_v5 = vadd.f32 %v6436_v4, %v11913_v16  ;;  %v5524_v36 = vpop.f32.mrb[7].mxu0  ;;  %v6438_v6 = vpop.f32.mrb[103].mxu1  ;;  %v8892_v4 = vcombine.high %v1927_v27, %v1931_v43 }
 0x54b   : > { %15153 = vst [vmem:[#allocation74_spill] sm:$0xff] %v12265_v5  ;;  %6648 = vmatmul.mubr.bf16.gmra.mrb[208].mxu1 %v8875_v39 }
 0x54c   : > { %6655 = vmatprep.mubr.bf16.mxu1 %v8884_v23 }
 0x54e   : > { %v12273_v11 = vpop.f32.mrb[8].mxu0  ;;  %v6441_v48 = vpop.f32.mrb[104].mxu1 }
 0x54f   : > { %15154 = vst [vmem:[#allocation75_spill] sm:$0xff] %v12273_v11  ;;  %v12276_v3 = vadd.f32 %v6441_v48, %v11927_v60  ;;  %v5529_v16 = vpop.f32.mrb[9].mxu0  ;;  %v6443_v20 = vpop.f32.mrb[105].mxu1  ;;  %v1935_v11 = vld [vmem:[%s14867_s0 + $0xa58] sm:$0xff] }
 0x550   : > { %v12278_v6 = vpop.f32.mrb[10].mxu0  ;;  %v6444_v39 = vpop.f32.mrb[106].mxu1  ;;  %v1939_v60 = vld [vmem:[%s14867_s0 + $0xa78] sm:$0xff]  ;;  %v8891_v20 = vcombine.low %v1927_v27, %v1931_v43 }
 0x551   : > { %15155 = vst [vmem:[#allocation76_spill] sm:$0xff] %v12276_v3  ;;  %15156 = vst [vmem:[#allocation77_spill] sm:$0xff] %v12278_v6  ;;  %v12281_v23 = vadd.f32 %v6444_v39, %v11929_v50  ;;  %v5532_v36 = vpop.f32.mrb[11].mxu0  ;;  %v6446_v12 = vpop.f32.mrb[107].mxu1  ;;  %v8900_v39 = vcombine.high %v1935_v11, %v1939_v60 }
 0x553   : > { %15157 = vst [vmem:[#allocation78_spill] sm:$0xff] %v12281_v23  ;;  %6656 = vmatmul.mubr.bf16.gmra.mrb[212].mxu1 %v8883_v28 }
 0x554   : > { %6663 = vmatprep.mubr.bf16.mxu1 %v8892_v4 }
 0x556   : > { %v12289_v42 = vpop.f32.mrb[12].mxu0  ;;  %v6449_v25 = vpop.f32.mrb[108].mxu1 }
 0x557   : > { %15158 = vst [vmem:[#allocation79_spill] sm:$0xff] %v12289_v42  ;;  %v12292_v48 = vadd.f32 %v6449_v25, %v11943_v63  ;;  %v5537_v50 = vpop.f32.mrb[13].mxu0  ;;  %v6451_v16 = vpop.f32.mrb[109].mxu1  ;;  %v1943_v42 = vld [vmem:[%s14867_s0 + $0xa98] sm:$0xff] }
 0x558   : > { %v12294_v12 = vpop.f32.mrb[14].mxu0  ;;  %v6452_v28 = vpop.f32.mrb[110].mxu1  ;;  %v1947_v63 = vld [vmem:[%s14867_s0 + $0xab8] sm:$0xff]  ;;  %v8899_v16 = vcombine.low %v1935_v11, %v1939_v60 }
 0x559   : > { %15159 = vst [vmem:[#allocation80_spill] sm:$0xff] %v12292_v48  ;;  %15160 = vst [vmem:[#allocation81_spill] sm:$0xff] %v12294_v12  ;;  %v12297_v4 = vadd.f32 %v6452_v28, %v11945_v0  ;;  %v5540_v36 = vpop.f32.mrb[15].mxu0  ;;  %v6454_v6 = vpop.f32.mrb[111].mxu1  ;;  %v8908_v28 = vcombine.high %v1943_v42, %v1947_v63 }
 0x55b   : > { %15161 = vst [vmem:[#allocation82_spill] sm:$0xff] %v12297_v4  ;;  %6664 = vmatmul.mubr.bf16.gmra.mrb[216].mxu1 %v8891_v20 }
 0x55c   : > { %6671 = vmatprep.mubr.bf16.mxu1 %v8900_v39 }
 0x55e   : > { %v12305_v27 = vpop.f32.mrb[16].mxu0  ;;  %v6457_v43 = vpop.f32.mrb[112].mxu1 }
 0x55f   : > { %15162 = vst [vmem:[#allocation83_spill] sm:$0xff] %v12305_v27  ;;  %v12308_v25 = vadd.f32 %v6457_v43, %v11959_v55  ;;  %v5545_v0 = vpop.f32.mrb[17].mxu0  ;;  %v6459_v50 = vpop.f32.mrb[113].mxu1  ;;  %v1951_v27 = vld [vmem:[%s14867_s0 + $0xad8] sm:$0xff] }
 0x560   : > { %v12310_v6 = vpop.f32.mrb[18].mxu0  ;;  %v6460_v20 = vpop.f32.mrb[114].mxu1  ;;  %v1955_v55 = vld [vmem:[%s14867_s0 + $0xaf8] sm:$0xff]  ;;  %v8907_v50 = vcombine.low %v1943_v42, %v1947_v63 }
 0x561   : > { %15163 = vst [vmem:[#allocation84_spill] sm:$0xff] %v12308_v25  ;;  %15164 = vst [vmem:[#allocation85_spill] sm:$0xff] %v12310_v6  ;;  %v12313_v39 = vadd.f32 %v6460_v20, %v11961_v44  ;;  %v5548_v36 = vpop.f32.mrb[19].mxu0  ;;  %v6462_v12 = vpop.f32.mrb[115].mxu1  ;;  %v8916_v20 = vcombine.high %v1951_v27, %v1955_v55 }
 0x563   : > { %15165 = vst [vmem:[#allocation86_spill] sm:$0xff] %v12313_v39  ;;  %6672 = vmatmul.mubr.bf16.gmra.mrb[220].mxu1 %v8899_v16 }
 0x564   : > { %6679 = vmatprep.mubr.bf16.mxu1 %v8908_v28 }
 0x566   : > { %v12321_v11 = vpop.f32.mrb[20].mxu0  ;;  %v6465_v60 = vpop.f32.mrb[116].mxu1 }
 0x567   : > { %15166 = vst [vmem:[#allocation87_spill] sm:$0xff] %v12321_v11  ;;  %v12324_v43 = vadd.f32 %v6465_v60, %v11975_v49  ;;  %v5553_v44 = vpop.f32.mrb[21].mxu0  ;;  %v6467_v0 = vpop.f32.mrb[117].mxu1  ;;  %v1959_v11 = vld [vmem:[%s14867_s0 + $0xb18] sm:$0xff] }
 0x568   : > { %v12326_v12 = vpop.f32.mrb[22].mxu0  ;;  %v6468_v16 = vpop.f32.mrb[118].mxu1  ;;  %v1963_v49 = vld [vmem:[%s14867_s0 + $0xb38] sm:$0xff]  ;;  %v8915_v0 = vcombine.low %v1951_v27, %v1955_v55 }
 0x569   : > { %15167 = vst [vmem:[#allocation88_spill] sm:$0xff] %v12324_v43  ;;  %15168 = vst [vmem:[#allocation89_spill] sm:$0xff] %v12326_v12  ;;  %v12329_v28 = vadd.f32 %v6468_v16, %v11977_v32  ;;  %v5556_v36 = vpop.f32.mrb[23].mxu0  ;;  %v6470_v6 = vpop.f32.mrb[119].mxu1  ;;  %v8924_v16 = vcombine.high %v1959_v11, %v1963_v49 }
 0x56b   : > { %15169 = vst [vmem:[#allocation90_spill] sm:$0xff] %v12329_v28  ;;  %6680 = vmatmul.mubr.bf16.gmra.mrb[224].mxu1 %v8907_v50 }
 0x56c   : > { %6687 = vmatprep.mubr.bf16.mxu1 %v8916_v20 }
 0x56e   : > { %v12337_v42 = vpop.f32.mrb[24].mxu0  ;;  %v6473_v63 = vpop.f32.mrb[120].mxu1 }
 0x56f   : > { %15170 = vst [vmem:[#allocation91_spill] sm:$0xff] %v12337_v42  ;;  %v12340_v60 = vadd.f32 %v6473_v63, %v11991_v24  ;;  %v5561_v32 = vpop.f32.mrb[25].mxu0  ;;  %v6475_v44 = vpop.f32.mrb[121].mxu1  ;;  %v1967_v42 = vld [vmem:[%s14867_s0 + $0xb58] sm:$0xff] }
 0x570   : > { %v12342_v6 = vpop.f32.mrb[26].mxu0  ;;  %v6476_v50 = vpop.f32.mrb[122].mxu1  ;;  %v1971_v24 = vld [vmem:[%s14867_s0 + $0xb78] sm:$0xff]  ;;  %v8923_v44 = vcombine.low %v1959_v11, %v1963_v49 }
 0x571   : > { %15171 = vst [vmem:[#allocation92_spill] sm:$0xff] %v12340_v60  ;;  %15172 = vst [vmem:[#allocation93_spill] sm:$0xff] %v12342_v6  ;;  %v12345_v20 = vadd.f32 %v6476_v50, %v11993_v7  ;;  %v5564_v36 = vpop.f32.mrb[27].mxu0  ;;  %v6478_v12 = vpop.f32.mrb[123].mxu1  ;;  %v8932_v50 = vcombine.high %v1967_v42, %v1971_v24 }
 0x573   : > { %15173 = vst [vmem:[#allocation94_spill] sm:$0xff] %v12345_v20  ;;  %6688 = vmatmul.mubr.bf16.gmra.mrb[228].mxu1 %v8915_v0 }
 0x574   : > { %6695 = vmatprep.mubr.bf16.mxu1 %v8924_v16 }
 0x576   : > { %v12353_v27 = vpop.f32.mrb[28].mxu0  ;;  %v6481_v55 = vpop.f32.mrb[124].mxu1 }
 0x577   : > { %15174 = vst [vmem:[#allocation95_spill] sm:$0xff] %v12353_v27  ;;  %v12356_v63 = vadd.f32 %v6481_v55, %v12007_v33  ;;  %v5569_v7 = vpop.f32.mrb[29].mxu0  ;;  %v6483_v32 = vpop.f32.mrb[125].mxu1  ;;  %v1975_v27 = vld [vmem:[%s14867_s0 + $0xb98] sm:$0xff] }
 0x578   : > { %v12358_v12 = vpop.f32.mrb[30].mxu0  ;;  %v6484_v0 = vpop.f32.mrb[126].mxu1  ;;  %v1979_v33 = vld [vmem:[%s14867_s0 + $0xbb8] sm:$0xff]  ;;  %v8931_v32 = vcombine.low %v1967_v42, %v1971_v24 }
 0x579   : > { %15175 = vst [vmem:[#allocation96_spill] sm:$0xff] %v12356_v63  ;;  %15176 = vst [vmem:[#allocation97_spill] sm:$0xff] %v12358_v12  ;;  %v12361_v16 = vadd.f32 %v6484_v0, %v12009_v59  ;;  %v5572_v36 = vpop.f32.mrb[31].mxu0  ;;  %v6486_v6 = vpop.f32.mrb[127].mxu1  ;;  %v8940_v0 = vcombine.high %v1975_v27, %v1979_v33 }
 0x57b   : > { %15177 = vst [vmem:[#allocation98_spill] sm:$0xff] %v12361_v16  ;;  %6696 = vmatmul.mubr.bf16.gmra.mrb[232].mxu1 %v8923_v44 }
 0x57c   : > { %6703 = vmatprep.mubr.bf16.mxu1 %v8932_v50 }
 0x57e   : > { %v12369_v11 = vpop.f32.mrb[32].mxu0  ;;  %v6489_v49 = vpop.f32.mrb[128].mxu1 }
 0x57f   : > { %15178 = vst [vmem:[#allocation99_spill] sm:$0xff] %v12369_v11  ;;  %v12372_v55 = vadd.f32 %v6489_v49, %v12023_v61  ;;  %v5577_v59 = vpop.f32.mrb[33].mxu0  ;;  %v6491_v7 = vpop.f32.mrb[129].mxu1  ;;  %v1983_v11 = vld [vmem:[%s14867_s0 + $0xbd8] sm:$0xff] }
 0x580   : > { %v12374_v6 = vpop.f32.mrb[34].mxu0  ;;  %v6492_v44 = vpop.f32.mrb[130].mxu1  ;;  %v1987_v61 = vld [vmem:[%s14867_s0 + $0xbf8] sm:$0xff]  ;;  %v8939_v7 = vcombine.low %v1975_v27, %v1979_v33 }
 0x581   : > { %15179 = vst [vmem:[#allocation100_spill] sm:$0xff] %v12372_v55  ;;  %15180 = vst [vmem:[#allocation101_spill] sm:$0xff] %v12374_v6  ;;  %v12377_v50 = vadd.f32 %v6492_v44, %v12025_v9  ;;  %v5580_v36 = vpop.f32.mrb[35].mxu0  ;;  %v6494_v12 = vpop.f32.mrb[131].mxu1  ;;  %v8948_v44 = vcombine.high %v1983_v11, %v1987_v61 }
 0x583   : > { %15181 = vst [vmem:[#allocation102_spill] sm:$0xff] %v12377_v50  ;;  %6704 = vmatmul.mubr.bf16.gmra.mrb[236].mxu1 %v8931_v32 }
 0x584   : > { %6711 = vmatprep.mubr.bf16.mxu1 %v8940_v0 }
 0x586   : > { %v12385_v42 = vpop.f32.mrb[36].mxu0  ;;  %v6497_v24 = vpop.f32.mrb[132].mxu1 }
 0x587   : > { %15182 = vst [vmem:[#allocation103_spill] sm:$0xff] %v12385_v42  ;;  %v12388_v49 = vadd.f32 %v6497_v24, %v12039_v45  ;;  %v5585_v9 = vpop.f32.mrb[37].mxu0  ;;  %v6499_v59 = vpop.f32.mrb[133].mxu1  ;;  %v1991_v42 = vld [vmem:[%s14867_s0 + $0xc18] sm:$0xff] }
 0x588   : > { %v12390_v12 = vpop.f32.mrb[38].mxu0  ;;  %v6500_v32 = vpop.f32.mrb[134].mxu1  ;;  %v1995_v45 = vld [vmem:[%s14867_s0 + $0xc38] sm:$0xff]  ;;  %v8947_v59 = vcombine.low %v1983_v11, %v1987_v61 }
 0x589   : > { %15183 = vst [vmem:[#allocation104_spill] sm:$0xff] %v12388_v49  ;;  %15184 = vst [vmem:[#allocation105_spill] sm:$0xff] %v12390_v12  ;;  %v12393_v0 = vadd.f32 %v6500_v32, %v12041_v1  ;;  %v5588_v36 = vpop.f32.mrb[39].mxu0  ;;  %v6502_v6 = vpop.f32.mrb[135].mxu1  ;;  %v8956_v32 = vcombine.high %v1991_v42, %v1995_v45 }
 0x58b   : > { %15185 = vst [vmem:[#allocation106_spill] sm:$0xff] %v12393_v0  ;;  %6712 = vmatmul.mubr.bf16.gmra.mrb[240].mxu1 %v8939_v7 }
 0x58c   : > { %6719 = vmatprep.mubr.bf16.mxu1 %v8948_v44 }
 0x58e   : > { %v12401_v27 = vpop.f32.mrb[40].mxu0  ;;  %v6505_v33 = vpop.f32.mrb[136].mxu1 }
 0x58f   : > { %15186 = vst [vmem:[#allocation107_spill] sm:$0xff] %v12401_v27  ;;  %v12404_v24 = vadd.f32 %v6505_v33, %v12055_v22  ;;  %v5593_v1 = vpop.f32.mrb[41].mxu0  ;;  %v6507_v9 = vpop.f32.mrb[137].mxu1  ;;  %v1999_v27 = vld [vmem:[%s14867_s0 + $0xc58] sm:$0xff]  ;;  %v6856_v33 = vadd.f32 %v12089_v19, %v12084_v46 }
 0x590   : > { %v12406_v6 = vpop.f32.mrb[42].mxu0  ;;  %v6508_v7 = vpop.f32.mrb[138].mxu1  ;;  %v2003_v22 = vld [vmem:[%s14867_s0 + $0xc78] sm:$0xff]  ;;  %v8955_v9 = vcombine.low %v1991_v42, %v1995_v45 }
 0x591   : > { %15187 = vst [vmem:[#allocation108_spill] sm:$0xff] %v12406_v6  ;;  %v12409_v44 = vadd.f32 %v6508_v7, %v12057_v31  ;;  %v5596_v36 = vpop.f32.mrb[43].mxu0  ;;  %v6510_v12 = vpop.f32.mrb[139].mxu1  ;;  %v2011_v42 = vld [vmem:[%s14867_s0 + $0xcb8] sm:$0xff] }
 0x592   : > { %v6857_v36 = vadd.f32 %v12100_v58, %v6856_v33 }
 0x593   : > { %15188 = vst [vmem:[#allocation109_spill] sm:$0xff] %v12409_v44  ;;  %6720 = vmatmul.mubr.bf16.gmra.mrb[244].mxu1 %v8947_v59 }
 0x594   : > { %6727 = vmatprep.mubr.bf16.mxu1 %v8956_v32  ;;  %v8964_v32 = vcombine.high %v1999_v27, %v2003_v22  ;;  %v6858_v19 = vadd.f32 %v12105_v37, %v6857_v36 }
 0x596   : > { %v12417_v11 = vpop.f32.mrb[44].mxu0  ;;  %v6513_v61 = vpop.f32.mrb[140].mxu1 }
 0x597   : > { %15189 = vst [vmem:[#allocation110_spill] sm:$0xff] %v12417_v11  ;;  %v12422_v31 = vadd.f32 %v6513_v61, %v12071_v56  ;;  %v5601_v12 = vpop.f32.mrb[45].mxu0  ;;  %v6515_v1 = vpop.f32.mrb[141].mxu1  ;;  %v2007_v56 = vld [vmem:[%s14867_s0 + $0xc98] sm:$0xff] }
 0x598   : > { %v12424_v59 = vpop.f32.mrb[46].mxu0  ;;  %v6516_v7 = vpop.f32.mrb[142].mxu1  ;;  %v8963_v12 = vcombine.low %v1999_v27, %v2003_v22  ;;  %v2019_v27 = vld [vmem:[%s14867_s0 + $0xcf8] sm:$0xff] }
 0x599   : > { %15190 = vst [vmem:[#allocation111_spill] sm:$0xff] %v12422_v31  ;;  %v12428_v6 = vadd.f32 %v6516_v7, %v12073_v38  ;;  %v5604_v11 = vpop.f32.mrb[47].mxu0  ;;  %v6518_v44 = vpop.f32.mrb[143].mxu1  ;;  %v6859_v38 = vadd.f32 %v12116_v52, %v6858_v19  ;;  %v8972_v7 = vcombine.high %v2007_v56, %v2011_v42 }
 0x59b   : > { %6728 = vmatmul.mubr.bf16.gmra.mrb[248].mxu1 %v8955_v9  ;;  %v6860_v58 = vadd.f32 %v12121_v53, %v6859_v38 }
 0x59c   : > { %6735 = vmatprep.mubr.bf16.mxu1 %v8964_v32 }
 0x59d   : > { %v6861_v19 = vadd.f32 %v12132_v30, %v6860_v58 }
 0x59e   : > { %v12437_v45 = vpop.f32.mrb[48].mxu0  ;;  %v6521_v61 = vpop.f32.mrb[144].mxu1 }
 0x59f   : > { %v12441_v11 = vadd.f32 %v6521_v61, %v12081_v14  ;;  %v5609_v44 = vpop.f32.mrb[49].mxu0  ;;  %v6523_v33 = vpop.f32.mrb[145].mxu1  ;;  %v2015_v14 = vld [vmem:[%s14867_s0 + $0xcd8] sm:$0xff] }
 0x5a0   : > { %v12443_v1 = vpop.f32.mrb[50].mxu0  ;;  %v6524_v9 = vpop.f32.mrb[146].mxu1  ;;  %v8971_v44 = vcombine.low %v2007_v56, %v2011_v42  ;;  %v2027_v56 = vld [vmem:[%s14867_s0 + $0xd38] sm:$0xff] }
 0x5a1   : > { %15191 = vst [vmem:[#allocation112_spill] sm:$0xff] %v12441_v11  ;;  %v12446_v32 = vadd.f32 %v6524_v9, %v12086_v35  ;;  %v5612_v36 = vpop.f32.mrb[51].mxu0  ;;  %v6526_v37 = vpop.f32.mrb[147].mxu1  ;;  %v6862_v9 = vadd.f32 %v12137_v17, %v6861_v19 }
 0x5a3   : > { %15192 = vst [vmem:[#allocation113_spill] sm:$0xff] %v12446_v32  ;;  %6736 = vmatmul.mubr.bf16.gmra.mrb[252].mxu1 %v8963_v12  ;;  %v8980_v12 = vcombine.high %v2015_v14, %v2019_v27  ;;  %v6863_v53 = vadd.f32 %v12148_v34, %v6862_v9  ;;  %v15197_v34 = vld [vmem:[#allocation37_spill] sm:$0xff] }
 0x5a4   : > { %6743 = vmatprep.mubr.bf16.mxu1 %v8972_v7 }
 0x5a6   : > { %v12456_v22 = vpop.f32.mrb[52].mxu0  ;;  %v6529_v35 = vpop.f32.mrb[148].mxu1 }
 0x5a7   : > { %v12459_v61 = vadd.f32 %v6529_v35, %v12097_v18  ;;  %v5617_v37 = vpop.f32.mrb[53].mxu0  ;;  %v6531_v38 = vpop.f32.mrb[149].mxu1  ;;  %v2023_v18 = vld [vmem:[%s14867_s0 + $0xd18] sm:$0xff]  ;;  %v15195_v35 = vld [vmem:[#allocation35_spill] sm:$0xff] }
 0x5a8   : > { %v12461_v33 = vpop.f32.mrb[54].mxu0  ;;  %v6532_v58 = vpop.f32.mrb[150].mxu1  ;;  %v8988_v9 = vcombine.high %v2023_v18, %v2027_v56 }
 0x5a9   : > { %15193 = vst [vmem:[#allocation114_spill] sm:$0xff] %v12459_v61  ;;  %v12465_v7 = vadd.f32 %v6532_v58, %v12102_v40  ;;  %v5620_v36 = vpop.f32.mrb[55].mxu0  ;;  %v6534_v30 = vpop.f32.mrb[151].mxu1  ;;  %v6864_v40 = vadd.f32 %v12153_v62, %v6863_v53 }
 0x5ab   : > { %15194 = vst [vmem:[#allocation115_spill] sm:$0xff] %v12465_v7  ;;  %6744 = vmatmul.mubr.bf16.gmra.mrb[0].mxu1 %v8971_v44  ;;  %v8979_v44 = vcombine.low %v2015_v14, %v2019_v27  ;;  %v6865_v36 = vadd.f32 %v12164_v2, %v6864_v40  ;;  %v2035_v14 = vld [vmem:[%s14867_s0 + $0xd78] sm:$0xff] }
 0x5ac   : > { %6751 = vmatprep.mubr.bf16.mxu1 %v8980_v12 }
 0x5ad   : > { %v6866_v53 = vadd.f32 %v12169_v8, %v6865_v36  ;;  %v15202_v36 = vld [vmem:[#allocation41_spill] sm:$0xff] }
 0x5ae   : > { %v12474_v42 = vpop.f32.mrb[56].mxu0  ;;  %v6537_v19 = vpop.f32.mrb[152].mxu1 }
 0x5af   : > { %v12478_v37 = vadd.f32 %v6537_v19, %v15195_v35  ;;  %v5625_v30 = vpop.f32.mrb[57].mxu0  ;;  %v6539_v38 = vpop.f32.mrb[153].mxu1  ;;  %v2031_v19 = vld [vmem:[%s14867_s0 + $0xd58] sm:$0xff]  ;;  %v15200_v35 = vld [vmem:[#allocation39_spill] sm:$0xff] }
 0x5b0   : > { %v12480_v58 = vpop.f32.mrb[58].mxu0  ;;  %v6540_v12 = vpop.f32.mrb[154].mxu1  ;;  %v8987_v38 = vcombine.low %v2023_v18, %v2027_v56  ;;  %v2043_v18 = vld [vmem:[%s14867_s0 + $0xdb8] sm:$0xff] }
 0x5b1   : > { %15196 = vst [vmem:[#allocation35_spill] sm:$0xff] %v12478_v37  ;;  %v12484_v17 = vadd.f32 %v6540_v12, %v15197_v34  ;;  %v5628_v52 = vpop.f32.mrb[59].mxu0  ;;  %v6542_v46 = vpop.f32.mrb[155].mxu1  ;;  %v6867_v34 = vadd.f32 %v12180_v47, %v6866_v53 }
 0x5b3   : > { %15198 = vst [vmem:[#allocation37_spill] sm:$0xff] %v12484_v17  ;;  %6752 = vmatmul.mubr.bf16.gmra.mrb[4].mxu1 %v8979_v44 }
 0x5b4   : > { %6759 = vmatprep.mubr.bf16.mxu1 %v8988_v9  ;;  %v8996_v9 = vcombine.high %v2031_v19, %v2035_v14 }
 0x5b6   : > { %v12493_v27 = vpop.f32.mrb[60].mxu0  ;;  %v6545_v40 = vpop.f32.mrb[156].mxu1 }
 0x5b7   : > { %15199 = vst [vmem:[#allocation116_spill] sm:$0xff] %v12493_v27  ;;  %v12497_v52 = vadd.f32 %v6545_v40, %v15200_v35  ;;  %v5633_v46 = vpop.f32.mrb[61].mxu0  ;;  %v6547_v30 = vpop.f32.mrb[157].mxu1  ;;  %v6868_v27 = vadd.f32 %v12185_v21, %v6867_v34  ;;  %v2039_v40 = vld [vmem:[%s14867_s0 + $0xd98] sm:$0xff] }
 0x5b8   : > { %v12499_v44 = vpop.f32.mrb[62].mxu0  ;;  %v6548_v12 = vpop.f32.mrb[158].mxu1  ;;  %v15205_v46 = vld [vmem:[#allocation43_spill] sm:$0xff]  ;;  %v8995_v30 = vcombine.low %v2031_v19, %v2035_v14  ;;  %v2051_v19 = vld [vmem:[%s14867_s0 + $0xdf8] sm:$0xff] }
 0x5b9   : > { %15201 = vst [vmem:[#allocation39_spill] sm:$0xff] %v12497_v52  ;;  %v12502_v8 = vadd.f32 %v6548_v12, %v15202_v36  ;;  %v5636_v2 = vpop.f32.mrb[63].mxu0  ;;  %v6550_v62 = vpop.f32.mrb[159].mxu1  ;;  %v6869_v53 = vadd.f32 %v12196_v15, %v6868_v27  ;;  %v9004_v12 = vcombine.high %v2039_v40, %v2043_v18  ;;  %v15208_v36 = vld [vmem:[#allocation45_spill] sm:$0xff] }
 0x5bb   : > { %15203 = vst [vmem:[#allocation41_spill] sm:$0xff] %v12502_v8  ;;  %6760 = vmatmul.mubr.bf16.gmra.mrb[8].mxu1 %v8987_v38 }
 0x5bc   : > { %6767 = vmatprep.mubr.bf16.mxu1 %v8996_v9  ;;  %v6870_v9 = vadd.f32 %v12201_v10, %v6869_v53 }
 0x5be   : > { %v12512_v56 = vpop.f32.mrb[64].mxu0  ;;  %v6553_v35 = vpop.f32.mrb[160].mxu1 }
 0x5bf   : > { %15204 = vst [vmem:[#allocation117_spill] sm:$0xff] %v12512_v56  ;;  %v12515_v2 = vadd.f32 %v6553_v35, %v15205_v46  ;;  %v5641_v62 = vpop.f32.mrb[65].mxu0  ;;  %v6555_v34 = vpop.f32.mrb[161].mxu1  ;;  %v6871_v56 = vadd.f32 %v12212_v13, %v6870_v9  ;;  %v2047_v35 = vld [vmem:[%s14867_s0 + $0xdd8] sm:$0xff]  ;;  %v15213_v13 = vld [vmem:[#allocation49_spill] sm:$0xff] }
 0x5c0   : > { %v12517_v38 = vpop.f32.mrb[66].mxu0  ;;  %v6556_v27 = vpop.f32.mrb[162].mxu1  ;;  %v15211_v62 = vld [vmem:[#allocation47_spill] sm:$0xff]  ;;  %v9012_v9 = vcombine.high %v2047_v35, %v2051_v19 }
 0x5c1   : > { %15206 = vst [vmem:[#allocation43_spill] sm:$0xff] %v12515_v2  ;;  %15207 = vst [vmem:[#allocation118_spill] sm:$0xff] %v12517_v38  ;;  %v12521_v15 = vadd.f32 %v6556_v27, %v15208_v36  ;;  %v5644_v21 = vpop.f32.mrb[67].mxu0  ;;  %v6558_v47 = vpop.f32.mrb[163].mxu1  ;;  %v6872_v46 = vadd.f32 %v12217_v54, %v6871_v56 }
 0x5c3   : > { %15209 = vst [vmem:[#allocation45_spill] sm:$0xff] %v12521_v15  ;;  %6768 = vmatmul.mubr.bf16.gmra.mrb[12].mxu1 %v8995_v30  ;;  %v9003_v30 = vcombine.low %v2039_v40, %v2043_v18  ;;  %v6873_v36 = vadd.f32 %v12228_v57, %v6872_v46  ;;  %v2059_v40 = vld [vmem:[%s14867_s0 + $0xe38] sm:$0xff] }
 0x5c4   : > { %6775 = vmatprep.mubr.bf16.mxu1 %v9004_v12 }
 0x5c5   : > { %v6874_v56 = vadd.f32 %v12233_v26, %v6873_v36 }
 0x5c6   : > { %v12530_v14 = vpop.f32.mrb[68].mxu0  ;;  %v6561_v53 = vpop.f32.mrb[164].mxu1 }
 0x5c7   : > { %15210 = vst [vmem:[#allocation119_spill] sm:$0xff] %v12530_v14  ;;  %v12534_v21 = vadd.f32 %v6561_v53, %v15211_v62  ;;  %v5649_v47 = vpop.f32.mrb[69].mxu0  ;;  %v6563_v34 = vpop.f32.mrb[165].mxu1  ;;  %v2055_v53 = vld [vmem:[%s14867_s0 + $0xe18] sm:$0xff]  ;;  %v6875_v46 = vadd.f32 %v12244_v29, %v6874_v56  ;;  %v15214_v62 = vld [vmem:[#allocation51_spill] sm:$0xff] }
 0x5c8   : > { %v12536_v27 = vpop.f32.mrb[70].mxu0  ;;  %v6564_v12 = vpop.f32.mrb[166].mxu1  ;;  %v9020_v34 = vcombine.high %v2055_v53, %v2059_v40  ;;  %v2063_v56 = vld [vmem:[%s14867_s0 + $0xe58] sm:$0xff] }
 0x5c9   : > { %15212 = vst [vmem:[#allocation47_spill] sm:$0xff] %v12534_v21  ;;  %v12540_v10 = vadd.f32 %v6564_v12, %v15213_v13  ;;  %v5652_v38 = vpop.f32.mrb[71].mxu0  ;;  %v6566_v14 = vpop.f32.mrb[167].mxu1  ;;  %v6876_v36 = vadd.f32 %v12249_v41, %v6875_v46  ;;  %v2071_v41 = vld [vmem:[%s14867_s0 + $0xe98] sm:$0xff] }
 0x5ca   : > { %v9011_v14 = vcombine.low %v2047_v35, %v2051_v19  ;;  %v2067_v35 = vld [vmem:[%s14867_s0 + $0xe78] sm:$0xff] }
 0x5cb   : > { %6776 = vmatmul.mubr.bf16.gmra.mrb[16].mxu1 %v9003_v30  ;;  %v15216_v30 = vld [vmem:[#allocation53_spill] sm:$0xff]  ;;  %v6877_v26 = vadd.f32 %v12260_v51, %v6876_v36  ;;  %v9028_v46 = vcombine.high %v2063_v56, %v2067_v35 }
 0x5cc   : > { %6783 = vmatprep.mubr.bf16.mxu1 %v9012_v9 }
 0x5ce   : > { %v6569_v18 = vpop.f32.mrb[168].mxu1 }
 0x5cf   : > { %v12551_v13 = vadd.f32 %v6569_v18, %v15214_v62  ;;  %v6571_v38 = vpop.f32.mrb[169].mxu1  ;;  %v15218_v18 = vld [vmem:[#allocation55_spill] sm:$0xff] }
 0x5d0   : > { %v6572_v47 = vpop.f32.mrb[170].mxu1 }
 0x5d1   : > { %15215 = vst [vmem:[#allocation49_spill] sm:$0xff] %v12551_v13  ;;  %v12554_v12 = vadd.f32 %v6572_v47, %v15216_v30  ;;  %v6574_v9 = vpop.f32.mrb[171].mxu1  ;;  %v9019_v47 = vcombine.low %v2055_v53, %v2059_v40  ;;  %v2075_v53 = vld [vmem:[%s14867_s0 + $0xeb8] sm:$0xff] }
 0x5d3   : > { %15217 = vst [vmem:[#allocation51_spill] sm:$0xff] %v12554_v12  ;;  %6784 = vmatmul.mubr.bf16.gmra.mrb[20].mxu1 %v9011_v14  ;;  %v6878_v14 = vadd.f32 %v12265_v5, %v6877_v26  ;;  %v15220_v26 = vld [vmem:[#allocation59_spill] sm:$0xff] }
 0x5d4   : > { %6791 = vmatprep.mubr.bf16.mxu1 %v9020_v34  ;;  %v15219_v34 = vld [vmem:[#allocation57_spill] sm:$0xff] }
 0x5d5   : > { %v6879_v51 = vadd.f32 %v12276_v3, %v6878_v14  ;;  %v9036_v14 = vcombine.high %v2071_v41, %v2075_v53 }
 0x5d6   : > { %v6577_v19 = vpop.f32.mrb[172].mxu1 }
 0x5d7   : > { %v12565_v62 = vadd.f32 %v6577_v19, %v15218_v18  ;;  %v6579_v38 = vpop.f32.mrb[173].mxu1  ;;  %v6880_v19 = vadd.f32 %v12281_v23, %v6879_v51  ;;  %v2079_v51 = vld [vmem:[%s14867_s0 + $0xed8] sm:$0xff] }
 0x5d8   : > { %v6580_v30 = vpop.f32.mrb[174].mxu1 }
 0x5d9   : > { %v12569_v9 = vadd.f32 %v6580_v30, %v15219_v34  ;;  %v6582_v36 = vpop.f32.mrb[175].mxu1  ;;  %v9027_v30 = vcombine.low %v2063_v56, %v2067_v35  ;;  %v2083_v56 = vld [vmem:[%s14867_s0 + $0xef8] sm:$0xff] }
 0x5db   : > { %6792 = vmatmul.mubr.bf16.gmra.mrb[24].mxu1 %v9019_v47  ;;  %v6881_v47 = vadd.f32 %v12292_v48, %v6880_v19  ;;  %v15222_v19 = vld [vmem:[#allocation63_spill] sm:$0xff] }
 0x5dc   : > { %6799 = vmatprep.mubr.bf16.mxu1 %v9028_v46  ;;  %v15221_v46 = vld [vmem:[#allocation61_spill] sm:$0xff] }
 0x5dd   : > { %v6882_v5 = vadd.f32 %v12297_v4, %v6881_v47 }
 0x5de   : > { %v6585_v40 = vpop.f32.mrb[176].mxu1 }
 0x5df   : > { %v12580_v18 = vadd.f32 %v6585_v40, %v15220_v26  ;;  %v6587_v38 = vpop.f32.mrb[177].mxu1  ;;  %v6883_v40 = vadd.f32 %v12308_v25, %v6882_v5  ;;  %v2087_v5 = vld [vmem:[%s14867_s0 + $0xf18] sm:$0xff]  ;;  %v15240_v25 = vld [vmem:[#allocation83_spill] sm:$0xff] }
 0x5e0   : > { %v6588_v34 = vpop.f32.mrb[178].mxu1 }
 0x5e1   : > { %v12584_v36 = vadd.f32 %v6588_v34, %v15221_v46  ;;  %v6590_v3 = vpop.f32.mrb[179].mxu1  ;;  %v9044_v34 = vcombine.high %v2079_v51, %v2083_v56  ;;  %v6884_v4 = vadd.f32 %v12313_v39, %v6883_v40  ;;  %v2095_v39 = vld [vmem:[%s14867_s0 + $0xf58] sm:$0xff] }
 0x5e2   : > { %v9035_v3 = vcombine.low %v2071_v41, %v2075_v53  ;;  %v2091_v41 = vld [vmem:[%s14867_s0 + $0xf38] sm:$0xff] }
 0x5e3   : > { %6800 = vmatmul.mubr.bf16.gmra.mrb[28].mxu1 %v9027_v30  ;;  %v6885_v48 = vadd.f32 %v12324_v43, %v6884_v4  ;;  %v9052_v40 = vcombine.high %v2087_v5, %v2091_v41 }
 0x5e4   : > { %6807 = vmatprep.mubr.bf16.mxu1 %v9036_v14  ;;  %v15223_v14 = vld [vmem:[#allocation65_spill] sm:$0xff] }
 0x5e6   : > { %v6593_v35 = vpop.f32.mrb[180].mxu1 }
 0x5e7   : > { %v12595_v26 = vadd.f32 %v6593_v35, %v15222_v19  ;;  %v6595_v38 = vpop.f32.mrb[181].mxu1  ;;  %v15225_v35 = vld [vmem:[#allocation67_spill] sm:$0xff] }
 0x5e8   : > { %v6596_v30 = vpop.f32.mrb[182].mxu1 }
 0x5e9   : > { %v12598_v47 = vadd.f32 %v6596_v30, %v15223_v14  ;;  %v6598_v46 = vpop.f32.mrb[183].mxu1  ;;  %v9043_v30 = vcombine.low %v2079_v51, %v2083_v56  ;;  %v2099_v51 = vld [vmem:[%s14867_s0 + $0xf78] sm:$0xff] }
 0x5eb   : > { %15224 = vst [vmem:[#allocation53_spill] sm:$0xff] %v12598_v47  ;;  %6808 = vmatmul.mubr.bf16.gmra.mrb[32].mxu1 %v9035_v3  ;;  %v6886_v3 = vadd.f32 %v12329_v28, %v6885_v48  ;;  %v15227_v48 = vld [vmem:[#allocation71_spill] sm:$0xff] }
 0x5ec   : > { %6815 = vmatprep.mubr.bf16.mxu1 %v9044_v34  ;;  %v15226_v34 = vld [vmem:[#allocation69_spill] sm:$0xff] }
 0x5ed   : > { %v6887_v43 = vadd.f32 %v12340_v60, %v6886_v3  ;;  %v9060_v3 = vcombine.high %v2095_v39, %v2099_v51 }
 0x5ee   : > { %v6601_v53 = vpop.f32.mrb[184].mxu1 }
 0x5ef   : > { %v12609_v19 = vadd.f32 %v6601_v53, %v15225_v35  ;;  %v6603_v38 = vpop.f32.mrb[185].mxu1  ;;  %v6888_v53 = vadd.f32 %v12345_v20, %v6887_v43  ;;  %v2103_v43 = vld [vmem:[%s14867_s0 + $0xf98] sm:$0xff] }
 0x5f0   : > { %v6604_v14 = vpop.f32.mrb[186].mxu1 }
 0x5f1   : > { %v12613_v4 = vadd.f32 %v6604_v14, %v15226_v34  ;;  %v6606_v46 = vpop.f32.mrb[187].mxu1  ;;  %v9051_v14 = vcombine.low %v2087_v5, %v2091_v41  ;;  %v2107_v5 = vld [vmem:[%s14867_s0 + $0xfb8] sm:$0xff] }
 0x5f3   : > { %6816 = vmatmul.mubr.bf16.gmra.mrb[36].mxu1 %v9043_v30  ;;  %v6889_v30 = vadd.f32 %v12356_v63, %v6888_v53  ;;  %v15231_v53 = vld [vmem:[#allocation75_spill] sm:$0xff] }
 0x5f4   : > { %6823 = vmatprep.mubr.bf16.mxu1 %v9052_v40  ;;  %v15229_v40 = vld [vmem:[#allocation73_spill] sm:$0xff] }
 0x5f5   : > { %v6890_v28 = vadd.f32 %v12361_v16, %v6889_v30 }
 0x5f6   : > { %v6609_v56 = vpop.f32.mrb[188].mxu1 }
 0x5f7   : > { %v12624_v35 = vadd.f32 %v6609_v56, %v15227_v48  ;;  %v6611_v38 = vpop.f32.mrb[189].mxu1  ;;  %v6891_v56 = vadd.f32 %v12372_v55, %v6890_v28  ;;  %v2111_v28 = vld [vmem:[%s14867_s0 + $0xfd8] sm:$0xff]  ;;  %v15239_v55 = vld [vmem:[#allocation109_spill] sm:$0xff] }
 0x5f8   : > { %v6612_v34 = vpop.f32.mrb[190].mxu1 }
 0x5f9   : > { %15228 = vst [vmem:[#allocation55_spill] sm:$0xff] %v12624_v35  ;;  %v12628_v46 = vadd.f32 %v6612_v34, %v15229_v40  ;;  %v6614_v60 = vpop.f32.mrb[191].mxu1  ;;  %v9068_v34 = vcombine.high %v2103_v43, %v2107_v5  ;;  %v6892_v16 = vadd.f32 %v12377_v50, %v6891_v56 }
 0x5fa   : > { %v9059_v60 = vcombine.low %v2095_v39, %v2099_v51  ;;  %v2115_v39 = vld [vmem:[%s14867_s0 + $0xff8] sm:$0xff] }
 0x5fb   : > { %15230 = vst [vmem:[#allocation57_spill] sm:$0xff] %v12628_v46  ;;  %6824 = vmatmul.mubr.bf16.gmra.mrb[40].mxu1 %v9051_v14  ;;  %v6893_v63 = vadd.f32 %v12388_v49, %v6892_v16  ;;  %v9076_v56 = vcombine.high %v2111_v28, %v2115_v39 }
 0x5fc   : > { %6831 = vmatprep.mubr.bf16.mxu1 %v9060_v3  ;;  %v15233_v3 = vld [vmem:[#allocation77_spill] sm:$0xff] }
 0x5fe   : > { %v6617_v41 = vpop.f32.mrb[192].mxu1 }
 0x5ff   : > { %v12639_v48 = vadd.f32 %v6617_v41, %v15231_v53  ;;  %v6619_v38 = vpop.f32.mrb[193].mxu1  ;;  %v15235_v41 = vld [vmem:[#allocation79_spill] sm:$0xff] }
 0x600   : > { %v6620_v14 = vpop.f32.mrb[194].mxu1 }
 0x601   : > { %15232 = vst [vmem:[#allocation59_spill] sm:$0xff] %v12639_v48  ;;  %v12642_v30 = vadd.f32 %v6620_v14, %v15233_v3  ;;  %v6622_v40 = vpop.f32.mrb[195].mxu1  ;;  %v9067_v14 = vcombine.low %v2103_v43, %v2107_v5  ;;  %v9075_v43 = vcombine.low %v2111_v28, %v2115_v39 }
 0x603   : > { %15234 = vst [vmem:[#allocation61_spill] sm:$0xff] %v12642_v30  ;;  %6832 = vmatmul.mubr.bf16.gmra.mrb[44].mxu1 %v9059_v60  ;;  %v6894_v60 = vadd.f32 %v12393_v0, %v6893_v63  ;;  %v15242_v63 = vld [vmem:[#allocation85_spill] sm:$0xff] }
 0x604   : > { %6839 = vmatprep.mubr.bf16.mxu1 %v9068_v34  ;;  %v15237_v34 = vld [vmem:[#allocation81_spill] sm:$0xff] }
 0x605   : > { %v6895_v49 = vadd.f32 %v12404_v24, %v6894_v60 }
 0x606   : > { %v6625_v51 = vpop.f32.mrb[196].mxu1 }
 0x607   : > { %v12653_v53 = vadd.f32 %v6625_v51, %v15235_v41  ;;  %v6627_v38 = vpop.f32.mrb[197].mxu1  ;;  %v6896_v20 = vadd.f32 %v15239_v55, %v6895_v49 }
 0x608   : > { %v6628_v3 = vpop.f32.mrb[198].mxu1 }
 0x609   : > { %15236 = vst [vmem:[#allocation63_spill] sm:$0xff] %v12653_v53  ;;  %v12657_v16 = vadd.f32 %v6628_v3, %v15237_v34  ;;  %v6630_v40 = vpop.f32.mrb[199].mxu1  ;;  %v6897_v38 = vadd.f32 %v12422_v31, %v6896_v20  ;;  %v15244_v34 = vld [vmem:[#allocation87_spill] sm:$0xff] }
 0x60a   : > { %v15246_v40 = vld [vmem:[#allocation89_spill] sm:$0xff] }
 0x60b   : > { %15238 = vst [vmem:[#allocation65_spill] sm:$0xff] %v12657_v16  ;;  %6840 = vmatmul.mubr.bf16.gmra.mrb[48].mxu1 %v9067_v14  ;;  %v6898_v60 = vadd.f32 %v12428_v6, %v6897_v38 }
 0x60c   : > { %6847 = vmatprep.mubr.bf16.mxu1 %v9076_v56 }
 0x60d   : > { %v6899_v56 = vadd.f32 %v12441_v11, %v6898_v60 }
 0x60e   : > { %v6633_v50 = vpop.f32.mrb[200].mxu1 }
 0x60f   : > { %v12662_v51 = vadd.f32 %v6633_v50, %v15240_v25  ;;  %v6635_v41 = vpop.f32.mrb[201].mxu1  ;;  %v6900_v20 = vadd.f32 %v12446_v32, %v6899_v56  ;;  %v15252_v56 = vld [vmem:[#allocation95_spill] sm:$0xff] }
 0x610   : > { %v6636_v5 = vpop.f32.mrb[202].mxu1 }
 0x611   : > { %15241 = vst [vmem:[#allocation67_spill] sm:$0xff] %v12662_v51  ;;  %v12666_v0 = vadd.f32 %v6636_v5, %v15242_v63  ;;  %v6638_v3 = vpop.f32.mrb[203].mxu1  ;;  %v6901_v41 = vadd.f32 %v12459_v61, %v6900_v20 }
 0x613   : > { %15243 = vst [vmem:[#allocation69_spill] sm:$0xff] %v12666_v0  ;;  %6848 = vmatmul.mubr.bf16.gmra.mrb[52].mxu1 %v9075_v43  ;;  %v15248_v43 = vld [vmem:[#allocation91_spill] sm:$0xff]  ;;  %v6902_v60 = vadd.f32 %v12465_v7, %v6901_v41 }
 0x616   : > { %v6641_v14 = vpop.f32.mrb[204].mxu1 }
 0x617   : > { %v12671_v49 = vadd.f32 %v6641_v14, %v15244_v34  ;;  %v6643_v25 = vpop.f32.mrb[205].mxu1  ;;  %v15250_v14 = vld [vmem:[#allocation93_spill] sm:$0xff] }
 0x618   : > { %v6644_v50 = vpop.f32.mrb[206].mxu1 }
 0x619   : > { %15245 = vst [vmem:[#allocation71_spill] sm:$0xff] %v12671_v49  ;;  %v12674_v28 = vadd.f32 %v6644_v50, %v15246_v40  ;;  %v6646_v39 = vpop.f32.mrb[207].mxu1  ;;  %v6903_v50 = vadd.f32 %v12478_v37, %v6902_v60  ;;  %v15256_v60 = vld [vmem:[#allocation99_spill] sm:$0xff] }
 0x61b   : > { %15247 = vst [vmem:[#allocation73_spill] sm:$0xff] %v12674_v28  ;;  %v6904_v39 = vadd.f32 %v12484_v17, %v6903_v50 }
 0x61e   : > { %v6649_v5 = vpop.f32.mrb[208].mxu1 }
 0x61f   : > { %v12679_v63 = vadd.f32 %v6649_v5, %v15248_v43  ;;  %v6651_v38 = vpop.f32.mrb[209].mxu1  ;;  %v6905_v5 = vadd.f32 %v12497_v52, %v6904_v39  ;;  %v15254_v43 = vld [vmem:[#allocation97_spill] sm:$0xff] }
 0x620   : > { %v6652_v3 = vpop.f32.mrb[210].mxu1 }
 0x621   : > { %15249 = vst [vmem:[#allocation75_spill] sm:$0xff] %v12679_v63  ;;  %v12683_v34 = vadd.f32 %v6652_v3, %v15250_v14  ;;  %v6654_v25 = vpop.f32.mrb[211].mxu1  ;;  %v6906_v3 = vadd.f32 %v12502_v8, %v6905_v5 }
 0x623   : > { %15251 = vst [vmem:[#allocation77_spill] sm:$0xff] %v12683_v34  ;;  %v6907_v25 = vadd.f32 %v12515_v2, %v6906_v3 }
 0x625   : > { %v6908_v39 = vadd.f32 %v12521_v15, %v6907_v25  ;;  %v15264_v25 = vld [vmem:[#allocation107_spill] sm:$0xff] }
 0x626   : > { %v6657_v40 = vpop.f32.mrb[212].mxu1 }
 0x627   : > { %v12688_v32 = vadd.f32 %v6657_v40, %v15252_v56  ;;  %v6659_v20 = vpop.f32.mrb[213].mxu1  ;;  %v15258_v40 = vld [vmem:[#allocation101_spill] sm:$0xff] }
 0x628   : > { %v6660_v61 = vpop.f32.mrb[214].mxu1 }
 0x629   : > { %15253 = vst [vmem:[#allocation79_spill] sm:$0xff] %v12688_v32  ;;  %v12692_v38 = vadd.f32 %v6660_v61, %v15254_v43  ;;  %v6662_v41 = vpop.f32.mrb[215].mxu1  ;;  %v6909_v61 = vadd.f32 %v12534_v21, %v6908_v39 }
 0x62a   : > { %v15260_v41 = vld [vmem:[#allocation103_spill] sm:$0xff] }
 0x62b   : > { %15255 = vst [vmem:[#allocation81_spill] sm:$0xff] %v12692_v38  ;;  %v6910_v3 = vadd.f32 %v12540_v10, %v6909_v61 }
 0x62e   : > { %v6665_v14 = vpop.f32.mrb[216].mxu1 }
 0x62f   : > { %v12697_v37 = vadd.f32 %v6665_v14, %v15256_v60  ;;  %v6667_v50 = vpop.f32.mrb[217].mxu1  ;;  %v15262_v14 = vld [vmem:[#allocation105_spill] sm:$0xff] }
 0x630   : > { %v6668_v17 = vpop.f32.mrb[218].mxu1 }
 0x631   : > { %15257 = vst [vmem:[#allocation83_spill] sm:$0xff] %v12697_v37  ;;  %v12700_v56 = vadd.f32 %v6668_v17, %v15258_v40  ;;  %v6670_v20 = vpop.f32.mrb[219].mxu1  ;;  %v6911_v17 = vadd.f32 %v12551_v13, %v6910_v3  ;;  %v15268_v3 = vld [vmem:[#allocation110_spill] sm:$0xff] }
 0x633   : > { %15259 = vst [vmem:[#allocation85_spill] sm:$0xff] %v12700_v56  ;;  %v6912_v20 = vadd.f32 %v12554_v12, %v6911_v17 }
 0x636   : > { %v6673_v43 = vpop.f32.mrb[220].mxu1 }
 0x637   : > { %v12705_v52 = vadd.f32 %v6673_v43, %v15260_v41  ;;  %v6675_v5 = vpop.f32.mrb[221].mxu1  ;;  %v6913_v43 = vadd.f32 %v12565_v62, %v6912_v20  ;;  %v15266_v41 = vld [vmem:[#allocation108_spill] sm:$0xff] }
 0x638   : > { %v6676_v8 = vpop.f32.mrb[222].mxu1 }
 0x639   : > { %15261 = vst [vmem:[#allocation87_spill] sm:$0xff] %v12705_v52  ;;  %v12709_v60 = vadd.f32 %v6676_v8, %v15262_v14  ;;  %v6678_v50 = vpop.f32.mrb[223].mxu1  ;;  %v6914_v8 = vadd.f32 %v12569_v9, %v6913_v43 }
 0x63b   : > { %15263 = vst [vmem:[#allocation89_spill] sm:$0xff] %v12709_v60  ;;  %v6915_v50 = vadd.f32 %v12580_v18, %v6914_v8 }
 0x63d   : > { %v6916_v20 = vadd.f32 %v12584_v36, %v6915_v50 }
 0x63e   : > { %v6681_v40 = vpop.f32.mrb[224].mxu1 }
 0x63f   : > { %v12714_v15 = vadd.f32 %v6681_v40, %v15264_v25  ;;  %v6683_v39 = vpop.f32.mrb[225].mxu1 }
 0x640   : > { %v6684_v21 = vpop.f32.mrb[226].mxu1 }
 0x641   : > { %15265 = vst [vmem:[#allocation91_spill] sm:$0xff] %v12714_v15  ;;  %v12718_v5 = vadd.f32 %v6684_v21, %v15266_v41  ;;  %v6686_v61 = vpop.f32.mrb[227].mxu1  ;;  %v6917_v21 = vadd.f32 %v12595_v26, %v6916_v20 }
 0x643   : > { %15267 = vst [vmem:[#allocation93_spill] sm:$0xff] %v12718_v5  ;;  %v6918_v8 = vadd.f32 %v12598_v47, %v6917_v21 }
 0x646   : > { %v6689_v14 = vpop.f32.mrb[228].mxu1 }
 0x647   : > { %v12723_v13 = vadd.f32 %v6689_v14, %v15268_v3  ;;  %v6691_v17 = vpop.f32.mrb[229].mxu1 }
 0x648   : > { %v6692_v12 = vpop.f32.mrb[230].mxu1 }
 0x649   : > { %15269 = vst [vmem:[#allocation95_spill] sm:$0xff] %v12723_v13  ;;  %v12726_v40 = vadd.f32 %v6692_v12, %v12424_v59  ;;  %v6694_v25 = vpop.f32.mrb[231].mxu1  ;;  %v6919_v59 = vadd.f32 %v12609_v19, %v6918_v8 }
 0x64b   : > { %15270 = vst [vmem:[#allocation97_spill] sm:$0xff] %v12726_v40  ;;  %v6920_v17 = vadd.f32 %v12613_v4, %v6919_v59 }
 0x64e   : > { %v6697_v39 = vpop.f32.mrb[232].mxu1 }
 0x64f   : > { %v12731_v41 = vadd.f32 %v6697_v39, %v12437_v45  ;;  %v6699_v43 = vpop.f32.mrb[233].mxu1  ;;  %v6921_v45 = vadd.f32 %v12624_v35, %v6920_v17 }
 0x650   : > { %v6700_v61 = vpop.f32.mrb[234].mxu1 }
 0x651   : > { %15271 = vst [vmem:[#allocation99_spill] sm:$0xff] %v12731_v41  ;;  %v12735_v14 = vadd.f32 %v6700_v61, %v12443_v1  ;;  %v6702_v3 = vpop.f32.mrb[235].mxu1  ;;  %v6922_v1 = vadd.f32 %v12628_v46, %v6921_v45 }
 0x653   : > { %15272 = vst [vmem:[#allocation101_spill] sm:$0xff] %v12735_v14  ;;  %v6923_v61 = vadd.f32 %v12639_v48, %v6922_v1 }
 0x655   : > { %v6924_v17 = vadd.f32 %v12642_v30, %v6923_v61  ;;  %v15280_v61 = vld [vmem:[#allocation117_spill] sm:$0xff] }
 0x656   : > { %v6705_v12 = vpop.f32.mrb[236].mxu1 }
 0x657   : > { %v12740_v50 = vadd.f32 %v6705_v12, %v12456_v22  ;;  %v6707_v25 = vpop.f32.mrb[237].mxu1 }
 0x658   : > { %v6708_v20 = vpop.f32.mrb[238].mxu1 }
 0x659   : > { %15273 = vst [vmem:[#allocation103_spill] sm:$0xff] %v12740_v50  ;;  %v12744_v39 = vadd.f32 %v6708_v20, %v12461_v33  ;;  %v6710_v21 = vpop.f32.mrb[239].mxu1  ;;  %v6925_v33 = vadd.f32 %v12653_v53, %v6924_v17  ;;  %v15277_v20 = vld [vmem:[#allocation116_spill] sm:$0xff] }
 0x65b   : > { %15274 = vst [vmem:[#allocation105_spill] sm:$0xff] %v12744_v39  ;;  %v6926_v1 = vadd.f32 %v12657_v16, %v6925_v33 }
 0x65e   : > { %v6713_v43 = vpop.f32.mrb[240].mxu1 }
 0x65f   : > { %v12749_v8 = vadd.f32 %v6713_v43, %v12474_v42  ;;  %v6715_v3 = vpop.f32.mrb[241].mxu1 }
 0x660   : > { %v6716_v59 = vpop.f32.mrb[242].mxu1 }
 0x661   : > { %15275 = vst [vmem:[#allocation107_spill] sm:$0xff] %v12749_v8  ;;  %v12752_v22 = vadd.f32 %v6716_v59, %v12480_v58  ;;  %v6718_v12 = vpop.f32.mrb[243].mxu1  ;;  %v6927_v58 = vadd.f32 %v12662_v51, %v6926_v1  ;;  %v15284_v1 = vld [vmem:[#allocation119_spill] sm:$0xff] }
 0x663   : > { %15276 = vst [vmem:[#allocation108_spill] sm:$0xff] %v12752_v22  ;;  %v6928_v59 = vadd.f32 %v12666_v0, %v6927_v58 }
 0x666   : > { %v6721_v25 = vpop.f32.mrb[244].mxu1 }
 0x667   : > { %v12757_v21 = vadd.f32 %v6721_v25, %v15277_v20  ;;  %v6723_v45 = vpop.f32.mrb[245].mxu1  ;;  %v6929_v25 = vadd.f32 %v12671_v49, %v6928_v59  ;;  %v15282_v20 = vld [vmem:[#allocation118_spill] sm:$0xff] }
 0x668   : > { %v6724_v46 = vpop.f32.mrb[246].mxu1 }
 0x669   : > { %15278 = vst [vmem:[#allocation110_spill] sm:$0xff] %v12757_v21  ;;  %v12761_v42 = vadd.f32 %v6724_v46, %v12499_v44  ;;  %v6726_v43 = vpop.f32.mrb[247].mxu1  ;;  %v6930_v44 = vadd.f32 %v12674_v28, %v6929_v25 }
 0x66b   : > { %15279 = vst [vmem:[#allocation116_spill] sm:$0xff] %v12761_v42  ;;  %v6931_v43 = vadd.f32 %v12679_v63, %v6930_v44 }
 0x66d   : > { %v6932_v59 = vadd.f32 %v12683_v34, %v6931_v43  ;;  %v15291_v43 = vld [vmem:[#allocation5_spill] sm:$0xff] }
 0x66e   : > { %v6729_v3 = vpop.f32.mrb[248].mxu1 }
 0x66f   : > { %v12766_v12 = vadd.f32 %v6729_v3, %v15280_v61  ;;  %v6731_v17 = vpop.f32.mrb[249].mxu1 }
 0x670   : > { %v6732_v53 = vpop.f32.mrb[250].mxu1 }
 0x671   : > { %15281 = vst [vmem:[#allocation117_spill] sm:$0xff] %v12766_v12  ;;  %v12770_v45 = vadd.f32 %v6732_v53, %v15282_v20  ;;  %v6734_v33 = vpop.f32.mrb[251].mxu1  ;;  %v6933_v53 = vadd.f32 %v12688_v32, %v6932_v59  ;;  %v15287_v20 = vld [vmem:[#allocation3_spill] sm:$0xff] }
 0x673   : > { %15283 = vst [vmem:[#allocation118_spill] sm:$0xff] %v12770_v45  ;;  %v6934_v44 = vadd.f32 %v12692_v38, %v6933_v53 }
 0x676   : > { %v6737_v46 = vpop.f32.mrb[252].mxu1 }
 0x677   : > { %v12775_v51 = vadd.f32 %v6737_v46, %v15284_v1  ;;  %v6739_v58 = vpop.f32.mrb[253].mxu1  ;;  %v15289_v46 = vld [vmem:[#allocation4_spill] sm:$0xff] }
 0x678   : > { %v6740_v0 = vpop.f32.mrb[254].mxu1 }
 0x679   : > { %15285 = vst [vmem:[#allocation119_spill] sm:$0xff] %v12775_v51  ;;  %v12778_v3 = vadd.f32 %v6740_v0, %v12536_v27  ;;  %v6742_v61 = vpop.f32.mrb[255].mxu1  ;;  %v6935_v0 = vadd.f32 %v12697_v37, %v6934_v44  ;;  %v15295_v44 = vld [vmem:[#allocation7_spill] sm:$0xff] }
 0x67b   : > { %15286 = vst [vmem:[#allocation120_spill] sm:$0xff] %v12778_v3  ;;  %v6936_v61 = vadd.f32 %v12700_v56, %v6935_v0 }
 0x67e   : > { %v6745_v17 = vpop.f32.mrb[0].mxu1 }
 0x67f   : > { %v12783_v33 = vadd.f32 %v6745_v17, %v15287_v20  ;;  %v6747_v25 = vpop.f32.mrb[1].mxu1  ;;  %v6937_v17 = vadd.f32 %v12705_v52, %v6936_v61  ;;  %v15293_v20 = vld [vmem:[#allocation6_spill] sm:$0xff] }
 0x680   : > { %v6748_v28 = vpop.f32.mrb[2].mxu1 }
 0x681   : > { %15288 = vst [vmem:[#allocation3_spill] sm:$0xff] %v12783_v33  ;;  %v12787_v1 = vadd.f32 %v6748_v28, %v15289_v46  ;;  %v6750_v58 = vpop.f32.mrb[3].mxu1  ;;  %v6938_v28 = vadd.f32 %v12709_v60, %v6937_v17 }
 0x683   : > { %15290 = vst [vmem:[#allocation4_spill] sm:$0xff] %v12787_v1  ;;  %v6939_v58 = vadd.f32 %v12714_v15, %v6938_v28 }
 0x685   : > { %v6940_v61 = vadd.f32 %v12718_v5, %v6939_v58  ;;  %v15303_v58 = vld [vmem:[#allocation11_spill] sm:$0xff] }
 0x686   : > { %v6753_v27 = vpop.f32.mrb[4].mxu1 }
 0x687   : > { %v12792_v34 = vadd.f32 %v6753_v27, %v15291_v43  ;;  %v6755_v59 = vpop.f32.mrb[5].mxu1  ;;  %v15297_v27 = vld [vmem:[#allocation8_spill] sm:$0xff] }
 0x688   : > { %v6756_v32 = vpop.f32.mrb[6].mxu1 }
 0x689   : > { %15292 = vst [vmem:[#allocation5_spill] sm:$0xff] %v12792_v34  ;;  %v12796_v25 = vadd.f32 %v6756_v32, %v15293_v20  ;;  %v6758_v53 = vpop.f32.mrb[7].mxu1  ;;  %v6941_v32 = vadd.f32 %v12723_v13, %v6940_v61 }
 0x68a   : > { %v15299_v53 = vld [vmem:[#allocation9_spill] sm:$0xff] }
 0x68b   : > { %15294 = vst [vmem:[#allocation6_spill] sm:$0xff] %v12796_v25  ;;  %v6942_v28 = vadd.f32 %v12726_v40, %v6941_v32 }
 0x68e   : > { %v6761_v46 = vpop.f32.mrb[8].mxu1 }
 0x68f   : > { %v12801_v37 = vadd.f32 %v6761_v46, %v15295_v44  ;;  %v6763_v0 = vpop.f32.mrb[9].mxu1  ;;  %v15301_v46 = vld [vmem:[#allocation10_spill] sm:$0xff] }
 0x690   : > { %v6764_v56 = vpop.f32.mrb[10].mxu1 }
 0x691   : > { %15296 = vst [vmem:[#allocation7_spill] sm:$0xff] %v12801_v37  ;;  %v12804_v43 = vadd.f32 %v6764_v56, %v15297_v27  ;;  %v6766_v59 = vpop.f32.mrb[11].mxu1  ;;  %v6943_v56 = vadd.f32 %v12731_v41, %v6942_v28  ;;  %v15306_v28 = vld [vmem:[#allocation13_spill] sm:$0xff] }
 0x693   : > { %15298 = vst [vmem:[#allocation8_spill] sm:$0xff] %v12804_v43  ;;  %v6944_v59 = vadd.f32 %v12735_v14, %v6943_v56 }
 0x696   : > { %v6769_v20 = vpop.f32.mrb[12].mxu1 }
 0x697   : > { %v12809_v52 = vadd.f32 %v6769_v20, %v15299_v53  ;;  %v6771_v17 = vpop.f32.mrb[13].mxu1  ;;  %v6945_v20 = vadd.f32 %v12740_v50, %v6944_v59  ;;  %v15304_v53 = vld [vmem:[#allocation12_spill] sm:$0xff] }
 0x698   : > { %v6772_v60 = vpop.f32.mrb[14].mxu1 }
 0x699   : > { %15300 = vst [vmem:[#allocation9_spill] sm:$0xff] %v12809_v52  ;;  %v12813_v44 = vadd.f32 %v6772_v60, %v15301_v46  ;;  %v6774_v0 = vpop.f32.mrb[15].mxu1  ;;  %v6946_v60 = vadd.f32 %v12744_v39, %v6945_v20 }
 0x69b   : > { %15302 = vst [vmem:[#allocation10_spill] sm:$0xff] %v12813_v44  ;;  %v6947_v0 = vadd.f32 %v12749_v8, %v6946_v60 }
 0x69d   : > { %v6948_v59 = vadd.f32 %v12752_v22, %v6947_v0  ;;  %v15311_v0 = vld [vmem:[#allocation17_spill] sm:$0xff] }
 0x69e   : > { %v6777_v27 = vpop.f32.mrb[16].mxu1 }
 0x69f   : > { %v12818_v5 = vadd.f32 %v6777_v27, %v15303_v58  ;;  %v6779_v61 = vpop.f32.mrb[17].mxu1  ;;  %v15308_v27 = vld [vmem:[#allocation14_spill] sm:$0xff] }
 0x6a0   : > { %v6780_v13 = vpop.f32.mrb[18].mxu1 }
 0x6a1   : > { %v12822_v17 = vadd.f32 %v6780_v13, %v15304_v53  ;;  %v6782_v32 = vpop.f32.mrb[19].mxu1  ;;  %v6949_v13 = vadd.f32 %v12757_v21, %v6948_v59 }
 0x6a2   : > { %v15309_v32 = vld [vmem:[#allocation15_spill] sm:$0xff] }
 0x6a3   : > { %15305 = vst [vmem:[#allocation11_spill] sm:$0xff] %v12822_v17  ;;  %v6950_v60 = vadd.f32 %v12761_v42, %v6949_v13 }
 0x6a6   : > { %v6785_v46 = vpop.f32.mrb[20].mxu1 }
 0x6a7   : > { %v12827_v41 = vadd.f32 %v6785_v46, %v15306_v28  ;;  %v6787_v56 = vpop.f32.mrb[21].mxu1  ;;  %v15310_v46 = vld [vmem:[#allocation16_spill] sm:$0xff] }
 0x6a8   : > { %v6788_v14 = vpop.f32.mrb[22].mxu1 }
 0x6a9   : > { %15307 = vst [vmem:[#allocation12_spill] sm:$0xff] %v12827_v41  ;;  %v12830_v58 = vadd.f32 %v6788_v14, %v15308_v27  ;;  %v6790_v61 = vpop.f32.mrb[23].mxu1  ;;  %v6951_v14 = vadd.f32 %v12766_v12, %v6950_v60  ;;  %v15315_v60 = vld [vmem:[#allocation19_spill] sm:$0xff] }
 0x6ab   : > { %v6952_v61 = vadd.f32 %v12770_v45, %v6951_v14 }
 0x6ae   : > { %v6793_v53 = vpop.f32.mrb[24].mxu1 }
 0x6af   : > { %v12835_v50 = vadd.f32 %v6793_v53, %v15309_v32  ;;  %v6795_v20 = vpop.f32.mrb[25].mxu1  ;;  %v6953_v53 = vadd.f32 %v12775_v51, %v6952_v61  ;;  %v15313_v32 = vld [vmem:[#allocation18_spill] sm:$0xff] }
 0x6b0   : > { %v6796_v39 = vpop.f32.mrb[26].mxu1 }
 0x6b1   : > { %v12839_v28 = vadd.f32 %v6796_v39, %v15310_v46  ;;  %v6798_v56 = vpop.f32.mrb[27].mxu1  ;;  %v6954_v39 = vadd.f32 %v12778_v3, %v6953_v53 }
 0x6b3   : > { %v6955_v56 = vadd.f32 %v12783_v33, %v6954_v39 }
 0x6b5   : > { %v6956_v61 = vadd.f32 %v12787_v1, %v6955_v56  ;;  %v15323_v56 = vld [vmem:[#allocation23_spill] sm:$0xff] }
 0x6b6   : > { %v6801_v27 = vpop.f32.mrb[28].mxu1 }
 0x6b7   : > { %v12844_v22 = vadd.f32 %v6801_v27, %v15311_v0  ;;  %v6803_v59 = vpop.f32.mrb[29].mxu1  ;;  %v15317_v27 = vld [vmem:[#allocation20_spill] sm:$0xff] }
 0x6b8   : > { %v6804_v21 = vpop.f32.mrb[30].mxu1 }
 0x6b9   : > { %15312 = vst [vmem:[#allocation13_spill] sm:$0xff] %v12844_v22  ;;  %v12848_v20 = vadd.f32 %v6804_v21, %v15313_v32  ;;  %v6806_v13 = vpop.f32.mrb[31].mxu1  ;;  %v6957_v21 = vadd.f32 %v12792_v34, %v6956_v61 }
 0x6ba   : > { %v15319_v13 = vld [vmem:[#allocation21_spill] sm:$0xff] }
 0x6bb   : > { %15314 = vst [vmem:[#allocation14_spill] sm:$0xff] %v12848_v20  ;;  %v6958_v39 = vadd.f32 %v12796_v25, %v6957_v21 }
 0x6be   : > { %v6809_v46 = vpop.f32.mrb[32].mxu1 }
 0x6bf   : > { %v12853_v12 = vadd.f32 %v6809_v46, %v15315_v60  ;;  %v6811_v14 = vpop.f32.mrb[33].mxu1  ;;  %v15321_v46 = vld [vmem:[#allocation22_spill] sm:$0xff] }
 0x6c0   : > { %v6812_v45 = vpop.f32.mrb[34].mxu1 }
 0x6c1   : > { %15316 = vst [vmem:[#allocation15_spill] sm:$0xff] %v12853_v12  ;;  %v12856_v0 = vadd.f32 %v6812_v45, %v15317_v27  ;;  %v6814_v59 = vpop.f32.mrb[35].mxu1  ;;  %v6959_v45 = vadd.f32 %v12801_v37, %v6958_v39  ;;  %v15327_v39 = vld [vmem:[#allocation25_spill] sm:$0xff] }
 0x6c3   : > { %15318 = vst [vmem:[#allocation16_spill] sm:$0xff] %v12856_v0  ;;  %v6960_v59 = vadd.f32 %v12804_v43, %v6959_v45 }
 0x6c6   : > { %v6817_v32 = vpop.f32.mrb[36].mxu1 }
 0x6c7   : > { %v12861_v51 = vadd.f32 %v6817_v32, %v15319_v13  ;;  %v6819_v53 = vpop.f32.mrb[37].mxu1  ;;  %v6961_v32 = vadd.f32 %v12809_v52, %v6960_v59  ;;  %v15325_v13 = vld [vmem:[#allocation24_spill] sm:$0xff] }
 0x6c8   : > { %v6820_v3 = vpop.f32.mrb[38].mxu1 }
 0x6c9   : > { %15320 = vst [vmem:[#allocation17_spill] sm:$0xff] %v12861_v51  ;;  %v12865_v60 = vadd.f32 %v6820_v3, %v15321_v46  ;;  %v6822_v14 = vpop.f32.mrb[39].mxu1  ;;  %v6962_v3 = vadd.f32 %v12813_v44, %v6961_v32 }
 0x6cb   : > { %15322 = vst [vmem:[#allocation18_spill] sm:$0xff] %v12865_v60  ;;  %v6963_v14 = vadd.f32 %v12818_v5, %v6962_v3 }
 0x6cd   : > { %v6964_v59 = vadd.f32 %v12822_v17, %v6963_v14  ;;  %v15335_v14 = vld [vmem:[#allocation29_spill] sm:$0xff] }
 0x6ce   : > { %v6825_v27 = vpop.f32.mrb[40].mxu1 }
 0x6cf   : > { %v12870_v1 = vadd.f32 %v6825_v27, %v15323_v56  ;;  %v6827_v61 = vpop.f32.mrb[41].mxu1  ;;  %v15329_v27 = vld [vmem:[#allocation26_spill] sm:$0xff] }
 0x6d0   : > { %v6828_v34 = vpop.f32.mrb[42].mxu1 }
 0x6d1   : > { %15324 = vst [vmem:[#allocation19_spill] sm:$0xff] %v12870_v1  ;;  %v12874_v53 = vadd.f32 %v6828_v34, %v15325_v13  ;;  %v6830_v21 = vpop.f32.mrb[43].mxu1  ;;  %v6965_v34 = vadd.f32 %v12827_v41, %v6964_v59 }
 0x6d2   : > { %v15331_v21 = vld [vmem:[#allocation27_spill] sm:$0xff] }
 0x6d3   : > { %15326 = vst [vmem:[#allocation20_spill] sm:$0xff] %v12874_v53  ;;  %v6966_v3 = vadd.f32 %v12830_v58, %v6965_v34 }
 0x6d6   : > { %v6833_v46 = vpop.f32.mrb[44].mxu1 }
 0x6d7   : > { %v12879_v37 = vadd.f32 %v6833_v46, %v15327_v39  ;;  %v6835_v45 = vpop.f32.mrb[45].mxu1  ;;  %v15333_v46 = vld [vmem:[#allocation28_spill] sm:$0xff] }
 0x6d8   : > { %v6836_v43 = vpop.f32.mrb[46].mxu1 }
 0x6d9   : > { %15328 = vst [vmem:[#allocation21_spill] sm:$0xff] %v12879_v37  ;;  %v12882_v56 = vadd.f32 %v6836_v43, %v15329_v27  ;;  %v6838_v61 = vpop.f32.mrb[47].mxu1  ;;  %v6967_v43 = vadd.f32 %v12835_v50, %v6966_v3 }
 0x6db   : > { %15330 = vst [vmem:[#allocation22_spill] sm:$0xff] %v12882_v56  ;;  %v6968_v61 = vadd.f32 %v12839_v28, %v6967_v43 }
 0x6de   : > { %v6841_v13 = vpop.f32.mrb[48].mxu1 }
 0x6df   : > { %v12887_v52 = vadd.f32 %v6841_v13, %v15331_v21  ;;  %v6843_v32 = vpop.f32.mrb[49].mxu1  ;;  %v6969_v13 = vadd.f32 %v12844_v22, %v6968_v61  ;;  %v15337_v21 = vld [vmem:[#allocation30_spill] sm:$0xff] }
 0x6e0   : > { %v6844_v44 = vpop.f32.mrb[50].mxu1 }
 0x6e1   : > { %15332 = vst [vmem:[#allocation23_spill] sm:$0xff] %v12887_v52  ;;  %v12891_v39 = vadd.f32 %v6844_v44, %v15333_v46  ;;  %v6846_v45 = vpop.f32.mrb[51].mxu1  ;;  %v6970_v44 = vadd.f32 %v12848_v20, %v6969_v13 }
 0x6e3   : > { %15334 = vst [vmem:[#allocation24_spill] sm:$0xff] %v12891_v39  ;;  %v6971_v46 = vadd.f32 %v12853_v12, %v6970_v44 }
 0x6e5   : > { %v6972_v3 = vadd.f32 %v12856_v0, %v6971_v46 }
 0x6e6   : > { %v6849_v27 = vpop.f32.mrb[52].mxu1 }
 0x6e7   : > { %v12896_v17 = vadd.f32 %v6849_v27, %v15335_v14  ;;  %v6851_v59 = vpop.f32.mrb[53].mxu1  ;;  %v6973_v45 = vadd.f32 %v12861_v51, %v6972_v3 }
 0x6e8   : > { %v6852_v41 = vpop.f32.mrb[54].mxu1 }
 0x6e9   : > { %15336 = vst [vmem:[#allocation25_spill] sm:$0xff] %v12896_v17  ;;  %v12900_v32 = vadd.f32 %v6852_v41, %v15337_v21  ;;  %v6854_v34 = vpop.f32.mrb[55].mxu1  ;;  %v6974_v43 = vadd.f32 %v12865_v60, %v6973_v45 }
 0x6eb   : > { %15338 = vst [vmem:[#allocation26_spill] sm:$0xff] %v12900_v32  ;;  %v6975_v27 = vadd.f32 %v12870_v1, %v6974_v43 }
 0x6ed   : > { %v6976_v14 = vadd.f32 %v12874_v53, %v6975_v27  ;;  %v15339_v27 = vld [vmem:[#allocation31_spill] sm:$0xff]  ;;  %v15347_v53 = vld [vmem:[#allocation44_spill] sm:$0xff] }
 0x6ef   : > { %v6977_v61 = vadd.f32 %v12879_v37, %v6976_v14 }
 0x6f1   : > { %v6978_v41 = vadd.f32 %v12882_v56, %v6977_v61  ;;  %v15340_v61 = vld [vmem:[#allocation32_spill] sm:$0xff] }
 0x6f3   : > { %v6979_v59 = vadd.f32 %v12887_v52, %v6978_v41 }
 0x6f5   : > { %v6980_v13 = vadd.f32 %v12891_v39, %v6979_v59  ;;  %v15341_v59 = vld [vmem:[#allocation33_spill] sm:$0xff] }
 0x6f7   : > { %v6981_v21 = vadd.f32 %v12896_v17, %v6980_v13 }
 0x6f9   : > { %v6982_v34 = vadd.f32 %v12900_v32, %v6981_v21  ;;  %v15342_v21 = vld [vmem:[#allocation34_spill] sm:$0xff] }
 0x6fb   : > { %v6983_v44 = vrot.slane %v6982_v34, 4 }
 0x6fd   : > { %v6984_v46 = vadd.f32 %v6983_v44, %v6982_v34  ;;  %v15343_v44 = vld [vmem:[#allocation36_spill] sm:$0xff] }
 0x6ff   : > { %v6985_v3 = vrot.slane %v6984_v46, 2 }
 0x701   : > { %v6986_v45 = vadd.f32 %v6985_v3, %v6984_v46 }
 0x703   : > { %v6987_v60 = vrot.slane %v6986_v45, 1 }
 0x705   : > { %v6988_v43 = vadd.f32 %v6987_v60, %v6986_v45  ;;  %v15344_v45 = vld [vmem:[#allocation38_spill] sm:$0xff] }
 0x707   : > { %v12915_v1 = vmul.f32 0.001, %v6988_v43 }
 0x709   : > { %v7247_v14 = vsub.f32 %v15339_v27, %v12915_v1  ;;  %v7248_v41 = vsub.f32 %v15340_v61, %v12915_v1  ;;  %v7249_v39 = vsub.f32 %v15341_v59, %v12915_v1  ;;  %v7250_v34 = vsub.f32 %v15342_v21, %v12915_v1  ;;  %v15345_v61 = vld [vmem:[#allocation40_spill] sm:$0xff] }
 0x70a   : > { %v7251_v46 = vsub.f32 %v15343_v44, %v12915_v1  ;;  %v7252_v43 = vsub.f32 %v15344_v45, %v12915_v1  ;;  %v7253_v52 = vsub.f32 %v15345_v61, %v12915_v1  ;;  %v7255_v44 = vsub.f32 %v15347_v53, %v12915_v1 }
 0x70b   : > { %v7503_v13 = vmul.f32 %v7247_v14, %v7247_v14  ;;  %v7504_v17 = vmul.f32 %v7248_v41, %v7248_v41  ;;  %v7505_v60 = vmul.f32 %v7249_v39, %v7249_v39  ;;  %v7506_v32 = vmul.f32 %v7250_v34, %v7250_v34  ;;  %v15346_v14 = vld [vmem:[#allocation42_spill] sm:$0xff] }
 0x70c   : > { %v7507_v56 = vmul.f32 %v7251_v46, %v7251_v46  ;;  %v7254_v41 = vsub.f32 %v15346_v14, %v12915_v1  ;;  %v7508_v37 = vmul.f32 %v7252_v43, %v7252_v43  ;;  %v7509_v39 = vmul.f32 %v7253_v52, %v7253_v52 }
 0x70d   : > { %v7631_v3 = vadd.f32 %v7504_v17, %v7503_v13  ;;  %v15348_v13 = vld [vmem:[#allocation46_spill] sm:$0xff]  ;;  %v7511_v46 = vmul.f32 %v7255_v44, %v7255_v44 }
 0x70e   : > { %v7256_v45 = vsub.f32 %v15348_v13, %v12915_v1  ;;  %v7510_v34 = vmul.f32 %v7254_v41, %v7254_v41 }
 0x70f   : > { %v7632_v27 = vadd.f32 %v7631_v3, %v7505_v60  ;;  %v15349_v3 = vld [vmem:[#allocation48_spill] sm:$0xff] }
 0x710   : > { %v7257_v61 = vsub.f32 %v15349_v3, %v12915_v1  ;;  %v7512_v43 = vmul.f32 %v7256_v45, %v7256_v45 }
 0x711   : > { %v7633_v59 = vadd.f32 %v7632_v27, %v7506_v32  ;;  %v15350_v27 = vld [vmem:[#allocation50_spill] sm:$0xff] }
 0x712   : > { %v7258_v14 = vsub.f32 %v15350_v27, %v12915_v1  ;;  %v7513_v52 = vmul.f32 %v7257_v61, %v7257_v61 }
 0x713   : > { %v7634_v21 = vadd.f32 %v7633_v59, %v7507_v56  ;;  %v15351_v59 = vld [vmem:[#allocation52_spill] sm:$0xff] }
 0x714   : > { %v7259_v53 = vsub.f32 %v15351_v59, %v12915_v1  ;;  %v7514_v41 = vmul.f32 %v7258_v14, %v7258_v14 }
 0x715   : > { %v7635_v17 = vadd.f32 %v7634_v21, %v7508_v37  ;;  %v15352_v21 = vld [vmem:[#allocation54_spill] sm:$0xff] }
 0x716   : > { %v7260_v13 = vsub.f32 %v15352_v21, %v12915_v1  ;;  %v7515_v44 = vmul.f32 %v7259_v53, %v7259_v53 }
 0x717   : > { %v7636_v60 = vadd.f32 %v7635_v17, %v7509_v39  ;;  %v15353_v17 = vld [vmem:[#allocation56_spill] sm:$0xff] }
 0x718   : > { %v7261_v3 = vsub.f32 %v15353_v17, %v12915_v1  ;;  %v7516_v45 = vmul.f32 %v7260_v13, %v7260_v13 }
 0x719   : > { %v7637_v32 = vadd.f32 %v7636_v60, %v7510_v34  ;;  %v15354_v60 = vld [vmem:[#allocation58_spill] sm:$0xff] }
 0x71a   : > { %v7262_v27 = vsub.f32 %v15354_v60, %v12915_v1  ;;  %v7517_v61 = vmul.f32 %v7261_v3, %v7261_v3 }
 0x71b   : > { %v7638_v56 = vadd.f32 %v7637_v32, %v7511_v46  ;;  %v15355_v32 = vld [vmem:[#allocation60_spill] sm:$0xff] }
 0x71c   : > { %v7263_v59 = vsub.f32 %v15355_v32, %v12915_v1  ;;  %v7518_v14 = vmul.f32 %v7262_v27, %v7262_v27 }
 0x71d   : > { %v7639_v37 = vadd.f32 %v7638_v56, %v7512_v43  ;;  %v7264_v56 = vsub.f32 %v12217_v54, %v12915_v1 }
 0x71e   : > { %v7519_v53 = vmul.f32 %v7263_v59, %v7263_v59 }
 0x71f   : > { %v7640_v39 = vadd.f32 %v7639_v37, %v7513_v52  ;;  %v7265_v37 = vsub.f32 %v12228_v57, %v12915_v1  ;;  %v7520_v13 = vmul.f32 %v7264_v56, %v7264_v56 }
 0x721   : > { %v7641_v34 = vadd.f32 %v7640_v39, %v7514_v41  ;;  %v15356_v39 = vld [vmem:[#allocation66_spill] sm:$0xff]  ;;  %v7521_v3 = vmul.f32 %v7265_v37, %v7265_v37 }
 0x722   : > { %v7266_v60 = vsub.f32 %v15356_v39, %v12915_v1 }
 0x723   : > { %v7642_v46 = vadd.f32 %v7641_v34, %v7515_v44  ;;  %v7267_v34 = vsub.f32 %v12244_v29, %v12915_v1 }
 0x724   : > { %v7522_v27 = vmul.f32 %v7266_v60, %v7266_v60 }
 0x725   : > { %v7643_v43 = vadd.f32 %v7642_v46, %v7516_v45  ;;  %v15357_v46 = vld [vmem:[#allocation70_spill] sm:$0xff]  ;;  %v7523_v59 = vmul.f32 %v7267_v34, %v7267_v34 }
 0x726   : > { %v7268_v54 = vsub.f32 %v15357_v46, %v12915_v1 }
 0x727   : > { %v7644_v52 = vadd.f32 %v7643_v43, %v7517_v61  ;;  %v15358_v43 = vld [vmem:[#allocation72_spill] sm:$0xff] }
 0x728   : > { %v7269_v57 = vsub.f32 %v15358_v43, %v12915_v1  ;;  %v7524_v56 = vmul.f32 %v7268_v54, %v7268_v54 }
 0x729   : > { %v7645_v41 = vadd.f32 %v7644_v52, %v7518_v14  ;;  %v15359_v52 = vld [vmem:[#allocation74_spill] sm:$0xff] }
 0x72a   : > { %v7270_v39 = vsub.f32 %v15359_v52, %v12915_v1  ;;  %v7525_v37 = vmul.f32 %v7269_v57, %v7269_v57 }
 0x72b   : > { %v7646_v44 = vadd.f32 %v7645_v41, %v7519_v53  ;;  %v15360_v41 = vld [vmem:[#allocation76_spill] sm:$0xff] }
 0x72c   : > { %v7271_v29 = vsub.f32 %v15360_v41, %v12915_v1  ;;  %v7526_v60 = vmul.f32 %v7270_v39, %v7270_v39 }
 0x72d   : > { %v7647_v45 = vadd.f32 %v7646_v44, %v7520_v13  ;;  %v7272_v44 = vsub.f32 %v12281_v23, %v12915_v1 }
 0x72e   : > { %v7527_v34 = vmul.f32 %v7271_v29, %v7271_v29 }
 0x72f   : > { %v7648_v61 = vadd.f32 %v7647_v45, %v7521_v3  ;;  %v15361_v45 = vld [vmem:[#allocation80_spill] sm:$0xff]  ;;  %v7528_v54 = vmul.f32 %v7272_v44, %v7272_v44 }
 0x730   : > { %v7273_v43 = vsub.f32 %v15361_v45, %v12915_v1 }
 0x731   : > { %v7649_v14 = vadd.f32 %v7648_v61, %v7522_v27  ;;  %v15362_v61 = vld [vmem:[#allocation82_spill] sm:$0xff] }
 0x732   : > { %v7274_v52 = vsub.f32 %v15362_v61, %v12915_v1  ;;  %v7529_v57 = vmul.f32 %v7273_v43, %v7273_v43 }
 0x733   : > { %v7650_v53 = vadd.f32 %v7649_v14, %v7523_v59  ;;  %v15363_v14 = vld [vmem:[#allocation84_spill] sm:$0xff] }
 0x734   : > { %v7275_v41 = vsub.f32 %v15363_v14, %v12915_v1  ;;  %v7530_v39 = vmul.f32 %v7274_v52, %v7274_v52 }
 0x735   : > { %v7651_v13 = vadd.f32 %v7650_v53, %v7524_v56  ;;  %v15364_v53 = vld [vmem:[#allocation86_spill] sm:$0xff] }
 0x736   : > { %v7276_v23 = vsub.f32 %v15364_v53, %v12915_v1  ;;  %v7531_v29 = vmul.f32 %v7275_v41, %v7275_v41 }
 0x737   : > { %v7652_v3 = vadd.f32 %v7651_v13, %v7525_v37  ;;  %v15365_v13 = vld [vmem:[#allocation88_spill] sm:$0xff] }
 0x738   : > { %v7277_v45 = vsub.f32 %v15365_v13, %v12915_v1  ;;  %v7532_v44 = vmul.f32 %v7276_v23, %v7276_v23 }
 0x739   : > { %v7653_v27 = vadd.f32 %v7652_v3, %v7526_v60  ;;  %v15366_v3 = vld [vmem:[#allocation90_spill] sm:$0xff] }
 0x73a   : > { %v7278_v61 = vsub.f32 %v15366_v3, %v12915_v1  ;;  %v7533_v43 = vmul.f32 %v7277_v45, %v7277_v45 }
 0x73b   : > { %v7654_v59 = vadd.f32 %v7653_v27, %v7527_v34  ;;  %v15367_v27 = vld [vmem:[#allocation92_spill] sm:$0xff] }
 0x73c   : > { %v7279_v14 = vsub.f32 %v15367_v27, %v12915_v1  ;;  %v7534_v52 = vmul.f32 %v7278_v61, %v7278_v61 }
 0x73d   : > { %v7655_v56 = vadd.f32 %v7654_v59, %v7528_v54  ;;  %v15368_v59 = vld [vmem:[#allocation94_spill] sm:$0xff] }
 0x73e   : > { %v7280_v53 = vsub.f32 %v15368_v59, %v12915_v1  ;;  %v7535_v41 = vmul.f32 %v7279_v14, %v7279_v14 }
 0x73f   : > { %v7656_v37 = vadd.f32 %v7655_v56, %v7529_v57  ;;  %v15369_v56 = vld [vmem:[#allocation96_spill] sm:$0xff] }
 0x740   : > { %v7281_v13 = vsub.f32 %v15369_v56, %v12915_v1  ;;  %v7536_v23 = vmul.f32 %v7280_v53, %v7280_v53 }
 0x741   : > { %v7657_v60 = vadd.f32 %v7656_v37, %v7530_v39  ;;  %v15370_v37 = vld [vmem:[#allocation98_spill] sm:$0xff] }
 0x742   : > { %v7282_v3 = vsub.f32 %v15370_v37, %v12915_v1  ;;  %v7537_v45 = vmul.f32 %v7281_v13, %v7281_v13 }
 0x743   : > { %v7658_v34 = vadd.f32 %v7657_v60, %v7531_v29  ;;  %v15371_v60 = vld [vmem:[#allocation100_spill] sm:$0xff] }
 0x744   : > { %v7283_v27 = vsub.f32 %v15371_v60, %v12915_v1  ;;  %v7538_v61 = vmul.f32 %v7282_v3, %v7282_v3 }
 0x745   : > { %v7659_v54 = vadd.f32 %v7658_v34, %v7532_v44  ;;  %v15372_v34 = vld [vmem:[#allocation102_spill] sm:$0xff] }
 0x746   : > { %v7284_v59 = vsub.f32 %v15372_v34, %v12915_v1  ;;  %v7539_v14 = vmul.f32 %v7283_v27, %v7283_v27 }
 0x747   : > { %v7660_v57 = vadd.f32 %v7659_v54, %v7533_v43  ;;  %v15373_v54 = vld [vmem:[#allocation104_spill] sm:$0xff] }
 0x748   : > { %v7285_v56 = vsub.f32 %v15373_v54, %v12915_v1  ;;  %v7540_v53 = vmul.f32 %v7284_v59, %v7284_v59 }
 0x749   : > { %v7661_v39 = vadd.f32 %v7660_v57, %v7534_v52  ;;  %v15374_v57 = vld [vmem:[#allocation106_spill] sm:$0xff] }
 0x74a   : > { %v7286_v37 = vsub.f32 %v15374_v57, %v12915_v1  ;;  %v7541_v13 = vmul.f32 %v7285_v56, %v7285_v56 }
 0x74b   : > { %v7662_v29 = vadd.f32 %v7661_v39, %v7535_v41  ;;  %v7287_v39 = vsub.f32 %v12404_v24, %v12915_v1 }
 0x74c   : > { %v7542_v3 = vmul.f32 %v7286_v37, %v7286_v37 }
 0x74d   : > { %v7663_v44 = vadd.f32 %v7662_v29, %v7536_v23  ;;  %v7288_v29 = vsub.f32 %v15239_v55, %v12915_v1  ;;  %v7543_v27 = vmul.f32 %v7287_v39, %v7287_v39 }
 0x74f   : > { %v7664_v43 = vadd.f32 %v7663_v44, %v7537_v45  ;;  %v7289_v44 = vsub.f32 %v12422_v31, %v12915_v1  ;;  %v7544_v59 = vmul.f32 %v7288_v29, %v7288_v29 }
 0x751   : > { %v7665_v52 = vadd.f32 %v7664_v43, %v7538_v61  ;;  %v7290_v43 = vsub.f32 %v12428_v6, %v12915_v1  ;;  %v7545_v56 = vmul.f32 %v7289_v44, %v7289_v44 }
 0x753   : > { %v7666_v41 = vadd.f32 %v7665_v52, %v7539_v14  ;;  %v7291_v52 = vsub.f32 %v12441_v11, %v12915_v1  ;;  %v7546_v37 = vmul.f32 %v7290_v43, %v7290_v43 }
 0x755   : > { %v7667_v23 = vadd.f32 %v7666_v41, %v7540_v53  ;;  %v15375_v41 = vld [vmem:[#allocation113_spill] sm:$0xff]  ;;  %v7547_v39 = vmul.f32 %v7291_v52, %v7291_v52 }
 0x756   : > { %v7292_v55 = vsub.f32 %v15375_v41, %v12915_v1 }
 0x757   : > { %v7668_v45 = vadd.f32 %v7667_v23, %v7541_v13  ;;  %v15376_v23 = vld [vmem:[#allocation114_spill] sm:$0xff] }
 0x758   : > { %v7293_v31 = vsub.f32 %v15376_v23, %v12915_v1  ;;  %v7548_v29 = vmul.f32 %v7292_v55, %v7292_v55 }
 0x759   : > { %v7669_v61 = vadd.f32 %v7668_v45, %v7542_v3  ;;  %v7294_v45 = vsub.f32 %v12465_v7, %v12915_v1 }
 0x75a   : > { %v7549_v44 = vmul.f32 %v7293_v31, %v7293_v31 }
 0x75b   : > { %v7670_v14 = vadd.f32 %v7669_v61, %v7543_v27  ;;  %v15377_v61 = vld [vmem:[#allocation35_spill] sm:$0xff]  ;;  %v7550_v43 = vmul.f32 %v7294_v45, %v7294_v45 }
 0x75c   : > { %v7295_v11 = vsub.f32 %v15377_v61, %v12915_v1 }
 0x75d   : > { %v7671_v53 = vadd.f32 %v7670_v14, %v7544_v59  ;;  %v15378_v14 = vld [vmem:[#allocation37_spill] sm:$0xff] }
 0x75e   : > { %v7296_v41 = vsub.f32 %v15378_v14, %v12915_v1  ;;  %v7551_v52 = vmul.f32 %v7295_v11, %v7295_v11 }
 0x75f   : > { %v7672_v13 = vadd.f32 %v7671_v53, %v7545_v56  ;;  %v15379_v53 = vld [vmem:[#allocation39_spill] sm:$0xff] }
 0x760   : > { %v7297_v23 = vsub.f32 %v15379_v53, %v12915_v1  ;;  %v7552_v55 = vmul.f32 %v7296_v41, %v7296_v41 }
 0x761   : > { %v7673_v3 = vadd.f32 %v7672_v13, %v7546_v37  ;;  %v15380_v13 = vld [vmem:[#allocation41_spill] sm:$0xff] }
 0x762   : > { %v7298_v7 = vsub.f32 %v15380_v13, %v12915_v1  ;;  %v7553_v31 = vmul.f32 %v7297_v23, %v7297_v23 }
 0x763   : > { %v7674_v27 = vadd.f32 %v7673_v3, %v7547_v39  ;;  %v7299_v3 = vsub.f32 %v12515_v2, %v12915_v1 }
 0x764   : > { %v7554_v45 = vmul.f32 %v7298_v7, %v7298_v7 }
 0x765   : > { %v7675_v59 = vadd.f32 %v7674_v27, %v7548_v29  ;;  %v15381_v27 = vld [vmem:[#allocation45_spill] sm:$0xff]  ;;  %v7555_v11 = vmul.f32 %v7299_v3, %v7299_v3 }
 0x766   : > { %v7300_v14 = vsub.f32 %v15381_v27, %v12915_v1 }
 0x767   : > { %v7676_v56 = vadd.f32 %v7675_v59, %v7549_v44  ;;  %v15382_v59 = vld [vmem:[#allocation47_spill] sm:$0xff] }
 0x768   : > { %v7301_v53 = vsub.f32 %v15382_v59, %v12915_v1  ;;  %v7556_v41 = vmul.f32 %v7300_v14, %v7300_v14 }
 0x769   : > { %v7677_v37 = vadd.f32 %v7676_v56, %v7550_v43  ;;  %v7302_v56 = vsub.f32 %v12540_v10, %v12915_v1 }
 0x76a   : > { %v7557_v23 = vmul.f32 %v7301_v53, %v7301_v53 }
 0x76b   : > { %v7678_v39 = vadd.f32 %v7677_v37, %v7551_v52  ;;  %v15383_v37 = vld [vmem:[#allocation49_spill] sm:$0xff]  ;;  %v7558_v7 = vmul.f32 %v7302_v56, %v7302_v56 }
 0x76c   : > { %v7303_v2 = vsub.f32 %v15383_v37, %v12915_v1 }
 0x76d   : > { %v7679_v29 = vadd.f32 %v7678_v39, %v7552_v55  ;;  %v15384_v39 = vld [vmem:[#allocation51_spill] sm:$0xff] }
 0x76e   : > { %v7304_v27 = vsub.f32 %v15384_v39, %v12915_v1  ;;  %v7559_v3 = vmul.f32 %v7303_v2, %v7303_v2 }
 0x76f   : > { %v7680_v44 = vadd.f32 %v7679_v29, %v7553_v31  ;;  %v7305_v29 = vsub.f32 %v12565_v62, %v12915_v1 }
 0x770   : > { %v7560_v14 = vmul.f32 %v7304_v27, %v7304_v27 }
 0x771   : > { %v7681_v43 = vadd.f32 %v7680_v44, %v7554_v45  ;;  %v7306_v44 = vsub.f32 %v12569_v9, %v12915_v1  ;;  %v7561_v53 = vmul.f32 %v7305_v29, %v7305_v29 }
 0x773   : > { %v7682_v52 = vadd.f32 %v7681_v43, %v7555_v11  ;;  %v7307_v43 = vsub.f32 %v12580_v18, %v12915_v1  ;;  %v7562_v56 = vmul.f32 %v7306_v44, %v7306_v44 }
 0x775   : > { %v7683_v55 = vadd.f32 %v7682_v52, %v7556_v41  ;;  %v7308_v52 = vsub.f32 %v12584_v36, %v12915_v1  ;;  %v7563_v2 = vmul.f32 %v7307_v43, %v7307_v43 }
 0x777   : > { %v7684_v31 = vadd.f32 %v7683_v55, %v7557_v23  ;;  %v7309_v55 = vsub.f32 %v12595_v26, %v12915_v1  ;;  %v7564_v27 = vmul.f32 %v7308_v52, %v7308_v52 }
 0x779   : > { %v7685_v45 = vadd.f32 %v7684_v31, %v7558_v7  ;;  %v7310_v31 = vsub.f32 %v12598_v47, %v12915_v1  ;;  %v7565_v29 = vmul.f32 %v7309_v55, %v7309_v55 }
 0x77b   : > { %v7686_v11 = vadd.f32 %v7685_v45, %v7559_v3  ;;  %v7311_v45 = vsub.f32 %v12609_v19, %v12915_v1  ;;  %v7566_v44 = vmul.f32 %v7310_v31, %v7310_v31 }
 0x77d   : > { %v7687_v41 = vadd.f32 %v7686_v11, %v7560_v14  ;;  %v7312_v11 = vsub.f32 %v12613_v4, %v12915_v1  ;;  %v7567_v43 = vmul.f32 %v7311_v45, %v7311_v45 }
 0x77f   : > { %v7688_v23 = vadd.f32 %v7687_v41, %v7561_v53  ;;  %v7313_v41 = vsub.f32 %v12624_v35, %v12915_v1  ;;  %v7568_v52 = vmul.f32 %v7312_v11, %v7312_v11 }
 0x781   : > { %v7689_v7 = vadd.f32 %v7688_v23, %v7562_v56  ;;  %v15385_v23 = vld [vmem:[#allocation57_spill] sm:$0xff]  ;;  %v7569_v55 = vmul.f32 %v7313_v41, %v7313_v41 }
 0x782   : > { %v7314_v47 = vsub.f32 %v15385_v23, %v12915_v1 }
 0x783   : > { %v7690_v3 = vadd.f32 %v7689_v7, %v7563_v2  ;;  %v7315_v7 = vsub.f32 %v12639_v48, %v12915_v1 }
 0x784   : > { %v7570_v31 = vmul.f32 %v7314_v47, %v7314_v47 }
 0x785   : > { %v7691_v14 = vadd.f32 %v7690_v3, %v7564_v27  ;;  %v7316_v3 = vsub.f32 %v12642_v30, %v12915_v1  ;;  %v7571_v45 = vmul.f32 %v7315_v7, %v7315_v7 }
 0x787   : > { %v7692_v53 = vadd.f32 %v7691_v14, %v7565_v29  ;;  %v15386_v14 = vld [vmem:[#allocation63_spill] sm:$0xff]  ;;  %v7572_v11 = vmul.f32 %v7316_v3, %v7316_v3 }
 0x788   : > { %v7317_v35 = vsub.f32 %v15386_v14, %v12915_v1 }
 0x789   : > { %v7693_v56 = vadd.f32 %v7692_v53, %v7566_v44  ;;  %v7318_v53 = vsub.f32 %v12657_v16, %v12915_v1 }
 0x78a   : > { %v7573_v41 = vmul.f32 %v7317_v35, %v7317_v35 }
 0x78b   : > { %v7694_v2 = vadd.f32 %v7693_v56, %v7567_v43  ;;  %v15387_v56 = vld [vmem:[#allocation67_spill] sm:$0xff]  ;;  %v7574_v47 = vmul.f32 %v7318_v53, %v7318_v53 }
 0x78c   : > { %v7319_v48 = vsub.f32 %v15387_v56, %v12915_v1 }
 0x78d   : > { %v7695_v27 = vadd.f32 %v7694_v2, %v7568_v52  ;;  %v15388_v2 = vld [vmem:[#allocation69_spill] sm:$0xff] }
 0x78e   : > { %v7320_v30 = vsub.f32 %v15388_v2, %v12915_v1  ;;  %v7575_v7 = vmul.f32 %v7319_v48, %v7319_v48 }
 0x78f   : > { %v7696_v29 = vadd.f32 %v7695_v27, %v7569_v55  ;;  %v7321_v27 = vsub.f32 %v12671_v49, %v12915_v1 }
 0x790   : > { %v7576_v3 = vmul.f32 %v7320_v30, %v7320_v30 }
 0x791   : > { %v7697_v44 = vadd.f32 %v7696_v29, %v7570_v31  ;;  %v15389_v29 = vld [vmem:[#allocation73_spill] sm:$0xff]  ;;  %v7577_v35 = vmul.f32 %v7321_v27, %v7321_v27 }
 0x792   : > { %v7322_v16 = vsub.f32 %v15389_v29, %v12915_v1 }
 0x793   : > { %v7698_v43 = vadd.f32 %v7697_v44, %v7571_v45  ;;  %v7323_v44 = vsub.f32 %v12679_v63, %v12915_v1 }
 0x794   : > { %v7578_v53 = vmul.f32 %v7322_v16, %v7322_v16 }
 0x795   : > { %v7699_v52 = vadd.f32 %v7698_v43, %v7572_v11  ;;  %v15390_v43 = vld [vmem:[#allocation77_spill] sm:$0xff]  ;;  %v7579_v48 = vmul.f32 %v7323_v44, %v7323_v44 }
 0x796   : > { %v7324_v2 = vsub.f32 %v15390_v43, %v12915_v1 }
 0x797   : > { %v7700_v55 = vadd.f32 %v7699_v52, %v7573_v41  ;;  %v15391_v52 = vld [vmem:[#allocation79_spill] sm:$0xff] }
 0x798   : > { %v7325_v49 = vsub.f32 %v15391_v52, %v12915_v1  ;;  %v7580_v30 = vmul.f32 %v7324_v2, %v7324_v2 }
 0x799   : > { %v7701_v31 = vadd.f32 %v7700_v55, %v7574_v47  ;;  %v7326_v55 = vsub.f32 %v12692_v38, %v12915_v1 }
 0x79a   : > { %v7581_v27 = vmul.f32 %v7325_v49, %v7325_v49 }
 0x79b   : > { %v7702_v45 = vadd.f32 %v7701_v31, %v7575_v7  ;;  %v15392_v31 = vld [vmem:[#allocation83_spill] sm:$0xff]  ;;  %v7582_v16 = vmul.f32 %v7326_v55, %v7326_v55 }
 0x79c   : > { %v7327_v63 = vsub.f32 %v15392_v31, %v12915_v1 }
 0x79d   : > { %v7703_v11 = vadd.f32 %v7702_v45, %v7576_v3  ;;  %v15393_v45 = vld [vmem:[#allocation85_spill] sm:$0xff] }
 0x79e   : > { %v7328_v43 = vsub.f32 %v15393_v45, %v12915_v1  ;;  %v7583_v44 = vmul.f32 %v7327_v63, %v7327_v63 }
 0x79f   : > { %v7704_v41 = vadd.f32 %v7703_v11, %v7577_v35  ;;  %v15394_v11 = vld [vmem:[#allocation87_spill] sm:$0xff] }
 0x7a0   : > { %v7329_v52 = vsub.f32 %v15394_v11, %v12915_v1  ;;  %v7584_v2 = vmul.f32 %v7328_v43, %v7328_v43 }
 0x7a1   : > { %v7705_v47 = vadd.f32 %v7704_v41, %v7578_v53  ;;  %v15395_v41 = vld [vmem:[#allocation89_spill] sm:$0xff] }
 0x7a2   : > { %v7330_v38 = vsub.f32 %v15395_v41, %v12915_v1  ;;  %v7585_v49 = vmul.f32 %v7329_v52, %v7329_v52 }
 0x7a3   : > { %v7706_v7 = vadd.f32 %v7705_v47, %v7579_v48  ;;  %v7331_v47 = vsub.f32 %v12714_v15, %v12915_v1 }
 0x7a4   : > { %v7586_v55 = vmul.f32 %v7330_v38, %v7330_v38 }
 0x7a5   : > { %v7707_v3 = vadd.f32 %v7706_v7, %v7580_v30  ;;  %v15396_v7 = vld [vmem:[#allocation93_spill] sm:$0xff]  ;;  %v7587_v63 = vmul.f32 %v7331_v47, %v7331_v47 }
 0x7a6   : > { %v7332_v45 = vsub.f32 %v15396_v7, %v12915_v1 }
 0x7a7   : > { %v7708_v35 = vadd.f32 %v7707_v3, %v7581_v27  ;;  %v15397_v3 = vld [vmem:[#allocation95_spill] sm:$0xff] }
 0x7a8   : > { %v7333_v11 = vsub.f32 %v15397_v3, %v12915_v1  ;;  %v7588_v43 = vmul.f32 %v7332_v45, %v7332_v45 }
 0x7a9   : > { %v7709_v53 = vadd.f32 %v7708_v35, %v7582_v16  ;;  %v7334_v35 = vsub.f32 %v12726_v40, %v12915_v1 }
 0x7aa   : > { %v7589_v52 = vmul.f32 %v7333_v11, %v7333_v11 }
 0x7ab   : > { %v7710_v48 = vadd.f32 %v7709_v53, %v7583_v44  ;;  %v15398_v53 = vld [vmem:[#allocation99_spill] sm:$0xff]  ;;  %v7590_v38 = vmul.f32 %v7334_v35, %v7334_v35 }
 0x7ac   : > { %v7335_v15 = vsub.f32 %v15398_v53, %v12915_v1 }
 0x7ad   : > { %v7711_v30 = vadd.f32 %v7710_v48, %v7584_v2  ;;  %v15399_v48 = vld [vmem:[#allocation101_spill] sm:$0xff] }
 0x7ae   : > { %v7336_v7 = vsub.f32 %v15399_v48, %v12915_v1  ;;  %v7591_v47 = vmul.f32 %v7335_v15, %v7335_v15 }
 0x7af   : > { %v7712_v27 = vadd.f32 %v7711_v30, %v7585_v49  ;;  %v15400_v30 = vld [vmem:[#allocation103_spill] sm:$0xff] }
 0x7b0   : > { %v7337_v3 = vsub.f32 %v15400_v30, %v12915_v1  ;;  %v7592_v45 = vmul.f32 %v7336_v7, %v7336_v7 }
 0x7b1   : > { %v7713_v16 = vadd.f32 %v7712_v27, %v7586_v55  ;;  %v15401_v27 = vld [vmem:[#allocation105_spill] sm:$0xff] }
 0x7b2   : > { %v7338_v40 = vsub.f32 %v15401_v27, %v12915_v1  ;;  %v7593_v11 = vmul.f32 %v7337_v3, %v7337_v3 }
 0x7b3   : > { %v7714_v44 = vadd.f32 %v7713_v16, %v7587_v63  ;;  %v7339_v16 = vsub.f32 %v12749_v8, %v12915_v1 }
 0x7b4   : > { %v7594_v35 = vmul.f32 %v7338_v40, %v7338_v40 }
 0x7b5   : > { %v7715_v2 = vadd.f32 %v7714_v44, %v7588_v43  ;;  %v15402_v44 = vld [vmem:[#allocation108_spill] sm:$0xff]  ;;  %v7595_v15 = vmul.f32 %v7339_v16, %v7339_v16 }
 0x7b6   : > { %v7340_v48 = vsub.f32 %v15402_v44, %v12915_v1 }
 0x7b7   : > { %v7716_v49 = vadd.f32 %v7715_v2, %v7589_v52  ;;  %v15403_v2 = vld [vmem:[#allocation110_spill] sm:$0xff] }
 0x7b8   : > { %v7341_v30 = vsub.f32 %v15403_v2, %v12915_v1  ;;  %v7596_v7 = vmul.f32 %v7340_v48, %v7340_v48 }
 0x7b9   : > { %v7717_v55 = vadd.f32 %v7716_v49, %v7590_v38  ;;  %v7342_v49 = vsub.f32 %v12761_v42, %v12915_v1 }
 0x7ba   : > { %v7597_v3 = vmul.f32 %v7341_v30, %v7341_v30 }
 0x7bb   : > { %v7718_v63 = vadd.f32 %v7717_v55, %v7591_v47  ;;  %v15404_v55 = vld [vmem:[#allocation117_spill] sm:$0xff]  ;;  %v7598_v40 = vmul.f32 %v7342_v49, %v7342_v49 }
 0x7bc   : > { %v7343_v8 = vsub.f32 %v15404_v55, %v12915_v1 }
 0x7bd   : > { %v7719_v43 = vadd.f32 %v7718_v63, %v7592_v45  ;;  %v15405_v63 = vld [vmem:[#allocation118_spill] sm:$0xff] }
 0x7be   : > { %v7344_v44 = vsub.f32 %v15405_v63, %v12915_v1  ;;  %v7599_v16 = vmul.f32 %v7343_v8, %v7343_v8 }
 0x7bf   : > { %v7720_v52 = vadd.f32 %v7719_v43, %v7593_v11  ;;  %v15406_v43 = vld [vmem:[#allocation119_spill] sm:$0xff] }
 0x7c0   : > { %v7345_v2 = vsub.f32 %v15406_v43, %v12915_v1  ;;  %v7600_v48 = vmul.f32 %v7344_v44, %v7344_v44 }
 0x7c1   : > { %v7721_v38 = vadd.f32 %v7720_v52, %v7594_v35  ;;  %v15407_v52 = vld [vmem:[#allocation120_spill] sm:$0xff] }
 0x7c2   : > { %v7346_v42 = vsub.f32 %v15407_v52, %v12915_v1  ;;  %v7601_v30 = vmul.f32 %v7345_v2, %v7345_v2 }
 0x7c3   : > { %v7722_v47 = vadd.f32 %v7721_v38, %v7595_v15  ;;  %v7347_v38 = vsub.f32 %v12783_v33, %v12915_v1 }
 0x7c4   : > { %v7602_v49 = vmul.f32 %v7346_v42, %v7346_v42 }
 0x7c5   : > { %v7723_v45 = vadd.f32 %v7722_v47, %v7596_v7  ;;  %v15408_v47 = vld [vmem:[#allocation4_spill] sm:$0xff]  ;;  %v7603_v8 = vmul.f32 %v7347_v38, %v7347_v38 }
 0x7c6   : > { %v7348_v63 = vsub.f32 %v15408_v47, %v12915_v1 }
 0x7c7   : > { %v7724_v11 = vadd.f32 %v7723_v45, %v7597_v3  ;;  %v15409_v45 = vld [vmem:[#allocation5_spill] sm:$0xff] }
 0x7c8   : > { %v7349_v43 = vsub.f32 %v15409_v45, %v12915_v1  ;;  %v7604_v44 = vmul.f32 %v7348_v63, %v7348_v63 }
 0x7c9   : > { %v7725_v35 = vadd.f32 %v7724_v11, %v7598_v40  ;;  %v7350_v11 = vsub.f32 %v12796_v25, %v12915_v1 }
 0x7ca   : > { %v7605_v2 = vmul.f32 %v7349_v43, %v7349_v43 }
 0x7cb   : > { %v7726_v15 = vadd.f32 %v7725_v35, %v7599_v16  ;;  %v15410_v35 = vld [vmem:[#allocation7_spill] sm:$0xff]  ;;  %v7606_v42 = vmul.f32 %v7350_v11, %v7350_v11 }
 0x7cc   : > { %v7351_v33 = vsub.f32 %v15410_v35, %v12915_v1 }
 0x7cd   : > { %v7727_v7 = vadd.f32 %v7726_v15, %v7600_v48  ;;  %v15411_v15 = vld [vmem:[#allocation8_spill] sm:$0xff] }
 0x7ce   : > { %v7352_v47 = vsub.f32 %v15411_v15, %v12915_v1  ;;  %v7607_v38 = vmul.f32 %v7351_v33, %v7351_v33 }
 0x7cf   : > { %v7728_v3 = vadd.f32 %v7727_v7, %v7601_v30  ;;  %v15412_v7 = vld [vmem:[#allocation9_spill] sm:$0xff] }
 0x7d0   : > { %v7353_v45 = vsub.f32 %v15412_v7, %v12915_v1  ;;  %v7608_v63 = vmul.f32 %v7352_v47, %v7352_v47 }
 0x7d1   : > { %v7729_v40 = vadd.f32 %v7728_v3, %v7602_v49  ;;  %v15413_v3 = vld [vmem:[#allocation10_spill] sm:$0xff] }
 0x7d2   : > { %v7354_v25 = vsub.f32 %v15413_v3, %v12915_v1  ;;  %v7609_v43 = vmul.f32 %v7353_v45, %v7353_v45 }
 0x7d3   : > { %v7730_v16 = vadd.f32 %v7729_v40, %v7603_v8  ;;  %v7355_v40 = vsub.f32 %v12818_v5, %v12915_v1 }
 0x7d4   : > { %v7610_v11 = vmul.f32 %v7354_v25, %v7354_v25 }
 0x7d5   : > { %v7731_v48 = vadd.f32 %v7730_v16, %v7604_v44  ;;  %v15414_v16 = vld [vmem:[#allocation11_spill] sm:$0xff]  ;;  %v7611_v33 = vmul.f32 %v7355_v40, %v7355_v40 }
 0x7d6   : > { %v7356_v15 = vsub.f32 %v15414_v16, %v12915_v1 }
 0x7d7   : > { %v7732_v30 = vadd.f32 %v7731_v48, %v7605_v2  ;;  %v15415_v48 = vld [vmem:[#allocation12_spill] sm:$0xff] }
 0x7d8   : > { %v7357_v7 = vsub.f32 %v15415_v48, %v12915_v1  ;;  %v7612_v47 = vmul.f32 %v7356_v15, %v7356_v15 }
 0x7d9   : > { %v7733_v49 = vadd.f32 %v7732_v30, %v7606_v42  ;;  %v7358_v30 = vsub.f32 %v12830_v58, %v12915_v1 }
 0x7da   : > { %v7613_v45 = vmul.f32 %v7357_v7, %v7357_v7 }
 0x7db   : > { %v7734_v8 = vadd.f32 %v7733_v49, %v7607_v38  ;;  %v7359_v49 = vsub.f32 %v12835_v50, %v12915_v1  ;;  %v7614_v25 = vmul.f32 %v7358_v30, %v7358_v30 }
 0x7dd   : > { %v7735_v44 = vadd.f32 %v7734_v8, %v7608_v63  ;;  %v7360_v8 = vsub.f32 %v12839_v28, %v12915_v1  ;;  %v7615_v40 = vmul.f32 %v7359_v49, %v7359_v49 }
 0x7df   : > { %v7736_v2 = vadd.f32 %v7735_v44, %v7609_v43  ;;  %v7361_v44 = vsub.f32 %v12844_v22, %v12915_v1  ;;  %v7616_v15 = vmul.f32 %v7360_v8, %v7360_v8 }
 0x7e1   : > { %v7737_v42 = vadd.f32 %v7736_v2, %v7610_v11  ;;  %v7362_v2 = vsub.f32 %v12848_v20, %v12915_v1  ;;  %v7617_v7 = vmul.f32 %v7361_v44, %v7361_v44 }
 0x7e3   : > { %v7738_v38 = vadd.f32 %v7737_v42, %v7611_v33  ;;  %v7363_v42 = vsub.f32 %v12853_v12, %v12915_v1  ;;  %v7618_v30 = vmul.f32 %v7362_v2, %v7362_v2 }
 0x7e5   : > { %v7739_v63 = vadd.f32 %v7738_v38, %v7612_v47  ;;  %v7364_v38 = vsub.f32 %v12856_v0, %v12915_v1  ;;  %v7619_v49 = vmul.f32 %v7363_v42, %v7363_v42 }
 0x7e7   : > { %v7740_v43 = vadd.f32 %v7739_v63, %v7613_v45  ;;  %v7365_v63 = vsub.f32 %v12861_v51, %v12915_v1  ;;  %v7620_v8 = vmul.f32 %v7364_v38, %v7364_v38 }
 0x7e9   : > { %v7741_v11 = vadd.f32 %v7740_v43, %v7614_v25  ;;  %v15416_v43 = vld [vmem:[#allocation18_spill] sm:$0xff]  ;;  %v7621_v44 = vmul.f32 %v7365_v63, %v7365_v63 }
 0x7ea   : > { %v7366_v20 = vsub.f32 %v15416_v43, %v12915_v1 }
 0x7eb   : > { %v7742_v33 = vadd.f32 %v7741_v11, %v7615_v40  ;;  %v15417_v11 = vld [vmem:[#allocation19_spill] sm:$0xff] }
 0x7ec   : > { %v7367_v12 = vsub.f32 %v15417_v11, %v12915_v1  ;;  %v7622_v2 = vmul.f32 %v7366_v20, %v7366_v20 }
 0x7ed   : > { %v7743_v47 = vadd.f32 %v7742_v33, %v7616_v15  ;;  %v15418_v33 = vld [vmem:[#allocation20_spill] sm:$0xff] }
 0x7ee   : > { %v7368_v0 = vsub.f32 %v15418_v33, %v12915_v1  ;;  %v7623_v42 = vmul.f32 %v7367_v12, %v7367_v12 }
 0x7ef   : > { %v7744_v45 = vadd.f32 %v7743_v47, %v7617_v7  ;;  %v15419_v47 = vld [vmem:[#allocation21_spill] sm:$0xff] }
 0x7f0   : > { %v7369_v51 = vsub.f32 %v15419_v47, %v12915_v1  ;;  %v7624_v38 = vmul.f32 %v7368_v0, %v7368_v0 }
 0x7f1   : > { %v7745_v25 = vadd.f32 %v7744_v45, %v7618_v30  ;;  %v15420_v45 = vld [vmem:[#allocation22_spill] sm:$0xff] }
 0x7f2   : > { %v7370_v43 = vsub.f32 %v15420_v45, %v12915_v1  ;;  %v7625_v63 = vmul.f32 %v7369_v51, %v7369_v51  ;;  %v7767_v51 = vld [vmem:[%s275_s9] sm:$0x1] }
 0x7f3   : > { %v7746_v40 = vadd.f32 %v7745_v25, %v7619_v49  ;;  %v15421_v25 = vld [vmem:[#allocation23_spill] sm:$0xff] }
 0x7f4   : > { %v7371_v11 = vsub.f32 %v15421_v25, %v12915_v1 }
 0x7f5   : > { %v7747_v15 = vadd.f32 %v7746_v40, %v7620_v8  ;;  %v7626_v40 = vmul.f32 %v7370_v43, %v7370_v43 }
 0x7f6   : > { %v7627_v20 = vmul.f32 %v7371_v11, %v7371_v11 }
 0x7f7   : > { %v7748_v7 = vadd.f32 %v7747_v15, %v7621_v44 }
 0x7f9   : > { %v7749_v30 = vadd.f32 %v7748_v7, %v7622_v2 }
 0x7fb   : > { %v7750_v49 = vadd.f32 %v7749_v30, %v7623_v42  ;;  %v7772_v30 = vlaneseq }
 0x7fd   : > { %v7751_v8 = vadd.f32 %v7750_v49, %v7624_v38  ;;  %v13167_v25 = vshrl.u32 %v7772_v30, 7  ;;  %v15422_v49 = vld [vmem:[#allocation31_spill] sm:$0xff]  ;;  %v15435_v38 = vld [vmem:[#allocation52_spill] sm:$0xff] }
 0x7ff   : > { %v7752_v33 = vadd.f32 %v7751_v8, %v7625_v63  ;;  %v15072_v43 = vsub.s32 0, %v13167_v25  ;;  %v15423_v8 = vld [vmem:[#allocation32_spill] sm:$0xff] }
 0x801   : > { %v7753_v44 = vadd.f32 %v7752_v33, %v7626_v40 }
 0x803   : > { %v7754_v15 = vadd.f32 %v7753_v44, %v7627_v20  ;;  %v15424_v20 = vld [vmem:[#allocation33_spill] sm:$0xff] }
 0x805   : > { %v7758_v47 = vrot.slane %v7754_v15, 4 }
 0x807   : > { %v7759_v12 = vadd.f32 %v7758_v47, %v7754_v15 }
 0x809   : > { %v7760_v2 = vrot.slane %v7759_v12, 2 }
 0x80b   : > { %v7761_v7 = vadd.f32 %v7760_v2, %v7759_v12  ;;  %v15426_v12 = vld [vmem:[#allocation36_spill] sm:$0xff] }
 0x80d   : > { %v7762_v22 = vrot.slane %v7761_v7, 1 }
 0x80f   : > { %v7763_v45 = vadd.f32 %v7762_v22, %v7761_v7  ;;  %v13180_v22 = vld [vmem:[%s278_s12] sm:$0x1]  ;;  %v15427_v7 = vld [vmem:[#allocation38_spill] sm:$0xff] }
 0x811   : > { %v7764_v0 = vmul.f32 0.001, %v7763_v45 }
 0x813   : > { %v7765_v42 = vadd.f32 1e-05, %v7764_v0 }
 0x815   : > { %10051 = vrsqrt.f32 %v7765_v42  ;;  %v15428_v42 = vld [vmem:[#allocation40_spill] sm:$0xff] }
 0x81f   : > { %v10052_v11 = vpop.eup %10051 }
 0x820   : > { %v7768_v33 = vmul.f32 %v10052_v11, %v7767_v51  ;;  %v15429_v51 = vld [vmem:[#allocation42_spill] sm:$0xff] }
 0x822   : > { %v13183_v47 = vmul.f32 %v7768_v33, %v12915_v1  ;;  %v13187_v45 = vrot.slane %v7768_v33, %v15072_v43  ;;  %v15425_v1 = vld [vmem:[#allocation34_spill] sm:$0xff]  ;;  %v15430_v33 = vld [vmem:[#allocation44_spill] sm:$0xff] }
 0x823   : > { %v15439_v43 = vld [vmem:[#allocation58_spill] sm:$0xff] }
 0x824   : > { %v13193_v63 = vmul.f32 %v15422_v49, %v13187_v45  ;;  %v13197_v40 = vmul.f32 %v15423_v8, %v13187_v45  ;;  %v13201_v44 = vmul.f32 %v15424_v20, %v13187_v45  ;;  %v13205_v15 = vmul.f32 %v15425_v1, %v13187_v45  ;;  %v15431_v8 = vld [vmem:[#allocation46_spill] sm:$0xff]  ;;  %v15432_v1 = vld [vmem:[#allocation48_spill] sm:$0xff] }
 0x825   : > { %v13209_v2 = vmul.f32 %v15426_v12, %v13187_v45  ;;  %v13213_v0 = vmul.f32 %v15427_v7, %v13187_v45  ;;  %v13217_v30 = vmul.f32 %v15428_v42, %v13187_v45  ;;  %v13221_v11 = vmul.f32 %v15429_v51, %v13187_v45  ;;  %v15433_v7 = vld [vmem:[#allocation50_spill] sm:$0xff] }
 0x826   : > { %v13225_v49 = vmul.f32 %v15430_v33, %v13187_v45  ;;  %v13229_v20 = vmul.f32 %v15431_v8, %v13187_v45  ;;  %v13233_v12 = vmul.f32 %v15432_v1, %v13187_v45  ;;  %v13237_v42 = vmul.f32 %v15433_v7, %v13187_v45 }
 0x827   : > { %v13241_v51 = vmul.f32 %v15435_v38, %v13187_v45  ;;  %v13245_v33 = vmul.f32 %v15352_v21, %v13187_v45  ;;  %v13249_v8 = vmul.f32 %v15353_v17, %v13187_v45  ;;  %v13253_v1 = vmul.f32 %v15439_v43, %v13187_v45 }
 0x828   : > { %15434 = vst [vmem:[#allocation27_spill] sm:$0xff] %v13237_v42  ;;  %v13257_v7 = vmul.f32 %v15355_v32, %v13187_v45  ;;  %v15441_v42 = vld [vmem:[#allocation62_spill] sm:$0xff]  ;;  %v13277_v32 = vmul.f32 %v15357_v46, %v13187_v45 }
 0x829   : > { %15436 = vst [vmem:[#allocation28_spill] sm:$0xff] %v13241_v51  ;;  %15437 = vst [vmem:[#allocation29_spill] sm:$0xff] %v13245_v33  ;;  %v13261_v38 = vmul.f32 %v15441_v42, %v13187_v45  ;;  %v15443_v51 = vld [vmem:[#allocation64_spill] sm:$0xff]  ;;  %v15445_v33 = vld [vmem:[#allocation66_spill] sm:$0xff] }
 0x82a   : > { %15438 = vst [vmem:[#allocation30_spill] sm:$0xff] %v13249_v8  ;;  %15440 = vst [vmem:[#allocation54_spill] sm:$0xff] %v13257_v7  ;;  %v13265_v21 = vmul.f32 %v15443_v51, %v13187_v45  ;;  %v13269_v17 = vmul.f32 %v15445_v33, %v13187_v45  ;;  %v15447_v8 = vld [vmem:[#allocation68_spill] sm:$0xff] }
 0x82b   : > { %15442 = vst [vmem:[#allocation56_spill] sm:$0xff] %v13261_v38  ;;  %v13273_v43 = vmul.f32 %v15447_v8, %v13187_v45  ;;  %15449 = vst [vmem:[#allocation102_spill] sm:$0xff] %v13277_v32  ;;  %v15450_v7 = vld [vmem:[#allocation72_spill] sm:$0xff]  ;;  %v15452_v38 = vld [vmem:[#allocation74_spill] sm:$0xff] }
 0x82c   : > { %15444 = vst [vmem:[#allocation60_spill] sm:$0xff] %v13265_v21  ;;  %15446 = vst [vmem:[#allocation70_spill] sm:$0xff] %v13269_v17  ;;  %v13281_v42 = vmul.f32 %v15450_v7, %v13187_v45  ;;  %v13285_v51 = vmul.f32 %v15452_v38, %v13187_v45  ;;  %v15454_v21 = vld [vmem:[#allocation76_spill] sm:$0xff]  ;;  %v15456_v17 = vld [vmem:[#allocation78_spill] sm:$0xff] }
 0x82d   : > { %15448 = vst [vmem:[#allocation100_spill] sm:$0xff] %v13273_v43  ;;  %v13289_v33 = vmul.f32 %v15454_v21, %v13187_v45  ;;  %v13293_v8 = vmul.f32 %v15456_v17, %v13187_v45  ;;  %v15458_v43 = vld [vmem:[#allocation80_spill] sm:$0xff]  ;;  %v15460_v32 = vld [vmem:[#allocation82_spill] sm:$0xff] }
 0x82e   : > { %15451 = vst [vmem:[#allocation104_spill] sm:$0xff] %v13281_v42  ;;  %15453 = vst [vmem:[#allocation106_spill] sm:$0xff] %v13285_v51  ;;  %v13297_v46 = vmul.f32 %v15458_v43, %v13187_v45  ;;  %v13301_v7 = vmul.f32 %v15460_v32, %v13187_v45  ;;  %v15462_v42 = vld [vmem:[#allocation84_spill] sm:$0xff]  ;;  %v15464_v51 = vld [vmem:[#allocation86_spill] sm:$0xff] }
 0x82f   : > { %15455 = vst [vmem:[#allocation35_spill] sm:$0xff] %v13289_v33  ;;  %15457 = vst [vmem:[#allocation41_spill] sm:$0xff] %v13293_v8  ;;  %v13305_v38 = vmul.f32 %v15462_v42, %v13187_v45  ;;  %v13309_v21 = vmul.f32 %v15464_v51, %v13187_v45  ;;  %v15466_v33 = vld [vmem:[#allocation88_spill] sm:$0xff]  ;;  %v15467_v8 = vld [vmem:[#allocation90_spill] sm:$0xff] }
 0x830   : > { %15459 = vst [vmem:[#allocation47_spill] sm:$0xff] %v13297_v46  ;;  %15461 = vst [vmem:[#allocation49_spill] sm:$0xff] %v13301_v7  ;;  %v13313_v17 = vmul.f32 %v15466_v33, %v13187_v45  ;;  %v13317_v43 = vmul.f32 %v15467_v8, %v13187_v45  ;;  %v15468_v46 = vld [vmem:[#allocation92_spill] sm:$0xff]  ;;  %v15469_v7 = vld [vmem:[#allocation94_spill] sm:$0xff]  ;;  %v13337_v8 = vmul.f32 %v15371_v60, %v13187_v45 }
 0x831   : > { %15463 = vst [vmem:[#allocation51_spill] sm:$0xff] %v13305_v38  ;;  %15465 = vst [vmem:[#allocation57_spill] sm:$0xff] %v13309_v21  ;;  %v13321_v32 = vmul.f32 %v15468_v46, %v13187_v45  ;;  %v13325_v42 = vmul.f32 %v15469_v7, %v13187_v45  ;;  %v15470_v38 = vld [vmem:[#allocation96_spill] sm:$0xff]  ;;  %v15471_v21 = vld [vmem:[#allocation98_spill] sm:$0xff]  ;;  %v13341_v46 = vmul.f32 %v15372_v34, %v13187_v45 }
 0x832   : > { %v13329_v51 = vmul.f32 %v15470_v38, %v13187_v45  ;;  %v13333_v33 = vmul.f32 %v15471_v21, %v13187_v45  ;;  %15473 = vst [vmem:[#allocation67_spill] sm:$0xff] %v13337_v8  ;;  %v13345_v7 = vmul.f32 %v15373_v54, %v13187_v45  ;;  %v13349_v38 = vmul.f32 %v15374_v57, %v13187_v45  ;;  %v15479_v8 = vld [vmem:[#allocation111_spill] sm:$0xff] }
 0x833   : > { %v13353_v21 = vmul.f32 %v12404_v24, %v13187_v45  ;;  %v13361_v34 = vmul.f32 %v15479_v8, %v13187_v45  ;;  %v13365_v54 = vmul.f32 %v12428_v6, %v13187_v45  ;;  %v13385_v6 = vmul.f32 %v15377_v61, %v13187_v45 }
 0x834   : > { %15472 = vst [vmem:[#allocation63_spill] sm:$0xff] %v13333_v33  ;;  %15474 = vst [vmem:[#allocation73_spill] sm:$0xff] %v13345_v7  ;;  %v15477_v33 = vld [vmem:[#allocation109_spill] sm:$0xff]  ;;  %v15481_v7 = vld [vmem:[#allocation112_spill] sm:$0xff] }
 0x835   : > { %15475 = vst [vmem:[#allocation83_spill] sm:$0xff] %v13349_v38  ;;  %15476 = vst [vmem:[#allocation89_spill] sm:$0xff] %v13353_v21  ;;  %v13357_v60 = vmul.f32 %v15477_v33, %v13187_v45  ;;  %v13369_v57 = vmul.f32 %v15481_v7, %v13187_v45  ;;  %v15483_v38 = vld [vmem:[#allocation113_spill] sm:$0xff]  ;;  %v15484_v21 = vld [vmem:[#allocation114_spill] sm:$0xff] }
 0x836   : > { %15480 = vst [vmem:[#allocation105_spill] sm:$0xff] %v13365_v54  ;;  %v13373_v24 = vmul.f32 %v15483_v38, %v13187_v45  ;;  %v13377_v33 = vmul.f32 %v15484_v21, %v13187_v45  ;;  %v15488_v54 = vld [vmem:[#allocation37_spill] sm:$0xff]  ;;  %v13397_v21 = vmul.f32 %v15380_v13, %v13187_v45  ;;  %v13417_v13 = vmul.f32 %v15383_v37, %v13187_v45 }
 0x837   : > { %15478 = vst [vmem:[#allocation99_spill] sm:$0xff] %v13357_v60  ;;  %15482 = vst [vmem:[#allocation117_spill] sm:$0xff] %v13369_v57  ;;  %v15486_v60 = vld [vmem:[#allocation115_spill] sm:$0xff]  ;;  %v13389_v7 = vmul.f32 %v15488_v54, %v13187_v45  ;;  %v13409_v54 = vmul.f32 %v15382_v59, %v13187_v45  ;;  %v13429_v59 = vmul.f32 %v12569_v9, %v13187_v45 }
 0x838   : > { %15485 = vst [vmem:[#allocation120_spill] sm:$0xff] %v13377_v33  ;;  %v13381_v8 = vmul.f32 %v15486_v60, %v13187_v45  ;;  %v15489_v57 = vld [vmem:[#allocation39_spill] sm:$0xff]  ;;  %v13437_v37 = vmul.f32 %v12584_v36, %v13187_v45  ;;  %v13449_v9 = vmul.f32 %v12609_v19, %v13187_v45 }
 0x839   : > { %v13393_v38 = vmul.f32 %v15489_v57, %v13187_v45  ;;  %v15490_v33 = vld [vmem:[#allocation43_spill] sm:$0xff]  ;;  %v13413_v57 = vmul.f32 %v12540_v10, %v13187_v45  ;;  %v13433_v10 = vmul.f32 %v12580_v18, %v13187_v45  ;;  %v13453_v18 = vmul.f32 %v12613_v4, %v13187_v45 }
 0x83a   : > { %15487 = vst [vmem:[#allocation7_spill] sm:$0xff] %v13381_v8  ;;  %v13401_v60 = vmul.f32 %v15490_v33, %v13187_v45  ;;  %v15491_v8 = vld [vmem:[#allocation45_spill] sm:$0xff]  ;;  %v13421_v33 = vmul.f32 %v15384_v39, %v13187_v45  ;;  %v13441_v39 = vmul.f32 %v12595_v26, %v13187_v45  ;;  %v13461_v26 = vmul.f32 %v15385_v23, %v13187_v45 }
 0x83b   : > { %v13405_v61 = vmul.f32 %v15491_v8, %v13187_v45  ;;  %v13425_v8 = vmul.f32 %v12565_v62, %v13187_v45  ;;  %15493 = vst [vmem:[#allocation11_spill] sm:$0xff] %v13433_v10  ;;  %15497 = vst [vmem:[#allocation32_spill] sm:$0xff] %v13453_v18  ;;  %v15498_v10 = vld [vmem:[#allocation55_spill] sm:$0xff]  ;;  %v13473_v4 = vmul.f32 %v15386_v14, %v13187_v45  ;;  %v15504_v18 = vld [vmem:[#allocation65_spill] sm:$0xff] }
 0x83c   : > { %15492 = vst [vmem:[#allocation10_spill] sm:$0xff] %v13421_v33  ;;  %15494 = vst [vmem:[#allocation12_spill] sm:$0xff] %v13441_v39  ;;  %v15495_v33 = vld [vmem:[#allocation53_spill] sm:$0xff]  ;;  %v13457_v36 = vmul.f32 %v15498_v10, %v13187_v45  ;;  %v15500_v39 = vld [vmem:[#allocation59_spill] sm:$0xff]  ;;  %v13477_v10 = vmul.f32 %v15504_v18, %v13187_v45  ;;  %v13481_v23 = vmul.f32 %v15387_v56, %v13187_v45 }
 0x83d   : > { %v13445_v62 = vmul.f32 %v15495_v33, %v13187_v45  ;;  %15499 = vst [vmem:[#allocation33_spill] sm:$0xff] %v13461_v26  ;;  %v13465_v33 = vmul.f32 %v15500_v39, %v13187_v45  ;;  %15503 = vst [vmem:[#allocation36_spill] sm:$0xff] %v13473_v4  ;;  %v15507_v26 = vld [vmem:[#allocation69_spill] sm:$0xff]  ;;  %v13493_v14 = vmul.f32 %v15389_v29, %v13187_v45  ;;  %v15511_v4 = vld [vmem:[#allocation75_spill] sm:$0xff] }
 0x83e   : > { %15505 = vst [vmem:[#allocation38_spill] sm:$0xff] %v13477_v10  ;;  %15506 = vst [vmem:[#allocation40_spill] sm:$0xff] %v13481_v23  ;;  %v13485_v39 = vmul.f32 %v15507_v26, %v13187_v45  ;;  %v13497_v18 = vmul.f32 %v15511_v4, %v13187_v45  ;;  %v15513_v10 = vld [vmem:[#allocation77_spill] sm:$0xff]  ;;  %v15514_v23 = vld [vmem:[#allocation79_spill] sm:$0xff]  ;;  %v13513_v29 = vmul.f32 %v15392_v31, %v13187_v45 }
 0x83f   : > { %15496 = vst [vmem:[#allocation31_spill] sm:$0xff] %v13445_v62  ;;  %15501 = vst [vmem:[#allocation34_spill] sm:$0xff] %v13465_v33  ;;  %v15502_v62 = vld [vmem:[#allocation61_spill] sm:$0xff]  ;;  %v15509_v33 = vld [vmem:[#allocation71_spill] sm:$0xff]  ;;  %v13501_v56 = vmul.f32 %v15513_v10, %v13187_v45  ;;  %v13505_v26 = vmul.f32 %v15514_v23, %v13187_v45  ;;  %v13525_v23 = vmul.f32 %v15395_v41, %v13187_v45 }
 0x840   : > { %v13469_v19 = vmul.f32 %v15502_v62, %v13187_v45  ;;  %15508 = vst [vmem:[#allocation42_spill] sm:$0xff] %v13485_v39  ;;  %v13489_v62 = vmul.f32 %v15509_v33, %v13187_v45  ;;  %15510 = vst [vmem:[#allocation44_spill] sm:$0xff] %v13493_v14  ;;  %v15516_v39 = vld [vmem:[#allocation81_spill] sm:$0xff]  ;;  %v13545_v41 = vmul.f32 %v15398_v53, %v13187_v45 }
 0x841   : > { %15512 = vst [vmem:[#allocation46_spill] sm:$0xff] %v13497_v18  ;;  %15515 = vst [vmem:[#allocation48_spill] sm:$0xff] %v13505_v26  ;;  %v13509_v33 = vmul.f32 %v15516_v39, %v13187_v45  ;;  %v15519_v14 = vld [vmem:[#allocation85_spill] sm:$0xff]  ;;  %v15521_v18 = vld [vmem:[#allocation87_spill] sm:$0xff] }
 0x842   : > { %15518 = vst [vmem:[#allocation52_spill] sm:$0xff] %v13513_v29  ;;  %v13517_v4 = vmul.f32 %v15519_v14, %v13187_v45  ;;  %v13521_v10 = vmul.f32 %v15521_v18, %v13187_v45  ;;  %15522 = vst [vmem:[#allocation62_spill] sm:$0xff] %v13525_v23  ;;  %v15523_v26 = vld [vmem:[#allocation91_spill] sm:$0xff]  ;;  %v15531_v23 = vld [vmem:[#allocation101_spill] sm:$0xff] }
 0x843   : > { %15517 = vst [vmem:[#allocation50_spill] sm:$0xff] %v13509_v33  ;;  %v13529_v39 = vmul.f32 %v15523_v26, %v13187_v45  ;;  %v15525_v33 = vld [vmem:[#allocation93_spill] sm:$0xff]  ;;  %v15526_v29 = vld [vmem:[#allocation95_spill] sm:$0xff]  ;;  %15530 = vst [vmem:[#allocation72_spill] sm:$0xff] %v13545_v41  ;;  %v13549_v26 = vmul.f32 %v15531_v23, %v13187_v45 }
 0x844   : > { %15520 = vst [vmem:[#allocation58_spill] sm:$0xff] %v13517_v4  ;;  %v13533_v31 = vmul.f32 %v15525_v33, %v13187_v45  ;;  %v13537_v14 = vmul.f32 %v15526_v29, %v13187_v45  ;;  %v15528_v4 = vld [vmem:[#allocation97_spill] sm:$0xff]  ;;  %v13557_v29 = vmul.f32 %v15401_v27, %v13187_v45  ;;  %v15538_v41 = vld [vmem:[#allocation110_spill] sm:$0xff]  ;;  %v13577_v27 = vmul.f32 %v15404_v55, %v13187_v45 }
 0x845   : > { %15524 = vst [vmem:[#allocation64_spill] sm:$0xff] %v13529_v39  ;;  %v13541_v18 = vmul.f32 %v15528_v4, %v13187_v45  ;;  %15532 = vst [vmem:[#allocation74_spill] sm:$0xff] %v13549_v26  ;;  %v15533_v39 = vld [vmem:[#allocation103_spill] sm:$0xff]  ;;  %v13569_v23 = vmul.f32 %v15538_v41, %v13187_v45  ;;  %v15540_v26 = vld [vmem:[#allocation116_spill] sm:$0xff]  ;;  %v13589_v41 = vmul.f32 %v15407_v52, %v13187_v45 }
 0x846   : > { %15527 = vst [vmem:[#allocation66_spill] sm:$0xff] %v13537_v14  ;;  %v13553_v33 = vmul.f32 %v15533_v39, %v13187_v45  ;;  %15534 = vst [vmem:[#allocation76_spill] sm:$0xff] %v13557_v29  ;;  %v15535_v14 = vld [vmem:[#allocation107_spill] sm:$0xff]  ;;  %v13573_v39 = vmul.f32 %v15540_v26, %v13187_v45  ;;  %v15543_v29 = vld [vmem:[#allocation118_spill] sm:$0xff]  ;;  %v13609_v52 = vmul.f32 %v15410_v35, %v13187_v45 }
 0x847   : > { %15529 = vst [vmem:[#allocation68_spill] sm:$0xff] %v13541_v18  ;;  %v13561_v4 = vmul.f32 %v15535_v14, %v13187_v45  ;;  %v15537_v18 = vld [vmem:[#allocation108_spill] sm:$0xff]  ;;  %15539 = vst [vmem:[#allocation80_spill] sm:$0xff] %v13569_v23  ;;  %v13581_v14 = vmul.f32 %v15543_v29, %v13187_v45  ;;  %v15547_v23 = vld [vmem:[#allocation3_spill] sm:$0xff]  ;;  %v13629_v35 = vmul.f32 %v15414_v16, %v13187_v45 }
 0x848   : > { %v13565_v53 = vmul.f32 %v15537_v18, %v13187_v45  ;;  %15541 = vst [vmem:[#allocation82_spill] sm:$0xff] %v13573_v39  ;;  %15542 = vst [vmem:[#allocation84_spill] sm:$0xff] %v13577_v27  ;;  %v13593_v26 = vmul.f32 %v15547_v23, %v13187_v45  ;;  %v15549_v39 = vld [vmem:[#allocation4_spill] sm:$0xff]  ;;  %v15550_v27 = vld [vmem:[#allocation5_spill] sm:$0xff] }
 0x849   : > { %15536 = vst [vmem:[#allocation78_spill] sm:$0xff] %v13561_v4  ;;  %15544 = vst [vmem:[#allocation86_spill] sm:$0xff] %v13581_v14  ;;  %v15545_v4 = vld [vmem:[#allocation119_spill] sm:$0xff]  ;;  %v13597_v55 = vmul.f32 %v15549_v39, %v13187_v45  ;;  %v13601_v29 = vmul.f32 %v15550_v27, %v13187_v45  ;;  %v15551_v14 = vld [vmem:[#allocation6_spill] sm:$0xff]  ;;  %v13621_v27 = vmul.f32 %v15413_v3, %v13187_v45 }
 0x84a   : > { %v13585_v18 = vmul.f32 %v15545_v4, %v13187_v45  ;;  %15546 = vst [vmem:[#allocation88_spill] sm:$0xff] %v13589_v41  ;;  %15548 = vst [vmem:[#allocation90_spill] sm:$0xff] %v13593_v26  ;;  %v13605_v4 = vmul.f32 %v15551_v14, %v13187_v45  ;;  %v15552_v41 = vld [vmem:[#allocation8_spill] sm:$0xff]  ;;  %v15553_v26 = vld [vmem:[#allocation9_spill] sm:$0xff]  ;;  %v13625_v14 = vmul.f32 %v12818_v5, %v13187_v45 }
 0x84b   : > { %v13613_v23 = vmul.f32 %v15552_v41, %v13187_v45  ;;  %v13617_v39 = vmul.f32 %v15553_v26, %v13187_v45  ;;  %15555 = vst [vmem:[#allocation94_spill] sm:$0xff] %v13629_v35  ;;  %v13633_v41 = vmul.f32 %v15415_v48, %v13187_v45  ;;  %v13637_v26 = vmul.f32 %v12830_v58, %v13187_v45  ;;  %v15562_v35 = vld [vmem:[#allocation14_spill] sm:$0xff] }
 0x84c   : > { %15554 = vst [vmem:[#allocation92_spill] sm:$0xff] %v13625_v14  ;;  %v13641_v3 = vmul.f32 %v12835_v50, %v13187_v45  ;;  %v13645_v5 = vmul.f32 %v12839_v28, %v13187_v45  ;;  %v15560_v14 = vld [vmem:[#allocation13_spill] sm:$0xff]  ;;  %v13653_v48 = vmul.f32 %v15562_v35, %v13187_v45 }
 0x84d   : > { %15556 = vst [vmem:[#allocation96_spill] sm:$0xff] %v13633_v41  ;;  %15557 = vst [vmem:[#allocation98_spill] sm:$0xff] %v13637_v26  ;;  %v13649_v16 = vmul.f32 %v15560_v14, %v13187_v45  ;;  %v15564_v41 = vld [vmem:[#allocation15_spill] sm:$0xff]  ;;  %v15566_v26 = vld [vmem:[#allocation16_spill] sm:$0xff] }
 0x84e   : > { %15558 = vst [vmem:[#allocation109_spill] sm:$0xff] %v13641_v3  ;;  %15559 = vst [vmem:[#allocation111_spill] sm:$0xff] %v13645_v5  ;;  %v13657_v58 = vmul.f32 %v15564_v41, %v13187_v45  ;;  %v13661_v50 = vmul.f32 %v15566_v26, %v13187_v45  ;;  %v15568_v3 = vld [vmem:[#allocation17_spill] sm:$0xff]  ;;  %v15570_v5 = vld [vmem:[#allocation18_spill] sm:$0xff] }
 0x84f   : > { %15561 = vst [vmem:[#allocation112_spill] sm:$0xff] %v13649_v16  ;;  %15563 = vst [vmem:[#allocation113_spill] sm:$0xff] %v13653_v48  ;;  %v13665_v28 = vmul.f32 %v15568_v3, %v13187_v45  ;;  %v13669_v14 = vmul.f32 %v15570_v5, %v13187_v45  ;;  %v15572_v16 = vld [vmem:[#allocation19_spill] sm:$0xff]  ;;  %v15574_v48 = vld [vmem:[#allocation20_spill] sm:$0xff]  ;;  %v15580_v5 = vsub.f32 %v13180_v22, %v13183_v47 }
 0x850   : > { %15565 = vst [vmem:[#allocation114_spill] sm:$0xff] %v13657_v58  ;;  %15567 = vst [vmem:[#allocation115_spill] sm:$0xff] %v13661_v50  ;;  %v13673_v35 = vmul.f32 %v15572_v16, %v13187_v45  ;;  %v13677_v41 = vmul.f32 %v15574_v48, %v13187_v45  ;;  %v15576_v58 = vld [vmem:[#allocation21_spill] sm:$0xff]  ;;  %v15578_v50 = vld [vmem:[#allocation22_spill] sm:$0xff] }
 0x851   : > { %15569 = vst [vmem:[#allocation37_spill] sm:$0xff] %v13665_v28  ;;  %15571 = vst [vmem:[#allocation39_spill] sm:$0xff] %v13669_v14  ;;  %v13681_v26 = vmul.f32 %v15576_v58, %v13187_v45  ;;  %v13685_v3 = vmul.f32 %v15578_v50, %v13187_v45  ;;  %v15579_v28 = vsub.s32 0, %v13167_v25  ;;  %v15581_v16 = vld [vmem:[#allocation23_spill] sm:$0xff]  ;;  %v15582_v48 = vld [vmem:[#allocation24_spill] sm:$0xff] }
 0x852   : > { %15573 = vst [vmem:[#allocation43_spill] sm:$0xff] %v13673_v35  ;;  %15575 = vst [vmem:[#allocation45_spill] sm:$0xff] %v13677_v41  ;;  %v13696_v35 = vmul.f32 %v15581_v16, %v13187_v45  ;;  %v13700_v41 = vmul.f32 %v15582_v48, %v13187_v45  ;;  %v15583_v58 = vld [vmem:[#allocation25_spill] sm:$0xff]  ;;  %v15584_v50 = vld [vmem:[#allocation26_spill] sm:$0xff] }
 0x853   : > { %15577 = vst [vmem:[#allocation53_spill] sm:$0xff] %v13681_v26  ;;  %v13692_v14 = vrot.slane %v15580_v5, %v15579_v28  ;;  %v13704_v26 = vmul.f32 %v15583_v58, %v13187_v45  ;;  %v13708_v25 = vmul.f32 %v15584_v50, %v13187_v45  ;;  %v15595_v16 = vld [vmem:[#allocation27_spill] sm:$0xff]  ;;  %v15597_v48 = vld [vmem:[#allocation28_spill] sm:$0xff]  ;;  %v15599_v58 = vld [vmem:[#allocation29_spill] sm:$0xff] }
 0x854   : > { %v15601_v50 = vld [vmem:[#allocation30_spill] sm:$0xff] }
 0x855   : > { %v13712_v22 = vadd.f32 %v13692_v14, %v13193_v63  ;;  %v13716_v47 = vadd.f32 %v13692_v14, %v13197_v40  ;;  %v13720_v28 = vadd.f32 %v13692_v14, %v13201_v44  ;;  %v13724_v5 = vadd.f32 %v13692_v14, %v13205_v15 }
 0x856   : > { %v13728_v45 = vadd.f32 %v13692_v14, %v13209_v2  ;;  %v13732_v63 = vadd.f32 %v13692_v14, %v13213_v0  ;;  %v13736_v40 = vadd.f32 %v13692_v14, %v13217_v30  ;;  %v13740_v44 = vadd.f32 %v13692_v14, %v13221_v11 }
 0x857   : > { %15585 = vst [vmem:[#allocation55_spill] sm:$0xff] %v13712_v22  ;;  %15586 = vst [vmem:[#allocation59_spill] sm:$0xff] %v13716_v47  ;;  %v13744_v15 = vadd.f32 %v13692_v14, %v13225_v49  ;;  %v13748_v2 = vadd.f32 %v13692_v14, %v13229_v20  ;;  %v13752_v0 = vadd.f32 %v13692_v14, %v13233_v12 }
 0x858   : > { %15587 = vst [vmem:[#allocation61_spill] sm:$0xff] %v13720_v28  ;;  %15588 = vst [vmem:[#allocation65_spill] sm:$0xff] %v13724_v5  ;;  %v13756_v30 = vadd.f32 %v13692_v14, %v15595_v16  ;;  %v13760_v11 = vadd.f32 %v13692_v14, %v15597_v48  ;;  %v13764_v49 = vadd.f32 %v13692_v14, %v15599_v58 }
 0x859   : > { %15589 = vst [vmem:[#allocation69_spill] sm:$0xff] %v13728_v45  ;;  %15590 = vst [vmem:[#allocation71_spill] sm:$0xff] %v13732_v63  ;;  %v13768_v20 = vadd.f32 %v13692_v14, %v15601_v50  ;;  %v13772_v12 = vadd.f32 %v13692_v14, %v13253_v1 }
 0x85a   : > { %15591 = vst [vmem:[#allocation75_spill] sm:$0xff] %v13736_v40  ;;  %15592 = vst [vmem:[#allocation77_spill] sm:$0xff] %v13740_v44 }
 0x85b   : > { %15593 = vst [vmem:[#allocation79_spill] sm:$0xff] %v13748_v2  ;;  %15594 = vst [vmem:[#allocation81_spill] sm:$0xff] %v13752_v0  ;;  %v15604_v0 = vld [vmem:[#allocation54_spill] sm:$0xff] }
 0x85c   : > { %15596 = vst [vmem:[#allocation85_spill] sm:$0xff] %v13756_v30  ;;  %15598 = vst [vmem:[#allocation87_spill] sm:$0xff] %v13760_v11  ;;  %v13776_v16 = vadd.f32 %v13692_v14, %v15604_v0  ;;  %v15606_v30 = vld [vmem:[#allocation56_spill] sm:$0xff] }
 0x85d   : > { %15600 = vst [vmem:[#allocation91_spill] sm:$0xff] %v13764_v49  ;;  %15602 = vst [vmem:[#allocation93_spill] sm:$0xff] %v13768_v20  ;;  %v13780_v48 = vadd.f32 %v13692_v14, %v15606_v30  ;;  %v15608_v11 = vld [vmem:[#allocation60_spill] sm:$0xff]  ;;  %v15610_v49 = vld [vmem:[#allocation70_spill] sm:$0xff] }
 0x85e   : > { %15603 = vst [vmem:[#allocation95_spill] sm:$0xff] %v13772_v12  ;;  %15605 = vst [vmem:[#allocation97_spill] sm:$0xff] %v13776_v16  ;;  %v13784_v58 = vadd.f32 %v13692_v14, %v15608_v11  ;;  %v13788_v50 = vadd.f32 %v13692_v14, %v15610_v49  ;;  %v15612_v20 = vld [vmem:[#allocation100_spill] sm:$0xff]  ;;  %v15614_v12 = vld [vmem:[#allocation102_spill] sm:$0xff] }
 0x85f   : > { %15607 = vst [vmem:[#allocation101_spill] sm:$0xff] %v13780_v48  ;;  %v13792_v1 = vadd.f32 %v13692_v14, %v15612_v20  ;;  %v13796_v0 = vadd.f32 %v13692_v14, %v15614_v12  ;;  %v15616_v16 = vld [vmem:[#allocation104_spill] sm:$0xff]  ;;  %v15618_v48 = vld [vmem:[#allocation106_spill] sm:$0xff] }
 0x860   : > { %15609 = vst [vmem:[#allocation103_spill] sm:$0xff] %v13784_v58  ;;  %15611 = vst [vmem:[#allocation107_spill] sm:$0xff] %v13788_v50  ;;  %v13800_v30 = vadd.f32 %v13692_v14, %v15616_v16  ;;  %v13804_v11 = vadd.f32 %v13692_v14, %v15618_v48  ;;  %v15620_v58 = vld [vmem:[#allocation35_spill] sm:$0xff]  ;;  %v15621_v50 = vld [vmem:[#allocation41_spill] sm:$0xff] }
 0x861   : > { %15613 = vst [vmem:[#allocation108_spill] sm:$0xff] %v13792_v1  ;;  %15615 = vst [vmem:[#allocation110_spill] sm:$0xff] %v13796_v0  ;;  %v13808_v49 = vadd.f32 %v13692_v14, %v15620_v58  ;;  %v13812_v20 = vadd.f32 %v13692_v14, %v15621_v50  ;;  %v15622_v1 = vld [vmem:[#allocation47_spill] sm:$0xff]  ;;  %v15623_v0 = vld [vmem:[#allocation49_spill] sm:$0xff]  ;;  %v13832_v50 = vadd.f32 %v13692_v14, %v13313_v17 }
 0x862   : > { %15617 = vst [vmem:[#allocation116_spill] sm:$0xff] %v13800_v30  ;;  %15619 = vst [vmem:[#allocation118_spill] sm:$0xff] %v13804_v11  ;;  %v13816_v12 = vadd.f32 %v13692_v14, %v15622_v1  ;;  %v13820_v16 = vadd.f32 %v13692_v14, %v15623_v0  ;;  %v15624_v30 = vld [vmem:[#allocation51_spill] sm:$0xff]  ;;  %v15625_v11 = vld [vmem:[#allocation57_spill] sm:$0xff]  ;;  %v13836_v1 = vadd.f32 %v13692_v14, %v13317_v43 }
 0x863   : > { %v13824_v48 = vadd.f32 %v13692_v14, %v15624_v30  ;;  %v13828_v58 = vadd.f32 %v13692_v14, %v15625_v11  ;;  %15627 = vst [vmem:[#allocation3_spill] sm:$0xff] %v13832_v50  ;;  %v13840_v0 = vadd.f32 %v13692_v14, %v13321_v32  ;;  %v13844_v30 = vadd.f32 %v13692_v14, %v13325_v42  ;;  %v15633_v50 = vld [vmem:[#allocation67_spill] sm:$0xff] }
 0x864   : > { %v13848_v11 = vadd.f32 %v13692_v14, %v13329_v51  ;;  %v13856_v43 = vadd.f32 %v13692_v14, %v15633_v50  ;;  %v13860_v32 = vadd.f32 %v13692_v14, %v13341_v46  ;;  %v13880_v46 = vadd.f32 %v13692_v14, %v13361_v34 }
 0x865   : > { %15626 = vst [vmem:[#allocation119_spill] sm:$0xff] %v13828_v58  ;;  %15628 = vst [vmem:[#allocation4_spill] sm:$0xff] %v13840_v0  ;;  %v15631_v58 = vld [vmem:[#allocation63_spill] sm:$0xff]  ;;  %v15635_v0 = vld [vmem:[#allocation73_spill] sm:$0xff] }
 0x866   : > { %15629 = vst [vmem:[#allocation5_spill] sm:$0xff] %v13844_v30  ;;  %15630 = vst [vmem:[#allocation6_spill] sm:$0xff] %v13848_v11  ;;  %v13852_v17 = vadd.f32 %v13692_v14, %v15631_v58  ;;  %v13864_v42 = vadd.f32 %v13692_v14, %v15635_v0  ;;  %v15637_v30 = vld [vmem:[#allocation83_spill] sm:$0xff]  ;;  %v15638_v11 = vld [vmem:[#allocation89_spill] sm:$0xff] }
 0x867   : > { %15634 = vst [vmem:[#allocation9_spill] sm:$0xff] %v13860_v32  ;;  %v13868_v51 = vadd.f32 %v13692_v14, %v15637_v30  ;;  %v13872_v58 = vadd.f32 %v13692_v14, %v15638_v11  ;;  %v15642_v32 = vld [vmem:[#allocation105_spill] sm:$0xff]  ;;  %v13892_v11 = vadd.f32 %v13692_v14, %v13373_v24  ;;  %v13912_v24 = vadd.f32 %v13692_v14, %v13393_v38 }
 0x868   : > { %15632 = vst [vmem:[#allocation8_spill] sm:$0xff] %v13852_v17  ;;  %15636 = vst [vmem:[#allocation13_spill] sm:$0xff] %v13864_v42  ;;  %v15640_v17 = vld [vmem:[#allocation99_spill] sm:$0xff]  ;;  %v13884_v0 = vadd.f32 %v13692_v14, %v15642_v32  ;;  %v15643_v42 = vld [vmem:[#allocation117_spill] sm:$0xff]  ;;  %v13904_v32 = vadd.f32 %v13692_v14, %v13385_v6  ;;  %v13924_v6 = vadd.f32 %v13692_v14, %v13405_v61 }
 0x869   : > { %15639 = vst [vmem:[#allocation14_spill] sm:$0xff] %v13872_v58  ;;  %v13876_v50 = vadd.f32 %v13692_v14, %v15640_v17  ;;  %v13888_v30 = vadd.f32 %v13692_v14, %v15643_v42  ;;  %v15644_v58 = vld [vmem:[#allocation120_spill] sm:$0xff]  ;;  %v13908_v42 = vadd.f32 %v13692_v14, %v13389_v7  ;;  %v13928_v7 = vadd.f32 %v13692_v14, %v13409_v54 }
 0x86a   : > { %v13896_v17 = vadd.f32 %v13692_v14, %v15644_v58  ;;  %v13916_v58 = vadd.f32 %v13692_v14, %v13397_v21  ;;  %v13932_v38 = vadd.f32 %v13692_v14, %v13413_v57  ;;  %v13936_v21 = vadd.f32 %v13692_v14, %v13417_v13 }
 0x86b   : > { %15641 = vst [vmem:[#allocation15_spill] sm:$0xff] %v13876_v50  ;;  %v15645_v50 = vld [vmem:[#allocation7_spill] sm:$0xff]  ;;  %15647 = vst [vmem:[#allocation17_spill] sm:$0xff] %v13928_v7  ;;  %v13944_v61 = vadd.f32 %v13692_v14, %v13425_v8  ;;  %v13948_v54 = vadd.f32 %v13692_v14, %v13429_v59  ;;  %v13956_v13 = vadd.f32 %v13692_v14, %v13437_v37 }
 0x86c   : > { %v13900_v34 = vadd.f32 %v13692_v14, %v15645_v50  ;;  %15646 = vst [vmem:[#allocation16_spill] sm:$0xff] %v13916_v58  ;;  %v13920_v50 = vadd.f32 %v13692_v14, %v13401_v60  ;;  %15648 = vst [vmem:[#allocation18_spill] sm:$0xff] %v13936_v21  ;;  %v15649_v58 = vld [vmem:[#allocation10_spill] sm:$0xff]  ;;  %v15652_v7 = vld [vmem:[#allocation11_spill] sm:$0xff]  ;;  %v13968_v59 = vadd.f32 %v13692_v14, %v13449_v9 }
 0x86d   : > { %v13940_v60 = vadd.f32 %v13692_v14, %v15649_v58  ;;  %15651 = vst [vmem:[#allocation20_spill] sm:$0xff] %v13948_v54  ;;  %v13952_v57 = vadd.f32 %v13692_v14, %v15652_v7  ;;  %15653 = vst [vmem:[#allocation21_spill] sm:$0xff] %v13956_v13  ;;  %v15654_v21 = vld [vmem:[#allocation12_spill] sm:$0xff]  ;;  %v13976_v37 = vadd.f32 %v13692_v14, %v13457_v36  ;;  %v15661_v13 = vld [vmem:[#allocation33_spill] sm:$0xff] }
 0x86e   : > { %v13960_v58 = vadd.f32 %v13692_v14, %v15654_v21  ;;  %15657 = vst [vmem:[#allocation23_spill] sm:$0xff] %v13968_v59  ;;  %v15658_v54 = vld [vmem:[#allocation32_spill] sm:$0xff]  ;;  %v13980_v21 = vadd.f32 %v13692_v14, %v15661_v13  ;;  %v13988_v9 = vadd.f32 %v13692_v14, %v13469_v19  ;;  %v14008_v19 = vadd.f32 %v13692_v14, %v13489_v62 }
 0x86f   : > { %15650 = vst [vmem:[#allocation19_spill] sm:$0xff] %v13940_v60  ;;  %v15656_v60 = vld [vmem:[#allocation31_spill] sm:$0xff]  ;;  %v13972_v7 = vadd.f32 %v13692_v14, %v15658_v54  ;;  %15660 = vst [vmem:[#allocation25_spill] sm:$0xff] %v13976_v37  ;;  %v15665_v59 = vld [vmem:[#allocation36_spill] sm:$0xff] }
 0x870   : > { %15655 = vst [vmem:[#allocation22_spill] sm:$0xff] %v13960_v58  ;;  %v13964_v8 = vadd.f32 %v13692_v14, %v15656_v60  ;;  %15662 = vst [vmem:[#allocation26_spill] sm:$0xff] %v13980_v21  ;;  %v15663_v58 = vld [vmem:[#allocation34_spill] sm:$0xff]  ;;  %v13992_v54 = vadd.f32 %v13692_v14, %v15665_v59  ;;  %v15668_v37 = vld [vmem:[#allocation40_spill] sm:$0xff] }
 0x871   : > { %15659 = vst [vmem:[#allocation24_spill] sm:$0xff] %v13972_v7  ;;  %v13984_v60 = vadd.f32 %v13692_v14, %v15663_v58  ;;  %15664 = vst [vmem:[#allocation27_spill] sm:$0xff] %v13988_v9  ;;  %v15667_v7 = vld [vmem:[#allocation38_spill] sm:$0xff]  ;;  %v14000_v13 = vadd.f32 %v13692_v14, %v15668_v37  ;;  %v15673_v9 = vld [vmem:[#allocation44_spill] sm:$0xff]  ;;  %v14020_v37 = vadd.f32 %v13692_v14, %v13501_v56 }
 0x872   : > { %15666 = vst [vmem:[#allocation28_spill] sm:$0xff] %v13992_v54  ;;  %v13996_v36 = vadd.f32 %v13692_v14, %v15667_v7  ;;  %v15670_v21 = vld [vmem:[#allocation42_spill] sm:$0xff]  ;;  %15672 = vst [vmem:[#allocation54_spill] sm:$0xff] %v14008_v19  ;;  %v14012_v59 = vadd.f32 %v13692_v14, %v15673_v9  ;;  %v15680_v19 = vld [vmem:[#allocation52_spill] sm:$0xff]  ;;  %v14040_v56 = vadd.f32 %v13692_v14, %v13521_v10 }
 0x873   : > { %15669 = vst [vmem:[#allocation29_spill] sm:$0xff] %v14000_v13  ;;  %v14004_v58 = vadd.f32 %v13692_v14, %v15670_v21  ;;  %v15675_v54 = vld [vmem:[#allocation46_spill] sm:$0xff]  ;;  %15676 = vst [vmem:[#allocation60_spill] sm:$0xff] %v14020_v37  ;;  %v15677_v13 = vld [vmem:[#allocation48_spill] sm:$0xff]  ;;  %v14032_v9 = vadd.f32 %v13692_v14, %v15680_v19  ;;  %v14052_v19 = vadd.f32 %v13692_v14, %v13533_v31 }
 0x874   : > { %15674 = vst [vmem:[#allocation56_spill] sm:$0xff] %v14012_v59  ;;  %v14016_v7 = vadd.f32 %v13692_v14, %v15675_v54  ;;  %v14024_v21 = vadd.f32 %v13692_v14, %v15677_v13  ;;  %v15682_v59 = vld [vmem:[#allocation58_spill] sm:$0xff]  ;;  %15684 = vst [vmem:[#allocation104_spill] sm:$0xff] %v14040_v56  ;;  %v15692_v56 = vld [vmem:[#allocation72_spill] sm:$0xff]  ;;  %v14072_v31 = vadd.f32 %v13692_v14, %v13553_v33 }
 0x875   : > { %15671 = vst [vmem:[#allocation30_spill] sm:$0xff] %v14004_v58  ;;  %v15679_v58 = vld [vmem:[#allocation50_spill] sm:$0xff]  ;;  %15681 = vst [vmem:[#allocation100_spill] sm:$0xff] %v14032_v9  ;;  %v14036_v54 = vadd.f32 %v13692_v14, %v15682_v59 }
 0x876   : > { %15678 = vst [vmem:[#allocation70_spill] sm:$0xff] %v14024_v21  ;;  %v14028_v62 = vadd.f32 %v13692_v14, %v15679_v58  ;;  %v15685_v37 = vld [vmem:[#allocation62_spill] sm:$0xff]  ;;  %v15687_v21 = vld [vmem:[#allocation64_spill] sm:$0xff]  ;;  %15688 = vst [vmem:[#allocation35_spill] sm:$0xff] %v14052_v19 }
 0x877   : > { %15683 = vst [vmem:[#allocation102_spill] sm:$0xff] %v14036_v54  ;;  %v14044_v13 = vadd.f32 %v13692_v14, %v15685_v37  ;;  %v14048_v58 = vadd.f32 %v13692_v14, %v15687_v21  ;;  %v15689_v9 = vld [vmem:[#allocation66_spill] sm:$0xff]  ;;  %v15691_v54 = vld [vmem:[#allocation68_spill] sm:$0xff]  ;;  %v14064_v37 = vadd.f32 %v13692_v14, %v15692_v56  ;;  %15696 = vst [vmem:[#allocation51_spill] sm:$0xff] %v14072_v31 }
 0x878   : > { %v14056_v59 = vadd.f32 %v13692_v14, %v15689_v9  ;;  %v14060_v10 = vadd.f32 %v13692_v14, %v15691_v54  ;;  %v15697_v19 = vld [vmem:[#allocation76_spill] sm:$0xff]  ;;  %v14084_v56 = vadd.f32 %v13692_v14, %v13565_v53  ;;  %v14104_v53 = vadd.f32 %v13692_v14, %v13585_v18 }
 0x879   : > { %15686 = vst [vmem:[#allocation106_spill] sm:$0xff] %v14044_v13  ;;  %15693 = vst [vmem:[#allocation47_spill] sm:$0xff] %v14064_v37  ;;  %v15694_v13 = vld [vmem:[#allocation74_spill] sm:$0xff]  ;;  %v14076_v9 = vadd.f32 %v13692_v14, %v15697_v19  ;;  %v15701_v37 = vld [vmem:[#allocation80_spill] sm:$0xff]  ;;  %v14124_v18 = vadd.f32 %v13692_v14, %v13605_v4 }
 0x87a   : > { %15690 = vst [vmem:[#allocation41_spill] sm:$0xff] %v14056_v59  ;;  %v14068_v21 = vadd.f32 %v13692_v14, %v15694_v13  ;;  %v15699_v59 = vld [vmem:[#allocation78_spill] sm:$0xff]  ;;  %15700 = vst [vmem:[#allocation63_spill] sm:$0xff] %v14084_v56  ;;  %v14088_v13 = vadd.f32 %v13692_v14, %v15701_v37  ;;  %v15704_v31 = vld [vmem:[#allocation84_spill] sm:$0xff] }
 0x87b   : > { %15698 = vst [vmem:[#allocation57_spill] sm:$0xff] %v14076_v9  ;;  %v14080_v54 = vadd.f32 %v13692_v14, %v15699_v59  ;;  %v14096_v19 = vadd.f32 %v13692_v14, %v15704_v31  ;;  %v15705_v9 = vld [vmem:[#allocation86_spill] sm:$0xff]  ;;  %v15706_v56 = vld [vmem:[#allocation88_spill] sm:$0xff]  ;;  %v14116_v31 = vadd.f32 %v13692_v14, %v13597_v55  ;;  %15709 = vst [vmem:[#allocation83_spill] sm:$0xff] %v14124_v18 }
 0x87c   : > { %15695 = vst [vmem:[#allocation49_spill] sm:$0xff] %v14068_v21  ;;  %15702 = vst [vmem:[#allocation67_spill] sm:$0xff] %v14088_v13  ;;  %v15703_v21 = vld [vmem:[#allocation82_spill] sm:$0xff]  ;;  %v14100_v59 = vadd.f32 %v13692_v14, %v15705_v9  ;;  %v14108_v37 = vadd.f32 %v13692_v14, %v15706_v56  ;;  %v14120_v9 = vadd.f32 %v13692_v14, %v13601_v29 }
 0x87d   : > { %v14092_v33 = vadd.f32 %v13692_v14, %v15703_v21  ;;  %v15707_v13 = vld [vmem:[#allocation90_spill] sm:$0xff]  ;;  %v14128_v56 = vadd.f32 %v13692_v14, %v13609_v52  ;;  %v14136_v55 = vadd.f32 %v13692_v14, %v13617_v39  ;;  %v14140_v29 = vadd.f32 %v13692_v14, %v13621_v27 }
 0x87e   : > { %v14112_v21 = vadd.f32 %v13692_v14, %v15707_v13  ;;  %15708 = vst [vmem:[#allocation73_spill] sm:$0xff] %v14120_v9  ;;  %v14132_v13 = vadd.f32 %v13692_v14, %v13613_v23  ;;  %v15714_v9 = vld [vmem:[#allocation92_spill] sm:$0xff]  ;;  %v15716_v18 = vld [vmem:[#allocation94_spill] sm:$0xff] }
 0x87f   : > { %15710 = vst [vmem:[#allocation89_spill] sm:$0xff] %v14128_v56  ;;  %15712 = vst [vmem:[#allocation105_spill] sm:$0xff] %v14136_v55  ;;  %v14144_v4 = vadd.f32 %v13692_v14, %v15714_v9  ;;  %v14148_v52 = vadd.f32 %v13692_v14, %v15716_v18  ;;  %v15718_v56 = vld [vmem:[#allocation96_spill] sm:$0xff]  ;;  %v15722_v55 = vld [vmem:[#allocation109_spill] sm:$0xff] }
 0x880   : > { %15711 = vst [vmem:[#allocation99_spill] sm:$0xff] %v14132_v13  ;;  %15713 = vst [vmem:[#allocation117_spill] sm:$0xff] %v14140_v29  ;;  %v14152_v23 = vadd.f32 %v13692_v14, %v15718_v56  ;;  %v15720_v13 = vld [vmem:[#allocation98_spill] sm:$0xff]  ;;  %v14160_v27 = vadd.f32 %v13692_v14, %v15722_v55  ;;  %v15724_v29 = vld [vmem:[#allocation111_spill] sm:$0xff] }
 0x881   : > { %15715 = vst [vmem:[#allocation120_spill] sm:$0xff] %v14144_v4  ;;  %15717 = vst [vmem:[#allocation7_spill] sm:$0xff] %v14148_v52  ;;  %v14156_v39 = vadd.f32 %v13692_v14, %v15720_v13  ;;  %v14164_v9 = vadd.f32 %v13692_v14, %v15724_v29  ;;  %v15726_v4 = vld [vmem:[#allocation112_spill] sm:$0xff]  ;;  %v15728_v52 = vld [vmem:[#allocation113_spill] sm:$0xff] }
 0x882   : > { %15719 = vst [vmem:[#allocation10_spill] sm:$0xff] %v14152_v23  ;;  %15723 = vst [vmem:[#allocation12_spill] sm:$0xff] %v14160_v27  ;;  %v14168_v18 = vadd.f32 %v13692_v14, %v15726_v4  ;;  %v14172_v56 = vadd.f32 %v13692_v14, %v15728_v52  ;;  %v15730_v23 = vld [vmem:[#allocation114_spill] sm:$0xff]  ;;  %v15733_v27 = vld [vmem:[#allocation37_spill] sm:$0xff] }
 0x883   : > { %15721 = vst [vmem:[#allocation11_spill] sm:$0xff] %v14156_v39  ;;  %15725 = vst [vmem:[#allocation31_spill] sm:$0xff] %v14164_v9  ;;  %v14176_v13 = vadd.f32 %v13692_v14, %v15730_v23  ;;  %v15732_v39 = vld [vmem:[#allocation115_spill] sm:$0xff]  ;;  %v14184_v29 = vadd.f32 %v13692_v14, %v15733_v27  ;;  %v14204_v27 = vadd.f32 %v13692_v14, %v13685_v3  ;;  %v8042_v3 = vmax.f32 (!%p9077_p5), %v13712_v22, 0.0 }
 0x884   : > { %15727 = vst [vmem:[#allocation32_spill] sm:$0xff] %v14168_v18  ;;  %15729 = vst [vmem:[#allocation33_spill] sm:$0xff] %v14172_v56  ;;  %v14180_v55 = vadd.f32 %v13692_v14, %v15732_v39  ;;  %v15735_v9 = vld [vmem:[#allocation39_spill] sm:$0xff]  ;;  %v15739_v56 = vld [vmem:[#allocation45_spill] sm:$0xff]  ;;  %8041 = sbr.rel (%p9077_p5) target bundleno = 2236 (0x8bc), region = 52  ;;  %v8051_v22 = vmax.f32 (!%p9077_p5), %v13748_v2, 0.0 }
 0x885   : > { %15731 = vst [vmem:[#allocation34_spill] sm:$0xff] %v14176_v13  ;;  %15734 = vst [vmem:[#allocation36_spill] sm:$0xff] %v14184_v29  ;;  %v14188_v4 = vadd.f32 %v13692_v14, %v15735_v9  ;;  %v15737_v18 = vld [vmem:[#allocation43_spill] sm:$0xff]  ;;  %v14196_v23 = vadd.f32 %v13692_v14, %v15739_v56  ;;  %v15741_v13 = vld [vmem:[#allocation53_spill] sm:$0xff]  ;;  %v14208_v9 = vadd.f32 %v13692_v14, %v13696_v35  ;;  %v8043_v35 = vmax.f32 (!%p9077_p5), %v13716_v47, 0.0 }
 0x886   : > { %v14192_v52 = vadd.f32 %v13692_v14, %v15737_v18  ;;  %v14200_v39 = vadd.f32 %v13692_v14, %v15741_v13  ;;  %15743 = vst [vmem:[#allocation46_spill] sm:$0xff] %v14204_v27  ;;  %v14212_v18 = vadd.f32 %v13692_v14, %v13700_v41  ;;  %v14216_v56 = vadd.f32 %v13692_v14, %v13704_v26 }
 0x887   : > { %15736 = vst [vmem:[#allocation38_spill] sm:$0xff] %v14188_v4  ;;  %15740 = vst [vmem:[#allocation42_spill] sm:$0xff] %v14196_v23  ;;  %v14220_v13 = vadd.f32 %v13692_v14, %v13708_v25  ;;  %v8045_v41 = vmax.f32 (!%p9077_p5), %v13724_v5, 0.0  ;;  %v8047_v26 = vmax.f32 (!%p9077_p5), %v13732_v63, 0.0  ;;  %v8049_v14 = vmax.f32 (!%p9077_p5), %v13740_v44, 0.0  ;;  %v15748_v23 = vld [vmem:[#allocation81_spill] sm:$0xff] (!%p9077_p5) }
 0x888   : > { %15738 = vst [vmem:[#allocation40_spill] sm:$0xff] %v14192_v52  ;;  %15742 = vst [vmem:[#allocation44_spill] sm:$0xff] %v14200_v39  ;;  %v8170_v25 = vpack.c.bf16 (!%p9077_p5), %v8043_v35, %v8042_v3  ;;  %v8050_v27 = vmax.f32 (!%p9077_p5), %v13744_v15, 0.0  ;;  %v15749_v52 = vld [vmem:[#allocation85_spill] sm:$0xff] (!%p9077_p5)  ;;  %v15750_v63 = vld [vmem:[#allocation87_spill] sm:$0xff] (!%p9077_p5) }
 0x889   : > { %15744 = vst [vmem:[#allocation48_spill] sm:$0xff] %v14208_v9  ;;  %15745 = vst [vmem:[#allocation50_spill] sm:$0xff] %v14212_v18  ;;  %v8044_v9 = vmax.f32 (!%p9077_p5), %v13720_v28, 0.0  ;;  %v8046_v18 = vmax.f32 (!%p9077_p5), %v13728_v45, 0.0  ;;  %v8052_v28 = vmax.f32 (!%p9077_p5), %v15748_v23, 0.0  ;;  %v8053_v5 = vmax.f32 (!%p9077_p5), %v15749_v52, 0.0 }
 0x88a   : > { %15746 = vst [vmem:[#allocation52_spill] sm:$0xff] %v14216_v56  ;;  %15747 = vst [vmem:[#allocation58_spill] sm:$0xff] %v14220_v13  ;;  %v8048_v56 = vmax.f32 (!%p9077_p5), %v13736_v40, 0.0  ;;  %v8174_v45 = vpack.c.bf16 (!%p9077_p5), %v8051_v22, %v8050_v27  ;;  %v8054_v4 = vmax.f32 (!%p9077_p5), %v15750_v63, 0.0  ;;  %v15751_v40 = vld [vmem:[#allocation91_spill] sm:$0xff] (!%p9077_p5)  ;;  %v15752_v44 = vld [vmem:[#allocation93_spill] sm:$0xff] (!%p9077_p5) }
 0x88b   : > { %v8171_v13 = vpack.c.bf16 %v8045_v41, %v8044_v9  ;;  %v8172_v39 = vpack.c.bf16 %v8047_v26, %v8046_v18  ;;  %8234 = vst [vmem:[#allocation2] sm:$0xff] %v8170_v25  ;;  %v8055_v29 = vmax.f32 %v15751_v40, 0.0  ;;  %v8056_v3 = vmax.f32 %v15752_v44, 0.0  ;;  %v15753_v35 = vld [vmem:[#allocation95_spill] sm:$0xff]  ;;  %v15754_v18 = vld [vmem:[#allocation97_spill] sm:$0xff]  ;;  %v15758_v63 = vld [vmem:[#allocation108_spill] sm:$0xff] }
 0x88c   : > { %v8173_v47 = vpack.c.bf16 %v8049_v14, %v8048_v56  ;;  %v8175_v9 = vpack.c.bf16 %v8053_v5, %v8052_v28  ;;  %v8057_v41 = vmax.f32 %v15753_v35, 0.0  ;;  %v8058_v56 = vmax.f32 %v15754_v18, 0.0  ;;  %v15755_v26 = vld [vmem:[#allocation101_spill] sm:$0xff]  ;;  %8238 = vst [vmem:[#allocation2 + $0x20] sm:$0xff] %v8174_v45  ;;  %v15756_v14 = vld [vmem:[#allocation103_spill] sm:$0xff]  ;;  %v15760_v28 = vld [vmem:[#allocation116_spill] sm:$0xff] }
 0x88d   : > { %8235 = vst [vmem:[#allocation2 + $0x8] sm:$0xff] %v8171_v13  ;;  %8236 = vst [vmem:[#allocation2 + $0x10] sm:$0xff] %v8172_v39  ;;  %v8059_v23 = vmax.f32 %v15755_v26, 0.0  ;;  %v8176_v52 = vpack.c.bf16 %v8055_v29, %v8054_v4  ;;  %v8060_v13 = vmax.f32 %v15756_v14, 0.0  ;;  %v15757_v22 = vld [vmem:[#allocation107_spill] sm:$0xff]  ;;  %v8062_v25 = vmax.f32 %v15758_v63, 0.0 }
 0x88e   : > { %8237 = vst [vmem:[#allocation2 + $0x18] sm:$0xff] %v8173_v47  ;;  %v8061_v27 = vmax.f32 %v15757_v22, 0.0  ;;  %8239 = vst [vmem:[#allocation2 + $0x28] sm:$0xff] %v8175_v9  ;;  %v8177_v40 = vpack.c.bf16 %v8057_v41, %v8056_v3  ;;  %v15759_v39 = vld [vmem:[#allocation110_spill] sm:$0xff]  ;;  %v8064_v5 = vmax.f32 %v15760_v28, 0.0  ;;  %v8066_v45 = vmax.f32 %v13808_v49, 0.0 }
 0x88f   : > { %v8178_v44 = vpack.c.bf16 %v8059_v23, %v8058_v56  ;;  %v8063_v47 = vmax.f32 %v15759_v39, 0.0  ;;  %8240 = vst [vmem:[#allocation2 + $0x30] sm:$0xff] %v8176_v52  ;;  %v15761_v18 = vld [vmem:[#allocation118_spill] sm:$0xff]  ;;  %v8067_v29 = vmax.f32 %v13812_v20, 0.0  ;;  %v8068_v26 = vmax.f32 %v13816_v12, 0.0  ;;  %v15762_v23 = vld [vmem:[#allocation119_spill] sm:$0xff] }
 0x890   : > { %v8179_v35 = vpack.c.bf16 %v8061_v27, %v8060_v13  ;;  %v8065_v2 = vmax.f32 %v15761_v18, 0.0  ;;  %8241 = vst [vmem:[#allocation2 + $0x38] sm:$0xff] %v8177_v40  ;;  %v8069_v3 = vmax.f32 %v13820_v16, 0.0  ;;  %v8070_v9 = vmax.f32 %v13824_v48, 0.0  ;;  %v15763_v14 = vld [vmem:[#allocation3_spill] sm:$0xff]  ;;  %v15764_v63 = vld [vmem:[#allocation4_spill] sm:$0xff] }
 0x891   : > { %8242 = vst [vmem:[#allocation2 + $0x40] sm:$0xff] %v8178_v44  ;;  %v8180_v4 = vpack.c.bf16 %v8063_v47, %v8062_v25  ;;  %v8182_v56 = vpack.c.bf16 %v8067_v29, %v8066_v45  ;;  %v8071_v52 = vmax.f32 %v15762_v23, 0.0  ;;  %v8072_v13 = vmax.f32 %v15763_v14, 0.0  ;;  %v15765_v25 = vld [vmem:[#allocation5_spill] sm:$0xff]  ;;  %v15766_v47 = vld [vmem:[#allocation6_spill] sm:$0xff] }
 0x892   : > { %8243 = vst [vmem:[#allocation2 + $0x48] sm:$0xff] %v8179_v35  ;;  %v8181_v41 = vpack.c.bf16 %v8065_v2, %v8064_v5  ;;  %v8183_v22 = vpack.c.bf16 %v8069_v3, %v8068_v26  ;;  %v8073_v27 = vmax.f32 %v13836_v1, 0.0  ;;  %v8074_v40 = vmax.f32 %v15764_v63, 0.0  ;;  %v15767_v35 = vld [vmem:[#allocation8_spill] sm:$0xff]  ;;  %v15768_v29 = vld [vmem:[#allocation9_spill] sm:$0xff] }
 0x893   : > { %8244 = vst [vmem:[#allocation2 + $0x50] sm:$0xff] %v8180_v4  ;;  %v8075_v44 = vmax.f32 %v15765_v25, 0.0  ;;  %8246 = vst [vmem:[#allocation2 + $0x60] sm:$0xff] %v8182_v56  ;;  %v8184_v39 = vpack.c.bf16 %v8071_v52, %v8070_v9  ;;  %v8076_v28 = vmax.f32 %v15766_v47, 0.0  ;;  %v8077_v2 = vmax.f32 %v15767_v35, 0.0  ;;  %v15769_v26 = vld [vmem:[#allocation13_spill] sm:$0xff] }
 0x894   : > { %8245 = vst [vmem:[#allocation2 + $0x58] sm:$0xff] %v8181_v41  ;;  %v8078_v5 = vmax.f32 %v13856_v43, 0.0  ;;  %8247 = vst [vmem:[#allocation2 + $0x68] sm:$0xff] %v8183_v22  ;;  %v8185_v18 = vpack.c.bf16 %v8073_v27, %v8072_v13  ;;  %v8079_v4 = vmax.f32 %v15768_v29, 0.0  ;;  %v8080_v3 = vmax.f32 %v15769_v26, 0.0  ;;  %v15770_v41 = vld [vmem:[#allocation14_spill] sm:$0xff] }
 0x895   : > { %v8186_v45 = vpack.c.bf16 %v8075_v44, %v8074_v40  ;;  %8248 = vst [vmem:[#allocation2 + $0x70] sm:$0xff] %v8184_v39  ;;  %v8187_v23 = vpack.c.bf16 %v8077_v2, %v8076_v28  ;;  %v8081_v14 = vmax.f32 %v13868_v51, 0.0  ;;  %v8082_v56 = vmax.f32 %v15770_v41, 0.0  ;;  %v15771_v9 = vld [vmem:[#allocation15_spill] sm:$0xff] }
 0x896   : > { %v8083_v52 = vmax.f32 %v15771_v9, 0.0  ;;  %8249 = vst [vmem:[#allocation2 + $0x78] sm:$0xff] %v8185_v18  ;;  %v8188_v63 = vpack.c.bf16 %v8079_v4, %v8078_v5  ;;  %v8084_v25 = vmax.f32 %v13880_v46, 0.0  ;;  %v8085_v13 = vmax.f32 %v13884_v0, 0.0 }
 0x897   : > { %8250 = vst [vmem:[#allocation2 + $0x80] sm:$0xff] %v8186_v45  ;;  %v8086_v22 = vmax.f32 %v13888_v30, 0.0  ;;  %8251 = vst [vmem:[#allocation2 + $0x88] sm:$0xff] %v8187_v23  ;;  %v8189_v27 = vpack.c.bf16 %v8081_v14, %v8080_v3  ;;  %v8087_v44 = vmax.f32 %v13892_v11, 0.0  ;;  %v8088_v39 = vmax.f32 %v13896_v17, 0.0  ;;  %v15772_v45 = vld [vmem:[#allocation16_spill] sm:$0xff] }
 0x898   : > { %v8190_v40 = vpack.c.bf16 %v8083_v52, %v8082_v56  ;;  %8252 = vst [vmem:[#allocation2 + $0x90] sm:$0xff] %v8188_v63  ;;  %v8191_v47 = vpack.c.bf16 %v8085_v13, %v8084_v25  ;;  %v8089_v28 = vmax.f32 %v13900_v34, 0.0  ;;  %v8090_v35 = vmax.f32 %v13904_v32, 0.0  ;;  %v15773_v14 = vld [vmem:[#allocation17_spill] sm:$0xff]  ;;  %v15774_v52 = vld [vmem:[#allocation18_spill] sm:$0xff]  ;;  %v15775_v25 = vld [vmem:[#allocation19_spill] sm:$0xff] }
 0x899   : > { %v8091_v2 = vmax.f32 %v13908_v42, 0.0  ;;  %8253 = vst [vmem:[#allocation2 + $0x98] sm:$0xff] %v8189_v27  ;;  %v8192_v5 = vpack.c.bf16 %v8087_v44, %v8086_v22  ;;  %v8092_v18 = vmax.f32 %v13912_v24, 0.0  ;;  %v8093_v29 = vmax.f32 %v15772_v45, 0.0 }
 0x89a   : > { %8254 = vst [vmem:[#allocation2 + $0xa0] sm:$0xff] %v8190_v40  ;;  %v8094_v4 = vmax.f32 %v13920_v50, 0.0  ;;  %8255 = vst [vmem:[#allocation2 + $0xa8] sm:$0xff] %v8191_v47  ;;  %v8193_v26 = vpack.c.bf16 %v8089_v28, %v8088_v39  ;;  %v8095_v23 = vmax.f32 %v13924_v6, 0.0  ;;  %v8096_v41 = vmax.f32 %v15773_v14, 0.0  ;;  %v15776_v40 = vld [vmem:[#allocation20_spill] sm:$0xff] }
 0x89b   : > { %v8194_v3 = vpack.c.bf16 %v8091_v2, %v8090_v35  ;;  %8256 = vst [vmem:[#allocation2 + $0xb0] sm:$0xff] %v8192_v5  ;;  %v8195_v56 = vpack.c.bf16 %v8093_v29, %v8092_v18  ;;  %v8097_v9 = vmax.f32 %v13932_v38, 0.0  ;;  %v8098_v63 = vmax.f32 %v15774_v52, 0.0  ;;  %v15777_v35 = vld [vmem:[#allocation21_spill] sm:$0xff]  ;;  %v15778_v5 = vld [vmem:[#allocation22_spill] sm:$0xff] }
 0x89c   : > { %v8099_v13 = vmax.f32 %v15775_v25, 0.0  ;;  %8257 = vst [vmem:[#allocation2 + $0xb8] sm:$0xff] %v8193_v26  ;;  %v8196_v22 = vpack.c.bf16 %v8095_v23, %v8094_v4  ;;  %v8100_v27 = vmax.f32 %v13944_v61, 0.0  ;;  %v8101_v44 = vmax.f32 %v15776_v40, 0.0  ;;  %v15779_v26 = vld [vmem:[#allocation23_spill] sm:$0xff]  ;;  %v15780_v4 = vld [vmem:[#allocation24_spill] sm:$0xff] }
 0x89d   : > { %8258 = vst [vmem:[#allocation2 + $0xc0] sm:$0xff] %v8194_v3  ;;  %v8102_v39 = vmax.f32 %v13952_v57, 0.0  ;;  %8259 = vst [vmem:[#allocation2 + $0xc8] sm:$0xff] %v8195_v56  ;;  %v8197_v47 = vpack.c.bf16 %v8097_v9, %v8096_v41  ;;  %v8103_v2 = vmax.f32 %v15777_v35, 0.0  ;;  %v8104_v18 = vmax.f32 %v15778_v5, 0.0  ;;  %v15781_v52 = vld [vmem:[#allocation25_spill] sm:$0xff] }
 0x89e   : > { %v8198_v28 = vpack.c.bf16 %v8099_v13, %v8098_v63  ;;  %8260 = vst [vmem:[#allocation2 + $0xd0] sm:$0xff] %v8196_v22  ;;  %v8199_v45 = vpack.c.bf16 %v8101_v44, %v8100_v27  ;;  %v8105_v29 = vmax.f32 %v13964_v8, 0.0  ;;  %v8106_v3 = vmax.f32 %v15779_v26, 0.0  ;;  %v15782_v56 = vld [vmem:[#allocation26_spill] sm:$0xff]  ;;  %v15783_v22 = vld [vmem:[#allocation27_spill] sm:$0xff]  ;;  %v15784_v40 = vld [vmem:[#allocation28_spill] sm:$0xff] }
 0x89f   : > { %v8107_v23 = vmax.f32 %v15780_v4, 0.0  ;;  %8261 = vst [vmem:[#allocation2 + $0xd8] sm:$0xff] %v8197_v47  ;;  %v8200_v14 = vpack.c.bf16 %v8103_v2, %v8102_v39  ;;  %v8108_v25 = vmax.f32 %v15781_v52, 0.0  ;;  %v8109_v41 = vmax.f32 %v15782_v56, 0.0  ;;  %v15785_v47 = vld [vmem:[#allocation29_spill] sm:$0xff]  ;;  %v15786_v39 = vld [vmem:[#allocation30_spill] sm:$0xff] }
 0x8a0   : > { %8262 = vst [vmem:[#allocation2 + $0xe0] sm:$0xff] %v8198_v28  ;;  %v8110_v9 = vmax.f32 %v13984_v60, 0.0  ;;  %8263 = vst [vmem:[#allocation2 + $0xe8] sm:$0xff] %v8199_v45  ;;  %v8201_v63 = vpack.c.bf16 %v8105_v29, %v8104_v18  ;;  %v8111_v27 = vmax.f32 %v15783_v22, 0.0  ;;  %v8112_v44 = vmax.f32 %v15784_v40, 0.0  ;;  %v15787_v4 = vld [vmem:[#allocation54_spill] sm:$0xff] }
 0x8a1   : > { %v8202_v13 = vpack.c.bf16 %v8107_v23, %v8106_v3  ;;  %8264 = vst [vmem:[#allocation2 + $0xf0] sm:$0xff] %v8200_v14  ;;  %v8203_v35 = vpack.c.bf16 %v8109_v41, %v8108_v25  ;;  %v8113_v5 = vmax.f32 %v13996_v36, 0.0  ;;  %v8114_v28 = vmax.f32 %v15785_v47, 0.0  ;;  %v15788_v45 = vld [vmem:[#allocation56_spill] sm:$0xff]  ;;  %v15790_v56 = vld [vmem:[#allocation70_spill] sm:$0xff] }
 0x8a2   : > { %v8115_v2 = vmax.f32 %v15786_v39, 0.0  ;;  %8265 = vst [vmem:[#allocation2 + $0xf8] sm:$0xff] %v8201_v63  ;;  %v8204_v26 = vpack.c.bf16 %v8111_v27, %v8110_v9  ;;  %v8116_v52 = vmax.f32 %v15787_v4, 0.0  ;;  %v8117_v18 = vmax.f32 %v15788_v45, 0.0  ;;  %v15789_v14 = vld [vmem:[#allocation60_spill] sm:$0xff]  ;;  %v15792_v9 = vld [vmem:[#allocation102_spill] sm:$0xff] }
 0x8a3   : > { %8266 = vst [vmem:[#allocation2 + $0x100] sm:$0xff] %v8202_v13  ;;  %v8118_v29 = vmax.f32 %v14016_v7, 0.0  ;;  %8267 = vst [vmem:[#allocation2 + $0x108] sm:$0xff] %v8203_v35  ;;  %v8205_v3 = vpack.c.bf16 %v8113_v5, %v8112_v44  ;;  %v8119_v25 = vmax.f32 %v15789_v14, 0.0  ;;  %v8120_v41 = vmax.f32 %v15790_v56, 0.0  ;;  %v15791_v63 = vld [vmem:[#allocation100_spill] sm:$0xff] }
 0x8a4   : > { %v8206_v23 = vpack.c.bf16 %v8115_v2, %v8114_v28  ;;  %8268 = vst [vmem:[#allocation2 + $0x110] sm:$0xff] %v8204_v26  ;;  %v8207_v22 = vpack.c.bf16 %v8117_v18, %v8116_v52  ;;  %v8121_v40 = vmax.f32 %v14028_v62, 0.0  ;;  %v8122_v13 = vmax.f32 %v15791_v63, 0.0  ;;  %v15793_v39 = vld [vmem:[#allocation104_spill] sm:$0xff]  ;;  %v15794_v35 = vld [vmem:[#allocation106_spill] sm:$0xff]  ;;  %v15795_v26 = vld [vmem:[#allocation35_spill] sm:$0xff] }
 0x8a5   : > { %v8123_v27 = vmax.f32 %v15792_v9, 0.0  ;;  %8269 = vst [vmem:[#allocation2 + $0x118] sm:$0xff] %v8205_v3  ;;  %v8208_v47 = vpack.c.bf16 %v8119_v25, %v8118_v29  ;;  %v8124_v4 = vmax.f32 %v15793_v39, 0.0  ;;  %v8125_v44 = vmax.f32 %v15794_v35, 0.0  ;;  %v15796_v45 = vld [vmem:[#allocation41_spill] sm:$0xff]  ;;  %v15797_v3 = vld [vmem:[#allocation47_spill] sm:$0xff] }
 0x8a6   : > { %8270 = vst [vmem:[#allocation2 + $0x120] sm:$0xff] %v8206_v23  ;;  %v8126_v5 = vmax.f32 %v14048_v58, 0.0  ;;  %8271 = vst [vmem:[#allocation2 + $0x128] sm:$0xff] %v8207_v22  ;;  %v8209_v28 = vpack.c.bf16 %v8121_v40, %v8120_v41  ;;  %v8127_v52 = vmax.f32 %v15795_v26, 0.0  ;;  %v8128_v18 = vmax.f32 %v15796_v45, 0.0  ;;  %v15798_v29 = vld [vmem:[#allocation49_spill] sm:$0xff] }
 0x8a7   : > { %v8210_v2 = vpack.c.bf16 %v8123_v27, %v8122_v13  ;;  %8272 = vst [vmem:[#allocation2 + $0x130] sm:$0xff] %v8208_v47  ;;  %v8211_v14 = vpack.c.bf16 %v8125_v44, %v8124_v4  ;;  %v8129_v56 = vmax.f32 %v14060_v10, 0.0  ;;  %v8130_v23 = vmax.f32 %v15797_v3, 0.0  ;;  %v15799_v9 = vld [vmem:[#allocation51_spill] sm:$0xff]  ;;  %v15800_v22 = vld [vmem:[#allocation57_spill] sm:$0xff] }
 0x8a8   : > { %v8131_v25 = vmax.f32 %v15798_v29, 0.0  ;;  %8273 = vst [vmem:[#allocation2 + $0x138] sm:$0xff] %v8209_v28  ;;  %v8212_v63 = vpack.c.bf16 %v8127_v52, %v8126_v5  ;;  %v8132_v39 = vmax.f32 %v15799_v9, 0.0  ;;  %v8133_v41 = vmax.f32 %v15800_v22, 0.0  ;;  %v15801_v47 = vld [vmem:[#allocation63_spill] sm:$0xff]  ;;  %v15803_v29 = vld [vmem:[#allocation73_spill] sm:$0xff] }
 0x8a9   : > { %8274 = vst [vmem:[#allocation2 + $0x140] sm:$0xff] %v8210_v2  ;;  %v8134_v40 = vmax.f32 %v14080_v54, 0.0  ;;  %8275 = vst [vmem:[#allocation2 + $0x148] sm:$0xff] %v8211_v14  ;;  %v8213_v13 = vpack.c.bf16 %v8129_v56, %v8128_v18  ;;  %v8135_v4 = vmax.f32 %v15801_v47, 0.0  ;;  %v15802_v35 = vld [vmem:[#allocation67_spill] sm:$0xff]  ;;  %v8137_v45 = vmax.f32 %v14092_v33, 0.0 }
 0x8aa   : > { %v8214_v27 = vpack.c.bf16 %v8131_v25, %v8130_v23  ;;  %v8136_v44 = vmax.f32 %v15802_v35, 0.0  ;;  %8276 = vst [vmem:[#allocation2 + $0x150] sm:$0xff] %v8212_v63  ;;  %v8215_v26 = vpack.c.bf16 %v8133_v41, %v8132_v39  ;;  %v8138_v28 = vmax.f32 %v14096_v19, 0.0  ;;  %v15804_v9 = vld [vmem:[#allocation83_spill] sm:$0xff]  ;;  %v15805_v22 = vld [vmem:[#allocation89_spill] sm:$0xff] }
 0x8ab   : > { %v8139_v5 = vmax.f32 %v14100_v59, 0.0  ;;  %8277 = vst [vmem:[#allocation2 + $0x158] sm:$0xff] %v8213_v13  ;;  %v8216_v2 = vpack.c.bf16 %v8135_v4, %v8134_v40  ;;  %v8140_v52 = vmax.f32 %v14104_v53, 0.0  ;;  %v8141_v18 = vmax.f32 %v14108_v37, 0.0  ;;  %v15806_v40 = vld [vmem:[#allocation99_spill] sm:$0xff]  ;;  %v15807_v47 = vld [vmem:[#allocation105_spill] sm:$0xff] }
 0x8ac   : > { %8278 = vst [vmem:[#allocation2 + $0x160] sm:$0xff] %v8214_v27  ;;  %v8142_v14 = vmax.f32 %v14112_v21, 0.0  ;;  %8279 = vst [vmem:[#allocation2 + $0x168] sm:$0xff] %v8215_v26  ;;  %v8217_v56 = vpack.c.bf16 %v8137_v45, %v8136_v44  ;;  %v8143_v23 = vmax.f32 %v14116_v31, 0.0  ;;  %v8144_v25 = vmax.f32 %v15803_v29, 0.0  ;;  %v15808_v35 = vld [vmem:[#allocation117_spill] sm:$0xff] }
 0x8ad   : > { %v8218_v3 = vpack.c.bf16 %v8139_v5, %v8138_v28  ;;  %8280 = vst [vmem:[#allocation2 + $0x170] sm:$0xff] %v8216_v2  ;;  %v8219_v63 = vpack.c.bf16 %v8141_v18, %v8140_v52  ;;  %v8145_v39 = vmax.f32 %v15804_v9, 0.0  ;;  %v8146_v41 = vmax.f32 %v15805_v22, 0.0  ;;  %v15809_v26 = vld [vmem:[#allocation120_spill] sm:$0xff]  ;;  %v15810_v2 = vld [vmem:[#allocation7_spill] sm:$0xff]  ;;  %v15811_v18 = vld [vmem:[#allocation10_spill] sm:$0xff] }
 0x8ae   : > { %v8147_v13 = vmax.f32 %v15806_v40, 0.0  ;;  %8281 = vst [vmem:[#allocation2 + $0x178] sm:$0xff] %v8217_v56  ;;  %v8220_v27 = vpack.c.bf16 %v8143_v23, %v8142_v14  ;;  %v8148_v4 = vmax.f32 %v15807_v47, 0.0  ;;  %v8149_v44 = vmax.f32 %v15808_v35, 0.0  ;;  %v15812_v22 = vld [vmem:[#allocation11_spill] sm:$0xff]  ;;  %v15813_v56 = vld [vmem:[#allocation12_spill] sm:$0xff] }
 0x8af   : > { %8282 = vst [vmem:[#allocation2 + $0x180] sm:$0xff] %v8218_v3  ;;  %v8150_v45 = vmax.f32 %v15809_v26, 0.0  ;;  %8283 = vst [vmem:[#allocation2 + $0x188] sm:$0xff] %v8219_v63  ;;  %v8221_v28 = vpack.c.bf16 %v8145_v39, %v8144_v25  ;;  %v8151_v52 = vmax.f32 %v15810_v2, 0.0  ;;  %v8152_v29 = vmax.f32 %v15811_v18, 0.0  ;;  %v15814_v14 = vld [vmem:[#allocation31_spill] sm:$0xff] }
 0x8b0   : > { %v8222_v5 = vpack.c.bf16 %v8147_v13, %v8146_v41  ;;  %8284 = vst [vmem:[#allocation2 + $0x190] sm:$0xff] %v8220_v27  ;;  %v8223_v9 = vpack.c.bf16 %v8149_v44, %v8148_v4  ;;  %v8153_v40 = vmax.f32 %v15812_v22, 0.0  ;;  %v8154_v3 = vmax.f32 %v15813_v56, 0.0  ;;  %v15815_v35 = vld [vmem:[#allocation32_spill] sm:$0xff]  ;;  %v15816_v63 = vld [vmem:[#allocation33_spill] sm:$0xff]  ;;  %v15817_v39 = vld [vmem:[#allocation34_spill] sm:$0xff] }
 0x8b1   : > { %v8155_v23 = vmax.f32 %v15814_v14, 0.0  ;;  %8285 = vst [vmem:[#allocation2 + $0x198] sm:$0xff] %v8221_v28  ;;  %v8224_v47 = vpack.c.bf16 %v8151_v52, %v8150_v45  ;;  %v8156_v26 = vmax.f32 %v15815_v35, 0.0  ;;  %v8157_v25 = vmax.f32 %v15816_v63, 0.0  ;;  %v15818_v4 = vld [vmem:[#allocation36_spill] sm:$0xff]  ;;  %v15819_v22 = vld [vmem:[#allocation38_spill] sm:$0xff] }
 0x8b2   : > { %8286 = vst [vmem:[#allocation2 + $0x1a0] sm:$0xff] %v8222_v5  ;;  %v8158_v41 = vmax.f32 %v15817_v39, 0.0  ;;  %8287 = vst [vmem:[#allocation2 + $0x1a8] sm:$0xff] %v8223_v9  ;;  %v8225_v13 = vpack.c.bf16 %v8153_v40, %v8152_v29  ;;  %v8159_v27 = vmax.f32 %v14180_v55, 0.0  ;;  %v8160_v44 = vmax.f32 %v15818_v4, 0.0  ;;  %v15820_v28 = vld [vmem:[#allocation40_spill] sm:$0xff] }
 0x8b3   : > { %v8226_v2 = vpack.c.bf16 %v8155_v23, %v8154_v3  ;;  %8288 = vst [vmem:[#allocation2 + $0x1b0] sm:$0xff] %v8224_v47  ;;  %v8227_v18 = vpack.c.bf16 %v8157_v25, %v8156_v26  ;;  %v8161_v56 = vmax.f32 %v15819_v22, 0.0  ;;  %v8162_v5 = vmax.f32 %v15820_v28, 0.0  ;;  %v15821_v45 = vld [vmem:[#allocation42_spill] sm:$0xff]  ;;  %v15822_v35 = vld [vmem:[#allocation44_spill] sm:$0xff] }
 0x8b4   : > { %v8163_v52 = vmax.f32 %v15821_v45, 0.0  ;;  %8289 = vst [vmem:[#allocation2 + $0x1b8] sm:$0xff] %v8225_v13  ;;  %v8228_v14 = vpack.c.bf16 %v8159_v27, %v8158_v41  ;;  %v8164_v63 = vmax.f32 %v15822_v35, 0.0  ;;  %v15823_v9 = vld [vmem:[#allocation46_spill] sm:$0xff]  ;;  %v15824_v40 = vld [vmem:[#allocation48_spill] sm:$0xff] }
 0x8b5   : > { %8290 = vst [vmem:[#allocation2 + $0x1c0] sm:$0xff] %v8226_v2  ;;  %v8165_v29 = vmax.f32 %v15823_v9, 0.0  ;;  %v8166_v3 = vmax.f32 %v15824_v40, 0.0  ;;  %8291 = vst [vmem:[#allocation2 + $0x1c8] sm:$0xff] %v8227_v18  ;;  %v8229_v23 = vpack.c.bf16 %v8161_v56, %v8160_v44  ;;  %v15825_v47 = vld [vmem:[#allocation50_spill] sm:$0xff]  ;;  %v15826_v25 = vld [vmem:[#allocation52_spill] sm:$0xff] }
 0x8b6   : > { %v8230_v39 = vpack.c.bf16 %v8163_v52, %v8162_v5  ;;  %v8167_v26 = vmax.f32 %v15825_v47, 0.0  ;;  %v8168_v4 = vmax.f32 %v15826_v25, 0.0  ;;  %8292 = vst [vmem:[#allocation2 + $0x1d0] sm:$0xff] %v8228_v14  ;;  %v15827_v28 = vld [vmem:[#allocation58_spill] sm:$0xff] }
 0x8b7   : > { %v8231_v22 = vpack.c.bf16 %v8165_v29, %v8164_v63  ;;  %v8169_v45 = vmax.f32 %v15827_v28, 0.0  ;;  %8293 = vst [vmem:[#allocation2 + $0x1d8] sm:$0xff] %v8229_v23 }
 0x8b8   : > { %8294 = vst [vmem:[#allocation2 + $0x1e0] sm:$0xff] %v8230_v39  ;;  %v8232_v41 = vpack.c.bf16 %v8167_v26, %v8166_v3 }
 0x8b9   : > { %8295 = vst [vmem:[#allocation2 + $0x1e8] sm:$0xff] %v8231_v22  ;;  %v8233_v13 = vpack.c.bf16 %v8169_v45, %v8168_v4 }
 0x8ba   : > { %8296 = vst [vmem:[#allocation2 + $0x1f0] sm:$0xff] %v8232_v41 }
 0x8bb   : > { %8297 = vst [vmem:[#allocation2 + $0x1f8] sm:$0xff] %v8233_v13 }
 0x8bc PF: > { %p9078_p6 = scmp.ne.s32.totalorder %s10104_s22, 2 }
 0x8bd   : > { %v15828_v2 = vld [vmem:[#allocation55_spill] sm:$0xff] (!%p9078_p6)  ;;  %v15830_v44 = vld [vmem:[#allocation61_spill] sm:$0xff] (!%p9078_p6)  ;;  %8310 = vst [vmem:[%s14873_s6 + $0x40] sm:$0xff] (!%p9078_p6), %v13744_v15  ;;  %v15847_v25 = vld [vmem:[#allocation108_spill] sm:$0xff] (!%p9078_p6) }
 0x8be   : > { %8301 = sbr.rel (%p9078_p6) target bundleno = 2302 (0x8fe), region = 56  ;;  %8302 = vst [vmem:[%s14873_s6] sm:$0xff] (!%p9078_p6), %v15828_v2  ;;  %v15829_v27 = vld [vmem:[#allocation59_spill] sm:$0xff] (!%p9078_p6)  ;;  %8304 = vst [vmem:[%s14873_s6 + $0x10] sm:$0xff] (!%p9078_p6), %v15830_v44  ;;  %v15831_v18 = vld [vmem:[#allocation65_spill] sm:$0xff] (!%p9078_p6) }
 0x8bf   : > { %8303 = vst [vmem:[%s14873_s6 + $0x8] sm:$0xff] (!%p9078_p6), %v15829_v27  ;;  %8305 = vst [vmem:[%s14873_s6 + $0x18] sm:$0xff] (!%p9078_p6), %v15831_v18  ;;  %v15832_v56 = vld [vmem:[#allocation69_spill] sm:$0xff] (!%p9078_p6)  ;;  %v15833_v5 = vld [vmem:[#allocation71_spill] sm:$0xff] (!%p9078_p6) }
 0x8c0   : > { %8306 = vst [vmem:[%s14873_s6 + $0x20] sm:$0xff] (!%p9078_p6), %v15832_v56  ;;  %8307 = vst [vmem:[%s14873_s6 + $0x28] sm:$0xff] (!%p9078_p6), %v15833_v5  ;;  %v15834_v52 = vld [vmem:[#allocation75_spill] sm:$0xff] (!%p9078_p6)  ;;  %v15835_v14 = vld [vmem:[#allocation77_spill] sm:$0xff] (!%p9078_p6) }
 0x8c1   : > { %8308 = vst [vmem:[%s14873_s6 + $0x30] sm:$0xff] (!%p9078_p6), %v15834_v52  ;;  %8309 = vst [vmem:[%s14873_s6 + $0x38] sm:$0xff] (!%p9078_p6), %v15835_v14  ;;  %v15836_v35 = vld [vmem:[#allocation79_spill] sm:$0xff] (!%p9078_p6)  ;;  %v15837_v63 = vld [vmem:[#allocation81_spill] sm:$0xff] (!%p9078_p6) }
 0x8c2   : > { %8311 = vst [vmem:[%s14873_s6 + $0x48] sm:$0xff] (!%p9078_p6), %v15836_v35  ;;  %8312 = vst [vmem:[%s14873_s6 + $0x50] sm:$0xff] (!%p9078_p6), %v15837_v63  ;;  %v15838_v9 = vld [vmem:[#allocation85_spill] sm:$0xff] (!%p9078_p6)  ;;  %v15839_v29 = vld [vmem:[#allocation87_spill] sm:$0xff] (!%p9078_p6) }
 0x8c3   : > { %8313 = vst [vmem:[%s14873_s6 + $0x58] sm:$0xff] (!%p9078_p6), %v15838_v9  ;;  %8314 = vst [vmem:[%s14873_s6 + $0x60] sm:$0xff] (!%p9078_p6), %v15839_v29  ;;  %v15840_v15 = vld [vmem:[#allocation91_spill] sm:$0xff] (!%p9078_p6)  ;;  %v15841_v40 = vld [vmem:[#allocation93_spill] sm:$0xff] (!%p9078_p6) }
 0x8c4   : > { %8315 = vst [vmem:[%s14873_s6 + $0x68] sm:$0xff] (!%p9078_p6), %v15840_v15  ;;  %8316 = vst [vmem:[%s14873_s6 + $0x70] sm:$0xff] (!%p9078_p6), %v15841_v40  ;;  %v15842_v3 = vld [vmem:[#allocation95_spill] sm:$0xff] (!%p9078_p6)  ;;  %v15843_v23 = vld [vmem:[#allocation97_spill] sm:$0xff] (!%p9078_p6) }
 0x8c5   : > { %8317 = vst [vmem:[%s14873_s6 + $0x78] sm:$0xff] %v15842_v3  ;;  %8318 = vst [vmem:[%s14873_s6 + $0x80] sm:$0xff] %v15843_v23  ;;  %v15844_v39 = vld [vmem:[#allocation101_spill] sm:$0xff]  ;;  %v15845_v47 = vld [vmem:[#allocation103_spill] sm:$0xff] }
 0x8c6   : > { %8319 = vst [vmem:[%s14873_s6 + $0x88] sm:$0xff] %v15844_v39  ;;  %8320 = vst [vmem:[%s14873_s6 + $0x90] sm:$0xff] %v15845_v47  ;;  %v15846_v26 = vld [vmem:[#allocation107_spill] sm:$0xff]  ;;  %v15848_v4 = vld [vmem:[#allocation110_spill] sm:$0xff] }
 0x8c7   : > { %8321 = vst [vmem:[%s14873_s6 + $0x98] sm:$0xff] %v15846_v26  ;;  %8322 = vst [vmem:[%s14873_s6 + $0xa0] sm:$0xff] %v15847_v25  ;;  %v15849_v22 = vld [vmem:[#allocation116_spill] sm:$0xff]  ;;  %v15850_v28 = vld [vmem:[#allocation118_spill] sm:$0xff] }
 0x8c8   : > { %8323 = vst [vmem:[%s14873_s6 + $0xa8] sm:$0xff] %v15848_v4  ;;  %8324 = vst [vmem:[%s14873_s6 + $0xb0] sm:$0xff] %v15849_v22  ;;  %v15856_v45 = vld [vmem:[#allocation8_spill] sm:$0xff]  ;;  %v15858_v41 = vld [vmem:[#allocation13_spill] sm:$0xff] }
 0x8c9   : > { %8325 = vst [vmem:[%s14873_s6 + $0xb8] sm:$0xff] %v15850_v28  ;;  %8326 = vst [vmem:[%s14873_s6 + $0xc0] sm:$0xff] %v13808_v49  ;;  %v15851_v49 = vld [vmem:[#allocation119_spill] sm:$0xff]  ;;  %v15859_v13 = vld [vmem:[#allocation14_spill] sm:$0xff] }
 0x8ca   : > { %8327 = vst [vmem:[%s14873_s6 + $0xc8] sm:$0xff] %v13812_v20  ;;  %8328 = vst [vmem:[%s14873_s6 + $0xd0] sm:$0xff] %v13816_v12  ;;  %v15852_v20 = vld [vmem:[#allocation3_spill] sm:$0xff]  ;;  %v15853_v12 = vld [vmem:[#allocation4_spill] sm:$0xff] }
 0x8cb   : > { %8329 = vst [vmem:[%s14873_s6 + $0xd8] sm:$0xff] %v13820_v16  ;;  %8330 = vst [vmem:[%s14873_s6 + $0xe0] sm:$0xff] %v13824_v48  ;;  %v15854_v16 = vld [vmem:[#allocation5_spill] sm:$0xff]  ;;  %v15855_v48 = vld [vmem:[#allocation6_spill] sm:$0xff] }
 0x8cc   : > { %8331 = vst [vmem:[%s14873_s6 + $0xe8] sm:$0xff] %v15851_v49  ;;  %8332 = vst [vmem:[%s14873_s6 + $0xf0] sm:$0xff] %v15852_v20  ;;  %v15879_v2 = vld [vmem:[#allocation70_spill] sm:$0xff]  ;;  %v15880_v27 = vld [vmem:[#allocation100_spill] sm:$0xff] }
 0x8cd   : > { %8333 = vst [vmem:[%s14873_s6 + $0xf8] sm:$0xff] %v13836_v1  ;;  %8334 = vst [vmem:[%s14873_s6 + $0x100] sm:$0xff] %v15853_v12  ;;  %v15857_v1 = vld [vmem:[#allocation9_spill] sm:$0xff]  ;;  %v15882_v44 = vld [vmem:[#allocation104_spill] sm:$0xff] }
 0x8ce   : > { %8335 = vst [vmem:[%s14873_s6 + $0x108] sm:$0xff] %v15854_v16  ;;  %8336 = vst [vmem:[%s14873_s6 + $0x110] sm:$0xff] %v15855_v48  ;;  %v15883_v18 = vld [vmem:[#allocation106_spill] sm:$0xff]  ;;  %v15885_v56 = vld [vmem:[#allocation41_spill] sm:$0xff] }
 0x8cf   : > { %8337 = vst [vmem:[%s14873_s6 + $0x118] sm:$0xff] %v15856_v45  ;;  %8338 = vst [vmem:[%s14873_s6 + $0x120] sm:$0xff] %v13856_v43  ;;  %v15860_v43 = vld [vmem:[#allocation15_spill] sm:$0xff]  ;;  %v15889_v14 = vld [vmem:[#allocation57_spill] sm:$0xff] }
 0x8d0   : > { %8339 = vst [vmem:[%s14873_s6 + $0x128] sm:$0xff] %v15857_v1  ;;  %8340 = vst [vmem:[%s14873_s6 + $0x130] sm:$0xff] %v15858_v41  ;;  %v15886_v5 = vld [vmem:[#allocation47_spill] sm:$0xff]  ;;  %v15900_v63 = vld [vmem:[#allocation10_spill] sm:$0xff] }
 0x8d1   : > { %8341 = vst [vmem:[%s14873_s6 + $0x138] sm:$0xff] %v13868_v51  ;;  %8342 = vst [vmem:[%s14873_s6 + $0x140] sm:$0xff] %v15859_v13  ;;  %v15861_v51 = vld [vmem:[#allocation16_spill] sm:$0xff]  ;;  %v15888_v52 = vld [vmem:[#allocation51_spill] sm:$0xff] }
 0x8d2   : > { %8343 = vst [vmem:[%s14873_s6 + $0x148] sm:$0xff] %v15860_v43  ;;  %8344 = vst [vmem:[%s14873_s6 + $0x150] sm:$0xff] %v13880_v46  ;;  %v15862_v46 = vld [vmem:[#allocation17_spill] sm:$0xff]  ;;  %v15891_v35 = vld [vmem:[#allocation67_spill] sm:$0xff] }
 0x8d3   : > { %8345 = vst [vmem:[%s14873_s6 + $0x158] sm:$0xff] %v13884_v0  ;;  %8346 = vst [vmem:[%s14873_s6 + $0x160] sm:$0xff] %v13888_v30  ;;  %v15863_v0 = vld [vmem:[#allocation18_spill] sm:$0xff]  ;;  %v15864_v30 = vld [vmem:[#allocation19_spill] sm:$0xff] }
 0x8d4   : > { %8347 = vst [vmem:[%s14873_s6 + $0x168] sm:$0xff] %v13892_v11  ;;  %8348 = vst [vmem:[%s14873_s6 + $0x170] sm:$0xff] %v13896_v17  ;;  %v15865_v11 = vld [vmem:[#allocation20_spill] sm:$0xff]  ;;  %v15866_v17 = vld [vmem:[#allocation21_spill] sm:$0xff] }
 0x8d5   : > { %8349 = vst [vmem:[%s14873_s6 + $0x178] sm:$0xff] %v13900_v34  ;;  %8350 = vst [vmem:[%s14873_s6 + $0x180] sm:$0xff] %v13904_v32  ;;  %v15867_v34 = vld [vmem:[#allocation22_spill] sm:$0xff]  ;;  %v15868_v32 = vld [vmem:[#allocation23_spill] sm:$0xff] }
 0x8d6   : > { %8351 = vst [vmem:[%s14873_s6 + $0x188] sm:$0xff] %v13908_v42  ;;  %8352 = vst [vmem:[%s14873_s6 + $0x190] sm:$0xff] %v13912_v24  ;;  %v15869_v42 = vld [vmem:[#allocation24_spill] sm:$0xff]  ;;  %v15870_v24 = vld [vmem:[#allocation25_spill] sm:$0xff] }
 0x8d7   : > { %8353 = vst [vmem:[%s14873_s6 + $0x198] sm:$0xff] %v15861_v51  ;;  %8354 = vst [vmem:[%s14873_s6 + $0x1a0] sm:$0xff] %v13920_v50  ;;  %v15871_v50 = vld [vmem:[#allocation26_spill] sm:$0xff]  ;;  %v15901_v9 = vld [vmem:[#allocation11_spill] sm:$0xff] }
 0x8d8   : > { %8355 = vst [vmem:[%s14873_s6 + $0x1a8] sm:$0xff] %v13924_v6  ;;  %8356 = vst [vmem:[%s14873_s6 + $0x1b0] sm:$0xff] %v15862_v46  ;;  %v15872_v6 = vld [vmem:[#allocation27_spill] sm:$0xff]  ;;  %v15902_v29 = vld [vmem:[#allocation12_spill] sm:$0xff] }
 0x8d9   : > { %8357 = vst [vmem:[%s14873_s6 + $0x1b8] sm:$0xff] %v13932_v38  ;;  %8358 = vst [vmem:[%s14873_s6 + $0x1c0] sm:$0xff] %v15863_v0  ;;  %v15873_v38 = vld [vmem:[#allocation28_spill] sm:$0xff]  ;;  %v15903_v15 = vld [vmem:[#allocation31_spill] sm:$0xff] }
 0x8da   : > { %8359 = vst [vmem:[%s14873_s6 + $0x1c8] sm:$0xff] %v15864_v30  ;;  %8360 = vst [vmem:[%s14873_s6 + $0x1d0] sm:$0xff] %v13944_v61  ;;  %v15874_v61 = vld [vmem:[#allocation29_spill] sm:$0xff]  ;;  %v15904_v40 = vld [vmem:[#allocation32_spill] sm:$0xff] }
 0x8db   : > { %8361 = vst [vmem:[%s14873_s6 + $0x1d8] sm:$0xff] %v15865_v11  ;;  %8362 = vst [vmem:[%s14873_s6 + $0x1e0] sm:$0xff] %v13952_v57  ;;  %v15875_v57 = vld [vmem:[#allocation30_spill] sm:$0xff]  ;;  %v15905_v3 = vld [vmem:[#allocation33_spill] sm:$0xff] }
 0x8dc   : > { %8363 = vst [vmem:[%s14873_s6 + $0x1e8] sm:$0xff] %v15866_v17  ;;  %8364 = vst [vmem:[%s14873_s6 + $0x1f0] sm:$0xff] %v15867_v34  ;;  %v15906_v23 = vld [vmem:[#allocation34_spill] sm:$0xff]  ;;  %v15907_v39 = vld [vmem:[#allocation36_spill] sm:$0xff] }
 0x8dd   : > { %8365 = vst [vmem:[%s14873_s6 + $0x1f8] sm:$0xff] %v13964_v8  ;;  %8366 = vst [vmem:[%s14873_s6 + $0x200] sm:$0xff] %v15868_v32  ;;  %v15876_v8 = vld [vmem:[#allocation54_spill] sm:$0xff]  ;;  %v15909_v26 = vld [vmem:[#allocation40_spill] sm:$0xff] }
 0x8de   : > { %8367 = vst [vmem:[%s14873_s6 + $0x208] sm:$0xff] %v15869_v42  ;;  %8368 = vst [vmem:[%s14873_s6 + $0x210] sm:$0xff] %v15870_v24  ;;  %v15908_v47 = vld [vmem:[#allocation38_spill] sm:$0xff]  ;;  %v15913_v22 = vld [vmem:[#allocation48_spill] sm:$0xff] }
 0x8df   : > { %8369 = vst [vmem:[%s14873_s6 + $0x218] sm:$0xff] %v15871_v50  ;;  %8370 = vst [vmem:[%s14873_s6 + $0x220] sm:$0xff] %v13984_v60  ;;  %v15877_v60 = vld [vmem:[#allocation56_spill] sm:$0xff]  ;;  %v15910_v25 = vld [vmem:[#allocation42_spill] sm:$0xff] }
 0x8e0   : > { %8371 = vst [vmem:[%s14873_s6 + $0x228] sm:$0xff] %v15872_v6  ;;  %8372 = vst [vmem:[%s14873_s6 + $0x230] sm:$0xff] %v15873_v38  ;;  %v15912_v4 = vld [vmem:[#allocation46_spill] sm:$0xff]  ;;  %v15915_v49 = vld [vmem:[#allocation52_spill] sm:$0xff] }
 0x8e1   : > { %8373 = vst [vmem:[%s14873_s6 + $0x238] sm:$0xff] %v13996_v36  ;;  %8374 = vst [vmem:[%s14873_s6 + $0x240] sm:$0xff] %v15874_v61  ;;  %v15878_v36 = vld [vmem:[#allocation60_spill] sm:$0xff]  ;;  %v15914_v28 = vld [vmem:[#allocation50_spill] sm:$0xff] }
 0x8e2   : > { %8375 = vst [vmem:[%s14873_s6 + $0x248] sm:$0xff] %v15875_v57  ;;  %8376 = vst [vmem:[%s14873_s6 + $0x250] sm:$0xff] %v15876_v8  ;;  %v15916_v20 = vld [vmem:[#allocation58_spill] sm:$0xff] }
 0x8e3   : > { %8377 = vst [vmem:[%s14873_s6 + $0x258] sm:$0xff] %v15877_v60  ;;  %8378 = vst [vmem:[%s14873_s6 + $0x260] sm:$0xff] %v14016_v7  ;;  %v15881_v7 = vld [vmem:[#allocation102_spill] sm:$0xff] }
 0x8e4   : > { %8379 = vst [vmem:[%s14873_s6 + $0x268] sm:$0xff] %v15878_v36  ;;  %8380 = vst [vmem:[%s14873_s6 + $0x270] sm:$0xff] %v15879_v2 }
 0x8e5   : > { %8381 = vst [vmem:[%s14873_s6 + $0x278] sm:$0xff] %v14028_v62  ;;  %8382 = vst [vmem:[%s14873_s6 + $0x280] sm:$0xff] %v15880_v27  ;;  %v15884_v62 = vld [vmem:[#allocation35_spill] sm:$0xff] }
 0x8e6   : > { %8383 = vst [vmem:[%s14873_s6 + $0x288] sm:$0xff] %v15881_v7  ;;  %8384 = vst [vmem:[%s14873_s6 + $0x290] sm:$0xff] %v15882_v44 }
 0x8e7   : > { %8385 = vst [vmem:[%s14873_s6 + $0x298] sm:$0xff] %v15883_v18  ;;  %8386 = vst [vmem:[%s14873_s6 + $0x2a0] sm:$0xff] %v14048_v58  ;;  %v15887_v58 = vld [vmem:[#allocation49_spill] sm:$0xff] }
 0x8e8   : > { %8387 = vst [vmem:[%s14873_s6 + $0x2a8] sm:$0xff] %v15884_v62  ;;  %8388 = vst [vmem:[%s14873_s6 + $0x2b0] sm:$0xff] %v15885_v56 }
 0x8e9   : > { %8389 = vst [vmem:[%s14873_s6 + $0x2b8] sm:$0xff] %v14060_v10  ;;  %8390 = vst [vmem:[%s14873_s6 + $0x2c0] sm:$0xff] %v15886_v5  ;;  %v15890_v10 = vld [vmem:[#allocation63_spill] sm:$0xff] }
 0x8ea   : > { %8391 = vst [vmem:[%s14873_s6 + $0x2c8] sm:$0xff] %v15887_v58  ;;  %8392 = vst [vmem:[%s14873_s6 + $0x2d0] sm:$0xff] %v15888_v52 }
 0x8eb   : > { %8393 = vst [vmem:[%s14873_s6 + $0x2d8] sm:$0xff] %v15889_v14  ;;  %8394 = vst [vmem:[%s14873_s6 + $0x2e0] sm:$0xff] %v14080_v54  ;;  %v15892_v54 = vld [vmem:[#allocation73_spill] sm:$0xff] }
 0x8ec   : > { %8395 = vst [vmem:[%s14873_s6 + $0x2e8] sm:$0xff] %v15890_v10  ;;  %8396 = vst [vmem:[%s14873_s6 + $0x2f0] sm:$0xff] %v15891_v35 }
 0x8ed   : > { %8397 = vst [vmem:[%s14873_s6 + $0x2f8] sm:$0xff] %v14092_v33  ;;  %8398 = vst [vmem:[%s14873_s6 + $0x300] sm:$0xff] %v14096_v19  ;;  %v15893_v33 = vld [vmem:[#allocation83_spill] sm:$0xff]  ;;  %v15894_v19 = vld [vmem:[#allocation89_spill] sm:$0xff] }
 0x8ee   : > { %8399 = vst [vmem:[%s14873_s6 + $0x308] sm:$0xff] %v14100_v59  ;;  %8400 = vst [vmem:[%s14873_s6 + $0x310] sm:$0xff] %v14104_v53  ;;  %v15895_v59 = vld [vmem:[#allocation99_spill] sm:$0xff]  ;;  %v15896_v53 = vld [vmem:[#allocation105_spill] sm:$0xff] }
 0x8ef   : > { %8401 = vst [vmem:[%s14873_s6 + $0x318] sm:$0xff] %v14108_v37  ;;  %8402 = vst [vmem:[%s14873_s6 + $0x320] sm:$0xff] %v14112_v21  ;;  %v15897_v37 = vld [vmem:[#allocation117_spill] sm:$0xff]  ;;  %v15898_v21 = vld [vmem:[#allocation120_spill] sm:$0xff] }
 0x8f0   : > { %8403 = vst [vmem:[%s14873_s6 + $0x328] sm:$0xff] %v14116_v31  ;;  %8404 = vst [vmem:[%s14873_s6 + $0x330] sm:$0xff] %v15892_v54  ;;  %v15899_v31 = vld [vmem:[#allocation7_spill] sm:$0xff] }
 0x8f1   : > { %8405 = vst [vmem:[%s14873_s6 + $0x338] sm:$0xff] %v15893_v33  ;;  %8406 = vst [vmem:[%s14873_s6 + $0x340] sm:$0xff] %v15894_v19 }
 0x8f2   : > { %8407 = vst [vmem:[%s14873_s6 + $0x348] sm:$0xff] %v15895_v59  ;;  %8408 = vst [vmem:[%s14873_s6 + $0x350] sm:$0xff] %v15896_v53 }
 0x8f3   : > { %8409 = vst [vmem:[%s14873_s6 + $0x358] sm:$0xff] %v15897_v37  ;;  %8410 = vst [vmem:[%s14873_s6 + $0x360] sm:$0xff] %v15898_v21 }
 0x8f4   : > { %8411 = vst [vmem:[%s14873_s6 + $0x368] sm:$0xff] %v15899_v31  ;;  %8412 = vst [vmem:[%s14873_s6 + $0x370] sm:$0xff] %v15900_v63 }
 0x8f5   : > { %8413 = vst [vmem:[%s14873_s6 + $0x378] sm:$0xff] %v15901_v9  ;;  %8414 = vst [vmem:[%s14873_s6 + $0x380] sm:$0xff] %v15902_v29 }
 0x8f6   : > { %8415 = vst [vmem:[%s14873_s6 + $0x388] sm:$0xff] %v15903_v15  ;;  %8416 = vst [vmem:[%s14873_s6 + $0x390] sm:$0xff] %v15904_v40 }
 0x8f7   : > { %8417 = vst [vmem:[%s14873_s6 + $0x398] sm:$0xff] %v15905_v3  ;;  %8418 = vst [vmem:[%s14873_s6 + $0x3a0] sm:$0xff] %v15906_v23 }
 0x8f8   : > { %8419 = vst [vmem:[%s14873_s6 + $0x3a8] sm:$0xff] %v14180_v55  ;;  %8420 = vst [vmem:[%s14873_s6 + $0x3b0] sm:$0xff] %v15907_v39  ;;  %v15911_v55 = vld [vmem:[#allocation44_spill] sm:$0xff] }
 0x8f9   : > { %8421 = vst [vmem:[%s14873_s6 + $0x3b8] sm:$0xff] %v15908_v47  ;;  %8422 = vst [vmem:[%s14873_s6 + $0x3c0] sm:$0xff] %v15909_v26 }
 0x8fa   : > { %8423 = vst [vmem:[%s14873_s6 + $0x3c8] sm:$0xff] %v15910_v25  ;;  %8424 = vst [vmem:[%s14873_s6 + $0x3d0] sm:$0xff] %v15911_v55 }
 0x8fb   : > { %8425 = vst [vmem:[%s14873_s6 + $0x3d8] sm:$0xff] %v15912_v4  ;;  %8426 = vst [vmem:[%s14873_s6 + $0x3e0] sm:$0xff] %v15913_v22 }
 0x8fc   : > { %8427 = vst [vmem:[%s14873_s6 + $0x3e8] sm:$0xff] %v15914_v28  ;;  %8428 = vst [vmem:[%s14873_s6 + $0x3f0] sm:$0xff] %v15915_v49 }
 0x8fd   : > { %8429 = vst [vmem:[%s14873_s6 + $0x3f8] sm:$0xff] %v15916_v20 }
 0x8fe PF: > { %s16_s21 = sadd.s32 1, %s10060_s21  }
 0x8ff   : > { %p13_p7 = scmp.ge.s32.totalorder %s16_s21, 5  }
 0x901   :  { %15 = sbr.rel (!%p13_p7) target bundleno = 1 (0x1), region = 91 }

</bundles_post_ra>
